<compile_context>
chip_gen: v7x
topology: tpu7x:2x2x1
jax: 0.10.0
libtpu: 0.0.40
codegen_flags: <defaults>
</compile_context>

<pallas_src>
import functools

import jax
import jax.numpy as jnp
from jax import lax
from jax.experimental import pallas as pl
from jax.experimental.pallas import tpu as pltpu

EPS = 1e-5
MAX_TILE_ROWS = 1024   # cap on d_blk*H*W rows per slab; keeps VMEM use modest
CIN_PAD = 8            # pad layer-1 Cin 3 -> 8 (zero channels / zero weights)


# --------------------------------------------------------------------------
# Kernel A: fused conv3d (9 matmuls, K = 3*Cin) + partial BN statistics
# --------------------------------------------------------------------------
def _conv_stats_kernel(x_ref, w_ref, conv_ref, stats_ref, *,
                       d_blk, H, W, C, Cout):
    # x_ref:     (1, d_blk+2, H+2, W+2, C) bf16   halo'd slab (auto-pipelined)
    # w_ref:     (9, 3*C, Cout) bf16              resident weights
    # conv_ref:  (1, d_blk*H*W, Cout) bf16        conv output block
    # stats_ref: (1, 2, Cout) f32                 per-slab sum / sum-of-squares
    x = x_ref[0]                                        # (d_blk+2, H+2, W+2, C)

    # Group the 3 kw taps along the channel (lane) dim once per slab:
    #   xw[d, h, w, kw*C + c] = x[d, h, w + kw, c]
    xw = jnp.concatenate([x[:, :, kw:kw + W, :] for kw in range(3)], axis=-1)

    rows = d_blk * H * W
    acc = jnp.zeros((rows, Cout), jnp.float32)
    for kd in range(3):
        for kh in range(3):
            patch = xw[kd:kd + d_blk, kh:kh + H].reshape(rows, 3 * C)
            acc = acc + jnp.dot(patch, w_ref[3 * kd + kh],
                                preferred_element_type=jnp.float32)

    conv_ref[0] = acc.astype(conv_ref.dtype)
    stats_ref[0] = jnp.concatenate(
        [jnp.sum(acc, axis=0, keepdims=True),
         jnp.sum(acc * acc, axis=0, keepdims=True)], axis=0)


# --------------------------------------------------------------------------
# Kernel B: BN apply (precomputed scale/shift) + ReLU [+ fused 2x2x2 maxpool]
# --------------------------------------------------------------------------
def _bn_relu_pool_kernel(y_ref, scale_ref, shift_ref, o_ref, *,
                         pool, d_blk, H, W, C):
    # y_ref:     (1, d_blk, H, W*C) bf16   lane-dense conv output tile
    # scale_ref: (1, W*C) f32  = tile(gamma * rsqrt(var+eps), W)
    # shift_ref: (1, W*C) f32  = tile(beta - mean*scale, W)
    y = y_ref[0].astype(jnp.float32)                            # (d_blk,H,W*C)
    z = jnp.maximum(y * scale_ref[...] + shift_ref[...], 0.0)
    if pool:
        z = z.reshape(d_blk // 2, 2, H, W * C).max(axis=1)       # pool d
        z = z.reshape(d_blk // 2, H // 2, 2, W * C).max(axis=2)  # pool h
        z = z.reshape(d_blk // 2, H // 2, W // 2, 2 * C)
        z = jnp.maximum(z[..., :C], z[..., C:])                  # pool w
        z = z.reshape(d_blk // 2, (H // 2) * (W // 2), C)
    o_ref[0] = z.astype(o_ref.dtype)


# --------------------------------------------------------------------------
# Per-layer wrapper
# --------------------------------------------------------------------------
def _pick_d_blk(D, H, W, pool, max_rows=MAX_TILE_ROWS):
    cands = [d for d in range(1, D + 1)
             if D % d == 0 and (not pool or d % 2 == 0)]
    good = [d for d in cands if d * H * W <= max_rows]
    return max(good) if good else min(cands)


def conv_bn_relu_layer(x, w_groups, gamma, beta, *, pool):
    # x: (N, D, H, W, Cin) float; w_groups: (9, 3*Cin, Cout) bf16
    N, D, H, W, Cin = x.shape
    Cout = w_groups.shape[-1]
    if pool:
        assert D % 2 == 0 and H % 2 == 0 and W % 2 == 0, "pool needs even dims"
    d_blk = _pick_d_blk(D, H, W, pool)
    d_per = D // d_blk
    slabs = N * d_per
    rows = d_blk * H * W

    # Spatial zero-pad (halo) once per layer; build halo'd depth slabs.
    xp = jnp.pad(x.astype(jnp.bfloat16),
                 ((0, 0), (1, 1), (1, 1), (1, 1), (0, 0)))
    if d_per == 1:
        xs = xp                                       # (N, D+2, H+2, W+2, Cin)
    else:
        idx = (jnp.arange(d_per)[:, None] * d_blk
               + jnp.arange(d_blk + 2)[None, :])      # (d_per, d_blk+2)
        xs = xp[:, idx].reshape(slabs, d_blk + 2, H + 2, W + 2, Cin)

    conv_kernel = functools.partial(
        _conv_stats_kernel, d_blk=d_blk, H=H, W=W, C=Cin, Cout=Cout)

    conv_out, stats = pl.pallas_call(
        conv_kernel,
        out_shape=(jax.ShapeDtypeStruct((slabs, rows, Cout), jnp.bfloat16),
                   jax.ShapeDtypeStruct((slabs, 2, Cout), jnp.float32)),
        grid=(slabs,),
        in_specs=[
            pl.BlockSpec((1, d_blk + 2, H + 2, W + 2, Cin),
                         lambda i: (i, 0, 0, 0, 0)),
            pl.BlockSpec((9, 3 * Cin, Cout), lambda i: (0, 0, 0)),  # resident
        ],
        out_specs=(
            pl.BlockSpec((1, rows, Cout), lambda i: (i, 0, 0)),
            pl.BlockSpec((1, 2, Cout), lambda i: (i, 0, 0)),
        ),
        compiler_params=pltpu.CompilerParams(
            dimension_semantics=("parallel",),        # megacore on v7x
            vmem_limit_bytes=32 * 1024 * 1024),
    )(xs, w_groups)

    # --- tiny cross-slab BN reduction in plain JAX (pass 1 -> scale/shift) ---
    s = jnp.sum(stats, axis=0)                        # (2, Cout) f32
    m_total = float(N * D * H * W)
    mean = s[0] / m_total
    var = s[1] / m_total - mean * mean                # biased, as PyTorch BN
    inv = lax.rsqrt(var + EPS)
    scale_c = gamma.astype(jnp.float32) * inv
    shift_c = beta.astype(jnp.float32) - mean * scale_c
    scale = jnp.tile(scale_c, W)[None, :]             # (1, W*Cout)
    shift = jnp.tile(shift_c, W)[None, :]

    # Free (contiguous) reshape -> lane-dense tiles for kernel B.
    yv = conv_out.reshape(slabs, d_blk, H, W * Cout)

    if pool:
        out_struct = jax.ShapeDtypeStruct(
            (slabs, d_blk // 2, (H // 2) * (W // 2), Cout), jnp.bfloat16)
        out_block = (1, d_blk // 2, (H // 2) * (W // 2), Cout)
    else:
        out_struct = jax.ShapeDtypeStruct(
            (slabs, d_blk, H, W * Cout), jnp.bfloat16)
        out_block = (1, d_blk, H, W * Cout)

    bn_kernel = functools.partial(
        _bn_relu_pool_kernel, pool=pool, d_blk=d_blk, H=H, W=W, C=Cout)

    out = pl.pallas_call(
        bn_kernel,
        out_shape=out_struct,
        grid=(slabs,),
        in_specs=[
            pl.BlockSpec((1, d_blk, H, W * Cout), lambda i: (i, 0, 0, 0)),
            pl.BlockSpec((1, W * Cout), lambda i: (0, 0)),
            pl.BlockSpec((1, W * Cout), lambda i: (0, 0)),
        ],
        out_specs=pl.BlockSpec(out_block, lambda i: (i, 0, 0, 0)),
        compiler_params=pltpu.CompilerParams(
            dimension_semantics=("parallel",),
            vmem_limit_bytes=32 * 1024 * 1024),
    )(yv, scale, shift)

    if pool:
        return out.reshape(N, D // 2, H // 2, W // 2, Cout)
    return out.reshape(N, D, H, W, Cout)


# --------------------------------------------------------------------------
# Parameters (PyTorch layout) + conversion to the kernel's tap-group layout
# --------------------------------------------------------------------------
def convert_conv3d_weight(w_oidhw, cin_pad=None):
    """PyTorch Conv3d weight (Cout, Cin, 3, 3, 3) -> (9, 3*Cin', Cout) bf16."""
    cout, cin = w_oidhw.shape[0], w_oidhw.shape[1]
    if cin_pad is not None and cin_pad > cin:
        w_oidhw = jnp.pad(
            w_oidhw, ((0, 0), (0, cin_pad - cin), (0, 0), (0, 0), (0, 0)))
        cin = cin_pad
    wt = jnp.transpose(w_oidhw, (2, 3, 4, 1, 0))      # (kd, kh, kw, cin, cout)
    return wt.reshape(9, 3 * cin, cout).astype(jnp.bfloat16)


def init_params(key, cins=(3, 64, 64, 64), cout=64):
    # Conv bias omitted on purpose: it is cancelled exactly by the BN mean
    # subtraction, so the forward output is identical.
    params = []
    for cin in cins:
        key, kw = jax.random.split(key)
        bound = 1.0 / (cin * 27) ** 0.5
        w = jax.random.uniform(kw, (cout, cin, 3, 3, 3), jnp.float32,
                               -bound, bound)
        gamma = jnp.ones((cout,), jnp.float32)
        beta = jnp.zeros((cout,), jnp.float32)
        params.append((w, gamma, beta))
    return params


# --------------------------------------------------------------------------
# Forward pass (layer1..layer4), matching FeatureEncoder3D.forward (train mode)
# --------------------------------------------------------------------------
@jax.jit
def feature_encoder_3d(x_ncdhw, params):
    x = jnp.transpose(x_ncdhw, (0, 2, 3, 4, 1))       # NCDHW -> NDHWC
    pools = (True, True, False, False)
    for li, ((w, gamma, beta), pool) in enumerate(zip(params, pools)):
        cin = w.shape[1]
        cin_pad = CIN_PAD if (li == 0 and cin < CIN_PAD) else None
        if cin_pad:
            x = jnp.pad(x, ((0, 0),) * 4 + ((0, cin_pad - cin),))
        wg = convert_conv3d_weight(w, cin_pad)
        x = conv_bn_relu_layer(x, wg, gamma, beta, pool=pool)
    return jnp.transpose(x, (0, 4, 1, 2, 3)).astype(jnp.float32)   # -> NCDHW


# --------------------------------------------------------------------------
# Pure-JAX reference (f32), for a loose numerical self-check
# --------------------------------------------------------------------------
def reference_forward(x_ncdhw, params):
    x = x_ncdhw
    pools = (True, True, False, False)
    for (w, gamma, beta), pool in zip(params, pools):
        y = lax.conv_general_dilated(
            x, w, window_strides=(1, 1, 1),
            padding=((1, 1), (1, 1), (1, 1)),
            dimension_numbers=("NCDHW", "OIDHW", "NCDHW"))
        mean = jnp.mean(y, axis=(0, 2, 3, 4), keepdims=True)
        var = jnp.mean(jnp.square(y - mean), axis=(0, 2, 3, 4), keepdims=True)
        y = (y - mean) * lax.rsqrt(var + EPS)
        y = y * gamma.reshape(1, -1, 1, 1, 1) + beta.reshape(1, -1, 1, 1, 1)
        y = jnp.maximum(y, 0.0)
        if pool:
            n, c, d, h, ww = y.shape
            y = y.reshape(n, c, d // 2, 2, h // 2, 2, ww // 2, 2)
            y = y.max(axis=(3, 5, 7))
        x = y
    return x


if __name__ == "__main__":
    key = jax.random.PRNGKey(0)
    kx, kp = jax.random.split(key)

    # Small NCDHW volume, like the PyTorch module's call convention.
    x = jax.random.normal(kx, (2, 3, 8, 8, 8), dtype=jnp.float32)
    params = init_params(kp)

    out = jax.block_until_ready(feature_encoder_3d(x, params))
    assert out.shape == (2, 64, 2, 2, 2), out.shape
    assert out.dtype == jnp.float32

    ref = jax.block_until_ready(jax.jit(reference_forward)(x, params))
    max_err = float(jnp.max(jnp.abs(out - ref)))
    mean_err = float(jnp.mean(jnp.abs(out - ref)))
    assert max_err < 0.5 and mean_err < 0.05, (max_err, mean_err)

    print("KERNEL_OK")
</pallas_src>

<mosaic_0001>
module attributes {stable_mosaic.version = 11 : i64} {
  func.func @_conv_stats_kernel(%arg0: i32, %arg1: memref<1x10x10x10x8xbf16, #tpu.memory_space<vmem>>, %arg2: memref<9x24x64xbf16, #tpu.memory_space<vmem>>, %arg3: memref<1x512x64xbf16, #tpu.memory_space<vmem>>, %arg4: memref<1x2x64xf32, #tpu.memory_space<vmem>>) attributes {dimension_semantics = [#tpu.dimension_semantics<parallel>], iteration_bounds = array<i64: 2>, scalar_prefetch = 0 : i64, scratch_operands = 0 : i64, tpu.core_type = #tpu.core_type<tc>, window_params = [{transform_indices = @transform_0, window_bounds = array<i64: 1, 10, 10, 10, 8>}, {pipeline_mode = #tpu.pipeline_mode<synchronous>, transform_indices = @transform_1, window_bounds = array<i64: 9, 24, 64>}, {transform_indices = @transform_2, window_bounds = array<i64: 1, 512, 64>}, {transform_indices = @transform_3, window_bounds = array<i64: 1, 2, 64>}]} {
    %c0 = arith.constant 0 : index
    %c0_0 = arith.constant 0 : index
    %c0_1 = arith.constant 0 : index
    %c0_2 = arith.constant 0 : index
    %c0_3 = arith.constant 0 : index
    %0 = vector.load %arg1[%c0, %c0_0, %c0_1, %c0_2, %c0_3] : memref<1x10x10x10x8xbf16, #tpu.memory_space<vmem>>, vector<1x10x10x10x8xbf16>
    %1 = vector.shape_cast %0 : vector<1x10x10x10x8xbf16> to vector<10x10x10x8xbf16>
    %2 = vector.extract_strided_slice %1 {offsets = [0, 0, 0, 0], sizes = [10, 10, 8, 8], strides = [1, 1, 1, 1]} : vector<10x10x10x8xbf16> to vector<10x10x8x8xbf16>
    %3 = vector.extract_strided_slice %1 {offsets = [0, 0, 1, 0], sizes = [10, 10, 8, 8], strides = [1, 1, 1, 1]} : vector<10x10x10x8xbf16> to vector<10x10x8x8xbf16>
    %4 = vector.extract_strided_slice %1 {offsets = [0, 0, 2, 0], sizes = [10, 10, 8, 8], strides = [1, 1, 1, 1]} : vector<10x10x10x8xbf16> to vector<10x10x8x8xbf16>
    %5 = tpu.concatenate %2, %3, %4 in 3 : vector<10x10x8x8xbf16>, vector<10x10x8x8xbf16>, vector<10x10x8x8xbf16> -> vector<10x10x8x24xbf16>
    %cst = arith.constant 0.000000e+00 : f32
    %6 = vector.broadcast %cst : f32 to vector<512x64xf32>
    %7 = vector.extract_strided_slice %5 {offsets = [0, 0, 0, 0], sizes = [8, 8, 8, 24], strides = [1, 1, 1, 1]} : vector<10x10x8x24xbf16> to vector<8x8x8x24xbf16>
    %8 = vector.shape_cast %7 : vector<8x8x8x24xbf16> to vector<512x24xbf16>
    %c0_4 = arith.constant 0 : index
    %c0_5 = arith.constant 0 : index
    %c0_6 = arith.constant 0 : index
    %9 = vector.load %arg2[%c0_4, %c0_5, %c0_6] : memref<9x24x64xbf16, #tpu.memory_space<vmem>>, vector<1x24x64xbf16>
    %10 = vector.shape_cast %9 : vector<1x24x64xbf16> to vector<24x64xbf16>
    %cst_7 = arith.constant dense<0.000000e+00> : vector<512x64xf32>
    %11 = tpu.matmul %8, %10, %cst_7 {dimension_numbers = #tpu.dot_dimension_numbers<[1], [0], [0], [1], [0, 0, 1, 1], [], []>} : vector<512x24xbf16>, vector<24x64xbf16>, vector<512x64xf32> -> vector<512x64xf32>
    %12 = arith.addf %6, %11 : vector<512x64xf32>
    %13 = vector.extract_strided_slice %5 {offsets = [0, 1, 0, 0], sizes = [8, 8, 8, 24], strides = [1, 1, 1, 1]} : vector<10x10x8x24xbf16> to vector<8x8x8x24xbf16>
    %14 = vector.shape_cast %13 : vector<8x8x8x24xbf16> to vector<512x24xbf16>
    %c1 = arith.constant 1 : index
    %c0_8 = arith.constant 0 : index
    %c0_9 = arith.constant 0 : index
    %15 = vector.load %arg2[%c1, %c0_8, %c0_9] : memref<9x24x64xbf16, #tpu.memory_space<vmem>>, vector<1x24x64xbf16>
    %16 = vector.shape_cast %15 : vector<1x24x64xbf16> to vector<24x64xbf16>
    %cst_10 = arith.constant dense<0.000000e+00> : vector<512x64xf32>
    %17 = tpu.matmul %14, %16, %cst_10 {dimension_numbers = #tpu.dot_dimension_numbers<[1], [0], [0], [1], [0, 0, 1, 1], [], []>} : vector<512x24xbf16>, vector<24x64xbf16>, vector<512x64xf32> -> vector<512x64xf32>
    %18 = arith.addf %12, %17 : vector<512x64xf32>
    %19 = vector.extract_strided_slice %5 {offsets = [0, 2, 0, 0], sizes = [8, 8, 8, 24], strides = [1, 1, 1, 1]} : vector<10x10x8x24xbf16> to vector<8x8x8x24xbf16>
    %20 = vector.shape_cast %19 : vector<8x8x8x24xbf16> to vector<512x24xbf16>
    %c2 = arith.constant 2 : index
    %c0_11 = arith.constant 0 : index
    %c0_12 = arith.constant 0 : index
    %21 = vector.load %arg2[%c2, %c0_11, %c0_12] : memref<9x24x64xbf16, #tpu.memory_space<vmem>>, vector<1x24x64xbf16>
    %22 = vector.shape_cast %21 : vector<1x24x64xbf16> to vector<24x64xbf16>
    %cst_13 = arith.constant dense<0.000000e+00> : vector<512x64xf32>
    %23 = tpu.matmul %20, %22, %cst_13 {dimension_numbers = #tpu.dot_dimension_numbers<[1], [0], [0], [1], [0, 0, 1, 1], [], []>} : vector<512x24xbf16>, vector<24x64xbf16>, vector<512x64xf32> -> vector<512x64xf32>
    %24 = arith.addf %18, %23 : vector<512x64xf32>
    %25 = vector.extract_strided_slice %5 {offsets = [1, 0, 0, 0], sizes = [8, 8, 8, 24], strides = [1, 1, 1, 1]} : vector<10x10x8x24xbf16> to vector<8x8x8x24xbf16>
    %26 = vector.shape_cast %25 : vector<8x8x8x24xbf16> to vector<512x24xbf16>
    %c3 = arith.constant 3 : index
    %c0_14 = arith.constant 0 : index
    %c0_15 = arith.constant 0 : index
    %27 = vector.load %arg2[%c3, %c0_14, %c0_15] : memref<9x24x64xbf16, #tpu.memory_space<vmem>>, vector<1x24x64xbf16>
    %28 = vector.shape_cast %27 : vector<1x24x64xbf16> to vector<24x64xbf16>
    %cst_16 = arith.constant dense<0.000000e+00> : vector<512x64xf32>
    %29 = tpu.matmul %26, %28, %cst_16 {dimension_numbers = #tpu.dot_dimension_numbers<[1], [0], [0], [1], [0, 0, 1, 1], [], []>} : vector<512x24xbf16>, vector<24x64xbf16>, vector<512x64xf32> -> vector<512x64xf32>
    %30 = arith.addf %24, %29 : vector<512x64xf32>
    %31 = vector.extract_strided_slice %5 {offsets = [1, 1, 0, 0], sizes = [8, 8, 8, 24], strides = [1, 1, 1, 1]} : vector<10x10x8x24xbf16> to vector<8x8x8x24xbf16>
    %32 = vector.shape_cast %31 : vector<8x8x8x24xbf16> to vector<512x24xbf16>
    %c4 = arith.constant 4 : index
    %c0_17 = arith.constant 0 : index
    %c0_18 = arith.constant 0 : index
    %33 = vector.load %arg2[%c4, %c0_17, %c0_18] : memref<9x24x64xbf16, #tpu.memory_space<vmem>>, vector<1x24x64xbf16>
    %34 = vector.shape_cast %33 : vector<1x24x64xbf16> to vector<24x64xbf16>
    %cst_19 = arith.constant dense<0.000000e+00> : vector<512x64xf32>
    %35 = tpu.matmul %32, %34, %cst_19 {dimension_numbers = #tpu.dot_dimension_numbers<[1], [0], [0], [1], [0, 0, 1, 1], [], []>} : vector<512x24xbf16>, vector<24x64xbf16>, vector<512x64xf32> -> vector<512x64xf32>
    %36 = arith.addf %30, %35 : vector<512x64xf32>
    %37 = vector.extract_strided_slice %5 {offsets = [1, 2, 0, 0], sizes = [8, 8, 8, 24], strides = [1, 1, 1, 1]} : vector<10x10x8x24xbf16> to vector<8x8x8x24xbf16>
    %38 = vector.shape_cast %37 : vector<8x8x8x24xbf16> to vector<512x24xbf16>
    %c5 = arith.constant 5 : index
    %c0_20 = arith.constant 0 : index
    %c0_21 = arith.constant 0 : index
    %39 = vector.load %arg2[%c5, %c0_20, %c0_21] : memref<9x24x64xbf16, #tpu.memory_space<vmem>>, vector<1x24x64xbf16>
    %40 = vector.shape_cast %39 : vector<1x24x64xbf16> to vector<24x64xbf16>
    %cst_22 = arith.constant dense<0.000000e+00> : vector<512x64xf32>
    %41 = tpu.matmul %38, %40, %cst_22 {dimension_numbers = #tpu.dot_dimension_numbers<[1], [0], [0], [1], [0, 0, 1, 1], [], []>} : vector<512x24xbf16>, vector<24x64xbf16>, vector<512x64xf32> -> vector<512x64xf32>
    %42 = arith.addf %36, %41 : vector<512x64xf32>
    %43 = vector.extract_strided_slice %5 {offsets = [2, 0, 0, 0], sizes = [8, 8, 8, 24], strides = [1, 1, 1, 1]} : vector<10x10x8x24xbf16> to vector<8x8x8x24xbf16>
    %44 = vector.shape_cast %43 : vector<8x8x8x24xbf16> to vector<512x24xbf16>
    %c6 = arith.constant 6 : index
    %c0_23 = arith.constant 0 : index
    %c0_24 = arith.constant 0 : index
    %45 = vector.load %arg2[%c6, %c0_23, %c0_24] : memref<9x24x64xbf16, #tpu.memory_space<vmem>>, vector<1x24x64xbf16>
    %46 = vector.shape_cast %45 : vector<1x24x64xbf16> to vector<24x64xbf16>
    %cst_25 = arith.constant dense<0.000000e+00> : vector<512x64xf32>
    %47 = tpu.matmul %44, %46, %cst_25 {dimension_numbers = #tpu.dot_dimension_numbers<[1], [0], [0], [1], [0, 0, 1, 1], [], []>} : vector<512x24xbf16>, vector<24x64xbf16>, vector<512x64xf32> -> vector<512x64xf32>
    %48 = arith.addf %42, %47 : vector<512x64xf32>
    %49 = vector.extract_strided_slice %5 {offsets = [2, 1, 0, 0], sizes = [8, 8, 8, 24], strides = [1, 1, 1, 1]} : vector<10x10x8x24xbf16> to vector<8x8x8x24xbf16>
    %50 = vector.shape_cast %49 : vector<8x8x8x24xbf16> to vector<512x24xbf16>
    %c7 = arith.constant 7 : index
    %c0_26 = arith.constant 0 : index
    %c0_27 = arith.constant 0 : index
    %51 = vector.load %arg2[%c7, %c0_26, %c0_27] : memref<9x24x64xbf16, #tpu.memory_space<vmem>>, vector<1x24x64xbf16>
    %52 = vector.shape_cast %51 : vector<1x24x64xbf16> to vector<24x64xbf16>
    %cst_28 = arith.constant dense<0.000000e+00> : vector<512x64xf32>
    %53 = tpu.matmul %50, %52, %cst_28 {dimension_numbers = #tpu.dot_dimension_numbers<[1], [0], [0], [1], [0, 0, 1, 1], [], []>} : vector<512x24xbf16>, vector<24x64xbf16>, vector<512x64xf32> -> vector<512x64xf32>
    %54 = arith.addf %48, %53 : vector<512x64xf32>
    %55 = vector.extract_strided_slice %5 {offsets = [2, 2, 0, 0], sizes = [8, 8, 8, 24], strides = [1, 1, 1, 1]} : vector<10x10x8x24xbf16> to vector<8x8x8x24xbf16>
    %56 = vector.shape_cast %55 : vector<8x8x8x24xbf16> to vector<512x24xbf16>
    %c8 = arith.constant 8 : index
    %c0_29 = arith.constant 0 : index
    %c0_30 = arith.constant 0 : index
    %57 = vector.load %arg2[%c8, %c0_29, %c0_30] : memref<9x24x64xbf16, #tpu.memory_space<vmem>>, vector<1x24x64xbf16>
    %58 = vector.shape_cast %57 : vector<1x24x64xbf16> to vector<24x64xbf16>
    %cst_31 = arith.constant dense<0.000000e+00> : vector<512x64xf32>
    %59 = tpu.matmul %56, %58, %cst_31 {dimension_numbers = #tpu.dot_dimension_numbers<[1], [0], [0], [1], [0, 0, 1, 1], [], []>} : vector<512x24xbf16>, vector<24x64xbf16>, vector<512x64xf32> -> vector<512x64xf32>
    %60 = arith.addf %54, %59 : vector<512x64xf32>
    %61 = arith.truncf %60 : vector<512x64xf32> to vector<512x64xbf16>
    %c0_32 = arith.constant 0 : index
    %c0_33 = arith.constant 0 : index
    %c0_34 = arith.constant 0 : index
    %62 = vector.load %arg3[%c0_32, %c0_33, %c0_34] : memref<1x512x64xbf16, #tpu.memory_space<vmem>>, vector<1x512x64xbf16>
    %63 = vector.shape_cast %62 : vector<1x512x64xbf16> to vector<512x64xbf16>
    %64 = vector.shape_cast %61 : vector<512x64xbf16> to vector<1x512x64xbf16>
    tpu.vector_store %arg3[%c0_32, %c0_33, %c0_34], %64 {strides = array<i32>} : memref<1x512x64xbf16, #tpu.memory_space<vmem>>, vector<1x512x64xbf16>,
    %cst_35 = arith.constant dense<0.000000e+00> : vector<64xf32>
    %65 = vector.multi_reduction <add>, %60, %cst_35 [0] : vector<512x64xf32> to vector<64xf32>
    %66 = vector.shape_cast %65 : vector<64xf32> to vector<1x64xf32>
    %67 = arith.mulf %60, %60 : vector<512x64xf32>
    %cst_36 = arith.constant dense<0.000000e+00> : vector<64xf32>
    %68 = vector.multi_reduction <add>, %67, %cst_36 [0] : vector<512x64xf32> to vector<64xf32>
    %69 = vector.shape_cast %68 : vector<64xf32> to vector<1x64xf32>
    %70 = tpu.concatenate %66, %69 in 0 : vector<1x64xf32>, vector<1x64xf32> -> vector<2x64xf32>
    %c0_37 = arith.constant 0 : index
    %c0_38 = arith.constant 0 : index
    %c0_39 = arith.constant 0 : index
    %71 = vector.load %arg4[%c0_37, %c0_38, %c0_39] : memref<1x2x64xf32, #tpu.memory_space<vmem>>, vector<1x2x64xf32>
    %72 = vector.shape_cast %71 : vector<1x2x64xf32> to vector<2x64xf32>
    %73 = vector.shape_cast %70 : vector<2x64xf32> to vector<1x2x64xf32>
    tpu.vector_store %arg4[%c0_37, %c0_38, %c0_39], %73 {strides = array<i32>} : memref<1x2x64xf32, #tpu.memory_space<vmem>>, vector<1x2x64xf32>,
    return
  }
  func.func @transform_0(%arg0: i32) -> (i32, i32, i32, i32, i32) {
    %c0_i32 = arith.constant 0 : i32
    %c0_i32_0 = arith.constant 0 : i32
    %c0_i32_1 = arith.constant 0 : i32
    %c0_i32_2 = arith.constant 0 : i32
    %c0_i32_3 = arith.constant 0 : i32
    return %arg0, %c0_i32, %c0_i32_0, %c0_i32_1, %c0_i32_2 : i32, i32, i32, i32, i32
  }
  func.func @transform_1(%arg0: i32) -> (i32, i32, i32) {
    %c0_i32 = arith.constant 0 : i32
    %c0_i32_0 = arith.constant 0 : i32
    %c0_i32_1 = arith.constant 0 : i32
    %c0_i32_2 = arith.constant 0 : i32
    return %c0_i32, %c0_i32_0, %c0_i32_1 : i32, i32, i32
  }
  func.func @transform_2(%arg0: i32) -> (i32, i32, i32) {
    %c0_i32 = arith.constant 0 : i32
    %c0_i32_0 = arith.constant 0 : i32
    %c0_i32_1 = arith.constant 0 : i32
    return %arg0, %c0_i32, %c0_i32_0 : i32, i32, i32
  }
  func.func @transform_3(%arg0: i32) -> (i32, i32, i32) {
    %c0_i32 = arith.constant 0 : i32
    %c0_i32_0 = arith.constant 0 : i32
    %c0_i32_1 = arith.constant 0 : i32
    return %arg0, %c0_i32, %c0_i32_0 : i32, i32, i32
  }
}

module attributes {stable_mosaic.version = 11 : i64} {
  func.func @_bn_relu_pool_kernel(%arg0: i32, %arg1: memref<1x8x8x512xbf16, #tpu.memory_space<vmem>>, %arg2: memref<1x512xf32, #tpu.memory_space<vmem>>, %arg3: memref<1x512xf32, #tpu.memory_space<vmem>>, %arg4: memref<1x4x16x64xbf16, #tpu.memory_space<vmem>>) attributes {dimension_semantics = [#tpu.dimension_semantics<parallel>], iteration_bounds = array<i64: 2>, scalar_prefetch = 0 : i64, scratch_operands = 0 : i64, tpu.core_type = #tpu.core_type<tc>, window_params = [{transform_indices = @transform_0, window_bounds = array<i64: 1, 8, 8, 512>}, {pipeline_mode = #tpu.pipeline_mode<synchronous>, transform_indices = @transform_1, window_bounds = array<i64: 1, 512>}, {pipeline_mode = #tpu.pipeline_mode<synchronous>, transform_indices = @transform_2, window_bounds = array<i64: 1, 512>}, {transform_indices = @transform_3, window_bounds = array<i64: 1, 4, 16, 64>}]} {
    %c0 = arith.constant 0 : index
    %c0_0 = arith.constant 0 : index
    %c0_1 = arith.constant 0 : index
    %c0_2 = arith.constant 0 : index
    %0 = vector.load %arg1[%c0, %c0_0, %c0_1, %c0_2] : memref<1x8x8x512xbf16, #tpu.memory_space<vmem>>, vector<1x8x8x512xbf16>
    %1 = vector.shape_cast %0 : vector<1x8x8x512xbf16> to vector<8x8x512xbf16>
    %2 = arith.extf %1 : vector<8x8x512xbf16> to vector<8x8x512xf32>
    %c0_3 = arith.constant 0 : index
    %c0_4 = arith.constant 0 : index
    %3 = vector.load %arg2[%c0_3, %c0_4] : memref<1x512xf32, #tpu.memory_space<vmem>>, vector<1x512xf32>
    %4 = vector.shape_cast %3 : vector<1x512xf32> to vector<1x1x512xf32>
    %5 = vector.broadcast %4 : vector<1x1x512xf32> to vector<8x8x512xf32>
    %6 = arith.mulf %2, %5 : vector<8x8x512xf32>
    %c0_5 = arith.constant 0 : index
    %c0_6 = arith.constant 0 : index
    %7 = vector.load %arg3[%c0_5, %c0_6] : memref<1x512xf32, #tpu.memory_space<vmem>>, vector<1x512xf32>
    %8 = vector.shape_cast %7 : vector<1x512xf32> to vector<1x1x512xf32>
    %9 = vector.broadcast %8 : vector<1x1x512xf32> to vector<8x8x512xf32>
    %10 = arith.addf %6, %9 : vector<8x8x512xf32>
    %cst = arith.constant 0.000000e+00 : f32
    %11 = vector.broadcast %cst : f32 to vector<8x8x512xf32>
    %12 = arith.maximumf %10, %11 : vector<8x8x512xf32>
    %13 = vector.shape_cast %12 : vector<8x8x512xf32> to vector<4x2x8x512xf32>
    %cst_7 = arith.constant dense<0xFF800000> : vector<4x8x512xf32>
    %14 = vector.multi_reduction <maximumf>, %13, %cst_7 [1] : vector<4x2x8x512xf32> to vector<4x8x512xf32>
    %15 = vector.shape_cast %14 : vector<4x8x512xf32> to vector<4x4x2x512xf32>
    %cst_8 = arith.constant dense<0xFF800000> : vector<4x4x512xf32>
    %16 = vector.multi_reduction <maximumf>, %15, %cst_8 [2] : vector<4x4x2x512xf32> to vector<4x4x512xf32>
    %17 = vector.shape_cast %16 : vector<4x4x512xf32> to vector<4x4x4x128xf32>
    %18 = vector.extract_strided_slice %17 {offsets = [0, 0, 0, 0], sizes = [4, 4, 4, 64], strides = [1, 1, 1, 1]} : vector<4x4x4x128xf32> to vector<4x4x4x64xf32>
    %19 = vector.extract_strided_slice %17 {offsets = [0, 0, 0, 64], sizes = [4, 4, 4, 64], strides = [1, 1, 1, 1]} : vector<4x4x4x128xf32> to vector<4x4x4x64xf32>
    %20 = arith.maximumf %18, %19 : vector<4x4x4x64xf32>
    %21 = vector.shape_cast %20 : vector<4x4x4x64xf32> to vector<4x16x64xf32>
    %22 = arith.truncf %21 : vector<4x16x64xf32> to vector<4x16x64xbf16>
    %c0_9 = arith.constant 0 : index
    %c0_10 = arith.constant 0 : index
    %c0_11 = arith.constant 0 : index
    %c0_12 = arith.constant 0 : index
    %23 = vector.load %arg4[%c0_9, %c0_10, %c0_11, %c0_12] : memref<1x4x16x64xbf16, #tpu.memory_space<vmem>>, vector<1x4x16x64xbf16>
    %24 = vector.shape_cast %23 : vector<1x4x16x64xbf16> to vector<4x16x64xbf16>
    %25 = vector.shape_cast %22 : vector<4x16x64xbf16> to vector<1x4x16x64xbf16>
    tpu.vector_store %arg4[%c0_9, %c0_10, %c0_11, %c0_12], %25 {strides = array<i32>} : memref<1x4x16x64xbf16, #tpu.memory_space<vmem>>, vector<1x4x16x64xbf16>,
    return
  }
  func.func @transform_0(%arg0: i32) -> (i32, i32, i32, i32) {
    %c0_i32 = arith.constant 0 : i32
    %c0_i32_0 = arith.constant 0 : i32
    %c0_i32_1 = arith.constant 0 : i32
    %c0_i32_2 = arith.constant 0 : i32
    return %arg0, %c0_i32, %c0_i32_0, %c0_i32_1 : i32, i32, i32, i32
  }
  func.func @transform_1(%arg0: i32) -> (i32, i32) {
    %c0_i32 = arith.constant 0 : i32
    %c0_i32_0 = arith.constant 0 : i32
    %c0_i32_1 = arith.constant 0 : i32
    return %c0_i32, %c0_i32_0 : i32, i32
  }
  func.func @transform_2(%arg0: i32) -> (i32, i32) {
    %c0_i32 = arith.constant 0 : i32
    %c0_i32_0 = arith.constant 0 : i32
    %c0_i32_1 = arith.constant 0 : i32
    return %c0_i32, %c0_i32_0 : i32, i32
  }
  func.func @transform_3(%arg0: i32) -> (i32, i32, i32, i32) {
    %c0_i32 = arith.constant 0 : i32
    %c0_i32_0 = arith.constant 0 : i32
    %c0_i32_1 = arith.constant 0 : i32
    %c0_i32_2 = arith.constant 0 : i32
    return %arg0, %c0_i32, %c0_i32_0, %c0_i32_1 : i32, i32, i32, i32
  }
}

module attributes {stable_mosaic.version = 11 : i64} {
  func.func @_conv_stats_kernel(%arg0: i32, %arg1: memref<1x6x6x6x64xbf16, #tpu.memory_space<vmem>>, %arg2: memref<9x192x64xbf16, #tpu.memory_space<vmem>>, %arg3: memref<1x64x64xbf16, #tpu.memory_space<vmem>>, %arg4: memref<1x2x64xf32, #tpu.memory_space<vmem>>) attributes {dimension_semantics = [#tpu.dimension_semantics<parallel>], iteration_bounds = array<i64: 2>, scalar_prefetch = 0 : i64, scratch_operands = 0 : i64, tpu.core_type = #tpu.core_type<tc>, window_params = [{transform_indices = @transform_0, window_bounds = array<i64: 1, 6, 6, 6, 64>}, {pipeline_mode = #tpu.pipeline_mode<synchronous>, transform_indices = @transform_1, window_bounds = array<i64: 9, 192, 64>}, {transform_indices = @transform_2, window_bounds = array<i64: 1, 64, 64>}, {transform_indices = @transform_3, window_bounds = array<i64: 1, 2, 64>}]} {
    %c0 = arith.constant 0 : index
    %c0_0 = arith.constant 0 : index
    %c0_1 = arith.constant 0 : index
    %c0_2 = arith.constant 0 : index
    %c0_3 = arith.constant 0 : index
    %0 = vector.load %arg1[%c0, %c0_0, %c0_1, %c0_2, %c0_3] : memref<1x6x6x6x64xbf16, #tpu.memory_space<vmem>>, vector<1x6x6x6x64xbf16>
    %1 = vector.shape_cast %0 : vector<1x6x6x6x64xbf16> to vector<6x6x6x64xbf16>
    %2 = vector.extract_strided_slice %1 {offsets = [0, 0, 0, 0], sizes = [6, 6, 4, 64], strides = [1, 1, 1, 1]} : vector<6x6x6x64xbf16> to vector<6x6x4x64xbf16>
    %3 = vector.extract_strided_slice %1 {offsets = [0, 0, 1, 0], sizes = [6, 6, 4, 64], strides = [1, 1, 1, 1]} : vector<6x6x6x64xbf16> to vector<6x6x4x64xbf16>
    %4 = vector.extract_strided_slice %1 {offsets = [0, 0, 2, 0], sizes = [6, 6, 4, 64], strides = [1, 1, 1, 1]} : vector<6x6x6x64xbf16> to vector<6x6x4x64xbf16>
    %5 = tpu.concatenate %2, %3, %4 in 3 : vector<6x6x4x64xbf16>, vector<6x6x4x64xbf16>, vector<6x6x4x64xbf16> -> vector<6x6x4x192xbf16>
    %cst = arith.constant 0.000000e+00 : f32
    %6 = vector.broadcast %cst : f32 to vector<64x64xf32>
    %7 = vector.extract_strided_slice %5 {offsets = [0, 0, 0, 0], sizes = [4, 4, 4, 192], strides = [1, 1, 1, 1]} : vector<6x6x4x192xbf16> to vector<4x4x4x192xbf16>
    %8 = vector.shape_cast %7 : vector<4x4x4x192xbf16> to vector<64x192xbf16>
    %c0_4 = arith.constant 0 : index
    %c0_5 = arith.constant 0 : index
    %c0_6 = arith.constant 0 : index
    %9 = vector.load %arg2[%c0_4, %c0_5, %c0_6] : memref<9x192x64xbf16, #tpu.memory_space<vmem>>, vector<1x192x64xbf16>
    %10 = vector.shape_cast %9 : vector<1x192x64xbf16> to vector<192x64xbf16>
    %cst_7 = arith.constant dense<0.000000e+00> : vector<64x64xf32>
    %11 = tpu.matmul %8, %10, %cst_7 {dimension_numbers = #tpu.dot_dimension_numbers<[1], [0], [0], [1], [0, 0, 1, 1], [], []>} : vector<64x192xbf16>, vector<192x64xbf16>, vector<64x64xf32> -> vector<64x64xf32>
    %12 = arith.addf %6, %11 : vector<64x64xf32>
    %13 = vector.extract_strided_slice %5 {offsets = [0, 1, 0, 0], sizes = [4, 4, 4, 192], strides = [1, 1, 1, 1]} : vector<6x6x4x192xbf16> to vector<4x4x4x192xbf16>
    %14 = vector.shape_cast %13 : vector<4x4x4x192xbf16> to vector<64x192xbf16>
    %c1 = arith.constant 1 : index
    %c0_8 = arith.constant 0 : index
    %c0_9 = arith.constant 0 : index
    %15 = vector.load %arg2[%c1, %c0_8, %c0_9] : memref<9x192x64xbf16, #tpu.memory_space<vmem>>, vector<1x192x64xbf16>
    %16 = vector.shape_cast %15 : vector<1x192x64xbf16> to vector<192x64xbf16>
    %cst_10 = arith.constant dense<0.000000e+00> : vector<64x64xf32>
    %17 = tpu.matmul %14, %16, %cst_10 {dimension_numbers = #tpu.dot_dimension_numbers<[1], [0], [0], [1], [0, 0, 1, 1], [], []>} : vector<64x192xbf16>, vector<192x64xbf16>, vector<64x64xf32> -> vector<64x64xf32>
    %18 = arith.addf %12, %17 : vector<64x64xf32>
    %19 = vector.extract_strided_slice %5 {offsets = [0, 2, 0, 0], sizes = [4, 4, 4, 192], strides = [1, 1, 1, 1]} : vector<6x6x4x192xbf16> to vector<4x4x4x192xbf16>
    %20 = vector.shape_cast %19 : vector<4x4x4x192xbf16> to vector<64x192xbf16>
    %c2 = arith.constant 2 : index
    %c0_11 = arith.constant 0 : index
    %c0_12 = arith.constant 0 : index
    %21 = vector.load %arg2[%c2, %c0_11, %c0_12] : memref<9x192x64xbf16, #tpu.memory_space<vmem>>, vector<1x192x64xbf16>
    %22 = vector.shape_cast %21 : vector<1x192x64xbf16> to vector<192x64xbf16>
    %cst_13 = arith.constant dense<0.000000e+00> : vector<64x64xf32>
    %23 = tpu.matmul %20, %22, %cst_13 {dimension_numbers = #tpu.dot_dimension_numbers<[1], [0], [0], [1], [0, 0, 1, 1], [], []>} : vector<64x192xbf16>, vector<192x64xbf16>, vector<64x64xf32> -> vector<64x64xf32>
    %24 = arith.addf %18, %23 : vector<64x64xf32>
    %25 = vector.extract_strided_slice %5 {offsets = [1, 0, 0, 0], sizes = [4, 4, 4, 192], strides = [1, 1, 1, 1]} : vector<6x6x4x192xbf16> to vector<4x4x4x192xbf16>
    %26 = vector.shape_cast %25 : vector<4x4x4x192xbf16> to vector<64x192xbf16>
    %c3 = arith.constant 3 : index
    %c0_14 = arith.constant 0 : index
    %c0_15 = arith.constant 0 : index
    %27 = vector.load %arg2[%c3, %c0_14, %c0_15] : memref<9x192x64xbf16, #tpu.memory_space<vmem>>, vector<1x192x64xbf16>
    %28 = vector.shape_cast %27 : vector<1x192x64xbf16> to vector<192x64xbf16>
    %cst_16 = arith.constant dense<0.000000e+00> : vector<64x64xf32>
    %29 = tpu.matmul %26, %28, %cst_16 {dimension_numbers = #tpu.dot_dimension_numbers<[1], [0], [0], [1], [0, 0, 1, 1], [], []>} : vector<64x192xbf16>, vector<192x64xbf16>, vector<64x64xf32> -> vector<64x64xf32>
    %30 = arith.addf %24, %29 : vector<64x64xf32>
    %31 = vector.extract_strided_slice %5 {offsets = [1, 1, 0, 0], sizes = [4, 4, 4, 192], strides = [1, 1, 1, 1]} : vector<6x6x4x192xbf16> to vector<4x4x4x192xbf16>
    %32 = vector.shape_cast %31 : vector<4x4x4x192xbf16> to vector<64x192xbf16>
    %c4 = arith.constant 4 : index
    %c0_17 = arith.constant 0 : index
    %c0_18 = arith.constant 0 : index
    %33 = vector.load %arg2[%c4, %c0_17, %c0_18] : memref<9x192x64xbf16, #tpu.memory_space<vmem>>, vector<1x192x64xbf16>
    %34 = vector.shape_cast %33 : vector<1x192x64xbf16> to vector<192x64xbf16>
    %cst_19 = arith.constant dense<0.000000e+00> : vector<64x64xf32>
    %35 = tpu.matmul %32, %34, %cst_19 {dimension_numbers = #tpu.dot_dimension_numbers<[1], [0], [0], [1], [0, 0, 1, 1], [], []>} : vector<64x192xbf16>, vector<192x64xbf16>, vector<64x64xf32> -> vector<64x64xf32>
    %36 = arith.addf %30, %35 : vector<64x64xf32>
    %37 = vector.extract_strided_slice %5 {offsets = [1, 2, 0, 0], sizes = [4, 4, 4, 192], strides = [1, 1, 1, 1]} : vector<6x6x4x192xbf16> to vector<4x4x4x192xbf16>
    %38 = vector.shape_cast %37 : vector<4x4x4x192xbf16> to vector<64x192xbf16>
    %c5 = arith.constant 5 : index
    %c0_20 = arith.constant 0 : index
    %c0_21 = arith.constant 0 : index
    %39 = vector.load %arg2[%c5, %c0_20, %c0_21] : memref<9x192x64xbf16, #tpu.memory_space<vmem>>, vector<1x192x64xbf16>
    %40 = vector.shape_cast %39 : vector<1x192x64xbf16> to vector<192x64xbf16>
    %cst_22 = arith.constant dense<0.000000e+00> : vector<64x64xf32>
    %41 = tpu.matmul %38, %40, %cst_22 {dimension_numbers = #tpu.dot_dimension_numbers<[1], [0], [0], [1], [0, 0, 1, 1], [], []>} : vector<64x192xbf16>, vector<192x64xbf16>, vector<64x64xf32> -> vector<64x64xf32>
    %42 = arith.addf %36, %41 : vector<64x64xf32>
    %43 = vector.extract_strided_slice %5 {offsets = [2, 0, 0, 0], sizes = [4, 4, 4, 192], strides = [1, 1, 1, 1]} : vector<6x6x4x192xbf16> to vector<4x4x4x192xbf16>
    %44 = vector.shape_cast %43 : vector<4x4x4x192xbf16> to vector<64x192xbf16>
    %c6 = arith.constant 6 : index
    %c0_23 = arith.constant 0 : index
    %c0_24 = arith.constant 0 : index
    %45 = vector.load %arg2[%c6, %c0_23, %c0_24] : memref<9x192x64xbf16, #tpu.memory_space<vmem>>, vector<1x192x64xbf16>
    %46 = vector.shape_cast %45 : vector<1x192x64xbf16> to vector<192x64xbf16>
    %cst_25 = arith.constant dense<0.000000e+00> : vector<64x64xf32>
    %47 = tpu.matmul %44, %46, %cst_25 {dimension_numbers = #tpu.dot_dimension_numbers<[1], [0], [0], [1], [0, 0, 1, 1], [], []>} : vector<64x192xbf16>, vector<192x64xbf16>, vector<64x64xf32> -> vector<64x64xf32>
    %48 = arith.addf %42, %47 : vector<64x64xf32>
    %49 = vector.extract_strided_slice %5 {offsets = [2, 1, 0, 0], sizes = [4, 4, 4, 192], strides = [1, 1, 1, 1]} : vector<6x6x4x192xbf16> to vector<4x4x4x192xbf16>
    %50 = vector.shape_cast %49 : vector<4x4x4x192xbf16> to vector<64x192xbf16>
    %c7 = arith.constant 7 : index
    %c0_26 = arith.constant 0 : index
    %c0_27 = arith.constant 0 : index
    %51 = vector.load %arg2[%c7, %c0_26, %c0_27] : memref<9x192x64xbf16, #tpu.memory_space<vmem>>, vector<1x192x64xbf16>
    %52 = vector.shape_cast %51 : vector<1x192x64xbf16> to vector<192x64xbf16>
    %cst_28 = arith.constant dense<0.000000e+00> : vector<64x64xf32>
    %53 = tpu.matmul %50, %52, %cst_28 {dimension_numbers = #tpu.dot_dimension_numbers<[1], [0], [0], [1], [0, 0, 1, 1], [], []>} : vector<64x192xbf16>, vector<192x64xbf16>, vector<64x64xf32> -> vector<64x64xf32>
    %54 = arith.addf %48, %53 : vector<64x64xf32>
    %55 = vector.extract_strided_slice %5 {offsets = [2, 2, 0, 0], sizes = [4, 4, 4, 192], strides = [1, 1, 1, 1]} : vector<6x6x4x192xbf16> to vector<4x4x4x192xbf16>
    %56 = vector.shape_cast %55 : vector<4x4x4x192xbf16> to vector<64x192xbf16>
    %c8 = arith.constant 8 : index
    %c0_29 = arith.constant 0 : index
    %c0_30 = arith.constant 0 : index
    %57 = vector.load %arg2[%c8, %c0_29, %c0_30] : memref<9x192x64xbf16, #tpu.memory_space<vmem>>, vector<1x192x64xbf16>
    %58 = vector.shape_cast %57 : vector<1x192x64xbf16> to vector<192x64xbf16>
    %cst_31 = arith.constant dense<0.000000e+00> : vector<64x64xf32>
    %59 = tpu.matmul %56, %58, %cst_31 {dimension_numbers = #tpu.dot_dimension_numbers<[1], [0], [0], [1], [0, 0, 1, 1], [], []>} : vector<64x192xbf16>, vector<192x64xbf16>, vector<64x64xf32> -> vector<64x64xf32>
    %60 = arith.addf %54, %59 : vector<64x64xf32>
    %61 = arith.truncf %60 : vector<64x64xf32> to vector<64x64xbf16>
    %c0_32 = arith.constant 0 : index
    %c0_33 = arith.constant 0 : index
    %c0_34 = arith.constant 0 : index
    %62 = vector.load %arg3[%c0_32, %c0_33, %c0_34] : memref<1x64x64xbf16, #tpu.memory_space<vmem>>, vector<1x64x64xbf16>
    %63 = vector.shape_cast %62 : vector<1x64x64xbf16> to vector<64x64xbf16>
    %64 = vector.shape_cast %61 : vector<64x64xbf16> to vector<1x64x64xbf16>
    tpu.vector_store %arg3[%c0_32, %c0_33, %c0_34], %64 {strides = array<i32>} : memref<1x64x64xbf16, #tpu.memory_space<vmem>>, vector<1x64x64xbf16>,
    %cst_35 = arith.constant dense<0.000000e+00> : vector<64xf32>
    %65 = vector.multi_reduction <add>, %60, %cst_35 [0] : vector<64x64xf32> to vector<64xf32>
    %66 = vector.shape_cast %65 : vector<64xf32> to vector<1x64xf32>
    %67 = arith.mulf %60, %60 : vector<64x64xf32>
    %cst_36 = arith.constant dense<0.000000e+00> : vector<64xf32>
    %68 = vector.multi_reduction <add>, %67, %cst_36 [0] : vector<64x64xf32> to vector<64xf32>
    %69 = vector.shape_cast %68 : vector<64xf32> to vector<1x64xf32>
    %70 = tpu.concatenate %66, %69 in 0 : vector<1x64xf32>, vector<1x64xf32> -> vector<2x64xf32>
    %c0_37 = arith.constant 0 : index
    %c0_38 = arith.constant 0 : index
    %c0_39 = arith.constant 0 : index
    %71 = vector.load %arg4[%c0_37, %c0_38, %c0_39] : memref<1x2x64xf32, #tpu.memory_space<vmem>>, vector<1x2x64xf32>
    %72 = vector.shape_cast %71 : vector<1x2x64xf32> to vector<2x64xf32>
    %73 = vector.shape_cast %70 : vector<2x64xf32> to vector<1x2x64xf32>
    tpu.vector_store %arg4[%c0_37, %c0_38, %c0_39], %73 {strides = array<i32>} : memref<1x2x64xf32, #tpu.memory_space<vmem>>, vector<1x2x64xf32>,
    return
  }
  func.func @transform_0(%arg0: i32) -> (i32, i32, i32, i32, i32) {
    %c0_i32 = arith.constant 0 : i32
    %c0_i32_0 = arith.constant 0 : i32
    %c0_i32_1 = arith.constant 0 : i32
    %c0_i32_2 = arith.constant 0 : i32
    %c0_i32_3 = arith.constant 0 : i32
    return %arg0, %c0_i32, %c0_i32_0, %c0_i32_1, %c0_i32_2 : i32, i32, i32, i32, i32
  }
  func.func @transform_1(%arg0: i32) -> (i32, i32, i32) {
    %c0_i32 = arith.constant 0 : i32
    %c0_i32_0 = arith.constant 0 : i32
    %c0_i32_1 = arith.constant 0 : i32
    %c0_i32_2 = arith.constant 0 : i32
    return %c0_i32, %c0_i32_0, %c0_i32_1 : i32, i32, i32
  }
  func.func @transform_2(%arg0: i32) -> (i32, i32, i32) {
    %c0_i32 = arith.constant 0 : i32
    %c0_i32_0 = arith.constant 0 : i32
    %c0_i32_1 = arith.constant 0 : i32
    return %arg0, %c0_i32, %c0_i32_0 : i32, i32, i32
  }
  func.func @transform_3(%arg0: i32) -> (i32, i32, i32) {
    %c0_i32 = arith.constant 0 : i32
    %c0_i32_0 = arith.constant 0 : i32
    %c0_i32_1 = arith.constant 0 : i32
    return %arg0, %c0_i32, %c0_i32_0 : i32, i32, i32
  }
}

module attributes {stable_mosaic.version = 11 : i64} {
  func.func @_bn_relu_pool_kernel(%arg0: i32, %arg1: memref<1x4x4x256xbf16, #tpu.memory_space<vmem>>, %arg2: memref<1x256xf32, #tpu.memory_space<vmem>>, %arg3: memref<1x256xf32, #tpu.memory_space<vmem>>, %arg4: memref<1x2x4x64xbf16, #tpu.memory_space<vmem>>) attributes {dimension_semantics = [#tpu.dimension_semantics<parallel>], iteration_bounds = array<i64: 2>, scalar_prefetch = 0 : i64, scratch_operands = 0 : i64, tpu.core_type = #tpu.core_type<tc>, window_params = [{transform_indices = @transform_0, window_bounds = array<i64: 1, 4, 4, 256>}, {pipeline_mode = #tpu.pipeline_mode<synchronous>, transform_indices = @transform_1, window_bounds = array<i64: 1, 256>}, {pipeline_mode = #tpu.pipeline_mode<synchronous>, transform_indices = @transform_2, window_bounds = array<i64: 1, 256>}, {transform_indices = @transform_3, window_bounds = array<i64: 1, 2, 4, 64>}]} {
    %c0 = arith.constant 0 : index
    %c0_0 = arith.constant 0 : index
    %c0_1 = arith.constant 0 : index
    %c0_2 = arith.constant 0 : index
    %0 = vector.load %arg1[%c0, %c0_0, %c0_1, %c0_2] : memref<1x4x4x256xbf16, #tpu.memory_space<vmem>>, vector<1x4x4x256xbf16>
    %1 = vector.shape_cast %0 : vector<1x4x4x256xbf16> to vector<4x4x256xbf16>
    %2 = arith.extf %1 : vector<4x4x256xbf16> to vector<4x4x256xf32>
    %c0_3 = arith.constant 0 : index
    %c0_4 = arith.constant 0 : index
    %3 = vector.load %arg2[%c0_3, %c0_4] : memref<1x256xf32, #tpu.memory_space<vmem>>, vector<1x256xf32>
    %4 = vector.shape_cast %3 : vector<1x256xf32> to vector<1x1x256xf32>
    %5 = vector.broadcast %4 : vector<1x1x256xf32> to vector<4x4x256xf32>
    %6 = arith.mulf %2, %5 : vector<4x4x256xf32>
    %c0_5 = arith.constant 0 : index
    %c0_6 = arith.constant 0 : index
    %7 = vector.load %arg3[%c0_5, %c0_6] : memref<1x256xf32, #tpu.memory_space<vmem>>, vector<1x256xf32>
    %8 = vector.shape_cast %7 : vector<1x256xf32> to vector<1x1x256xf32>
    %9 = vector.broadcast %8 : vector<1x1x256xf32> to vector<4x4x256xf32>
    %10 = arith.addf %6, %9 : vector<4x4x256xf32>
    %cst = arith.constant 0.000000e+00 : f32
    %11 = vector.broadcast %cst : f32 to vector<4x4x256xf32>
    %12 = arith.maximumf %10, %11 : vector<4x4x256xf32>
    %13 = vector.shape_cast %12 : vector<4x4x256xf32> to vector<2x2x4x256xf32>
    %cst_7 = arith.constant dense<0xFF800000> : vector<2x4x256xf32>
    %14 = vector.multi_reduction <maximumf>, %13, %cst_7 [1] : vector<2x2x4x256xf32> to vector<2x4x256xf32>
    %15 = vector.shape_cast %14 : vector<2x4x256xf32> to vector<2x2x2x256xf32>
    %cst_8 = arith.constant dense<0xFF800000> : vector<2x2x256xf32>
    %16 = vector.multi_reduction <maximumf>, %15, %cst_8 [2] : vector<2x2x2x256xf32> to vector<2x2x256xf32>
    %17 = vector.shape_cast %16 : vector<2x2x256xf32> to vector<2x2x2x128xf32>
    %18 = vector.extract_strided_slice %17 {offsets = [0, 0, 0, 0], sizes = [2, 2, 2, 64], strides = [1, 1, 1, 1]} : vector<2x2x2x128xf32> to vector<2x2x2x64xf32>
    %19 = vector.extract_strided_slice %17 {offsets = [0, 0, 0, 64], sizes = [2, 2, 2, 64], strides = [1, 1, 1, 1]} : vector<2x2x2x128xf32> to vector<2x2x2x64xf32>
    %20 = arith.maximumf %18, %19 : vector<2x2x2x64xf32>
    %21 = vector.shape_cast %20 : vector<2x2x2x64xf32> to vector<2x4x64xf32>
    %22 = arith.truncf %21 : vector<2x4x64xf32> to vector<2x4x64xbf16>
    %c0_9 = arith.constant 0 : index
    %c0_10 = arith.constant 0 : index
    %c0_11 = arith.constant 0 : index
    %c0_12 = arith.constant 0 : index
    %23 = vector.load %arg4[%c0_9, %c0_10, %c0_11, %c0_12] : memref<1x2x4x64xbf16, #tpu.memory_space<vmem>>, vector<1x2x4x64xbf16>
    %24 = vector.shape_cast %23 : vector<1x2x4x64xbf16> to vector<2x4x64xbf16>
    %25 = vector.shape_cast %22 : vector<2x4x64xbf16> to vector<1x2x4x64xbf16>
    tpu.vector_store %arg4[%c0_9, %c0_10, %c0_11, %c0_12], %25 {strides = array<i32>} : memref<1x2x4x64xbf16, #tpu.memory_space<vmem>>, vector<1x2x4x64xbf16>,
    return
  }
  func.func @transform_0(%arg0: i32) -> (i32, i32, i32, i32) {
    %c0_i32 = arith.constant 0 : i32
    %c0_i32_0 = arith.constant 0 : i32
    %c0_i32_1 = arith.constant 0 : i32
    %c0_i32_2 = arith.constant 0 : i32
    return %arg0, %c0_i32, %c0_i32_0, %c0_i32_1 : i32, i32, i32, i32
  }
  func.func @transform_1(%arg0: i32) -> (i32, i32) {
    %c0_i32 = arith.constant 0 : i32
    %c0_i32_0 = arith.constant 0 : i32
    %c0_i32_1 = arith.constant 0 : i32
    return %c0_i32, %c0_i32_0 : i32, i32
  }
  func.func @transform_2(%arg0: i32) -> (i32, i32) {
    %c0_i32 = arith.constant 0 : i32
    %c0_i32_0 = arith.constant 0 : i32
    %c0_i32_1 = arith.constant 0 : i32
    return %c0_i32, %c0_i32_0 : i32, i32
  }
  func.func @transform_3(%arg0: i32) -> (i32, i32, i32, i32) {
    %c0_i32 = arith.constant 0 : i32
    %c0_i32_0 = arith.constant 0 : i32
    %c0_i32_1 = arith.constant 0 : i32
    %c0_i32_2 = arith.constant 0 : i32
    return %arg0, %c0_i32, %c0_i32_0, %c0_i32_1 : i32, i32, i32, i32
  }
}

module attributes {stable_mosaic.version = 11 : i64} {
  func.func @_conv_stats_kernel(%arg0: i32, %arg1: memref<1x4x4x4x64xbf16, #tpu.memory_space<vmem>>, %arg2: memref<9x192x64xbf16, #tpu.memory_space<vmem>>, %arg3: memref<1x8x64xbf16, #tpu.memory_space<vmem>>, %arg4: memref<1x2x64xf32, #tpu.memory_space<vmem>>) attributes {dimension_semantics = [#tpu.dimension_semantics<parallel>], iteration_bounds = array<i64: 2>, scalar_prefetch = 0 : i64, scratch_operands = 0 : i64, tpu.core_type = #tpu.core_type<tc>, window_params = [{transform_indices = @transform_0, window_bounds = array<i64: 1, 4, 4, 4, 64>}, {pipeline_mode = #tpu.pipeline_mode<synchronous>, transform_indices = @transform_1, window_bounds = array<i64: 9, 192, 64>}, {transform_indices = @transform_2, window_bounds = array<i64: 1, 8, 64>}, {transform_indices = @transform_3, window_bounds = array<i64: 1, 2, 64>}]} {
    %c0 = arith.constant 0 : index
    %c0_0 = arith.constant 0 : index
    %c0_1 = arith.constant 0 : index
    %c0_2 = arith.constant 0 : index
    %c0_3 = arith.constant 0 : index
    %0 = vector.load %arg1[%c0, %c0_0, %c0_1, %c0_2, %c0_3] : memref<1x4x4x4x64xbf16, #tpu.memory_space<vmem>>, vector<1x4x4x4x64xbf16>
    %1 = vector.shape_cast %0 : vector<1x4x4x4x64xbf16> to vector<4x4x4x64xbf16>
    %2 = vector.extract_strided_slice %1 {offsets = [0, 0, 0, 0], sizes = [4, 4, 2, 64], strides = [1, 1, 1, 1]} : vector<4x4x4x64xbf16> to vector<4x4x2x64xbf16>
    %3 = vector.extract_strided_slice %1 {offsets = [0, 0, 1, 0], sizes = [4, 4, 2, 64], strides = [1, 1, 1, 1]} : vector<4x4x4x64xbf16> to vector<4x4x2x64xbf16>
    %4 = vector.extract_strided_slice %1 {offsets = [0, 0, 2, 0], sizes = [4, 4, 2, 64], strides = [1, 1, 1, 1]} : vector<4x4x4x64xbf16> to vector<4x4x2x64xbf16>
    %5 = tpu.concatenate %2, %3, %4 in 3 : vector<4x4x2x64xbf16>, vector<4x4x2x64xbf16>, vector<4x4x2x64xbf16> -> vector<4x4x2x192xbf16>
    %cst = arith.constant 0.000000e+00 : f32
    %6 = vector.broadcast %cst : f32 to vector<8x64xf32>
    %7 = vector.extract_strided_slice %5 {offsets = [0, 0, 0, 0], sizes = [2, 2, 2, 192], strides = [1, 1, 1, 1]} : vector<4x4x2x192xbf16> to vector<2x2x2x192xbf16>
    %8 = vector.shape_cast %7 : vector<2x2x2x192xbf16> to vector<8x192xbf16>
    %c0_4 = arith.constant 0 : index
    %c0_5 = arith.constant 0 : index
    %c0_6 = arith.constant 0 : index
    %9 = vector.load %arg2[%c0_4, %c0_5, %c0_6] : memref<9x192x64xbf16, #tpu.memory_space<vmem>>, vector<1x192x64xbf16>
    %10 = vector.shape_cast %9 : vector<1x192x64xbf16> to vector<192x64xbf16>
    %cst_7 = arith.constant dense<0.000000e+00> : vector<8x64xf32>
    %11 = tpu.matmul %8, %10, %cst_7 {dimension_numbers = #tpu.dot_dimension_numbers<[1], [0], [0], [1], [0, 0, 1, 1], [], []>} : vector<8x192xbf16>, vector<192x64xbf16>, vector<8x64xf32> -> vector<8x64xf32>
    %12 = arith.addf %6, %11 : vector<8x64xf32>
    %13 = vector.extract_strided_slice %5 {offsets = [0, 1, 0, 0], sizes = [2, 2, 2, 192], strides = [1, 1, 1, 1]} : vector<4x4x2x192xbf16> to vector<2x2x2x192xbf16>
    %14 = vector.shape_cast %13 : vector<2x2x2x192xbf16> to vector<8x192xbf16>
    %c1 = arith.constant 1 : index
    %c0_8 = arith.constant 0 : index
    %c0_9 = arith.constant 0 : index
    %15 = vector.load %arg2[%c1, %c0_8, %c0_9] : memref<9x192x64xbf16, #tpu.memory_space<vmem>>, vector<1x192x64xbf16>
    %16 = vector.shape_cast %15 : vector<1x192x64xbf16> to vector<192x64xbf16>
    %cst_10 = arith.constant dense<0.000000e+00> : vector<8x64xf32>
    %17 = tpu.matmul %14, %16, %cst_10 {dimension_numbers = #tpu.dot_dimension_numbers<[1], [0], [0], [1], [0, 0, 1, 1], [], []>} : vector<8x192xbf16>, vector<192x64xbf16>, vector<8x64xf32> -> vector<8x64xf32>
    %18 = arith.addf %12, %17 : vector<8x64xf32>
    %19 = vector.extract_strided_slice %5 {offsets = [0, 2, 0, 0], sizes = [2, 2, 2, 192], strides = [1, 1, 1, 1]} : vector<4x4x2x192xbf16> to vector<2x2x2x192xbf16>
    %20 = vector.shape_cast %19 : vector<2x2x2x192xbf16> to vector<8x192xbf16>
    %c2 = arith.constant 2 : index
    %c0_11 = arith.constant 0 : index
    %c0_12 = arith.constant 0 : index
    %21 = vector.load %arg2[%c2, %c0_11, %c0_12] : memref<9x192x64xbf16, #tpu.memory_space<vmem>>, vector<1x192x64xbf16>
    %22 = vector.shape_cast %21 : vector<1x192x64xbf16> to vector<192x64xbf16>
    %cst_13 = arith.constant dense<0.000000e+00> : vector<8x64xf32>
    %23 = tpu.matmul %20, %22, %cst_13 {dimension_numbers = #tpu.dot_dimension_numbers<[1], [0], [0], [1], [0, 0, 1, 1], [], []>} : vector<8x192xbf16>, vector<192x64xbf16>, vector<8x64xf32> -> vector<8x64xf32>
    %24 = arith.addf %18, %23 : vector<8x64xf32>
    %25 = vector.extract_strided_slice %5 {offsets = [1, 0, 0, 0], sizes = [2, 2, 2, 192], strides = [1, 1, 1, 1]} : vector<4x4x2x192xbf16> to vector<2x2x2x192xbf16>
    %26 = vector.shape_cast %25 : vector<2x2x2x192xbf16> to vector<8x192xbf16>
    %c3 = arith.constant 3 : index
    %c0_14 = arith.constant 0 : index
    %c0_15 = arith.constant 0 : index
    %27 = vector.load %arg2[%c3, %c0_14, %c0_15] : memref<9x192x64xbf16, #tpu.memory_space<vmem>>, vector<1x192x64xbf16>
    %28 = vector.shape_cast %27 : vector<1x192x64xbf16> to vector<192x64xbf16>
    %cst_16 = arith.constant dense<0.000000e+00> : vector<8x64xf32>
    %29 = tpu.matmul %26, %28, %cst_16 {dimension_numbers = #tpu.dot_dimension_numbers<[1], [0], [0], [1], [0, 0, 1, 1], [], []>} : vector<8x192xbf16>, vector<192x64xbf16>, vector<8x64xf32> -> vector<8x64xf32>
    %30 = arith.addf %24, %29 : vector<8x64xf32>
    %31 = vector.extract_strided_slice %5 {offsets = [1, 1, 0, 0], sizes = [2, 2, 2, 192], strides = [1, 1, 1, 1]} : vector<4x4x2x192xbf16> to vector<2x2x2x192xbf16>
    %32 = vector.shape_cast %31 : vector<2x2x2x192xbf16> to vector<8x192xbf16>
    %c4 = arith.constant 4 : index
    %c0_17 = arith.constant 0 : index
    %c0_18 = arith.constant 0 : index
    %33 = vector.load %arg2[%c4, %c0_17, %c0_18] : memref<9x192x64xbf16, #tpu.memory_space<vmem>>, vector<1x192x64xbf16>
    %34 = vector.shape_cast %33 : vector<1x192x64xbf16> to vector<192x64xbf16>
    %cst_19 = arith.constant dense<0.000000e+00> : vector<8x64xf32>
    %35 = tpu.matmul %32, %34, %cst_19 {dimension_numbers = #tpu.dot_dimension_numbers<[1], [0], [0], [1], [0, 0, 1, 1], [], []>} : vector<8x192xbf16>, vector<192x64xbf16>, vector<8x64xf32> -> vector<8x64xf32>
    %36 = arith.addf %30, %35 : vector<8x64xf32>
    %37 = vector.extract_strided_slice %5 {offsets = [1, 2, 0, 0], sizes = [2, 2, 2, 192], strides = [1, 1, 1, 1]} : vector<4x4x2x192xbf16> to vector<2x2x2x192xbf16>
    %38 = vector.shape_cast %37 : vector<2x2x2x192xbf16> to vector<8x192xbf16>
    %c5 = arith.constant 5 : index
    %c0_20 = arith.constant 0 : index
    %c0_21 = arith.constant 0 : index
    %39 = vector.load %arg2[%c5, %c0_20, %c0_21] : memref<9x192x64xbf16, #tpu.memory_space<vmem>>, vector<1x192x64xbf16>
    %40 = vector.shape_cast %39 : vector<1x192x64xbf16> to vector<192x64xbf16>
    %cst_22 = arith.constant dense<0.000000e+00> : vector<8x64xf32>
    %41 = tpu.matmul %38, %40, %cst_22 {dimension_numbers = #tpu.dot_dimension_numbers<[1], [0], [0], [1], [0, 0, 1, 1], [], []>} : vector<8x192xbf16>, vector<192x64xbf16>, vector<8x64xf32> -> vector<8x64xf32>
    %42 = arith.addf %36, %41 : vector<8x64xf32>
    %43 = vector.extract_strided_slice %5 {offsets = [2, 0, 0, 0], sizes = [2, 2, 2, 192], strides = [1, 1, 1, 1]} : vector<4x4x2x192xbf16> to vector<2x2x2x192xbf16>
    %44 = vector.shape_cast %43 : vector<2x2x2x192xbf16> to vector<8x192xbf16>
    %c6 = arith.constant 6 : index
    %c0_23 = arith.constant 0 : index
    %c0_24 = arith.constant 0 : index
    %45 = vector.load %arg2[%c6, %c0_23, %c0_24] : memref<9x192x64xbf16, #tpu.memory_space<vmem>>, vector<1x192x64xbf16>
    %46 = vector.shape_cast %45 : vector<1x192x64xbf16> to vector<192x64xbf16>
    %cst_25 = arith.constant dense<0.000000e+00> : vector<8x64xf32>
    %47 = tpu.matmul %44, %46, %cst_25 {dimension_numbers = #tpu.dot_dimension_numbers<[1], [0], [0], [1], [0, 0, 1, 1], [], []>} : vector<8x192xbf16>, vector<192x64xbf16>, vector<8x64xf32> -> vector<8x64xf32>
    %48 = arith.addf %42, %47 : vector<8x64xf32>
    %49 = vector.extract_strided_slice %5 {offsets = [2, 1, 0, 0], sizes = [2, 2, 2, 192], strides = [1, 1, 1, 1]} : vector<4x4x2x192xbf16> to vector<2x2x2x192xbf16>
    %50 = vector.shape_cast %49 : vector<2x2x2x192xbf16> to vector<8x192xbf16>
    %c7 = arith.constant 7 : index
    %c0_26 = arith.constant 0 : index
    %c0_27 = arith.constant 0 : index
    %51 = vector.load %arg2[%c7, %c0_26, %c0_27] : memref<9x192x64xbf16, #tpu.memory_space<vmem>>, vector<1x192x64xbf16>
    %52 = vector.shape_cast %51 : vector<1x192x64xbf16> to vector<192x64xbf16>
    %cst_28 = arith.constant dense<0.000000e+00> : vector<8x64xf32>
    %53 = tpu.matmul %50, %52, %cst_28 {dimension_numbers = #tpu.dot_dimension_numbers<[1], [0], [0], [1], [0, 0, 1, 1], [], []>} : vector<8x192xbf16>, vector<192x64xbf16>, vector<8x64xf32> -> vector<8x64xf32>
    %54 = arith.addf %48, %53 : vector<8x64xf32>
    %55 = vector.extract_strided_slice %5 {offsets = [2, 2, 0, 0], sizes = [2, 2, 2, 192], strides = [1, 1, 1, 1]} : vector<4x4x2x192xbf16> to vector<2x2x2x192xbf16>
    %56 = vector.shape_cast %55 : vector<2x2x2x192xbf16> to vector<8x192xbf16>
    %c8 = arith.constant 8 : index
    %c0_29 = arith.constant 0 : index
    %c0_30 = arith.constant 0 : index
    %57 = vector.load %arg2[%c8, %c0_29, %c0_30] : memref<9x192x64xbf16, #tpu.memory_space<vmem>>, vector<1x192x64xbf16>
    %58 = vector.shape_cast %57 : vector<1x192x64xbf16> to vector<192x64xbf16>
    %cst_31 = arith.constant dense<0.000000e+00> : vector<8x64xf32>
    %59 = tpu.matmul %56, %58, %cst_31 {dimension_numbers = #tpu.dot_dimension_numbers<[1], [0], [0], [1], [0, 0, 1, 1], [], []>} : vector<8x192xbf16>, vector<192x64xbf16>, vector<8x64xf32> -> vector<8x64xf32>
    %60 = arith.addf %54, %59 : vector<8x64xf32>
    %61 = arith.truncf %60 : vector<8x64xf32> to vector<8x64xbf16>
    %c0_32 = arith.constant 0 : index
    %c0_33 = arith.constant 0 : index
    %c0_34 = arith.constant 0 : index
    %62 = vector.load %arg3[%c0_32, %c0_33, %c0_34] : memref<1x8x64xbf16, #tpu.memory_space<vmem>>, vector<1x8x64xbf16>
    %63 = vector.shape_cast %62 : vector<1x8x64xbf16> to vector<8x64xbf16>
    %64 = vector.shape_cast %61 : vector<8x64xbf16> to vector<1x8x64xbf16>
    tpu.vector_store %arg3[%c0_32, %c0_33, %c0_34], %64 {strides = array<i32>} : memref<1x8x64xbf16, #tpu.memory_space<vmem>>, vector<1x8x64xbf16>,
    %cst_35 = arith.constant dense<0.000000e+00> : vector<64xf32>
    %65 = vector.multi_reduction <add>, %60, %cst_35 [0] : vector<8x64xf32> to vector<64xf32>
    %66 = vector.shape_cast %65 : vector<64xf32> to vector<1x64xf32>
    %67 = arith.mulf %60, %60 : vector<8x64xf32>
    %cst_36 = arith.constant dense<0.000000e+00> : vector<64xf32>
    %68 = vector.multi_reduction <add>, %67, %cst_36 [0] : vector<8x64xf32> to vector<64xf32>
    %69 = vector.shape_cast %68 : vector<64xf32> to vector<1x64xf32>
    %70 = tpu.concatenate %66, %69 in 0 : vector<1x64xf32>, vector<1x64xf32> -> vector<2x64xf32>
    %c0_37 = arith.constant 0 : index
    %c0_38 = arith.constant 0 : index
    %c0_39 = arith.constant 0 : index
    %71 = vector.load %arg4[%c0_37, %c0_38, %c0_39] : memref<1x2x64xf32, #tpu.memory_space<vmem>>, vector<1x2x64xf32>
    %72 = vector.shape_cast %71 : vector<1x2x64xf32> to vector<2x64xf32>
    %73 = vector.shape_cast %70 : vector<2x64xf32> to vector<1x2x64xf32>
    tpu.vector_store %arg4[%c0_37, %c0_38, %c0_39], %73 {strides = array<i32>} : memref<1x2x64xf32, #tpu.memory_space<vmem>>, vector<1x2x64xf32>,
    return
  }
  func.func @transform_0(%arg0: i32) -> (i32, i32, i32, i32, i32) {
    %c0_i32 = arith.constant 0 : i32
    %c0_i32_0 = arith.constant 0 : i32
    %c0_i32_1 = arith.constant 0 : i32
    %c0_i32_2 = arith.constant 0 : i32
    %c0_i32_3 = arith.constant 0 : i32
    return %arg0, %c0_i32, %c0_i32_0, %c0_i32_1, %c0_i32_2 : i32, i32, i32, i32, i32
  }
  func.func @transform_1(%arg0: i32) -> (i32, i32, i32) {
    %c0_i32 = arith.constant 0 : i32
    %c0_i32_0 = arith.constant 0 : i32
    %c0_i32_1 = arith.constant 0 : i32
    %c0_i32_2 = arith.constant 0 : i32
    return %c0_i32, %c0_i32_0, %c0_i32_1 : i32, i32, i32
  }
  func.func @transform_2(%arg0: i32) -> (i32, i32, i32) {
    %c0_i32 = arith.constant 0 : i32
    %c0_i32_0 = arith.constant 0 : i32
    %c0_i32_1 = arith.constant 0 : i32
    return %arg0, %c0_i32, %c0_i32_0 : i32, i32, i32
  }
  func.func @transform_3(%arg0: i32) -> (i32, i32, i32) {
    %c0_i32 = arith.constant 0 : i32
    %c0_i32_0 = arith.constant 0 : i32
    %c0_i32_1 = arith.constant 0 : i32
    return %arg0, %c0_i32, %c0_i32_0 : i32, i32, i32
  }
}

module attributes {stable_mosaic.version = 11 : i64} {
  func.func @_bn_relu_pool_kernel(%arg0: i32, %arg1: memref<1x2x2x128xbf16, #tpu.memory_space<vmem>>, %arg2: memref<1x128xf32, #tpu.memory_space<vmem>>, %arg3: memref<1x128xf32, #tpu.memory_space<vmem>>, %arg4: memref<1x2x2x128xbf16, #tpu.memory_space<vmem>>) attributes {dimension_semantics = [#tpu.dimension_semantics<parallel>], iteration_bounds = array<i64: 2>, scalar_prefetch = 0 : i64, scratch_operands = 0 : i64, tpu.core_type = #tpu.core_type<tc>, window_params = [{transform_indices = @transform_0, window_bounds = array<i64: 1, 2, 2, 128>}, {pipeline_mode = #tpu.pipeline_mode<synchronous>, transform_indices = @transform_1, window_bounds = array<i64: 1, 128>}, {pipeline_mode = #tpu.pipeline_mode<synchronous>, transform_indices = @transform_2, window_bounds = array<i64: 1, 128>}, {transform_indices = @transform_3, window_bounds = array<i64: 1, 2, 2, 128>}]} {
    %c0 = arith.constant 0 : index
    %c0_0 = arith.constant 0 : index
    %c0_1 = arith.constant 0 : index
    %c0_2 = arith.constant 0 : index
    %0 = vector.load %arg1[%c0, %c0_0, %c0_1, %c0_2] : memref<1x2x2x128xbf16, #tpu.memory_space<vmem>>, vector<1x2x2x128xbf16>
    %1 = vector.shape_cast %0 : vector<1x2x2x128xbf16> to vector<2x2x128xbf16>
    %2 = arith.extf %1 : vector<2x2x128xbf16> to vector<2x2x128xf32>
    %c0_3 = arith.constant 0 : index
    %c0_4 = arith.constant 0 : index
    %3 = vector.load %arg2[%c0_3, %c0_4] : memref<1x128xf32, #tpu.memory_space<vmem>>, vector<1x128xf32>
    %4 = vector.shape_cast %3 : vector<1x128xf32> to vector<1x1x128xf32>
    %5 = vector.broadcast %4 : vector<1x1x128xf32> to vector<2x2x128xf32>
    %6 = arith.mulf %2, %5 : vector<2x2x128xf32>
    %c0_5 = arith.constant 0 : index
    %c0_6 = arith.constant 0 : index
    %7 = vector.load %arg3[%c0_5, %c0_6] : memref<1x128xf32, #tpu.memory_space<vmem>>, vector<1x128xf32>
    %8 = vector.shape_cast %7 : vector<1x128xf32> to vector<1x1x128xf32>
    %9 = vector.broadcast %8 : vector<1x1x128xf32> to vector<2x2x128xf32>
    %10 = arith.addf %6, %9 : vector<2x2x128xf32>
    %cst = arith.constant 0.000000e+00 : f32
    %11 = vector.broadcast %cst : f32 to vector<2x2x128xf32>
    %12 = arith.maximumf %10, %11 : vector<2x2x128xf32>
    %13 = arith.truncf %12 : vector<2x2x128xf32> to vector<2x2x128xbf16>
    %c0_7 = arith.constant 0 : index
    %c0_8 = arith.constant 0 : index
    %c0_9 = arith.constant 0 : index
    %c0_10 = arith.constant 0 : index
    %14 = vector.load %arg4[%c0_7, %c0_8, %c0_9, %c0_10] : memref<1x2x2x128xbf16, #tpu.memory_space<vmem>>, vector<1x2x2x128xbf16>
    %15 = vector.shape_cast %14 : vector<1x2x2x128xbf16> to vector<2x2x128xbf16>
    %16 = vector.shape_cast %13 : vector<2x2x128xbf16> to vector<1x2x2x128xbf16>
    tpu.vector_store %arg4[%c0_7, %c0_8, %c0_9, %c0_10], %16 {strides = array<i32>} : memref<1x2x2x128xbf16, #tpu.memory_space<vmem>>, vector<1x2x2x128xbf16>,
    return
  }
  func.func @transform_0(%arg0: i32) -> (i32, i32, i32, i32) {
    %c0_i32 = arith.constant 0 : i32
    %c0_i32_0 = arith.constant 0 : i32
    %c0_i32_1 = arith.constant 0 : i32
    %c0_i32_2 = arith.constant 0 : i32
    return %arg0, %c0_i32, %c0_i32_0, %c0_i32_1 : i32, i32, i32, i32
  }
  func.func @transform_1(%arg0: i32) -> (i32, i32) {
    %c0_i32 = arith.constant 0 : i32
    %c0_i32_0 = arith.constant 0 : i32
    %c0_i32_1 = arith.constant 0 : i32
    return %c0_i32, %c0_i32_0 : i32, i32
  }
  func.func @transform_2(%arg0: i32) -> (i32, i32) {
    %c0_i32 = arith.constant 0 : i32
    %c0_i32_0 = arith.constant 0 : i32
    %c0_i32_1 = arith.constant 0 : i32
    return %c0_i32, %c0_i32_0 : i32, i32
  }
  func.func @transform_3(%arg0: i32) -> (i32, i32, i32, i32) {
    %c0_i32 = arith.constant 0 : i32
    %c0_i32_0 = arith.constant 0 : i32
    %c0_i32_1 = arith.constant 0 : i32
    %c0_i32_2 = arith.constant 0 : i32
    return %arg0, %c0_i32, %c0_i32_0, %c0_i32_1 : i32, i32, i32, i32
  }
}

</mosaic_0001>

<bundles_post_ra>
// kernel: tile.43
= control target key start
LH: loop header
LB: loop body
LE: loop exit
PB: predicated region body
PF: predicated region fallthrough
CT: control target
= control target key end

     0   :  { %s22_s0 = inlined_call_operand.vmem [shape: f32[64], index: 0, kind: input, shape index: {}]   ;;  %s23_s1 = inlined_call_operand.vmem [shape: f32[8,64], index: 1, kind: output, shape index: {}]  }
   0x1   :  { %v4_v0 = vld [vmem:[%s22_s0] ss:$0 sm:$0xff] }
   0x2   :  { %5 = vst [vmem:[%s23_s1] sm:$0xff] %v4_v0 }

// kernel: tile.44
= control target key start
LH: loop header
LB: loop body
LE: loop exit
PB: predicated region body
PF: predicated region fallthrough
CT: control target
= control target key end

     0   :  { %vm3_vm0 = vcmask 523264   ;;  %s41_s8 = smov 64   ;;  %vm9_vm1 = vcmask 1048064   ;;  %s70_s0 = inlined_call_operand.vmem [shape: f32[8,64], index: 0, kind: input, shape index: {}]   ;;  %s71_s1 = inlined_call_operand.vmem [shape: f32[1,512], index: 1, kind: output, shape index: {}]  }
   0x1   :  { %v36_v0 = vld [vmem:[%s70_s0 + $0x1] ss:$2 sm:$0xf]   ;;  %v2_v1 = vld [vmem:[%s70_s0] ss:$2 sm:$0xf]  }
   0x2   :  { %7 = vrot.lane.b32.xlu0 %v36_v0, %s41_s8  ;;  %4 = vst.msk [vmem:[#allocation0] ss:$8 sm:$0xf] %vm3_vm0, %v2_v1  }
  0x74   :  { %v8_v2 = vpop.permute.xlu0 %7  }
  0x75   :  { %10 = vst.msk [vmem:[#allocation0] ss:$8 sm:$0xf] %vm9_vm1, %v8_v2  }
  0x7c   :  { %v14_v3 = vld [vmem:[#allocation0] sm:$0x1]  ;;  %v18_v4 = vld [vmem:[#allocation0 + $0x8] sm:$0x1]  ;;  %v23_v5 = vld [vmem:[#allocation0 + $0x10] sm:$0x1] }
  0x7d   :  { %16 = vst [vmem:[%s71_s1] sm:$0x1] %v14_v3  ;;  %37 = vst [vmem:[%s71_s1 + $0x1] sm:$0x1] %v18_v4  ;;  %v29_v6 = vld [vmem:[#allocation0 + $0x18] sm:$0x1] }
  0x7e   :  { %38 = vst [vmem:[%s71_s1 + $0x2] sm:$0x1] %v23_v5  ;;  %39 = vst [vmem:[%s71_s1 + $0x3] sm:$0x1] %v29_v6 }

// kernel: feature_encoder_3d.9
= control target key start
LH: loop header
LB: loop body
LE: loop exit
PB: predicated region body
PF: predicated region fallthrough
CT: control target
= control target key end

     0   :  { %s1932_s12 = smov 0   ;;  %s2630_s0 = inlined_call_operand.vmem [shape: bf16[2,8,8,512], index: 0, kind: input, shape index: {}]   ;;  %s2631_s1 = inlined_call_operand.vmem [shape: f32[1,512], index: 1, kind: input, shape index: {}]   ;;  %s2632_s2 = inlined_call_operand.vmem [shape: f32[1,512], index: 2, kind: input, shape index: {}]   ;;  %s2633_s3 = inlined_call_operand.vmem [shape: bf16[2,4,16,64], index: 3, kind: output, shape index: {}]  }
   0x1 LB: > { %s1843_s13 = sadd.s32 4294967295, %s1906_s12   ;;  %p1847_p0 = scmp.ge.s32.totalorder %s1906_s12, 1  ;;  %s1906_s12 = sphi %s1932_s12, %s13_s12  }
   0x2   : > { %p137_p1 = scmp.lt.s32.totalorder %s1906_s12, 3 }
   0x4   : > { %p138_p2 = pnand %p1847_p0, %p137_p1 }
   0x6   : > { %141 = sbr.rel (%p138_p2) target bundleno = 378 (0x17a), region = 32 }
   0xd   : > { %p161_p3 = scmp.lt.s32.totalorder %s1843_s13, 1  ;;  %v221_v0 = vlaneseq  ;;  %v1908_v2 = vmov 1983009808   ;;  %v219_v4 = vld [vmem:[%s2631_s1] sm:$0xf]  ;;  %vm871_vm0 = vcmask 1041408  }
   0xe   : > { %v396_v3 = vunpack.c.l.s4 %v1908_v2  ;;  %v1909_v5 = vmov 1934713408   ;;  %v273_v29 = vld [vmem:[%s2632_s2] sm:$0xf]  ;;  %vm1385_vm1 = vcmask 1041409   ;;  %vm1388_vm2 = vcmask 1042434  }
   0xf   : > { %s2649_s13 = smov (!%p161_p3, %s1843_s13), 1  ;;  %v222_v1 = vshrl.u32 %v221_v0, 7  ;;  %v1518_v6 = vunpack.c.l.s4 %v1909_v5  ;;  %vm1391_vm3 = vcmask 1043459   ;;  %s1910_s22 = smov 64   ;;  %vm1779_vm4 = vcmask 519168  }
  0x10   : > { %s1878_s16 = sshll.u32 %s2649_s13, 7  ;;  %v397_v11 = vunpack.c.0.s8 %v396_v3  ;;  %s1879_s23 = sshll.u32 %s2649_s13, 5 }
  0x11   : > { %v223_v7 = vsub.s32 0, %v222_v1  ;;  %v227_v8 = vsub.s32 1, %v222_v1  ;;  %v231_v9 = vsub.s32 2, %v222_v1  ;;  %v235_v10 = vsub.s32 3, %v222_v1  ;;  %s1949_s19 = scalar_lea.vmem %s2630_s0, %s1878_s16  ;;  %s2588_s26 = scalar_lea.vmem %s2633_s3, %s1879_s23 }
  0x12   : > { %v1519_v12 = vunpack.c.0.s8 %v1518_v6  ;;  %v171_v13 = vld [vmem:[%s1949_s19] sm:$0xff]  ;;  %v172_v14 = vld [vmem:[%s1949_s19 + $0x8] sm:$0xff]  ;;  %v173_v15 = vld [vmem:[%s1949_s19 + $0x10] sm:$0xff]  ;;  %v1983_v43 = vsub.s32 %v397_v11, %v222_v1 }
  0x13   : > { %v1954_v16 = vrot.slane %v219_v4, %v223_v7  ;;  %v1956_v17 = vrot.slane %v219_v4, %v227_v8  ;;  %v1958_v18 = vrot.slane %v219_v4, %v231_v9  ;;  %v1960_v19 = vrot.slane %v219_v4, %v235_v10  ;;  %v174_v20 = vld [vmem:[%s1949_s19 + $0x18] sm:$0xff]  ;;  %v175_v34 = vld [vmem:[%s1949_s19 + $0x20] sm:$0xff]  ;;  %v176_v55 = vld [vmem:[%s1949_s19 + $0x28] sm:$0xff] }
  0x14   : > { %v187_v21 = vunpack.c.l.bf16 %v171_v13  ;;  %v188_v22 = vunpack.c.h.bf16 %v171_v13  ;;  %v189_v23 = vunpack.c.l.bf16 %v172_v14  ;;  %v190_v24 = vunpack.c.h.bf16 %v172_v14  ;;  %v177_v56 = vld [vmem:[%s1949_s19 + $0x30] sm:$0xff] }
  0x15   : > { %v191_v25 = vunpack.c.l.bf16 %v173_v15  ;;  %v192_v26 = vunpack.c.h.bf16 %v173_v15  ;;  %v193_v27 = vunpack.c.l.bf16 %v174_v20  ;;  %v194_v28 = vunpack.c.h.bf16 %v174_v20 }
  0x16   : > { %v241_v30 = vmul.f32 %v1954_v16, %v187_v21  ;;  %v242_v31 = vmul.f32 %v1956_v17, %v188_v22  ;;  %v243_v32 = vmul.f32 %v1958_v18, %v189_v23  ;;  %v244_v33 = vmul.f32 %v1960_v19, %v190_v24 }
  0x17   : > { %v245_v35 = vmul.f32 %v1954_v16, %v191_v25  ;;  %v246_v36 = vmul.f32 %v1956_v17, %v192_v26  ;;  %v247_v37 = vmul.f32 %v1958_v18, %v193_v27  ;;  %v248_v38 = vmul.f32 %v1960_v19, %v194_v28 }
  0x18   : > { %v1975_v39 = vrot.slane %v273_v29, %v223_v7  ;;  %v1977_v40 = vrot.slane %v273_v29, %v227_v8  ;;  %v1979_v41 = vrot.slane %v273_v29, %v231_v9  ;;  %v1981_v42 = vrot.slane %v273_v29, %v235_v10 }
  0x19   : > { %v1985_v44 = vsub.s32 %v1519_v12, %v222_v1  ;;  %v195_v45 = vunpack.c.l.bf16 %v175_v34  ;;  %v196_v46 = vunpack.c.h.bf16 %v175_v34  ;;  %v178_v1 = vld [vmem:[%s1949_s19 + $0x38] sm:$0xff]  ;;  %v197_v2 = vunpack.c.l.bf16 %v176_v55 }
  0x1a   : > { %v295_v47 = vadd.f32 %v1975_v39, %v241_v30  ;;  %v296_v48 = vadd.f32 %v1977_v40, %v242_v31  ;;  %v297_v49 = vadd.f32 %v1979_v41, %v243_v32  ;;  %v298_v50 = vadd.f32 %v1981_v42, %v244_v33 }
  0x1b   : > { %v299_v51 = vadd.f32 %v1975_v39, %v245_v35  ;;  %v300_v52 = vadd.f32 %v1977_v40, %v246_v36  ;;  %v301_v53 = vadd.f32 %v1979_v41, %v247_v37  ;;  %v302_v54 = vadd.f32 %v1981_v42, %v248_v38 }
  0x1c   : > { %v327_v57 = vmax.f32 %v295_v47, 0.0  ;;  %v328_v58 = vmax.f32 %v296_v48, 0.0  ;;  %v329_v59 = vmax.f32 %v297_v49, 0.0  ;;  %v330_v60 = vmax.f32 %v298_v50, 0.0 }
  0x1d   : > { %v331_v61 = vmax.f32 %v299_v51, 0.0  ;;  %v332_v62 = vmax.f32 %v300_v52, 0.0  ;;  %v333_v63 = vmax.f32 %v301_v53, 0.0  ;;  %v334_v0 = vmax.f32 %v302_v54, 0.0 }
  0x1e   : > { %v198_v3 = vunpack.c.h.bf16 %v176_v55  ;;  %v199_v4 = vunpack.c.l.bf16 %v177_v56  ;;  %v200_v5 = vunpack.c.h.bf16 %v177_v56  ;;  %v201_v10 = vunpack.c.l.bf16 %v178_v1 }
  0x1f   : > { %v359_v6 = vmax.f32 %v327_v57, %v331_v61  ;;  %v360_v7 = vmax.f32 %v328_v58, %v332_v62  ;;  %v361_v8 = vmax.f32 %v329_v59, %v333_v63  ;;  %v362_v9 = vmax.f32 %v330_v60, %v334_v0 }
  0x20   : > { %v202_v11 = vunpack.c.h.bf16 %v178_v1  ;;  %v249_v12 = vmul.f32 %v1954_v16, %v195_v45  ;;  %v250_v13 = vmul.f32 %v1956_v17, %v196_v46  ;;  %v2001_v22 = vmul.f32 %v1958_v18, %v197_v2 }
  0x21   : > { %v391_v14 = vcombine.low %v359_v6, %v360_v7  ;;  %v392_v15 = vcombine.high %v359_v6, %v360_v7  ;;  %v393_v20 = vcombine.low %v361_v8, %v362_v9  ;;  %v394_v21 = vcombine.high %v361_v8, %v362_v9 }
  0x22   : > { %v2004_v23 = vmul.f32 %v1960_v19, %v198_v3  ;;  %v2007_v24 = vmul.f32 %v1954_v16, %v199_v4  ;;  %v2010_v25 = vmul.f32 %v1956_v17, %v200_v5  ;;  %v2017_v30 = vmul.f32 %v1958_v18, %v201_v10 }
  0x23   : > { %v401_v26 = vrot.slane %v391_v14, %v1983_v43  ;;  %v408_v27 = vrot.slane %v392_v15, %v1983_v43  ;;  %v415_v28 = vrot.slane %v393_v20, %v1983_v43  ;;  %v422_v29 = vrot.slane %v394_v21, %v1983_v43 }
  0x24   : > { %v2020_v31 = vmul.f32 %v1960_v19, %v202_v11  ;;  %v2023_v32 = vadd.f32 %v1975_v39, %v249_v12  ;;  %v2026_v33 = vadd.f32 %v1977_v40, %v250_v13 }
  0x25   : > { %v423_v34 = vcombine.low %v401_v26, %v415_v28  ;;  %v424_v35 = vcombine.high %v401_v26, %v415_v28  ;;  %v425_v36 = vcombine.low %v408_v27, %v422_v29  ;;  %v426_v37 = vcombine.high %v408_v27, %v422_v29 }
  0x26   : > { %v1852_v38 = vcombine.low %v415_v28, %v415_v28  ;;  %v1853_v45 = vcombine.high %v415_v28, %v415_v28  ;;  %v1854_v46 = vcombine.low %v422_v29, %v422_v29  ;;  %v1855_v47 = vcombine.high %v422_v29, %v422_v29 }
  0x27   : > { %v542_v48 = vrot.slane %v423_v34, %v1983_v43  ;;  %v559_v49 = vrot.slane %v424_v35, %v1983_v43  ;;  %v2031_v50 = vrot.slane %v425_v36, %v1983_v43  ;;  %v2034_v51 = vrot.slane %v426_v37, %v1983_v43 }
  0x28   : > { %v549_v52 = vrot.slane %v1852_v38, %v1983_v43  ;;  %v566_v53 = vrot.slane %v1853_v45, %v1983_v43  ;;  %v2039_v54 = vrot.slane %v1854_v46, %v1983_v43  ;;  %v2042_v55 = vrot.slane %v1855_v47, %v1983_v43 }
  0x29   : > { %v550_v56 = vcombine.high %v542_v48, %v542_v48  ;;  %v567_v57 = vcombine.high %v559_v49, %v559_v49  ;;  %v584_v58 = vcombine.high %v2031_v50, %v2031_v50  ;;  %v601_v59 = vcombine.high %v2034_v51, %v2034_v51 }
  0x2a   : > { %v551_v60 = vcombine.high %v549_v52, %v549_v52  ;;  %v568_v61 = vcombine.high %v566_v53, %v566_v53  ;;  %v585_v62 = vcombine.high %v2039_v54, %v2039_v54  ;;  %v602_v63 = vcombine.high %v2042_v55, %v2042_v55 }
  0x2b   : > { %v872_v0 = vsel %vm871_vm0, %v542_v48, -inf  ;;  %v879_v1 = vsel %vm871_vm0, %v550_v56, -inf  ;;  %v886_v2 = vsel %vm871_vm0, %v549_v52, -inf  ;;  %v900_v3 = vsel %vm871_vm0, %v559_v49, -inf }
  0x2c   : > { %v873_v4 = vrot.slane %v872_v0, 4  ;;  %v880_v5 = vrot.slane %v879_v1, 4  ;;  %v887_v6 = vrot.slane %v886_v2, 4  ;;  %v893_v7 = vsel %vm871_vm0, %v551_v60, -inf }
  0x2d   : > { %v894_v8 = vrot.slane %v893_v7, 4  ;;  %v901_v9 = vrot.slane %v900_v3, 4  ;;  %v907_v10 = vsel %vm871_vm0, %v567_v57, -inf  ;;  %v914_v11 = vsel %vm871_vm0, %v566_v53, -inf }
  0x2e   : > { %v874_v12 = vmax.f32 %v872_v0, %v873_v4  ;;  %v881_v13 = vmax.f32 %v879_v1, %v880_v5  ;;  %v888_v14 = vmax.f32 %v886_v2, %v887_v6  ;;  %v908_v15 = vrot.slane %v907_v10, 4 }
  0x2f   : > { %v895_v20 = vmax.f32 %v893_v7, %v894_v8  ;;  %v902_v21 = vmax.f32 %v900_v3, %v901_v9  ;;  %v915_v26 = vrot.slane %v914_v11, 4  ;;  %v921_v27 = vsel %vm871_vm0, %v568_v61, -inf }
  0x30   : > { %v875_v28 = vrot.slane %v874_v12, 2  ;;  %v882_v29 = vrot.slane %v881_v13, 2  ;;  %v889_v34 = vrot.slane %v888_v14, 2  ;;  %v909_v35 = vmax.f32 %v907_v10, %v908_v15 }
  0x31   : > { %v896_v36 = vrot.slane %v895_v20, 2  ;;  %v903_v37 = vrot.slane %v902_v21, 2  ;;  %v916_v38 = vmax.f32 %v914_v11, %v915_v26  ;;  %v922_v45 = vrot.slane %v921_v27, 4 }
  0x32   : > { %v876_v46 = vmax.f32 %v874_v12, %v875_v28  ;;  %v883_v47 = vmax.f32 %v881_v13, %v882_v29  ;;  %v890_v48 = vmax.f32 %v888_v14, %v889_v34  ;;  %v910_v49 = vrot.slane %v909_v35, 2 }
  0x33   : > { %v897_v52 = vmax.f32 %v895_v20, %v896_v36  ;;  %v904_v53 = vmax.f32 %v902_v21, %v903_v37  ;;  %v917_v56 = vrot.slane %v916_v38, 2  ;;  %v923_v57 = vmax.f32 %v921_v27, %v922_v45 }
  0x34   : > { %v877_v60 = vrot.slane %v876_v46, 1  ;;  %v884_v0 = vrot.slane %v883_v47, 1  ;;  %v891_v1 = vrot.slane %v890_v48, 1  ;;  %v911_v61 = vmax.f32 %v909_v35, %v910_v49 }
  0x35   : > { %v898_v2 = vrot.slane %v897_v52, 1  ;;  %v905_v3 = vrot.slane %v904_v53, 1  ;;  %v918_v4 = vmax.f32 %v916_v38, %v917_v56  ;;  %v924_v5 = vrot.slane %v923_v57, 2 }
  0x36   : > { %v2060_v6 = vmax.f32 %v876_v46, %v877_v60  ;;  %v2062_v7 = vmax.f32 %v883_v47, %v884_v0  ;;  %v2064_v8 = vmax.f32 %v890_v48, %v891_v1  ;;  %v912_v9 = vrot.slane %v911_v61, 1 }
  0x37   : > { %v2066_v10 = vmax.f32 %v897_v52, %v898_v2  ;;  %v2068_v11 = vmax.f32 %v904_v53, %v905_v3  ;;  %v919_v12 = vrot.slane %v918_v4, 1  ;;  %v925_v13 = vmax.f32 %v923_v57, %v924_v5 }
  0x38   : > { %v2070_v14 = vmax.f32 %v911_v61, %v912_v9  ;;  %v928_v15 = vsel %vm871_vm0, %v2031_v50, -inf  ;;  %v935_v20 = vsel %vm871_vm0, %v584_v58, -inf  ;;  %v942_v21 = vsel %vm871_vm0, %v2039_v54, -inf }
  0x39   : > { %v2077_v26 = vmax.f32 %v918_v4, %v919_v12  ;;  %v926_v27 = vrot.slane %v925_v13, 1  ;;  %v929_v28 = vrot.slane %v928_v15, 4  ;;  %v936_v29 = vrot.slane %v935_v20, 4 }
  0x3a   : > { %v943_v34 = vrot.slane %v942_v21, 4  ;;  %v949_v35 = vsel %vm871_vm0, %v585_v62, -inf  ;;  %v956_v36 = vsel %vm871_vm0, %v2034_v51, -inf  ;;  %v963_v50 = vsel %vm871_vm0, %v601_v59, -inf }
  0x3b   : > { %v2089_v58 = vmax.f32 %v925_v13, %v926_v27  ;;  %v930_v37 = vmax.f32 %v928_v15, %v929_v28  ;;  %v937_v38 = vmax.f32 %v935_v20, %v936_v29  ;;  %v950_v45 = vrot.slane %v949_v35, 4 }
  0x3c   : > { %v944_v46 = vmax.f32 %v942_v21, %v943_v34  ;;  %v957_v47 = vrot.slane %v956_v36, 4  ;;  %v964_v48 = vrot.slane %v963_v50, 4  ;;  %v970_v54 = vsel %vm871_vm0, %v2042_v55, -inf }
  0x3d   : > { %v931_v62 = vrot.slane %v930_v37, 2  ;;  %v938_v49 = vrot.slane %v937_v38, 2  ;;  %v951_v52 = vmax.f32 %v949_v35, %v950_v45  ;;  %v971_v53 = vrot.slane %v970_v54, 4 }
  0x3e   : > { %v945_v51 = vrot.slane %v944_v46, 2  ;;  %v958_v56 = vmax.f32 %v956_v36, %v957_v47  ;;  %v965_v59 = vmax.f32 %v963_v50, %v964_v48  ;;  %v977_v57 = vsel %vm871_vm0, %v602_v63, -inf }
  0x3f   : > { %v932_v60 = vmax.f32 %v930_v37, %v931_v62  ;;  %v939_v0 = vmax.f32 %v937_v38, %v938_v49  ;;  %v952_v1 = vrot.slane %v951_v52, 2  ;;  %v972_v61 = vmax.f32 %v970_v54, %v971_v53 }
  0x40   : > { %v946_v2 = vmax.f32 %v944_v46, %v945_v51  ;;  %v959_v3 = vrot.slane %v958_v56, 2  ;;  %v966_v4 = vrot.slane %v965_v59, 2  ;;  %v978_v5 = vrot.slane %v977_v57, 4 }
  0x41   : > { %v933_v9 = vrot.slane %v932_v60, 1  ;;  %v940_v12 = vrot.slane %v939_v0, 1  ;;  %v953_v13 = vmax.f32 %v951_v52, %v952_v1  ;;  %v973_v15 = vrot.slane %v972_v61, 2 }
  0x42   : > { %v947_v20 = vrot.slane %v946_v2, 1  ;;  %v960_v21 = vmax.f32 %v958_v56, %v959_v3  ;;  %v967_v27 = vmax.f32 %v965_v59, %v966_v4  ;;  %v979_v28 = vmax.f32 %v977_v57, %v978_v5 }
  0x43   : > { %v934_v55 = vmax.f32 %v932_v60, %v933_v9  ;;  %v941_v29 = vmax.f32 %v939_v0, %v940_v12  ;;  %v954_v63 = vrot.slane %v953_v13, 1  ;;  %v974_v34 = vmax.f32 %v972_v61, %v973_v15 }
  0x44   : > { %v948_v35 = vmax.f32 %v946_v2, %v947_v20  ;;  %v961_v36 = vrot.slane %v960_v21, 1  ;;  %v968_v50 = vrot.slane %v967_v27, 1  ;;  %v980_v37 = vrot.slane %v979_v28, 2 }
  0x45   : > { %v955_v38 = vmax.f32 %v953_v13, %v954_v63  ;;  %v975_v45 = vrot.slane %v974_v34, 1  ;;  %v1384_v46 = vrot.slane %v2068_v11, 7  ;;  %v1387_v47 = vrot.slane %v934_v55, 6  ;;  %v179_v55 = vld [vmem:[%s1949_s19 + $0x40] sm:$0xff] }
  0x46   : > { %v962_v48 = vmax.f32 %v960_v21, %v961_v36  ;;  %v969_v54 = vmax.f32 %v967_v27, %v968_v50  ;;  %v981_v62 = vmax.f32 %v979_v28, %v980_v37  ;;  %v1393_v49 = vrot.slane %v2070_v14, 7 }
  0x47   : > { %v976_v52 = vmax.f32 %v974_v34, %v975_v45  ;;  %v1386_v53 = vsel %vm1385_vm1, %v1384_v46, %v2060_v6  ;;  %v1395_v51 = vrot.slane %v941_v29, 6  ;;  %v1399_v56 = vrot.slane %v2077_v26, 7  ;;  %v2136_v45 = vld [vmem:[%s1949_s19 + $0x50] sm:$0xff] }
  0x48   : > { %v982_v59 = vrot.slane %v981_v62, 1  ;;  %v1389_v57 = vsel %vm1388_vm2, %v1387_v47, %v1386_v53  ;;  %v1390_v60 = vrot.slane %v962_v48, 5  ;;  %v1394_v11 = vsel %vm1385_vm1, %v1393_v49, %v2062_v7 }
  0x49   : > { %v1396_v0 = vsel %vm1388_vm2, %v1395_v51, %v1394_v11  ;;  %v1397_v1 = vrot.slane %v969_v54, 5  ;;  %v1400_v14 = vsel %vm1385_vm1, %v1399_v56, %v2064_v8  ;;  %v1401_v61 = vrot.slane %v948_v35, 6  ;;  %v180_v35 = vld [vmem:[%s1949_s19 + $0x48] sm:$0xff] }
  0x4a   : > { %v983_v2 = vmax.f32 %v981_v62, %v982_v59  ;;  %v1392_v6 = vsel %vm1391_vm3, %v1390_v60, %v1389_v57  ;;  %v1403_v3 = vrot.slane %v976_v52, 5  ;;  %v1405_v26 = vrot.slane %v2089_v58, 7  ;;  %v2139_v52 = vld [vmem:[%s1949_s19 + $0x58] sm:$0xff]  ;;  %v2144_v60 = vld [vmem:[%s1949_s19 + $0x60] sm:$0xff] }
  0x4b   : > { %v1398_v4 = vsel %vm1391_vm3, %v1397_v1, %v1396_v0  ;;  %v1402_v5 = vsel %vm1388_vm2, %v1401_v61, %v1400_v14  ;;  %v1407_v9 = vrot.slane %v955_v38, 6  ;;  %v305_v7 = vadd.f32 %v1979_v41, %v2001_v22 }
  0x4c   : > { %v1404_v12 = vsel %vm1391_vm3, %v1403_v3, %v1402_v5  ;;  %v1406_v8 = vsel %vm1385_vm1, %v1405_v26, %v2066_v10  ;;  %v1409_v13 = vrot.slane %v983_v2, 5  ;;  %v306_v15 = vadd.f32 %v1981_v42, %v2004_v23 }
  0x4d   : > { %v1408_v58 = vsel %vm1388_vm2, %v1407_v9, %v1406_v8  ;;  %v1499_v20 = vcombine.low %v1392_v6, %v1404_v12  ;;  %v307_v21 = vadd.f32 %v1975_v39, %v2007_v24  ;;  %v308_v27 = vadd.f32 %v1977_v40, %v2010_v25 }
  0x4e   : > { %v1410_v22 = vsel %vm1391_vm3, %v1409_v13, %v1408_v58  ;;  %v309_v10 = vadd.f32 %v1979_v41, %v2017_v30  ;;  %v310_v28 = vadd.f32 %v1981_v42, %v2020_v31  ;;  %v335_v23 = vmax.f32 %v2023_v32, 0.0 }
  0x4f   : > { %v1506_v29 = vrot.slane %v1499_v20, %v1983_v43  ;;  %v1507_v63 = vcombine.low %v1398_v4, %v1410_v22  ;;  %v336_v24 = vmax.f32 %v2026_v33, 0.0  ;;  %v337_v34 = vmax.f32 %v305_v7, 0.0 }
  0x50   : > { %v338_v25 = vmax.f32 %v306_v15, 0.0  ;;  %v339_v36 = vmax.f32 %v307_v21, 0.0  ;;  %v340_v50 = vmax.f32 %v308_v27, 0.0  ;;  %v341_v37 = vmax.f32 %v309_v10, 0.0 }
  0x51   : > { %v1514_v30 = vrot.slane %v1507_v63, %v1983_v43  ;;  %v342_v38 = vmax.f32 %v310_v28, 0.0  ;;  %v203_v31 = vunpack.c.l.bf16 %v179_v55  ;;  %v204_v32 = vunpack.c.h.bf16 %v179_v55 }
  0x52   : > { %v363_v46 = vmax.f32 %v335_v23, %v339_v36  ;;  %v364_v47 = vmax.f32 %v336_v24, %v340_v50  ;;  %v365_v48 = vmax.f32 %v337_v34, %v341_v37  ;;  %v205_v54 = vunpack.c.l.bf16 %v180_v35 }
  0x53   : > { %v1516_v33 = vcombine.high %v1506_v29, %v1514_v30  ;;  %v1515_v62 = vcombine.low %v1506_v29, %v1514_v30  ;;  %v366_v49 = vmax.f32 %v338_v25, %v342_v38  ;;  %v206_v53 = vunpack.c.h.bf16 %v180_v35 }
  0x54   : > { %v427_v51 = vcombine.low %v363_v46, %v364_v47  ;;  %v428_v56 = vcombine.high %v363_v46, %v364_v47  ;;  %v207_v59 = vunpack.c.l.bf16 %v2136_v45  ;;  %v208_v57 = vunpack.c.h.bf16 %v2136_v45 }
  0x55   : > { %v2147_v11 = vrot.slane %v1516_v33, %v1985_v44  ;;  %v2150_v0 = vrot.slane %v1515_v62, %v1985_v44  ;;  %v429_v1 = vcombine.low %v365_v48, %v366_v49  ;;  %v430_v14 = vcombine.high %v365_v48, %v366_v49 }
  0x56   : > { %v437_v61 = vrot.slane %v427_v51, %v1983_v43  ;;  %v444_v2 = vrot.slane %v428_v56, %v1983_v43  ;;  %v209_v6 = vunpack.c.l.bf16 %v2139_v52  ;;  %v2634_v26 = vmov 0.0  }
  0x57   : > { %1655 = vrot.lane.b32.xlu1 %v2147_v11, %s1910_s22  ;;  %1651 = vrot.lane.b32.xlu0 %v2150_v0, %s1910_s22  ;;  %v2162_v4 = vcombine.high %v2147_v11, %v2634_v26  ;;  %v451_v5 = vrot.slane %v429_v1, %v1983_v43  ;;  %v458_v9 = vrot.slane %v430_v14, %v1983_v43 }
  0x58   : > { %v2168_v12 = vmul.f32 %v1954_v16, %v203_v31  ;;  %v2171_v8 = vmul.f32 %v1956_v17, %v204_v32  ;;  %v2174_v13 = vmul.f32 %v1958_v18, %v205_v54  ;;  %v2177_v15 = vmul.f32 %v1960_v19, %v206_v53 }
  0x59   : > { %v459_v58 = vcombine.low %v437_v61, %v451_v5  ;;  %v460_v20 = vcombine.high %v437_v61, %v451_v5  ;;  %v461_v21 = vcombine.low %v444_v2, %v458_v9  ;;  %v462_v27 = vcombine.high %v444_v2, %v458_v9 }
  0x5a   : > { %v1856_v22 = vcombine.low %v451_v5, %v451_v5  ;;  %v1857_v10 = vcombine.high %v451_v5, %v451_v5  ;;  %v1858_v28 = vcombine.low %v458_v9, %v458_v9  ;;  %v1859_v23 = vcombine.high %v458_v9, %v458_v9 }
  0x5b   : > { %1657 = vrot.lane.b32.xlu1 %v2162_v4, %s1910_s22  ;;  %v610_v55 = vrot.slane %v459_v58, %v1983_v43  ;;  %v627_v29 = vrot.slane %v460_v20, %v1983_v43  ;;  %v2184_v63 = vrot.slane %v461_v21, %v1983_v43  ;;  %v2187_v24 = vrot.slane %v462_v27, %v1983_v43 }
  0x5c   : > { %v617_v34 = vrot.slane %v1856_v22, %v1983_v43  ;;  %v634_v35 = vrot.slane %v1857_v10, %v1983_v43  ;;  %v2192_v25 = vrot.slane %v1858_v28, %v1983_v43  ;;  %v2195_v36 = vrot.slane %v1859_v23, %v1983_v43 }
  0x5d   : > { %v618_v50 = vcombine.high %v610_v55, %v610_v55  ;;  %v635_v37 = vcombine.high %v627_v29, %v627_v29  ;;  %v652_v30 = vcombine.high %v2184_v63, %v2184_v63  ;;  %v669_v38 = vcombine.high %v2187_v24, %v2187_v24 }
  0x5e   : > { %v619_v31 = vcombine.high %v617_v34, %v617_v34  ;;  %v636_v32 = vcombine.high %v634_v35, %v634_v35  ;;  %v653_v46 = vcombine.high %v2192_v25, %v2192_v25  ;;  %v670_v47 = vcombine.high %v2195_v36, %v2195_v36 }
  0x5f   : > { %v984_v48 = vsel %vm871_vm0, %v610_v55, -inf  ;;  %v991_v54 = vsel %vm871_vm0, %v618_v50, -inf  ;;  %v998_v33 = vsel %vm871_vm0, %v617_v34, -inf  ;;  %v1012_v62 = vsel %vm871_vm0, %v627_v29, -inf }
  0x60   : > { %v985_v49 = vrot.slane %v984_v48, 4  ;;  %v992_v53 = vrot.slane %v991_v54, 4  ;;  %v999_v51 = vrot.slane %v998_v33, 4  ;;  %v1005_v56 = vsel %vm871_vm0, %v619_v31, -inf }
  0x61   : > { %v1006_v1 = vrot.slane %v1005_v56, 4  ;;  %v1013_v14 = vrot.slane %v1012_v62, 4  ;;  %v1019_v61 = vsel %vm871_vm0, %v635_v37, -inf  ;;  %v1026_v2 = vsel %vm871_vm0, %v634_v35, -inf }
  0x62   : > { %v986_v5 = vmax.f32 %v984_v48, %v985_v49  ;;  %v993_v9 = vmax.f32 %v991_v54, %v992_v53  ;;  %v1000_v58 = vmax.f32 %v998_v33, %v999_v51  ;;  %v1020_v20 = vrot.slane %v1019_v61, 4 }
  0x63   : > { %v1007_v21 = vmax.f32 %v1005_v56, %v1006_v1  ;;  %v1014_v27 = vmax.f32 %v1012_v62, %v1013_v14  ;;  %v1027_v22 = vrot.slane %v1026_v2, 4  ;;  %v1033_v10 = vsel %vm871_vm0, %v636_v32, -inf }
  0x64   : > { %v987_v28 = vrot.slane %v986_v5, 2  ;;  %v994_v23 = vrot.slane %v993_v9, 2  ;;  %v1001_v55 = vrot.slane %v1000_v58, 2  ;;  %v1021_v29 = vmax.f32 %v1019_v61, %v1020_v20 }
  0x65   : > { %v1008_v34 = vrot.slane %v1007_v21, 2  ;;  %v1015_v50 = vrot.slane %v1014_v27, 2  ;;  %v1028_v31 = vmax.f32 %v1026_v2, %v1027_v22  ;;  %v1034_v7 = vrot.slane %v1033_v10, 4 }
  0x66   : > { %v988_v37 = vmax.f32 %v986_v5, %v987_v28  ;;  %v995_v26 = vmax.f32 %v993_v9, %v994_v23  ;;  %v1002_v35 = vmax.f32 %v1000_v58, %v1001_v55  ;;  %v1022_v48 = vrot.slane %v1021_v29, 2 }
  0x67   : > { %v1009_v54 = vmax.f32 %v1007_v21, %v1008_v34  ;;  %v1016_v33 = vmax.f32 %v1014_v27, %v1015_v50  ;;  %v1029_v49 = vrot.slane %v1028_v31, 2  ;;  %v1035_v53 = vmax.f32 %v1033_v10, %v1034_v7 }
  0x68   : > { %v989_v62 = vrot.slane %v988_v37, 1  ;;  %v996_v51 = vrot.slane %v995_v26, 1  ;;  %v1003_v56 = vrot.slane %v1002_v35, 1  ;;  %v1023_v32 = vmax.f32 %v1021_v29, %v1022_v48 }
  0x69   : > { %v1010_v1 = vrot.slane %v1009_v54, 1  ;;  %v1017_v14 = vrot.slane %v1016_v33, 1  ;;  %v1030_v3 = vmax.f32 %v1028_v31, %v1029_v49  ;;  %v1036_v61 = vrot.slane %v1035_v53, 2 }
  0x6a   : > { %v2213_v20 = vmax.f32 %v988_v37, %v989_v62  ;;  %v2215_v2 = vmax.f32 %v995_v26, %v996_v51  ;;  %v2217_v5 = vmax.f32 %v1002_v35, %v1003_v56  ;;  %v1024_v9 = vrot.slane %v1023_v32, 1 }
  0x6b   : > { %v2219_v58 = vmax.f32 %v1009_v54, %v1010_v1  ;;  %v2221_v21 = vmax.f32 %v1016_v33, %v1017_v14  ;;  %v1031_v7 = vrot.slane %v1030_v3, 1  ;;  %v1037_v27 = vmax.f32 %v1035_v53, %v1036_v61 }
  0x6c   : > { %v2223_v22 = vmax.f32 %v1023_v32, %v1024_v9  ;;  %v1040_v10 = vsel %vm871_vm0, %v2184_v63, -inf  ;;  %v1047_v28 = vsel %vm871_vm0, %v652_v30, -inf  ;;  %v1054_v26 = vsel %vm871_vm0, %v2192_v25, -inf }
  0x6d   : > { %v2230_v23 = vmax.f32 %v1030_v3, %v1031_v7  ;;  %v1038_v55 = vrot.slane %v1037_v27, 1  ;;  %v1041_v29 = vrot.slane %v1040_v10, 4  ;;  %v1048_v34 = vrot.slane %v1047_v28, 4 }
  0x6e   : > { %v1055_v50 = vrot.slane %v1054_v26, 4  ;;  %v1061_v31 = vsel %vm871_vm0, %v653_v46, -inf  ;;  %v1068_v37 = vsel %vm871_vm0, %v2187_v24, -inf  ;;  %v1075_v63 = vsel %vm871_vm0, %v669_v38, -inf }
  0x6f   : > { %v2242_v30 = vmax.f32 %v1037_v27, %v1038_v55  ;;  %v1042_v3 = vmax.f32 %v1040_v10, %v1041_v29  ;;  %v1049_v35 = vmax.f32 %v1047_v28, %v1048_v34  ;;  %v1062_v48 = vrot.slane %v1061_v31, 4 }
  0x70   : > { %v1056_v54 = vmax.f32 %v1054_v26, %v1055_v50  ;;  %v1069_v33 = vrot.slane %v1068_v37, 4  ;;  %v1076_v49 = vrot.slane %v1075_v63, 4  ;;  %v1082_v25 = vsel %vm871_vm0, %v2195_v36, -inf }
  0x71   : > { %v1043_v46 = vrot.slane %v1042_v3, 2  ;;  %v1050_v53 = vrot.slane %v1049_v35, 2  ;;  %v1063_v62 = vmax.f32 %v1061_v31, %v1062_v48  ;;  %v1083_v51 = vrot.slane %v1082_v25, 4 }
  0x72   : > { %v1057_v56 = vrot.slane %v1056_v54, 2  ;;  %v1070_v32 = vmax.f32 %v1068_v37, %v1069_v33  ;;  %v1077_v24 = vmax.f32 %v1075_v63, %v1076_v49  ;;  %v1089_v38 = vsel %vm871_vm0, %v670_v47, -inf }
  0x73   : > { %v1044_v1 = vmax.f32 %v1042_v3, %v1043_v46  ;;  %v1051_v14 = vmax.f32 %v1049_v35, %v1050_v53  ;;  %v1064_v61 = vrot.slane %v1063_v62, 2  ;;  %v1084_v9 = vmax.f32 %v1082_v25, %v1083_v51 }
  0x74   : > { %v1058_v7 = vmax.f32 %v1056_v54, %v1057_v56  ;;  %v1071_v27 = vrot.slane %v1070_v32, 2  ;;  %v1078_v10 = vrot.slane %v1077_v24, 2  ;;  %v1090_v28 = vrot.slane %v1089_v38, 4 }
  0x75   : > { %v1045_v26 = vrot.slane %v1044_v1, 1  ;;  %v1052_v55 = vrot.slane %v1051_v14, 1  ;;  %v1065_v29 = vmax.f32 %v1063_v62, %v1064_v61  ;;  %v1085_v34 = vrot.slane %v1084_v9, 2 }
  0x76   : > { %v1059_v50 = vrot.slane %v1058_v7, 1  ;;  %v1072_v31 = vmax.f32 %v1070_v32, %v1071_v27  ;;  %v1079_v37 = vmax.f32 %v1077_v24, %v1078_v10  ;;  %v1091_v63 = vmax.f32 %v1089_v38, %v1090_v28 }
  0x77   : > { %v1046_v48 = vmax.f32 %v1044_v1, %v1045_v26  ;;  %v1053_v36 = vmax.f32 %v1051_v14, %v1052_v55  ;;  %v1066_v33 = vrot.slane %v1065_v29, 1  ;;  %v1086_v47 = vmax.f32 %v1084_v9, %v1085_v34 }
  0x78   : > { %v1060_v3 = vmax.f32 %v1058_v7, %v1059_v50  ;;  %v1073_v35 = vrot.slane %v1072_v31, 1  ;;  %v1080_v49 = vrot.slane %v1079_v37, 1  ;;  %v1092_v25 = vrot.slane %v1091_v63, 2 }
  0x79   : > { %v1067_v54 = vmax.f32 %v1065_v29, %v1066_v33  ;;  %v1087_v46 = vrot.slane %v1086_v47, 1  ;;  %v1411_v53 = vrot.slane %v2221_v21, 7  ;;  %v1413_v51 = vrot.slane %v1046_v48, 6 }
  0x7a   : > { %v1074_v56 = vmax.f32 %v1072_v31, %v1073_v35  ;;  %v1081_v62 = vmax.f32 %v1079_v37, %v1080_v49  ;;  %v1093_v61 = vmax.f32 %v1091_v63, %v1092_v25  ;;  %v1417_v32 = vrot.slane %v2223_v22, 7 }
  0x7b   : > { %v1088_v24 = vmax.f32 %v1086_v47, %v1087_v46  ;;  %v1412_v38 = vsel %vm1385_vm1, %v1411_v53, %v2213_v20  ;;  %v1419_v1 = vrot.slane %v1053_v36, 6  ;;  %v1423_v14 = vrot.slane %v2230_v23, 7 }
  0x7c   : > { %v1094_v9 = vrot.slane %v1093_v61, 1  ;;  %v1414_v7 = vsel %vm1388_vm2, %v1413_v51, %v1412_v38  ;;  %v1415_v27 = vrot.slane %v1074_v56, 5  ;;  %v1418_v21 = vsel %vm1385_vm1, %v1417_v32, %v2215_v2 }
  0x7d   : > { %v1420_v10 = vsel %vm1388_vm2, %v1419_v1, %v1418_v21  ;;  %v1421_v28 = vrot.slane %v1081_v62, 5  ;;  %v1424_v22 = vsel %vm1385_vm1, %v1423_v14, %v2217_v5  ;;  %v1425_v26 = vrot.slane %v1060_v3, 6 }
  0x7e   : > { %v1095_v55 = vmax.f32 %v1093_v61, %v1094_v9  ;;  %v1416_v20 = vsel %vm1391_vm3, %v1415_v27, %v1414_v7  ;;  %v1427_v29 = vrot.slane %v1088_v24, 5  ;;  %v1429_v23 = vrot.slane %v2242_v30, 7  ;;  %v2300_v24 = vld [vmem:[%s1949_s19 + $0x70] sm:$0xff] }
  0x7f   : > { %v1422_v34 = vsel %vm1391_vm3, %v1421_v28, %v1420_v10  ;;  %v1426_v50 = vsel %vm1388_vm2, %v1425_v26, %v1424_v22  ;;  %v1431_v31 = vrot.slane %v1067_v54, 6  ;;  %v261_v2 = vmul.f32 %v1954_v16, %v207_v59  ;;  %v2305_v28 = vld [vmem:[%s1949_s19 + $0x78] sm:$0xff] }
  0x80   : > { %v1428_v37 = vsel %vm1391_vm3, %v1427_v29, %v1426_v50  ;;  %v1430_v5 = vsel %vm1385_vm1, %v1429_v23, %v2219_v58  ;;  %v1433_v63 = vrot.slane %v1095_v55, 5  ;;  %v262_v48 = vmul.f32 %v1956_v17, %v208_v57 }
  0x81   : > { %v1432_v30 = vsel %vm1388_vm2, %v1431_v31, %v1430_v5  ;;  %v1533_v36 = vcombine.low %v1416_v20, %v1428_v37  ;;  %v263_v33 = vmul.f32 %v1958_v18, %v209_v6  ;;  %v2637_v59 = vunpack.c.h.bf16 %v2139_v52 }
  0x82   : > { %v1434_v3 = vsel %vm1391_vm3, %v1433_v63, %v1432_v30  ;;  %v311_v58 = vadd.f32 %v1975_v39, %v2168_v12  ;;  %v312_v45 = vadd.f32 %v1977_v40, %v2171_v8  ;;  %v313_v57 = vadd.f32 %v1979_v41, %v2174_v13  ;;  %v2296_v8 = vld [vmem:[%s1949_s19 + $0x68] sm:$0xff] }
  0x83   : > { %v264_v47 = vmul.f32 %v1960_v19, %v2637_v59  ;;  %v1540_v35 = vrot.slane %v1533_v36, %v1983_v43  ;;  %v1541_v49 = vcombine.low %v1422_v34, %v1434_v3  ;;  %v314_v52 = vadd.f32 %v1981_v42, %v2177_v15 }
  0x84   : > { %v315_v6 = vadd.f32 %v1975_v39, %v261_v2  ;;  %v316_v25 = vadd.f32 %v1977_v40, %v262_v48  ;;  %v317_v54 = vadd.f32 %v1979_v41, %v263_v33  ;;  %v343_v46 = vmax.f32 %v311_v58, 0.0 }
  0x85   : > { %v318_v12 = vadd.f32 %v1981_v42, %v264_v47  ;;  %v1548_v13 = vrot.slane %v1541_v49, %v1983_v43  ;;  %v344_v53 = vmax.f32 %v312_v45, 0.0  ;;  %v345_v51 = vmax.f32 %v313_v57, 0.0 }
  0x86   : > { %v346_v56 = vmax.f32 %v314_v52, 0.0  ;;  %v347_v62 = vmax.f32 %v315_v6, 0.0  ;;  %v348_v61 = vmax.f32 %v316_v25, 0.0  ;;  %v349_v15 = vmax.f32 %v317_v54, 0.0 }
  0x87   : > { %v350_v32 = vmax.f32 %v318_v12, 0.0  ;;  %v1549_v38 = vcombine.low %v1540_v35, %v1548_v13  ;;  %v1550_v1 = vcombine.high %v1540_v35, %v1548_v13  ;;  %v212_v14 = vunpack.c.h.bf16 %v2144_v60 }
  0x88   : > { %v213_v9 = vunpack.c.l.bf16 %v2296_v8  ;;  %v367_v7 = vmax.f32 %v343_v46, %v347_v62  ;;  %v368_v27 = vmax.f32 %v344_v53, %v348_v61  ;;  %v369_v21 = vmax.f32 %v345_v51, %v349_v15 }
  0x89   : > { %v370_v10 = vmax.f32 %v346_v56, %v350_v32  ;;  %v2308_v22 = vrot.slane %v1549_v38, %v1985_v44  ;;  %v2311_v26 = vrot.slane %v1550_v1, %v1985_v44  ;;  %v2638_v31 = vmov 0.0  }
  0x8a   : > { %v463_v29 = vcombine.low %v367_v7, %v368_v27  ;;  %v464_v23 = vcombine.high %v367_v7, %v368_v27  ;;  %v2640_v47 = vunpack.c.l.bf16 %v2144_v60  ;;  %v2340_v58 = vmul.f32 %v1956_v17, %v212_v14 }
  0x8b   : > { %v465_v34 = vcombine.low %v369_v21, %v370_v10  ;;  %v466_v50 = vcombine.high %v369_v21, %v370_v10  ;;  %1659 = vrot.lane.b32.xlu0 %v2308_v22, %s1910_s22  ;;  %v2319_v2 = vcombine.high %v2308_v22, %v2638_v31  ;;  %v2323_v37 = vcombine.high %v2311_v26, %v2638_v31 }
  0x8c   : > { %v473_v48 = vrot.slane %v463_v29, %v1983_v43  ;;  %v480_v30 = vrot.slane %v464_v23, %v1983_v43  ;;  %v2337_v3 = vmul.f32 %v1954_v16, %v2640_v47  ;;  %v2343_v45 = vmul.f32 %v1958_v18, %v213_v9 }
  0x8d   : > { %2639 = vst [vmem:[#allocation2_spill] sm:$0xff] %v2323_v37  ;;  %v487_v36 = vrot.slane %v465_v34, %v1983_v43  ;;  %v494_v33 = vrot.slane %v466_v50, %v1983_v43  ;;  %1661 = vrot.lane.b32.xlu1 %v2319_v2, %s1910_s22 }
  0x8f   : > { %v495_v57 = vcombine.low %v473_v48, %v487_v36  ;;  %v496_v35 = vcombine.high %v473_v48, %v487_v36  ;;  %v497_v49 = vcombine.low %v480_v30, %v494_v33  ;;  %v498_v52 = vcombine.high %v480_v30, %v494_v33  ;;  %1663 = vrot.lane.b32.xlu0 %v2311_v26, %s1910_s22 }
  0x90   : > { %v1860_v6 = vcombine.low %v487_v36, %v487_v36  ;;  %v1861_v25 = vcombine.high %v487_v36, %v487_v36  ;;  %v1862_v54 = vcombine.low %v494_v33, %v494_v33  ;;  %v1863_v60 = vcombine.high %v494_v33, %v494_v33 }
  0x91   : > { %v678_v12 = vrot.slane %v495_v57, %v1983_v43  ;;  %v695_v46 = vrot.slane %v496_v35, %v1983_v43  ;;  %v2350_v13 = vrot.slane %v497_v49, %v1983_v43  ;;  %v2353_v53 = vrot.slane %v498_v52, %v1983_v43  ;;  %1665 = vrot.lane.b32.xlu1 %v2323_v37, %s1910_s22 }
  0x92   : > { %v685_v51 = vrot.slane %v1860_v6, %v1983_v43  ;;  %v702_v56 = vrot.slane %v1861_v25, %v1983_v43  ;;  %v2360_v62 = vrot.slane %v1862_v54, %v1983_v43  ;;  %v2363_v61 = vrot.slane %v1863_v60, %v1983_v43 }
  0x93   : > { %v686_v15 = vcombine.high %v678_v12, %v678_v12  ;;  %v703_v32 = vcombine.high %v695_v46, %v695_v46  ;;  %v720_v38 = vcombine.high %v2350_v13, %v2350_v13  ;;  %v737_v1 = vcombine.high %v2353_v53, %v2353_v53 }
  0x94   : > { %v687_v14 = vcombine.high %v685_v51, %v685_v51  ;;  %v704_v9 = vcombine.high %v702_v56, %v702_v56  ;;  %v721_v7 = vcombine.high %v2360_v62, %v2360_v62  ;;  %v1096_v21 = vsel %vm871_vm0, %v678_v12, -inf }
  0x95   : > { %v1103_v10 = vsel %vm871_vm0, %v686_v15, -inf  ;;  %v1110_v29 = vsel %vm871_vm0, %v685_v51, -inf  ;;  %v1124_v23 = vsel %vm871_vm0, %v695_v46, -inf  ;;  %v1097_v34 = vrot.slane %v1096_v21, 4 }
  0x96   : > { %v1104_v50 = vrot.slane %v1103_v10, 4  ;;  %v1111_v48 = vrot.slane %v1110_v29, 4  ;;  %v1117_v30 = vsel %vm871_vm0, %v687_v14, -inf  ;;  %v1125_v33 = vrot.slane %v1124_v23, 4 }
  0x97   : > { %v1118_v36 = vrot.slane %v1117_v30, 4  ;;  %v1131_v47 = vsel %vm871_vm0, %v703_v32, -inf  ;;  %v1138_v57 = vsel %vm871_vm0, %v702_v56, -inf  ;;  %v1098_v35 = vmax.f32 %v1096_v21, %v1097_v34 }
  0x98   : > { %v1105_v49 = vmax.f32 %v1103_v10, %v1104_v50  ;;  %v1112_v52 = vmax.f32 %v1110_v29, %v1111_v48  ;;  %v1132_v6 = vrot.slane %v1131_v47, 4  ;;  %v1126_v54 = vmax.f32 %v1124_v23, %v1125_v33 }
  0x99   : > { %v1119_v25 = vmax.f32 %v1117_v30, %v1118_v36  ;;  %v1139_v60 = vrot.slane %v1138_v57, 4  ;;  %v1145_v12 = vsel %vm871_vm0, %v704_v9, -inf  ;;  %v1099_v46 = vrot.slane %v1098_v35, 2 }
  0x9a   : > { %v1106_v51 = vrot.slane %v1105_v49, 2  ;;  %v1113_v15 = vrot.slane %v1112_v52, 2  ;;  %v1133_v59 = vmax.f32 %v1131_v47, %v1132_v6  ;;  %v1127_v63 = vrot.slane %v1126_v54, 2 }
  0x9b   : > { %v1120_v14 = vrot.slane %v1119_v25, 2  ;;  %v1140_v5 = vmax.f32 %v1138_v57, %v1139_v60  ;;  %v1146_v20 = vrot.slane %v1145_v12, 4  ;;  %v1100_v32 = vmax.f32 %v1098_v35, %v1099_v46 }
  0x9c   : > { %v1107_v55 = vmax.f32 %v1105_v49, %v1106_v51  ;;  %v1114_v56 = vmax.f32 %v1112_v52, %v1113_v15  ;;  %v1134_v21 = vrot.slane %v1133_v59, 2  ;;  %v1128_v29 = vmax.f32 %v1126_v54, %v1127_v63 }
  0x9d   : > { %v1121_v10 = vmax.f32 %v1119_v25, %v1120_v14  ;;  %v1141_v34 = vrot.slane %v1140_v5, 2  ;;  %v1147_v50 = vmax.f32 %v1145_v12, %v1146_v20  ;;  %v1101_v23 = vrot.slane %v1100_v32, 1 }
  0x9e   : > { %v1108_v48 = vrot.slane %v1107_v55, 1  ;;  %v1115_v30 = vrot.slane %v1114_v56, 1  ;;  %v1135_v9 = vmax.f32 %v1133_v59, %v1134_v21  ;;  %v1129_v33 = vrot.slane %v1128_v29, 1 }
  0x9f   : > { %v1122_v36 = vrot.slane %v1121_v10, 1  ;;  %v1142_v27 = vmax.f32 %v1140_v5, %v1141_v34  ;;  %v1148_v47 = vrot.slane %v1147_v50, 2  ;;  %v2381_v6 = vmax.f32 %v1100_v32, %v1101_v23 }
  0xa0   : > { %v2383_v57 = vmax.f32 %v1107_v55, %v1108_v48  ;;  %v2385_v35 = vmax.f32 %v1114_v56, %v1115_v30  ;;  %v1136_v49 = vrot.slane %v1135_v9, 1  ;;  %v2389_v63 = vmax.f32 %v1128_v29, %v1129_v33 }
  0xa1   : > { %v2387_v52 = vmax.f32 %v1121_v10, %v1122_v36  ;;  %v1143_v20 = vrot.slane %v1142_v27, 1  ;;  %v1149_v25 = vmax.f32 %v1147_v50, %v1148_v47  ;;  %v1152_v59 = vsel %vm871_vm0, %v2350_v13, -inf }
  0xa2   : > { %v2391_v54 = vmax.f32 %v1135_v9, %v1136_v49  ;;  %v1159_v5 = vsel %vm871_vm0, %v720_v38, -inf  ;;  %v1166_v55 = vsel %vm871_vm0, %v2360_v62, -inf  ;;  %v1153_v46 = vrot.slane %v1152_v59, 4 }
  0xa3   : > { %v2398_v60 = vmax.f32 %v1142_v27, %v1143_v20  ;;  %v1150_v12 = vrot.slane %v1149_v25, 1  ;;  %v1160_v51 = vrot.slane %v1159_v5, 4  ;;  %v1167_v15 = vrot.slane %v1166_v55, 4 }
  0xa4   : > { %v1173_v14 = vsel %vm871_vm0, %v721_v7, -inf  ;;  %v1180_v32 = vsel %vm871_vm0, %v2353_v53, -inf  ;;  %v1187_v13 = vsel %vm871_vm0, %v737_v1, -inf  ;;  %v1154_v27 = vmax.f32 %v1152_v59, %v1153_v46 }
  0xa5   : > { %v2410_v38 = vmax.f32 %v1149_v25, %v1150_v12  ;;  %v1161_v56 = vmax.f32 %v1159_v5, %v1160_v51  ;;  %v1174_v21 = vrot.slane %v1173_v14, 4  ;;  %v1168_v10 = vmax.f32 %v1166_v55, %v1167_v15 }
  0xa6   : > { %v1181_v29 = vrot.slane %v1180_v32, 4  ;;  %v1188_v34 = vrot.slane %v1187_v13, 4  ;;  %v1194_v62 = vsel %vm871_vm0, %v2363_v61, -inf  ;;  %v1155_v7 = vrot.slane %v1154_v27, 2 }
  0xa7   : > { %v1162_v50 = vrot.slane %v1161_v56, 2  ;;  %v1175_v23 = vmax.f32 %v1173_v14, %v1174_v21  ;;  %v1195_v48 = vrot.slane %v1194_v62, 4  ;;  %v1169_v30 = vrot.slane %v1168_v10, 2 }
  0xa8   : > { %v1182_v9 = vmax.f32 %v1180_v32, %v1181_v29  ;;  %v1189_v53 = vmax.f32 %v1187_v13, %v1188_v34  ;;  %v2641_v1 = vcombine.high %v2363_v61, %v2363_v61  ;;  %v1156_v33 = vmax.f32 %v1154_v27, %v1155_v7 }
  0xa9   : > { %v1163_v47 = vmax.f32 %v1161_v56, %v1162_v50  ;;  %v1176_v49 = vrot.slane %v1175_v23, 2  ;;  %v1196_v20 = vmax.f32 %v1194_v62, %v1195_v48  ;;  %v1170_v25 = vmax.f32 %v1168_v10, %v1169_v30 }
  0xaa   : > { %v1201_v36 = vsel %vm871_vm0, %v2641_v1, -inf  ;;  %v1183_v59 = vrot.slane %v1182_v9, 2  ;;  %v1190_v5 = vrot.slane %v1189_v53, 2  ;;  %v1157_v12 = vrot.slane %v1156_v33, 1 }
  0xab   : > { %v1202_v55 = vrot.slane %v1201_v36, 4  ;;  %v1164_v46 = vrot.slane %v1163_v47, 1  ;;  %v1177_v51 = vmax.f32 %v1175_v23, %v1176_v49  ;;  %v1197_v15 = vrot.slane %v1196_v20, 2 }
  0xac   : > { %v1171_v14 = vrot.slane %v1170_v25, 1  ;;  %v1184_v32 = vmax.f32 %v1182_v9, %v1183_v59  ;;  %v1191_v13 = vmax.f32 %v1189_v53, %v1190_v5  ;;  %v1158_v29 = vmax.f32 %v1156_v33, %v1157_v12 }
  0xad   : > { %v1203_v21 = vmax.f32 %v1201_v36, %v1202_v55  ;;  %v1165_v61 = vmax.f32 %v1163_v47, %v1164_v46  ;;  %v1178_v34 = vrot.slane %v1177_v51, 1  ;;  %v1198_v1 = vmax.f32 %v1196_v20, %v1197_v15 }
  0xae   : > { %v1172_v27 = vmax.f32 %v1170_v25, %v1171_v14  ;;  %v1185_v56 = vrot.slane %v1184_v32, 1  ;;  %v1192_v7 = vrot.slane %v1191_v13, 1  ;;  %v1435_v48 = vrot.slane %v2389_v63, 7 }
  0xaf   : > { %v1204_v62 = vrot.slane %v1203_v21, 2  ;;  %v1179_v10 = vmax.f32 %v1177_v51, %v1178_v34  ;;  %v1199_v50 = vrot.slane %v1198_v1, 1  ;;  %v1437_v30 = vrot.slane %v1158_v29, 6 }
  0xb0   : > { %v1186_v37 = vmax.f32 %v1184_v32, %v1185_v56  ;;  %v1193_v23 = vmax.f32 %v1191_v13, %v1192_v7  ;;  %v1441_v9 = vrot.slane %v2391_v54, 7  ;;  %v1436_v36 = vsel %vm1385_vm1, %v1435_v48, %v2381_v6 }
  0xb1   : > { %v1205_v49 = vmax.f32 %v1203_v21, %v1204_v62  ;;  %v1200_v53 = vmax.f32 %v1198_v1, %v1199_v50  ;;  %v1443_v33 = vrot.slane %v1165_v61, 6  ;;  %v1447_v47 = vrot.slane %v2398_v60, 7 }
  0xb2   : > { %v1438_v25 = vsel %vm1388_vm2, %v1437_v30, %v1436_v36  ;;  %v1439_v59 = vrot.slane %v1186_v37, 5  ;;  %v1442_v63 = vsel %vm1385_vm1, %v1441_v9, %v2383_v57  ;;  %v1445_v55 = vrot.slane %v1193_v23, 5 }
  0xb3   : > { %v1206_v20 = vrot.slane %v1205_v49, 1  ;;  %v1444_v5 = vsel %vm1388_vm2, %v1443_v33, %v1442_v63  ;;  %v1448_v54 = vsel %vm1385_vm1, %v1447_v47, %v2385_v35  ;;  %v1449_v12 = vrot.slane %v1172_v27, 6 }
  0xb4   : > { %v1440_v6 = vsel %vm1391_vm3, %v1439_v59, %v1438_v25  ;;  %v1451_v51 = vrot.slane %v1200_v53, 5  ;;  %v1453_v60 = vrot.slane %v2410_v38, 7  ;;  %v1446_v15 = vsel %vm1391_vm3, %v1445_v55, %v1444_v5 }
  0xb5   : > { %v1207_v46 = vmax.f32 %v1205_v49, %v1206_v20  ;;  %v1450_v37 = vsel %vm1388_vm2, %v1449_v12, %v1448_v54  ;;  %v1455_v14 = vrot.slane %v1179_v10, 6  ;;  %v2642_v57 = vunpack.c.h.bf16 %v2296_v8 }
  0xb6   : > { %v1452_v13 = vsel %vm1391_vm3, %v1451_v51, %v1450_v37  ;;  %v1454_v35 = vsel %vm1385_vm1, %v1453_v60, %v2387_v52  ;;  %v2643_v29 = vunpack.c.l.bf16 %v2300_v24  ;;  %v2644_v1 = vunpack.c.h.bf16 %v2300_v24 }
  0xb7   : > { %v268_v32 = vmul.f32 %v1960_v19, %v2642_v57  ;;  %v1457_v21 = vrot.slane %v1207_v46, 5  ;;  %v1456_v38 = vsel %vm1388_vm2, %v1455_v14, %v1454_v35  ;;  %v1567_v34 = vcombine.low %v1440_v6, %v1452_v13 }
  0xb8   : > { %v269_v61 = vmul.f32 %v1954_v16, %v2643_v29  ;;  %v270_v27 = vmul.f32 %v1956_v17, %v2644_v1  ;;  %v2645_v8 = vunpack.c.l.bf16 %v2305_v28  ;;  %v2646_v52 = vunpack.c.h.bf16 %v2305_v28 }
  0xb9   : > { %v1458_v7 = vsel %vm1391_vm3, %v1457_v21, %v1456_v38  ;;  %v319_v16 = vadd.f32 %v1975_v39, %v2337_v3  ;;  %v320_v10 = vadd.f32 %v1977_v40, %v2340_v58  ;;  %v1574_v24 = vrot.slane %v1567_v34, %v1983_v43 }
  0xba   : > { %v271_v56 = vmul.f32 %v1958_v18, %v2645_v8  ;;  %v272_v62 = vmul.f32 %v1960_v19, %v2646_v52  ;;  %v1575_v50 = vcombine.low %v1446_v15, %v1458_v7  ;;  %v321_v17 = vadd.f32 %v1979_v41, %v2343_v45 }
  0xbb   : > { %v322_v18 = vadd.f32 %v1981_v42, %v268_v32  ;;  %v323_v48 = vadd.f32 %v1975_v39, %v269_v61  ;;  %v324_v28 = vadd.f32 %v1977_v40, %v270_v27  ;;  %v351_v23 = vmax.f32 %v319_v16, 0.0 }
  0xbc   : > { %v325_v19 = vadd.f32 %v1979_v41, %v271_v56  ;;  %v326_v30 = vadd.f32 %v1981_v42, %v272_v62  ;;  %v1582_v3 = vrot.slane %v1575_v50, %v1983_v43  ;;  %v352_v58 = vmax.f32 %v320_v10, 0.0 }
  0xbd   : > { %v353_v49 = vmax.f32 %v321_v17, 0.0  ;;  %v354_v9 = vmax.f32 %v322_v18, 0.0  ;;  %v355_v53 = vmax.f32 %v323_v48, 0.0  ;;  %v356_v36 = vmax.f32 %v324_v28, 0.0 }
  0xbe   : > { %v357_v33 = vmax.f32 %v325_v19, 0.0  ;;  %v1583_v45 = vcombine.low %v1574_v24, %v1582_v3  ;;  %v1584_v47 = vcombine.high %v1574_v24, %v1582_v3  ;;  %v358_v20 = vmax.f32 %v326_v30, 0.0 }
  0xbf   : > { %v371_v25 = vmax.f32 %v351_v23, %v355_v53  ;;  %v372_v39 = vmax.f32 %v352_v58, %v356_v36 }
  0xc0   : > { %v373_v59 = vmax.f32 %v353_v49, %v357_v33  ;;  %v2467_v40 = vrot.slane %v1583_v45, %v1985_v44  ;;  %v374_v41 = vmax.f32 %v354_v9, %v358_v20  ;;  %v2476_v55 = vrot.slane %v1584_v47, %v1985_v44 }
  0xc1   : > { %v499_v42 = vcombine.low %v371_v25, %v372_v39  ;;  %v500_v63 = vcombine.high %v371_v25, %v372_v39 }
  0xc2   : > { %1667 = vrot.lane.b32.xlu0 %v2467_v40, %s1910_s22  ;;  %v2473_v5 = vcombine.high %v2467_v40, %v2638_v31  ;;  %v501_v54 = vcombine.low %v373_v59, %v374_v41  ;;  %v502_v12 = vcombine.high %v373_v59, %v374_v41  ;;  %v2484_v51 = vcombine.high %v2476_v55, %v2638_v31 }
  0xc3   : > { %v509_v46 = vrot.slane %v499_v42, %v1983_v43  ;;  %v516_v6 = vrot.slane %v500_v63, %v1983_v43 }
  0xc4   : > { %1669 = vrot.lane.b32.xlu1 %v2473_v5, %s1910_s22  ;;  %v523_v60 = vrot.slane %v501_v54, %v1983_v43  ;;  %v530_v15 = vrot.slane %v502_v12, %v1983_v43 }
  0xc6   : > { %1671 = vrot.lane.b32.xlu0 %v2476_v55, %s1910_s22  ;;  %v531_v37 = vcombine.low %v509_v46, %v523_v60  ;;  %v532_v14 = vcombine.high %v509_v46, %v523_v60  ;;  %v533_v57 = vcombine.low %v516_v6, %v530_v15  ;;  %v534_v32 = vcombine.high %v516_v6, %v530_v15 }
  0xc7   : > { %v1864_v13 = vcombine.low %v523_v60, %v523_v60  ;;  %v1865_v35 = vcombine.high %v523_v60, %v523_v60  ;;  %v1866_v21 = vcombine.low %v530_v15, %v530_v15  ;;  %v1867_v29 = vcombine.high %v530_v15, %v530_v15 }
  0xc8   : > { %1673 = vrot.lane.b32.xlu1 %v2484_v51, %s1910_s22  ;;  %v746_v61 = vrot.slane %v531_v37, %v1983_v43  ;;  %v763_v38 = vrot.slane %v532_v14, %v1983_v43  ;;  %v2495_v34 = vrot.slane %v533_v57, %v1983_v43  ;;  %v2498_v1 = vrot.slane %v534_v32, %v1983_v43 }
  0xc9   : > { %v753_v27 = vrot.slane %v1864_v13, %v1983_v43  ;;  %v770_v8 = vrot.slane %v1865_v35, %v1983_v43  ;;  %v2503_v56 = vrot.slane %v1866_v21, %v1983_v43  ;;  %v2506_v7 = vrot.slane %v1867_v29, %v1983_v43 }
  0xca   : > { %v754_v52 = vcombine.high %v746_v61, %v746_v61  ;;  %v771_v62 = vcombine.high %v763_v38, %v763_v38  ;;  %v788_v16 = vcombine.high %v2495_v34, %v2495_v34  ;;  %v805_v10 = vcombine.high %v2498_v1, %v2498_v1 }
  0xcb   : > { %v755_v24 = vcombine.high %v753_v27, %v753_v27  ;;  %v772_v50 = vcombine.high %v770_v8, %v770_v8  ;;  %v789_v17 = vcombine.high %v2503_v56, %v2503_v56  ;;  %v806_v18 = vcombine.high %v2506_v7, %v2506_v7 }
  0xcc   : > { %v1208_v48 = vsel %vm871_vm0, %v746_v61, -inf  ;;  %v1215_v28 = vsel %vm871_vm0, %v754_v52, -inf  ;;  %v1222_v19 = vsel %vm871_vm0, %v753_v27, -inf  ;;  %v1236_v30 = vsel %vm871_vm0, %v763_v38, -inf }
  0xcd   : > { %v1209_v3 = vrot.slane %v1208_v48, 4  ;;  %v1216_v23 = vrot.slane %v1215_v28, 4  ;;  %v1223_v58 = vrot.slane %v1222_v19, 4  ;;  %v1229_v49 = vsel %vm871_vm0, %v755_v24, -inf }
  0xce   : > { %v1230_v9 = vrot.slane %v1229_v49, 4  ;;  %v1237_v53 = vrot.slane %v1236_v30, 4  ;;  %v1243_v36 = vsel %vm871_vm0, %v771_v62, -inf  ;;  %v1250_v33 = vsel %vm871_vm0, %v770_v8, -inf }
  0xcf   : > { %v1210_v45 = vmax.f32 %v1208_v48, %v1209_v3  ;;  %v1217_v47 = vmax.f32 %v1215_v28, %v1216_v23  ;;  %v1224_v20 = vmax.f32 %v1222_v19, %v1223_v58  ;;  %v1244_v25 = vrot.slane %v1243_v36, 4 }
  0xd0   : > { %v1231_v39 = vmax.f32 %v1229_v49, %v1230_v9  ;;  %v1238_v59 = vmax.f32 %v1236_v30, %v1237_v53  ;;  %v1251_v41 = vrot.slane %v1250_v33, 4  ;;  %v1257_v42 = vsel %vm871_vm0, %v772_v50, -inf }
  0xd1   : > { %v1211_v63 = vrot.slane %v1210_v45, 2  ;;  %v1218_v54 = vrot.slane %v1217_v47, 2  ;;  %v1225_v12 = vrot.slane %v1224_v20, 2  ;;  %v1245_v46 = vmax.f32 %v1243_v36, %v1244_v25 }
  0xd2   : > { %v1232_v6 = vrot.slane %v1231_v39, 2  ;;  %v1239_v60 = vrot.slane %v1238_v59, 2  ;;  %v1252_v15 = vmax.f32 %v1250_v33, %v1251_v41  ;;  %v1258_v37 = vrot.slane %v1257_v42, 4 }
  0xd3   : > { %v1212_v14 = vmax.f32 %v1210_v45, %v1211_v63  ;;  %v1219_v57 = vmax.f32 %v1217_v47, %v1218_v54  ;;  %v1226_v32 = vmax.f32 %v1224_v20, %v1225_v12  ;;  %v1246_v13 = vrot.slane %v1245_v46, 2 }
  0xd4   : > { %v1233_v35 = vmax.f32 %v1231_v39, %v1232_v6  ;;  %v1240_v21 = vmax.f32 %v1238_v59, %v1239_v60  ;;  %v1253_v29 = vrot.slane %v1252_v15, 2  ;;  %v1259_v61 = vmax.f32 %v1257_v42, %v1258_v37 }
  0xd5   : > { %v1213_v38 = vrot.slane %v1212_v14, 1  ;;  %v1220_v27 = vrot.slane %v1219_v57, 1  ;;  %v1227_v8 = vrot.slane %v1226_v32, 1  ;;  %v1247_v52 = vmax.f32 %v1245_v46, %v1246_v13 }
  0xd6   : > { %v1234_v62 = vrot.slane %v1233_v35, 1  ;;  %v1241_v24 = vrot.slane %v1240_v21, 1  ;;  %v1254_v50 = vmax.f32 %v1252_v15, %v1253_v29  ;;  %v1260_v48 = vrot.slane %v1259_v61, 2 }
  0xd7   : > { %v2524_v28 = vmax.f32 %v1212_v14, %v1213_v38  ;;  %v2526_v19 = vmax.f32 %v1219_v57, %v1220_v27  ;;  %v2528_v30 = vmax.f32 %v1226_v32, %v1227_v8  ;;  %v1248_v3 = vrot.slane %v1247_v52, 1 }
  0xd8   : > { %v2530_v23 = vmax.f32 %v1233_v35, %v1234_v62  ;;  %v2532_v58 = vmax.f32 %v1240_v21, %v1241_v24  ;;  %v1255_v49 = vrot.slane %v1254_v50, 1  ;;  %v1261_v9 = vmax.f32 %v1259_v61, %v1260_v48 }
  0xd9   : > { %v2534_v53 = vmax.f32 %v1247_v52, %v1248_v3  ;;  %v1264_v36 = vsel %vm871_vm0, %v2495_v34, -inf  ;;  %v1271_v33 = vsel %vm871_vm0, %v788_v16, -inf  ;;  %v1278_v45 = vsel %vm871_vm0, %v2503_v56, -inf }
  0xda   : > { %v2541_v47 = vmax.f32 %v1254_v50, %v1255_v49  ;;  %v1262_v20 = vrot.slane %v1261_v9, 1  ;;  %v1265_v25 = vrot.slane %v1264_v36, 4  ;;  %v1272_v39 = vrot.slane %v1271_v33, 4 }
  0xdb   : > { %v1279_v59 = vrot.slane %v1278_v45, 4  ;;  %v1285_v41 = vsel %vm871_vm0, %v789_v17, -inf  ;;  %v1292_v42 = vsel %vm871_vm0, %v2498_v1, -inf  ;;  %v1299_v34 = vsel %vm871_vm0, %v805_v10, -inf }
  0xdc   : > { %v2553_v16 = vmax.f32 %v1261_v9, %v1262_v20  ;;  %v1266_v63 = vmax.f32 %v1264_v36, %v1265_v25  ;;  %v1273_v54 = vmax.f32 %v1271_v33, %v1272_v39  ;;  %v1286_v12 = vrot.slane %v1285_v41, 4 }
  0xdd   : > { %v1280_v46 = vmax.f32 %v1278_v45, %v1279_v59  ;;  %v1293_v6 = vrot.slane %v1292_v42, 4  ;;  %v1300_v60 = vrot.slane %v1299_v34, 4  ;;  %v1306_v56 = vsel %vm871_vm0, %v2506_v7, -inf  ;;  %v1656_v59 = vpop.permute.xlu1 %1655 }
  0xde   : > { %v1267_v17 = vrot.slane %v1266_v63, 2  ;;  %v1274_v15 = vrot.slane %v1273_v54, 2  ;;  %v1287_v37 = vmax.f32 %v1285_v41, %v1286_v12  ;;  %v1307_v14 = vrot.slane %v1306_v56, 4 }
  0xdf   : > { %v1281_v57 = vrot.slane %v1280_v46, 2  ;;  %v1294_v32 = vmax.f32 %v1292_v42, %v1293_v6  ;;  %v1301_v1 = vmax.f32 %v1299_v34, %v1300_v60  ;;  %v1313_v10 = vsel %vm871_vm0, %v806_v18, -inf }
  0xe0   : > { %v1268_v13 = vmax.f32 %v1266_v63, %v1267_v17  ;;  %v1275_v35 = vmax.f32 %v1273_v54, %v1274_v15  ;;  %v1288_v21 = vrot.slane %v1287_v37, 2  ;;  %v1308_v29 = vmax.f32 %v1306_v56, %v1307_v14 }
  0xe1   : > { %v1282_v61 = vmax.f32 %v1280_v46, %v1281_v57  ;;  %v1295_v38 = vrot.slane %v1294_v32, 2  ;;  %v1302_v27 = vrot.slane %v1301_v1, 2  ;;  %v1314_v8 = vrot.slane %v1313_v10, 4 }
  0xe2   : > { %v1269_v52 = vrot.slane %v1268_v13, 1  ;;  %v1276_v62 = vrot.slane %v1275_v35, 1  ;;  %v1289_v24 = vmax.f32 %v1287_v37, %v1288_v21  ;;  %v1309_v50 = vrot.slane %v1308_v29, 2  ;;  %v1658_v21 = vpop.permute.xlu1 %1657 }
  0xe3   : > { %v1283_v48 = vrot.slane %v1282_v61, 1  ;;  %v1296_v3 = vmax.f32 %v1294_v32, %v1295_v38  ;;  %v1303_v49 = vmax.f32 %v1301_v1, %v1302_v27  ;;  %v1315_v9 = vmax.f32 %v1313_v10, %v1314_v8 }
  0xe4   : > { %v1270_v36 = vmax.f32 %v1268_v13, %v1269_v52  ;;  %v1277_v7 = vmax.f32 %v1275_v35, %v1276_v62  ;;  %v1290_v33 = vrot.slane %v1289_v24, 1  ;;  %v1310_v18 = vmax.f32 %v1308_v29, %v1309_v50 }
  0xe5   : > { %v1284_v45 = vmax.f32 %v1282_v61, %v1283_v48  ;;  %v1297_v20 = vrot.slane %v1296_v3, 1  ;;  %v1304_v25 = vrot.slane %v1303_v49, 1  ;;  %v1316_v39 = vrot.slane %v1315_v9, 2 }
  0xe6   : > { %v1291_v41 = vmax.f32 %v1289_v24, %v1290_v33  ;;  %v1311_v42 = vrot.slane %v1310_v18, 1  ;;  %v1459_v34 = vrot.slane %v2532_v58, 7  ;;  %v1461_v63 = vrot.slane %v1270_v36, 6 }
  0xe7   : > { %v1298_v54 = vmax.f32 %v1296_v3, %v1297_v20  ;;  %v1305_v12 = vmax.f32 %v1303_v49, %v1304_v25  ;;  %v1317_v46 = vmax.f32 %v1315_v9, %v1316_v39  ;;  %v1465_v6 = vrot.slane %v2534_v53, 7 }
  0xe8   : > { %v1312_v60 = vmax.f32 %v1310_v18, %v1311_v42  ;;  %v1460_v56 = vsel %vm1385_vm1, %v1459_v34, %v2524_v28  ;;  %v1467_v17 = vrot.slane %v1277_v7, 6  ;;  %v1471_v15 = vrot.slane %v2541_v47, 7  ;;  %v1652_v18 = vpop.permute.xlu0 %1651 }
  0xe9   : > { %v1318_v37 = vrot.slane %v1317_v46, 1  ;;  %v1462_v14 = vsel %vm1388_vm2, %v1461_v63, %v1460_v56  ;;  %v1463_v57 = vrot.slane %v1298_v54, 5  ;;  %v1466_v58 = vsel %vm1385_vm1, %v1465_v6, %v2526_v19 }
  0xea   : > { %v1468_v32 = vsel %vm1388_vm2, %v1467_v17, %v1466_v58  ;;  %v1469_v1 = vrot.slane %v1305_v12, 5  ;;  %v1472_v53 = vsel %vm1385_vm1, %v1471_v15, %v2528_v30  ;;  %v1473_v10 = vrot.slane %v1284_v45, 6 }
  0xeb   : > { %v1319_v13 = vmax.f32 %v1317_v46, %v1318_v37  ;;  %v1464_v28 = vsel %vm1391_vm3, %v1463_v57, %v1462_v14  ;;  %v1475_v35 = vrot.slane %v1312_v60, 5  ;;  %v1477_v47 = vrot.slane %v2553_v16, 7 }
  0xec   : > { %v1474_v29 = vsel %vm1388_vm2, %v1473_v10, %v1472_v53  ;;  %v1479_v61 = vrot.slane %v1291_v41, 6  ;;  %v1470_v19 = vsel %vm1391_vm3, %v1469_v1, %v1468_v32  ;;  %v1701_v62 = vmax.f32 %v2147_v11, %v1656_v59 }
  0xed   : > { %v1476_v38 = vsel %vm1391_vm3, %v1475_v35, %v1474_v29  ;;  %v1478_v27 = vsel %vm1385_vm1, %v1477_v47, %v2530_v23  ;;  %v1481_v30 = vrot.slane %v1319_v13, 5  ;;  %v1702_v16 = vmax.f32 %v2162_v4, %v1658_v21 }
  0xee   : > { %v1480_v8 = vsel %vm1388_vm2, %v1479_v61, %v1478_v27  ;;  %v1601_v52 = vcombine.low %v1464_v28, %v1476_v38  ;;  %v1531_v33 = vcombine.high %v2150_v0, %v2638_v31  ;;  %v1699_v53 = vmax.f32 %v2150_v0, %v1652_v18 }
  0xef   : > { %v1482_v24 = vsel %vm1391_vm3, %v1481_v30, %v1480_v8  ;;  %v1732_v3 = vcombine.low %v1701_v62, %v1702_v16 }
  0xf0   : > { %v1608_v50 = vrot.slane %v1601_v52, %v1983_v43  ;;  %v1609_v48 = vcombine.low %v1470_v19, %v1482_v24 }
  0xf1   : > { %v1881_v49 = vpack.c.bf16 %v1732_v3, %v1732_v3 }
  0xf2   : > { %v1616_v23 = vrot.slane %v1609_v48, %v1983_v43 }
  0xf3   : > { %1781 = vst.msk [vmem:[%s2588_s26 + $0x4] sm:$0xf] %vm1779_vm4, %v1881_v49 }
  0xf4   : > { %v1617_v11 = vcombine.low %v1608_v50, %v1616_v23  ;;  %v1618_v9 = vcombine.high %v1608_v50, %v1616_v23 }
  0xf6   : > { %v1625_v4 = vrot.slane %v1617_v11, %v1985_v44  ;;  %v1632_v36 = vrot.slane %v1618_v9, %v1985_v44 }
  0xf8   : > { %1675 = vrot.lane.b32.xlu0 %v1625_v4, %s1910_s22  ;;  %v1633_v7 = vcombine.high %v1625_v4, %v2638_v31  ;;  %v1634_v43 = vcombine.high %v1632_v36, %v2638_v31  ;;  %v2647_v31 = vld [vmem:[#allocation2_spill] sm:$0xff] }
  0xfa   : > { %1677 = vrot.lane.b32.xlu1 %v1633_v7, %s1910_s22 }
  0xfc   : > { %1653 = vrot.lane.b32.xlu0 %v1531_v33, %s1910_s22 }
  0xfd   : > { %v1660_v45 = vpop.permute.xlu0 %1659 }
  0xfe   : > { %1681 = vrot.lane.b32.xlu1 %v1634_v43, %s1910_s22  ;;  %v1703_v20 = vmax.f32 %v2308_v22, %v1660_v45 }
  0xff   : > { %v1662_v44 = vpop.permute.xlu1 %1661 }
 0x100   : > { %1679 = vrot.lane.b32.xlu0 %v1632_v36, %s1910_s22  ;;  %v1704_v25 = vmax.f32 %v2319_v2, %v1662_v44 }
 0x101   : > { %v1664_v39 = vpop.permute.xlu0 %1663 }
 0x102   : > { %v1733_v59 = vcombine.low %v1703_v20, %v1704_v25  ;;  %v1705_v34 = vmax.f32 %v2311_v26, %v1664_v39 }
 0x103   : > { %v1666_v41 = vpop.permute.xlu1 %1665 }
 0x104   : > { %v1882_v42 = vpack.c.bf16 %v1733_v59, %v1733_v59  ;;  %v1706_v63 = vmax.f32 %v2647_v31, %v1666_v41 }
 0x106   : > { %1782 = vst.msk [vmem:[%s2588_s26 + $0x8] sm:$0xf] %vm1779_vm4, %v1882_v42  ;;  %v1734_v54 = vcombine.low %v1705_v34, %v1706_v63 }
 0x108   : > { %v1883_v12 = vpack.c.bf16 %v1734_v54, %v1734_v54 }
 0x10a   : > { %1783 = vst.msk [vmem:[%s2588_s26 + $0xc] sm:$0xf] %vm1779_vm4, %v1883_v12 }
 0x134   : > { %v1668_v46 = vpop.permute.xlu0 %1667 }
 0x135   : > { %v1707_v2 = vmax.f32 %v2467_v40, %v1668_v46 }
 0x136   : > { %v1670_v22 = vpop.permute.xlu1 %1669 }
 0x137   : > { %v1708_v6 = vmax.f32 %v2473_v5, %v1670_v22 }
 0x138   : > { %v1672_v60 = vpop.permute.xlu0 %1671 }
 0x139   : > { %v1735_v56 = vcombine.low %v1707_v2, %v1708_v6  ;;  %v1709_v15 = vmax.f32 %v2476_v55, %v1672_v60 }
 0x13a   : > { %v1674_v17 = vpop.permute.xlu1 %1673 }
 0x13b   : > { %v1884_v26 = vpack.c.bf16 %v1735_v56, %v1735_v56  ;;  %v1710_v37 = vmax.f32 %v2484_v51, %v1674_v17 }
 0x13d   : > { %1784 = vst.msk [vmem:[%s2588_s26 + $0x10] sm:$0xf] %vm1779_vm4, %v1884_v26  ;;  %v1736_v14 = vcombine.low %v1709_v15, %v1710_v37 }
 0x13f   : > { %v1885_v57 = vpack.c.bf16 %v1736_v14, %v1736_v14 }
 0x141   : > { %1785 = vst.msk [vmem:[%s2588_s26 + $0x14] sm:$0xf] %vm1779_vm4, %v1885_v57 }
 0x16a   : > { %v1676_v58 = vpop.permute.xlu0 %1675 }
 0x16b   : > { %v1711_v32 = vmax.f32 %v1625_v4, %v1676_v58 }
 0x16c   : > { %v1678_v40 = vpop.permute.xlu1 %1677 }
 0x16d   : > { %v1712_v5 = vmax.f32 %v1633_v7, %v1678_v40 }
 0x16e   : > { %v1654_v1 = vpop.permute.xlu0 %1653 }
 0x16f   : > { %v1737_v10 = vcombine.low %v1711_v32, %v1712_v5  ;;  %v1700_v55 = vmax.f32 %v1531_v33, %v1654_v1 }
 0x170   : > { %v1682_v13 = vpop.permute.xlu1 %1681 }
 0x171   : > { %v1886_v51 = vpack.c.bf16 %v1737_v10, %v1737_v10  ;;  %v1731_v28 = vcombine.low %v1699_v53, %v1700_v55  ;;  %v1714_v35 = vmax.f32 %v1634_v43, %v1682_v13 }
 0x172   : > { %v1680_v47 = vpop.permute.xlu0 %1679 }
 0x173   : > { %1786 = vst.msk [vmem:[%s2588_s26 + $0x18] sm:$0xf] %vm1779_vm4, %v1886_v51  ;;  %v1880_v21 = vpack.c.bf16 %v1731_v28, %v1731_v28  ;;  %v1713_v29 = vmax.f32 %v1632_v36, %v1680_v47 }
 0x175   : > { %1780 = vst.msk [vmem:[%s2588_s26] sm:$0xf] %vm1779_vm4, %v1880_v21  ;;  %v1738_v61 = vcombine.low %v1713_v29, %v1714_v35 }
 0x177   : > { %v1887_v19 = vpack.c.bf16 %v1738_v61, %v1738_v61 }
 0x179   : > { %1787 = vst.msk [vmem:[%s2588_s26 + $0x1c] sm:$0xf] %vm1779_vm4, %v1887_v19 }
 0x17a PF: > { %s13_s12 = sadd.s32 1, %s1906_s12  }
 0x17b   : > { %p10_p4 = scmp.ge.s32.totalorder %s13_s12, 4  }
 0x17d   :  { %12 = sbr.rel (!%p10_p4) target bundleno = 1 (0x1), region = 62 }

// kernel: tile.53
= control target key start
LH: loop header
LB: loop body
LE: loop exit
PB: predicated region body
PF: predicated region fallthrough
CT: control target
= control target key end

     0   :  { %s22_s0 = inlined_call_operand.vmem [shape: f32[64], index: 0, kind: input, shape index: {}]   ;;  %s23_s1 = inlined_call_operand.vmem [shape: f32[4,64], index: 1, kind: output, shape index: {}]  }
   0x1   :  { %v4_v0 = vld [vmem:[%s22_s0] ss:$0 sm:$0xff] }
   0x2   :  { %5 = vst [vmem:[%s23_s1] sm:$0xf] %v4_v0 }

// kernel: tile.54
= control target key start
LH: loop header
LB: loop body
LE: loop exit
PB: predicated region body
PF: predicated region fallthrough
CT: control target
= control target key end

     0   :  { %s6_s8 = smov 3  ;;  %vm8_vm0 = vcmask 523264   ;;  %s30_s9 = smov 64   ;;  %vm15_vm1 = vcmask 1048064   ;;  %s50_s0 = inlined_call_operand.vmem [shape: f32[4,64], index: 0, kind: input, shape index: {}]   ;;  %s51_s1 = inlined_call_operand.vmem [shape: f32[1,256], index: 1, kind: output, shape index: {}]  }
   0x1   :  { %v4_v0 = vld [vmem:[%s50_s0] sm:$0xf]  ;;  %s11_s0 = smov 3 }
   0x2   :  { %5 = vst [vmem:[#allocation1] sm:$0xf] %v4_v0 }
   0x9   :  { %v12_v1 = vld [vmem:[#allocation1 + $0x1] ss:$2 sm:%s11_s0]   ;;  %v7_v2 = vld [vmem:[#allocation1] ss:$2 sm:%s6_s8]  }
   0xa   :  { %13 = vrot.lane.b32.xlu0 %v12_v1, %s30_s9  ;;  %9 = vst.msk [vmem:[#allocation0] ss:$8 sm:$0x3] %vm8_vm0, %v7_v2  }
  0x7c   :  { %v14_v3 = vpop.permute.xlu0 %13  }
  0x7d   :  { %16 = vst.msk [vmem:[#allocation0] ss:$8 sm:$0x3] %vm15_vm1, %v14_v3  }
  0x84   :  { %v20_v4 = vld [vmem:[#allocation0] sm:$0x1]  ;;  %v24_v5 = vld [vmem:[#allocation0 + $0x8] sm:$0x1] }
  0x85   :  { %22 = vst [vmem:[%s51_s1] sm:$0x1] %v20_v4  ;;  %28 = vst [vmem:[%s51_s1 + $0x1] sm:$0x1] %v24_v5 }

// kernel: feature_encoder_3d.11
= control target key start
LH: loop header
LB: loop body
LE: loop exit
PB: predicated region body
PF: predicated region fallthrough
CT: control target
= control target key end

     0   :  { %s539_s12 = smov 0   ;;  %s594_s0 = inlined_call_operand.vmem [shape: bf16[2,4,4,256], index: 0, kind: input, shape index: {}]   ;;  %s595_s1 = inlined_call_operand.vmem [shape: f32[1,256], index: 1, kind: input, shape index: {}]   ;;  %s596_s2 = inlined_call_operand.vmem [shape: f32[1,256], index: 2, kind: input, shape index: {}]   ;;  %s597_s3 = inlined_call_operand.vmem [shape: bf16[2,2,4,64], index: 3, kind: output, shape index: {}]  }
   0x1 LB: > { %s473_s13 = sadd.s32 4294967295, %s513_s12   ;;  %p477_p0 = scmp.ge.s32.totalorder %s513_s12, 1  ;;  %s513_s12 = sphi %s539_s12, %s13_s12  }
   0x2   : > { %p137_p1 = scmp.lt.s32.totalorder %s513_s12, 3 }
   0x4   : > { %p138_p2 = pnand %p477_p0, %p137_p1 }
   0x5   : > { %p161_p3 = scmp.lt.s32.totalorder (!%p138_p2), %s473_s13, 1  ;;  %v181_v0 = vlaneseq (!%p138_p2)  ;;  %v179_v2 = vld [vmem:[%s595_s1] sm:$0x3] (!%p138_p2)  ;;  %v515_v6 = vmov (!%p138_p2), 1983009808   ;;  %vm275_vm0 = vcmask (!%p138_p2), 1041408  }
   0x6   : > { %141 = sbr.rel (%p138_p2) target bundleno = 186 (0xba), region = 32  ;;  %v195_v3 = vld [vmem:[%s596_s2] sm:$0x3] (!%p138_p2)  ;;  %v220_v7 = vunpack.c.l.s4 (!%p138_p2), %v515_v6  ;;  %vm341_vm1 = vcmask (!%p138_p2), 1041409   ;;  %s517_s22 = smov (!%p138_p2), 64   ;;  %vm415_vm2 = vcmask (!%p138_p2), 517120  }
   0x7   : > { %v549_v1 = vshrl.u32 (!%p138_p2), %v181_v0, 7 }
   0x8   : > { %v221_v20 = vunpack.c.0.s8 (!%p138_p2), %v220_v7 }
   0x9   : > { %v183_v4 = vsub.s32 (!%p138_p2), 0, %v549_v1  ;;  %v187_v5 = vsub.s32 (!%p138_p2), 1, %v549_v1 }
   0xa   : > { %v564_v29 = vsub.s32 (!%p138_p2), %v221_v20, %v549_v1 }
   0xb   : > { %v184_v9 = vrot.slane (!%p138_p2), %v179_v2, %v183_v4  ;;  %v188_v10 = vrot.slane (!%p138_p2), %v179_v2, %v187_v5  ;;  %v200_v11 = vrot.slane (!%p138_p2), %v195_v3, %v183_v4  ;;  %v204_v12 = vrot.slane (!%p138_p2), %v195_v3, %v187_v5 }
   0xd   : > { %s599_s13 = smov (!%p161_p3, %s473_s13), 1  ;;  %v189_v16 = vcombine.low %v184_v9, %v188_v10  ;;  %v205_v17 = vcombine.low %v200_v11, %v204_v12 }
   0xe   : > { %s484_s18 = sshll.u32 %s599_s13, 4  ;;  %s485_s23 = sshll.u32 %s599_s13, 2 }
   0xf   : > { %s165_s21 = scalar_lea.vmem %s594_s0, %s484_s18  ;;  %s170_s26 = scalar_lea.vmem %s597_s3, %s485_s23 }
  0x10   : > { %v494_v8 = vld [vmem:[%s165_s21 + $0x8] sm:$0xff]   ;;  %v487_v13 = vld [vmem:[%s165_s21] sm:$0xff]  }
  0x11   : > { %v492_v14 = vunpack.c.l.bf16 %v494_v8  ;;  %v493_v15 = vunpack.c.h.bf16 %v494_v8  ;;  %v488_v18 = vunpack.c.l.bf16 %v487_v13  ;;  %v489_v19 = vunpack.c.h.bf16 %v487_v13 }
  0x13   : > { %v193_v21 = vmul.f32 %v492_v14, %v189_v16  ;;  %v194_v22 = vmul.f32 %v493_v15, %v189_v16  ;;  %v191_v23 = vmul.f32 %v488_v18, %v189_v16  ;;  %v192_v24 = vmul.f32 %v489_v19, %v189_v16 }
  0x14   : > { %v516_v18 = vmov 1934713408  }
  0x15   : > { %v209_v25 = vadd.f32 %v205_v17, %v193_v21  ;;  %v210_v26 = vadd.f32 %v205_v17, %v194_v22  ;;  %v207_v27 = vadd.f32 %v205_v17, %v191_v23  ;;  %v208_v28 = vadd.f32 %v205_v17, %v192_v24 }
  0x16   : > { %v353_v19 = vunpack.c.l.s4 %v516_v18 }
  0x17   : > { %v213_v30 = vmax.f32 %v209_v25, 0.0  ;;  %v214_v31 = vmax.f32 %v210_v26, 0.0  ;;  %v211_v32 = vmax.f32 %v207_v27, 0.0  ;;  %v212_v33 = vmax.f32 %v208_v28, 0.0 }
  0x19   : > { %v216_v34 = vmax.f32 %v213_v30, %v214_v31  ;;  %v215_v35 = vmax.f32 %v211_v32, %v212_v33 }
  0x1b   : > { %v233_v36 = vrot.slane %v216_v34, %v564_v29  ;;  %v225_v37 = vrot.slane %v215_v35, %v564_v29  ;;  %v354_v34 = vunpack.c.0.s8 %v353_v19 }
  0x1d   : > { %v234_v38 = vcombine.high %v233_v36, %v233_v36  ;;  %v257_v39 = vrot.slane %v233_v36, %v564_v29  ;;  %v226_v40 = vcombine.high %v225_v37, %v225_v37  ;;  %v241_v41 = vrot.slane %v225_v37, %v564_v29 }
  0x1f   : > { %v258_v42 = vcombine.high %v257_v39, %v257_v39  ;;  %v265_v43 = vrot.slane %v234_v38, %v564_v29  ;;  %v304_v44 = vsel %vm275_vm0, %v257_v39, -inf  ;;  %v242_v45 = vcombine.high %v241_v41, %v241_v41 }
  0x20   : > { %v305_v46 = vrot.slane %v304_v44, 4  ;;  %v249_v47 = vrot.slane %v226_v40, %v564_v29  ;;  %v276_v48 = vsel %vm275_vm0, %v241_v41, -inf }
  0x21   : > { %v266_v49 = vcombine.high %v265_v43, %v265_v43  ;;  %v311_v50 = vsel %vm275_vm0, %v258_v42, -inf  ;;  %v318_v51 = vsel %vm275_vm0, %v265_v43, -inf  ;;  %v277_v52 = vrot.slane %v276_v48, 4 }
  0x22   : > { %v306_v53 = vmax.f32 %v304_v44, %v305_v46  ;;  %v312_v54 = vrot.slane %v311_v50, 4  ;;  %v319_v55 = vrot.slane %v318_v51, 4  ;;  %v250_v56 = vcombine.high %v249_v47, %v249_v47 }
  0x23   : > { %v325_v57 = vsel %vm275_vm0, %v266_v49, -inf  ;;  %v278_v58 = vmax.f32 %v276_v48, %v277_v52  ;;  %v283_v59 = vsel %vm275_vm0, %v242_v45, -inf  ;;  %v290_v60 = vsel %vm275_vm0, %v249_v47, -inf }
  0x24   : > { %v307_v61 = vrot.slane %v306_v53, 2  ;;  %v313_v62 = vmax.f32 %v311_v50, %v312_v54  ;;  %v320_v63 = vmax.f32 %v318_v51, %v319_v55  ;;  %v326_v0 = vrot.slane %v325_v57, 4 }
  0x25   : > { %v279_v2 = vrot.slane %v278_v58, 2  ;;  %v284_v3 = vrot.slane %v283_v59, 4  ;;  %v291_v4 = vrot.slane %v290_v60, 4  ;;  %v297_v5 = vsel %vm275_vm0, %v250_v56, -inf }
  0x26   : > { %v308_v6 = vmax.f32 %v306_v53, %v307_v61  ;;  %v314_v7 = vrot.slane %v313_v62, 2  ;;  %v321_v8 = vrot.slane %v320_v63, 2  ;;  %v327_v9 = vmax.f32 %v325_v57, %v326_v0 }
  0x27   : > { %v280_v10 = vmax.f32 %v278_v58, %v279_v2  ;;  %v285_v11 = vmax.f32 %v283_v59, %v284_v3  ;;  %v292_v12 = vmax.f32 %v290_v60, %v291_v4  ;;  %v298_v13 = vrot.slane %v297_v5, 4 }
  0x28   : > { %v309_v14 = vrot.slane %v308_v6, 1  ;;  %v315_v15 = vmax.f32 %v313_v62, %v314_v7  ;;  %v322_v16 = vmax.f32 %v320_v63, %v321_v8  ;;  %v328_v17 = vrot.slane %v327_v9, 2 }
  0x29   : > { %v286_v20 = vrot.slane %v285_v11, 2  ;;  %v293_v21 = vrot.slane %v292_v12, 2  ;;  %v299_v22 = vmax.f32 %v297_v5, %v298_v13  ;;  %v281_v26 = vrot.slane %v280_v10, 1 }
  0x2a   : > { %v316_v23 = vrot.slane %v315_v15, 1  ;;  %v323_v24 = vrot.slane %v322_v16, 1  ;;  %v329_v25 = vmax.f32 %v327_v9, %v328_v17  ;;  %v310_v31 = vmax.f32 %v308_v6, %v309_v14 }
  0x2b   : > { %v287_v27 = vmax.f32 %v285_v11, %v286_v20  ;;  %v294_v28 = vmax.f32 %v292_v12, %v293_v21  ;;  %v300_v30 = vrot.slane %v299_v22, 2  ;;  %v282_v41 = vmax.f32 %v280_v10, %v281_v26 }
  0x2c   : > { %v324_v32 = vmax.f32 %v322_v16, %v323_v24  ;;  %v330_v33 = vrot.slane %v329_v25, 1  ;;  %v317_v38 = vmax.f32 %v315_v15, %v316_v23  ;;  %v357_v46 = vsub.s32 %v354_v34, %v549_v1 }
  0x2d   : > { %v288_v35 = vrot.slane %v287_v27, 1  ;;  %v295_v36 = vrot.slane %v294_v28, 1  ;;  %v301_v37 = vmax.f32 %v299_v22, %v300_v30  ;;  %v518_v57 = vmov 0.0  }
  0x2e   : > { %v331_v39 = vmax.f32 %v329_v25, %v330_v33  ;;  %v345_v40 = vrot.slane %v324_v32, 7 }
  0x2f   : > { %v296_v42 = vmax.f32 %v294_v28, %v295_v36  ;;  %v302_v43 = vrot.slane %v301_v37, 1  ;;  %v289_v47 = vmax.f32 %v287_v27, %v288_v35 }
  0x30   : > { %v346_v44 = vsel %vm341_vm1, %v345_v40, %v310_v31  ;;  %v347_v45 = vrot.slane %v331_v39, 7 }
  0x31   : > { %v303_v48 = vmax.f32 %v301_v37, %v302_v43  ;;  %v340_v49 = vrot.slane %v296_v42, 7 }
  0x32   : > { %v348_v50 = vsel %vm341_vm1, %v347_v45, %v317_v38 }
  0x33   : > { %v362_v51 = vcombine.low %v346_v44, %v348_v50  ;;  %v342_v52 = vsel %vm341_vm1, %v340_v49, %v282_v41  ;;  %v343_v53 = vrot.slane %v303_v48, 7 }
  0x35   : > { %v369_v54 = vrot.slane %v362_v51, %v357_v46  ;;  %v344_v55 = vsel %vm341_vm1, %v343_v53, %v289_v47 }
  0x36   : > { %v351_v56 = vcombine.low %v342_v52, %v344_v55 }
  0x37   : > { %379 = vrot.lane.b32.xlu1 %v369_v54, %s517_s22  ;;  %v370_v58 = vcombine.high %v369_v54, %v518_v57 }
  0x38   : > { %v358_v59 = vrot.slane %v351_v56, %v357_v46 }
  0x3a   : > { %375 = vrot.lane.b32.xlu0 %v358_v59, %s517_s22  ;;  %v359_v1 = vcombine.high %v358_v59, %v518_v57 }
  0x3b   : > { %381 = vrot.lane.b32.xlu1 %v370_v58, %s517_s22 }
  0x3e   : > { %377 = vrot.lane.b32.xlu0 %v359_v1, %s517_s22 }
  0xa9   : > { %v380_v60 = vpop.permute.xlu1 %379 }
  0xaa   : > { %v389_v63 = vmax.f32 %v369_v54, %v380_v60 }
  0xac   : > { %v376_v61 = vpop.permute.xlu0 %375 }
  0xad   : > { %v382_v62 = vpop.permute.xlu1 %381  ;;  %v387_v4 = vmax.f32 %v358_v59, %v376_v61 }
  0xae   : > { %v390_v0 = vmax.f32 %v370_v58, %v382_v62 }
  0xb0   : > { %v403_v2 = vcombine.low %v389_v63, %v390_v0  ;;  %v378_v3 = vpop.permute.xlu0 %377 }
  0xb1   : > { %v388_v5 = vmax.f32 %v359_v1, %v378_v3 }
  0xb2   : > { %v410_v6 = vrot.slane %v403_v2, %v564_v29 }
  0xb3   : > { %v395_v7 = vcombine.low %v387_v4, %v388_v5 }
  0xb4   : > { %v414_v8 = vpack.c.bf16 %v410_v6, %v410_v6 }
  0xb5   : > { %v402_v9 = vrot.slane %v395_v7, %v564_v29 }
  0xb6   : > { %417 = vst.msk [vmem:[%s170_s26 + $0x2] sm:$0x3] %vm415_vm2, %v414_v8 }
  0xb7   : > { %v413_v10 = vpack.c.bf16 %v402_v9, %v402_v9 }
  0xb9   : > { %416 = vst.msk [vmem:[%s170_s26] sm:$0x3] %vm415_vm2, %v413_v10 }
  0xba PF: > { %s13_s12 = sadd.s32 1, %s513_s12  }
  0xbb   : > { %p10_p4 = scmp.ge.s32.totalorder %s13_s12, 4  }
  0xbd   :  { %12 = sbr.rel (!%p10_p4) target bundleno = 1 (0x1), region = 62 }

// kernel: tile.63
= control target key start
LH: loop header
LB: loop body
LE: loop exit
PB: predicated region body
PF: predicated region fallthrough
CT: control target
= control target key end

     0   :  { %s22_s0 = inlined_call_operand.vmem [shape: f32[64], index: 0, kind: input, shape index: {}]   ;;  %s23_s1 = inlined_call_operand.vmem [shape: f32[2,64], index: 1, kind: output, shape index: {}]  }
   0x1   :  { %v4_v0 = vld [vmem:[%s22_s0] ss:$0 sm:$0xff] }
   0x2   :  { %5 = vst [vmem:[%s23_s1] sm:$0x3] %v4_v0 }

// kernel: tile.64
= control target key start
LH: loop header
LB: loop body
LE: loop exit
PB: predicated region body
PF: predicated region fallthrough
CT: control target
= control target key end

     0   :  { %vm7_vm0 = vcmask 523264   ;;  %vm13_vm1 = vcmask 1048064   ;;  %s39_s0 = inlined_call_operand.vmem [shape: f32[2,64], index: 0, kind: input, shape index: {}]   ;;  %s40_s1 = inlined_call_operand.vmem [shape: f32[1,128], index: 1, kind: output, shape index: {}]  }
   0x1   :  { %v4_v0 = vld [vmem:[%s39_s0] sm:$0x3]  ;;  %s22_s0 = smov 64  }
   0x2   :  { %5 = vst [vmem:[#allocation1] sm:$0x3] %v4_v0 }
   0x9   :  { %v10_v1 = vld [vmem:[#allocation1 + $0x1] sm:$0x1]   ;;  %v6_v2 = vld [vmem:[#allocation1] sm:$0x1]  }
   0xa   :  { %11 = vrot.lane.b32.xlu0 %v10_v1, %s22_s0  ;;  %8 = vst.msk [vmem:[#allocation0] sm:$0x1] %vm7_vm0, %v6_v2  }
  0x7c   :  { %v12_v3 = vpop.permute.xlu0 %11  }
  0x7d   :  { %14 = vst.msk [vmem:[#allocation0] sm:$0x1] %vm13_vm1, %v12_v3  }
  0x84   :  { %v18_v4 = vld [vmem:[#allocation0] sm:$0x1] }
  0x85   :  { %20 = vst [vmem:[%s40_s1] sm:$0x1] %v18_v4 }

// kernel: feature_encoder_3d.13
= control target key start
LH: loop header
LB: loop body
LE: loop exit
PB: predicated region body
PF: predicated region fallthrough
CT: control target
= control target key end

     0   :  { %s294_s12 = smov 0   ;;  %s317_s0 = inlined_call_operand.vmem [shape: bf16[2,2,2,128], index: 0, kind: input, shape index: {}]   ;;  %s318_s1 = inlined_call_operand.vmem [shape: f32[1,128], index: 1, kind: input, shape index: {}]   ;;  %s319_s2 = inlined_call_operand.vmem [shape: f32[1,128], index: 2, kind: input, shape index: {}]   ;;  %s320_s3 = inlined_call_operand.vmem [shape: bf16[2,2,2,128], index: 3, kind: output, shape index: {}]  }
   0x1 LB: > { %s247_s13 = sadd.s32 4294967295, %s272_s12   ;;  %p251_p0 = scmp.ge.s32.totalorder %s272_s12, 1  ;;  %s272_s12 = sphi %s294_s12, %s13_s12  }
   0x2   : > { %p136_p1 = scmp.lt.s32.totalorder %s272_s12, 3 }
   0x4   : > { %p137_p2 = pnand %p251_p0, %p136_p1 }
   0x5   : > { %p158_p3 = scmp.lt.s32.totalorder (!%p137_p2), %s247_s13, 1  ;;  %v254_v2 = vld [vmem:[%s318_s1] ss:$0 sm:$0xff] (!%p137_p2) }
   0x6   : > { %140 = sbr.rel (%p137_p2) target bundleno = 28 (0x1c), region = 32  ;;  %v255_v5 = vld [vmem:[%s319_s2] ss:$0 sm:$0xff] (!%p137_p2) }
   0xd   : > { %s322_s13 = smov (!%p158_p3, %s247_s13), 1 }
   0xe   : > { %s252_s14 = sshll.u32 %s322_s13, 1 }
   0xf   : > { %s161_s17 = scalar_lea.vmem %s317_s0, %s252_s14  ;;  %s165_s24 = scalar_lea.vmem %s320_s3, %s252_s14 }
  0x10   : > { %v166_v0 = vld [vmem:[%s161_s17] sm:$0x1]  ;;  %v167_v1 = vld [vmem:[%s161_s17 + $0x1] sm:$0x1] }
  0x11   : > { %v168_v3 = vunpack.c.l.bf16 %v166_v0  ;;  %v169_v4 = vunpack.c.l.bf16 %v167_v1 }
  0x13   : > { %v177_v6 = vmul.f32 %v254_v2, %v168_v3  ;;  %v178_v7 = vmul.f32 %v254_v2, %v169_v4 }
  0x15   : > { %v186_v8 = vadd.f32 %v255_v5, %v177_v6  ;;  %v187_v9 = vadd.f32 %v255_v5, %v178_v7 }
  0x17   : > { %v188_v10 = vmax.f32 %v186_v8, 0.0  ;;  %v189_v11 = vmax.f32 %v187_v9, 0.0 }
  0x19   : > { %v190_v12 = vpack.c.bf16 %v188_v10, %v188_v10  ;;  %v191_v13 = vpack.c.bf16 %v189_v11, %v189_v11 }
  0x1b   : > { %192 = vst [vmem:[%s165_s24] sm:$0x1] %v190_v12  ;;  %193 = vst [vmem:[%s165_s24 + $0x1] sm:$0x1] %v191_v13 }
  0x1c PF: > { %s13_s12 = sadd.s32 1, %s272_s12  }
  0x1d   : > { %p10_p4 = scmp.ge.s32.totalorder %s13_s12, 4  }
  0x1f   :  { %12 = sbr.rel (!%p10_p4) target bundleno = 1 (0x1), region = 62 }

// kernel: feature_encoder_3d.10
= control target key start
LH: loop header
LB: loop body
LE: loop exit
PB: predicated region body
PF: predicated region fallthrough
CT: control target
= control target key end

     0   :  { %s3925_s12 = smov 0   ;;  %s5126_s0 = inlined_call_operand.vmem [shape: bf16[2,6,6,6,64], index: 0, kind: input, shape index: {}]   ;;  %s5127_s1 = inlined_call_operand.vmem [shape: bf16[9,192,64], index: 1, kind: input, shape index: {}]   ;;  %s5128_s2 = inlined_call_operand.vmem [shape: bf16[2,64,64], index: 2, kind: output, shape index: {0}]   ;;  %s5129_s3 = inlined_call_operand.vmem [shape: f32[2,2,64], index: 3, kind: output, shape index: {1}]  }
   0x1 LB: > { %s3162_s13 = sadd.s32 4294967295, %s3900_s12   ;;  %p3166_p0 = scmp.ge.s32.totalorder %s3900_s12, 1  ;;  %s3900_s12 = sphi %s3925_s12, %s14_s12  }
   0x2   : > { %p140_p1 = scmp.lt.s32.totalorder %s3900_s12, 3 }
   0x4   : > { %p141_p2 = pnand %p3166_p0, %p140_p1 }
   0x5   : > { %p168_p3 = scmp.lt.s32.totalorder (!%p141_p2), %s3162_s13, 1  ;;  %v3744_v0 = vld [vmem:[%s5127_s1 + $0x180] sm:$0xff] (!%p141_p2)   ;;  %v3902_v1 = vmov (!%p141_p2), 0   ;;  %v3745_v2 = vld [vmem:[%s5127_s1 + $0x188] sm:$0xff] (!%p141_p2)   ;;  %v3747_v5 = vld [vmem:[%s5127_s1 + $0x190] sm:$0xff] (!%p141_p2)   ;;  %s3903_s7 = smov (!%p141_p2), 64  }
   0x6   : > { %144 = sbr.rel (%p141_p2) target bundleno = 604 (0x25c), region = 28  ;;  %2093 = vmatprep.subr.bf16.mxu0 (!%p141_p2), %v3902_v1  ;;  %1185 = vmatprep.subr.bf16.mxu1 (!%p141_p2), %v3902_v1  ;;  %v3746_v3 = vld [vmem:[%s5127_s1 + $0x60] sm:$0xff] (!%p141_p2)   ;;  %v3748_v4 = vld [vmem:[%s5127_s1 + $0x68] sm:$0xff] (!%p141_p2)   ;;  %v3749_v22 = vld [vmem:[%s5127_s1 + $0x198] sm:$0xff] (!%p141_p2)   ;;  %vm687_vm0 = vcmask (!%p141_p2), 523264   ;;  %vm3013_vm1 = vcmask (!%p141_p2), 519168  }
   0x7   : > { %2094 = vmatpush1.bf16.msra.mxu0 (!%p141_p2), %v3744_v0  ;;  %1186 = vmatpush1.bf16.msra.mxu1 (!%p141_p2), %v3746_v3  ;;  %v3750_v42 = vld [vmem:[%s5127_s1 + $0x70] sm:$0xff] (!%p141_p2)   ;;  %v3751_v46 = vld [vmem:[%s5127_s1 + $0x1a0] sm:$0xff] (!%p141_p2)   ;;  %v3752_v57 = vld [vmem:[%s5127_s1 + $0x78] sm:$0xff] (!%p141_p2)   ;;  %vm3072_vm2 = vcmask (!%p141_p2), 1040384   ;;  %vm3074_vm3 = vcmask (!%p141_p2), 517120  }
   0x8   : > { %2095 = vmatprep.subr.bf16.mxu0 (!%p141_p2), %v3902_v1  ;;  %1187 = vmatprep.subr.bf16.mxu1 (!%p141_p2), %v3902_v1  ;;  %v3753_v62 = vld [vmem:[%s5127_s1 + $0x1a8] sm:$0xff] (!%p141_p2)  }
   0xb   : > { %2096 = vmatpush1.bf16.msra.mxu0 (!%p141_p2), %v3745_v2  ;;  %1188 = vmatpush1.bf16.msra.mxu1 (!%p141_p2), %v3748_v4 }
   0xc   : > { %2097 = vmatprep.subr.bf16.mxu0 (!%p141_p2), %v3902_v1  ;;  %1189 = vmatprep.subr.bf16.mxu1 (!%p141_p2), %v3902_v1 }
   0xd   : > { %s5131_s13 = smov (!%p168_p3, %s3162_s13), 1 }
   0xe   : > { %s3702_s20 = smul.u32 144, %s5131_s13  ;;  %s3170_s21 = sshll.u32 %s5131_s13, 1 }
   0xf   : > { %2098 = vmatpush1.bf16.msra.mxu0 %v3747_v5  ;;  %1190 = vmatpush1.bf16.msra.mxu1 %v3750_v42  ;;  %s181_s24 = scalar_lea.vmem %s5129_s3, %s3170_s21 }
  0x10   : > { %s3954_s25 = scalar_lea.vmem %s5126_s0, %s3702_s20  ;;  %2099 = vmatprep.subr.bf16.mxu0 %v3902_v1  ;;  %1191 = vmatprep.subr.bf16.mxu1 %v3902_v1 }
  0x11   : > { %v192_v6 = vld [vmem:[%s3954_s25 + $0x24] sm:$0x7]  ;;  %v190_v7 = vld [vmem:[%s3954_s25 + $0x1c] sm:$0x7]  ;;  %v193_v8 = vld [vmem:[%s3954_s25 + $0x28] sm:$0x7] }
  0x12   : > { %v3964_v9 = vcombine.low %v192_v6, %v192_v6  ;;  %v3966_v10 = vcombine.low %v190_v7, %v190_v7  ;;  %v3968_v11 = vcombine.low %v193_v8, %v193_v8  ;;  %v191_v12 = vld [vmem:[%s3954_s25 + $0x20] sm:$0x7]  ;;  %v185_v13 = vld [vmem:[%s3954_s25 + $0x8] sm:$0x7]  ;;  %v184_v14 = vld [vmem:[%s3954_s25 + $0x4] sm:$0x7] }
  0x13   : > { %v3973_v15 = vcombine.low %v191_v12, %v191_v12  ;;  %v3975_v16 = vcombine.low %v185_v13, %v185_v13  ;;  %v3977_v17 = vcombine.low %v184_v14, %v184_v14  ;;  %v187_v26 = vld [vmem:[%s3954_s25 + $0x10] sm:$0x7]  ;;  %v186_v31 = vld [vmem:[%s3954_s25 + $0xc] sm:$0x7]  ;;  %v197_v36 = vld [vmem:[%s3954_s25 + $0x38] sm:$0x7]  ;;  %2100 = vmatpush1.bf16.msra.mxu0 %v3749_v22  ;;  %1192 = vmatpush1.bf16.msra.mxu1 %v3752_v57 }
  0x14   : > { %v391_v18 = vshrl.u32 %v3964_v9, 16  ;;  %v393_v19 = vshll.u32 %v3964_v9, 16  ;;  %v377_v20 = vshrl.u32 %v3966_v10, 16  ;;  %v379_v21 = vshll.u32 %v3966_v10, 16  ;;  %v196_v41 = vld [vmem:[%s3954_s25 + $0x34] sm:$0x7]  ;;  %2101 = vmatprep.subr.bf16.mxu0 %v3902_v1  ;;  %1193 = vmatprep.subr.bf16.mxu1 %v3902_v1 }
  0x15   : > { %v398_v23 = vshrl.u32 %v3968_v11, 16  ;;  %v400_v24 = vshll.u32 %v3968_v11, 16  ;;  %v386_v25 = vshll.u32 %v3973_v15, 16  ;;  %v384_v29 = vshrl.u32 %v3973_v15, 16  ;;  %v199_v51 = vld [vmem:[%s3954_s25 + $0x40] sm:$0x7] }
  0x16   : > { %v395_v27 = vrot.slane %v393_v19, 1  ;;  %v381_v28 = vrot.slane %v379_v21, 1  ;;  %v344_v30 = vshll.u32 %v3975_v16, 16  ;;  %v342_v34 = vshrl.u32 %v3975_v16, 16  ;;  %v198_v54 = vld [vmem:[%s3954_s25 + $0x3c] sm:$0x7] }
  0x17   : > { %v402_v32 = vrot.slane %v400_v24, 1  ;;  %v388_v33 = vrot.slane %v386_v25, 1  ;;  %v337_v35 = vshll.u32 %v3977_v17, 16  ;;  %v3998_v40 = vcombine.low %v187_v26, %v187_v26  ;;  %2102 = vmatpush1.bf16.msra.mxu0 %v3751_v46  ;;  %v203_v4 = vld [vmem:[%s3954_s25 + $0x50] sm:$0x7]  ;;  %v3754_v6 = vld [vmem:[%s5127_s1 + $0x80] sm:$0xff]  }
  0x18   : > { %v396_v37 = vor.u32 %v395_v27, %v391_v18  ;;  %v382_v38 = vor.u32 %v381_v28, %v377_v20  ;;  %v346_v39 = vrot.slane %v344_v30, 1  ;;  %v335_v43 = vshrl.u32 %v3977_v17, 16  ;;  %2103 = vmatprep.subr.bf16.mxu0 %v3902_v1  ;;  %v202_v5 = vld [vmem:[%s3954_s25 + $0x4c] sm:$0x7]  ;;  %v3755_v12 = vld [vmem:[%s5127_s1 + $0x1b0] sm:$0xff]   ;;  %1194 = vmatpush1.bf16.msra.mxu1 %v3754_v6  ;;  %v3757_v30 = vld [vmem:[%s5127_s1 + $0x1b8] sm:$0xff]  }
  0x19   : > { %v339_v44 = vrot.slane %v337_v35, 1  ;;  %v4005_v45 = vcombine.low %v186_v31, %v186_v31  ;;  %v403_v47 = vor.u32 %v402_v32, %v398_v23  ;;  %v389_v48 = vor.u32 %v388_v33, %v384_v29  ;;  %v205_v24 = vld [vmem:[%s3954_s25 + $0x58] sm:$0x7]  ;;  %v204_v25 = vld [vmem:[%s3954_s25 + $0x54] sm:$0x7]  ;;  %v3756_v27 = vld [vmem:[%s5127_s1 + $0x88] sm:$0xff]   ;;  %1195 = vmatprep.subr.bf16.mxu1 %v3902_v1 }
  0x1a   : > { %597 = vrot.lane.b32.xlu1 %v396_v37, %s3903_s7  ;;  %593 = vrot.lane.b32.xlu0 %v382_v38, %s3903_s7  ;;  %v358_v49 = vshll.u32 %v3998_v40, 16  ;;  %v4014_v50 = vcombine.low %v197_v36, %v197_v36  ;;  %v4018_v53 = vcombine.low %v196_v41, %v196_v41  ;;  %v347_v55 = vor.u32 %v346_v39, %v342_v34  ;;  %v209_v26 = vld [vmem:[%s3954_s25 + $0x68] sm:$0x7]  ;;  %v208_v39 = vld [vmem:[%s3954_s25 + $0x64] sm:$0x7] }
  0x1b   : > { %v351_v52 = vshll.u32 %v4005_v45, 16  ;;  %v356_v56 = vshrl.u32 %v3998_v40, 16  ;;  %v340_v58 = vor.u32 %v339_v44, %v335_v43  ;;  %v4027_v61 = vcombine.low %v199_v51, %v199_v51  ;;  %2104 = vmatpush1.bf16.msra.mxu0 %v3753_v62  ;;  %v3758_v41 = vld [vmem:[%s5127_s1 + $0x90] sm:$0xff]   ;;  %v210_v57 = vld [vmem:[%s3954_s25 + $0x6c] sm:$0x7] }
  0x1c   : > { %v360_v59 = vrot.slane %v358_v49, 1  ;;  %v428_v60 = vshll.u32 %v4014_v50, 16  ;;  %v349_v63 = vshrl.u32 %v4005_v45, 16  ;;  %v421_v2 = vshll.u32 %v4018_v53, 16  ;;  %2105 = vmatprep.subr.bf16.mxu0 %v3902_v1  ;;  %1196 = vmatpush1.bf16.msra.mxu1 %v3756_v27  ;;  %v211_v46 = vld [vmem:[%s3954_s25 + $0x70] sm:$0x7] }
  0x1d   : > { %v353_v0 = vrot.slane %v351_v52, 1  ;;  %v4037_v3 = vcombine.low %v198_v54, %v198_v54  ;;  %v426_v7 = vshrl.u32 %v4014_v50, 16  ;;  %v419_v8 = vshrl.u32 %v4018_v53, 16  ;;  %1197 = vmatprep.subr.bf16.mxu1 %v3902_v1  ;;  %v3761_v62 = vld [vmem:[%s5127_s1 + $0x1c8] sm:$0xff]   ;;  %v200_v27 = vld [vmem:[%s3954_s25 + $0x44] sm:$0x7] }
  0x1e   : > { %599 = vrot.lane.b32.xlu1 %v403_v47, %s3903_s7  ;;  %595 = vrot.lane.b32.xlu0 %v389_v48, %s3903_s7  ;;  %v361_v13 = vor.u32 %v360_v59, %v356_v56  ;;  %v430_v14 = vrot.slane %v428_v60, 1  ;;  %v442_v18 = vshll.u32 %v4027_v61, 16  ;;  %v4051_v19 = vcombine.low %v203_v4, %v203_v4  ;;  %v3759_v47 = vld [vmem:[%s5127_s1 + $0x1c0] sm:$0xff]  }
  0x1f   : > { %v354_v20 = vor.u32 %v353_v0, %v349_v63  ;;  %v423_v21 = vrot.slane %v421_v2, 1  ;;  %v435_v22 = vshll.u32 %v4037_v3, 16  ;;  %v4057_v23 = vcombine.low %v202_v5, %v202_v5  ;;  %2106 = vmatpush1.bf16.msra.mxu0 %v3755_v12  ;;  %v194_v5 = vld [vmem:[%s3954_s25 + $0x2c] sm:$0x7] }
  0x20   : > { %v440_v28 = vshrl.u32 %v4027_v61, 16  ;;  %v433_v29 = vshrl.u32 %v4037_v3, 16  ;;  %v431_v31 = vor.u32 %v430_v14, %v426_v7  ;;  %v444_v32 = vrot.slane %v442_v18, 1  ;;  %2107 = vmatprep.subr.bf16.mxu0 %v3902_v1  ;;  %1198 = vmatpush1.bf16.msra.mxu1 %v3758_v41  ;;  %v3764_v18 = vld [vmem:[%s5127_s1 + $0xa0] sm:$0xff]  }
  0x21   : > { %v470_v33 = vshll.u32 %v4051_v19, 16  ;;  %v4072_v34 = vcombine.low %v205_v24, %v205_v24  ;;  %v424_v35 = vor.u32 %v423_v21, %v419_v8  ;;  %v437_v36 = vrot.slane %v435_v22, 1  ;;  %1199 = vmatprep.subr.bf16.mxu1 %v3902_v1  ;;  %v3765_v21 = vld [vmem:[%s5127_s1 + $0x1d0] sm:$0xff]  }
  0x22   : > { %583 = vrot.lane.b32.xlu1 %v347_v55, %s3903_s7  ;;  %581 = vrot.lane.b32.xlu0 %v340_v58, %s3903_s7  ;;  %v463_v37 = vshll.u32 %v4057_v23, 16  ;;  %v4078_v38 = vcombine.low %v204_v25, %v204_v25  ;;  %v468_v42 = vshrl.u32 %v4051_v19, 16  ;;  %v461_v43 = vshrl.u32 %v4057_v23, 16  ;;  %v3760_v58 = vld [vmem:[%s5127_s1 + $0x98] sm:$0xff]  }
  0x23   : > { %v4086_v44 = vcombine.low %v209_v26, %v209_v26  ;;  %2108 = vmatpush1.bf16.msra.mxu0 %v3757_v30  ;;  %v445_v48 = vor.u32 %v444_v32, %v440_v28  ;;  %v472_v49 = vrot.slane %v470_v33, 1  ;;  %v484_v51 = vshll.u32 %v4072_v34, 16  ;;  %v189_v32 = vld [vmem:[%s3954_s25 + $0x18] sm:$0x7]  ;;  %v3768_v33 = vld [vmem:[%s5127_s1 + $0xa8] sm:$0xff]  }
  0x24   : > { %2109 = vmatprep.subr.bf16.mxu0 %v3902_v1  ;;  %v438_v52 = vor.u32 %v437_v36, %v433_v29  ;;  %v465_v54 = vrot.slane %v463_v37, 1  ;;  %v477_v55 = vshll.u32 %v4078_v38, 16  ;;  %v4098_v56 = vcombine.low %v208_v39, %v208_v39  ;;  %1200 = vmatpush1.bf16.msra.mxu1 %v3760_v58  ;;  %v3769_v37 = vld [vmem:[%s5127_s1 + $0x1d8] sm:$0xff]   ;;  %v212_v58 = vld [vmem:[%s3954_s25 + $0x74] sm:$0x7] }
  0x25   : > { %v482_v59 = vshrl.u32 %v4072_v34, 16  ;;  %v512_v60 = vshll.u32 %v4086_v44, 16  ;;  %v473_v63 = vor.u32 %v472_v49, %v468_v42  ;;  %v486_v0 = vrot.slane %v484_v51, 1  ;;  %1201 = vmatprep.subr.bf16.mxu1 %v3902_v1  ;;  %v206_v51 = vld [vmem:[%s3954_s25 + $0x5c] sm:$0x7] }
  0x26   : > { %587 = vrot.lane.b32.xlu1 %v361_v13, %s3903_s7  ;;  %585 = vrot.lane.b32.xlu0 %v354_v20, %s3903_s7  ;;  %v475_v2 = vshrl.u32 %v4078_v38, 16  ;;  %v4111_v4 = vcombine.low %v211_v46, %v211_v46  ;;  %v466_v6 = vor.u32 %v465_v54, %v461_v43  ;;  %v479_v7 = vrot.slane %v477_v55, 1  ;;  %v183_v13 = vld [vmem:[%s3954_s25] sm:$0x7]  ;;  %v3770_v54 = vld [vmem:[%s5127_s1 + $0xb0] sm:$0xff]  }
  0x27   : > { %2110 = vmatpush1.bf16.msra.mxu0 %v3759_v47  ;;  %v505_v8 = vshll.u32 %v4098_v56, 16  ;;  %v4118_v12 = vcombine.low %v210_v57, %v210_v57  ;;  %v510_v14 = vshrl.u32 %v4086_v44, 16  ;;  %v514_v20 = vrot.slane %v512_v60, 1 }
  0x28   : > { %2111 = vmatprep.subr.bf16.mxu0 %v3902_v1  ;;  %v487_v22 = vor.u32 %v486_v0, %v482_v59  ;;  %v503_v24 = vshrl.u32 %v4098_v56, 16  ;;  %v526_v25 = vshll.u32 %v4111_v4, 16  ;;  %v4131_v26 = vcombine.low %v194_v5, %v194_v5  ;;  %1202 = vmatpush1.bf16.msra.mxu1 %v3764_v18  ;;  %v201_v0 = vld [vmem:[%s3954_s25 + $0x48] sm:$0x7] }
  0x29   : > { %v480_v28 = vor.u32 %v479_v7, %v475_v2  ;;  %v507_v29 = vrot.slane %v505_v8, 1  ;;  %v519_v30 = vshll.u32 %v4118_v12, 16  ;;  %v524_v36 = vshrl.u32 %v4111_v4, 16  ;;  %1203 = vmatprep.subr.bf16.mxu1 %v3902_v1  ;;  %v188_v8 = vld [vmem:[%s3954_s25 + $0x14] sm:$0x7] }
  0x2a   : > { %607 = vrot.lane.b32.xlu1 %v431_v31, %s3903_s7  ;;  %605 = vrot.lane.b32.xlu0 %v424_v35, %s3903_s7  ;;  %v4138_v31 = vcombine.low %v183_v13, %v183_v13  ;;  %v515_v35 = vor.u32 %v514_v20, %v510_v14  ;;  %v528_v39 = vrot.slane %v526_v25, 1  ;;  %v407_v41 = vshll.u32 %v4131_v26, 16  ;;  %v207_v13 = vld [vmem:[%s3954_s25 + $0x60] sm:$0x7]  ;;  %v3772_v14 = vld [vmem:[%s5127_s1 + $0xb8] sm:$0xff]  }
  0x2b   : > { %2112 = vmatpush1.bf16.msra.mxu0 %v3761_v62  ;;  %v4150_v42 = vcombine.low %v200_v27, %v200_v27  ;;  %v4152_v43 = vcombine.low %v189_v32, %v189_v32  ;;  %v508_v46 = vor.u32 %v507_v29, %v503_v24  ;;  %v517_v47 = vshrl.u32 %v4118_v12, 16 }
  0x2c   : > { %2113 = vmatprep.subr.bf16.mxu0 %v3902_v1  ;;  %v330_v49 = vshll.u32 %v4138_v31, 16  ;;  %1204 = vmatpush1.bf16.msra.mxu1 %v3768_v33  ;;  %v405_v55 = vshrl.u32 %v4131_v26, 16  ;;  %v328_v57 = vshrl.u32 %v4138_v31, 16  ;;  %v529_v59 = vor.u32 %v528_v39, %v524_v36 }
  0x2d   : > { %1205 = vmatprep.subr.bf16.mxu1 %v3902_v1  ;;  %v409_v60 = vrot.slane %v407_v41, 1  ;;  %v449_v62 = vshll.u32 %v4150_v42, 16  ;;  %v447_v18 = vshrl.u32 %v4150_v42, 16  ;;  %v370_v20 = vshrl.u32 %v4152_v43, 16 }
  0x2e   : > { %611 = vrot.lane.b32.xlu1 %v445_v48, %s3903_s7  ;;  %609 = vrot.lane.b32.xlu0 %v438_v52, %s3903_s7  ;;  %v521_v48 = vrot.slane %v519_v30, 1  ;;  %v195_v52 = vld [vmem:[%s3954_s25 + $0x30] sm:$0x7]  ;;  %v332_v5 = vrot.slane %v330_v49, 1  ;;  %v4187_v25 = vcombine.low %v212_v58, %v212_v58  ;;  %v4192_v30 = vcombine.low %v201_v0, %v201_v0 }
  0x2f   : > { %2114 = vmatpush1.bf16.msra.mxu0 %v3765_v21  ;;  %v4176_v7 = vcombine.low %v195_v52, %v195_v52  ;;  %v410_v21 = vor.u32 %v409_v60, %v405_v55  ;;  %v4194_v32 = vcombine.low %v188_v8, %v188_v8  ;;  %v4196_v33 = vcombine.low %v207_v13, %v207_v13  ;;  %v214_v55 = vld [vmem:[%s3954_s25 + $0x7c] sm:$0x7]  ;;  %v215_v60 = vld [vmem:[%s3954_s25 + $0x80] sm:$0x7]  ;;  %v216_v13 = vld [vmem:[%s3954_s25 + $0x84] sm:$0x7] }
  0x30   : > { %2115 = vmatprep.subr.bf16.mxu0 %v3902_v1  ;;  %v522_v2 = vor.u32 %v521_v48, %v517_v47  ;;  %1206 = vmatpush1.bf16.msra.mxu1 %v3770_v54  ;;  %v333_v27 = vor.u32 %v332_v5, %v328_v57  ;;  %v533_v41 = vshll.u32 %v4187_v25, 16  ;;  %v4216_v5 = vcombine.low %v214_v55, %v214_v55 }
  0x31   : > { %1207 = vmatprep.subr.bf16.mxu1 %v3902_v1  ;;  %v414_v29 = vshll.u32 %v4176_v7, 16  ;;  %v412_v36 = vshrl.u32 %v4176_v7, 16  ;;  %v365_v52 = vshll.u32 %v4194_v32, 16  ;;  %v498_v54 = vshll.u32 %v4196_v33, 16 }
  0x32   : > { %619 = vrot.lane.b32.xlu1 %v473_v63, %s3903_s7  ;;  %617 = vrot.lane.b32.xlu0 %v466_v6, %s3903_s7  ;;  %v4169_v63 = vcombine.low %v206_v51, %v206_v51  ;;  %v372_v6 = vshll.u32 %v4152_v43, 16  ;;  %v456_v51 = vshll.u32 %v4192_v30, 16  ;;  %v535_v58 = vrot.slane %v533_v41, 1 }
  0x33   : > { %2116 = vmatpush1.bf16.msra.mxu0 %v3769_v37  ;;  %v531_v37 = vshrl.u32 %v4187_v25, 16  ;;  %v416_v49 = vrot.slane %v414_v29, 1  ;;  %v496_v8 = vshrl.u32 %v4196_v33, 16  ;;  %v4228_v29 = vcombine.low %v216_v13, %v216_v13 }
  0x34   : > { %2286 = vmatprep.subr.bf16.mxu0 %v3902_v1  ;;  %v491_v24 = vshll.u32 %v4169_v63, 16  ;;  %1208 = vmatpush1.bf16.msra.mxu1 %v3772_v14  ;;  %v458_v0 = vrot.slane %v456_v51, 1  ;;  %v367_v14 = vrot.slane %v365_v52, 1 }
  0x35   : > { %1410 = vmatprep.subr.bf16.mxu1 %v3902_v1  ;;  %v561_v51 = vshll.u32 %v4228_v29, 16 }
  0x36   : > { %623 = vrot.lane.b32.xlu1 %v487_v22, %s3903_s7  ;;  %621 = vrot.lane.b32.xlu0 %v480_v28, %s3903_s7  ;;  %v451_v22 = vrot.slane %v449_v62, 1  ;;  %v374_v28 = vrot.slane %v372_v6, 1  ;;  %v493_v39 = vrot.slane %v491_v24, 1  ;;  %v417_v62 = vor.u32 %v416_v49, %v412_v36 }
  0x37   : > { %v363_v6 = vshrl.u32 %v4194_v32, 16 }
  0x38   : > { %v452_v47 = vor.u32 %v451_v22, %v447_v18  ;;  %v375_v48 = vor.u32 %v374_v28, %v370_v20  ;;  %v500_v18 = vrot.slane %v498_v54, 1  ;;  %v4221_v20 = vcombine.low %v215_v60, %v215_v60  ;;  %v217_v22 = vld [vmem:[%s3954_s25 + $0x88] sm:$0x7] }
  0x39   : > { %v547_v28 = vshll.u32 %v4216_v5, 16  ;;  %v368_v36 = vor.u32 %v367_v14, %v363_v6 }
  0x3a   : > { %631 = vrot.lane.b32.xlu1 %v515_v35, %s3903_s7  ;;  %629 = vrot.lane.b32.xlu0 %v508_v46, %s3903_s7  ;;  %v489_v35 = vshrl.u32 %v4169_v63, 16  ;;  %v213_v46 = vld [vmem:[%s3954_s25 + $0x78] sm:$0x7]  ;;  %v501_v41 = vor.u32 %v500_v18, %v496_v8  ;;  %v552_v54 = vshrl.u32 %v4221_v20, 16 }
  0x3b   : > { %v549_v49 = vrot.slane %v547_v28, 1  ;;  %v3904_v28 = vmov 1983009808  }
  0x3c   : > { %v494_v57 = vor.u32 %v493_v39, %v489_v35  ;;  %v218_v35 = vld [vmem:[%s3954_s25 + $0x8c] sm:$0x7]  ;;  %v554_v39 = vshll.u32 %v4221_v20, 16 }
  0x3d   : > { %v4239_v52 = vcombine.low %v218_v35, %v218_v35  ;;  %v814_v35 = vunpack.c.l.s4 %v3904_v28 }
  0x3e   : > { %635 = vrot.lane.b32.xlu1 %v529_v59, %s3903_s7  ;;  %633 = vrot.lane.b32.xlu0 %v522_v2, %s3903_s7  ;;  %v454_v59 = vshrl.u32 %v4192_v30, 16  ;;  %v4214_v2 = vcombine.low %v213_v46, %v213_v46  ;;  %v556_v55 = vrot.slane %v554_v39, 1  ;;  %v660_v39 = vrot.slane %v3964_v9, 1 }
  0x3f   : > { %v573_v18 = vshrl.u32 %v4239_v52, 16 }
  0x40   : > { %v459_v24 = vor.u32 %v458_v0, %v454_v59  ;;  %v538_v46 = vshrl.u32 %v4214_v2, 16  ;;  %v575_v0 = vshll.u32 %v4239_v52, 16  ;;  %v557_v13 = vor.u32 %v556_v55, %v552_v54  ;;  %v3859_v54 = vld [vmem:[%s3954_s25 + $0x1c] sm:$0x7] }
  0x42   : > { %601 = vrot.lane.b32.xlu0 %v410_v21, %s3903_s7  ;;  %579 = vrot.lane.b32.xlu1 %v333_v27, %s3903_s7  ;;  %v536_v21 = vor.u32 %v535_v58, %v531_v37  ;;  %v540_v27 = vshll.u32 %v4214_v2, 16  ;;  %v545_v37 = vshrl.u32 %v4216_v5, 16 }
  0x44   : > { %v550_v60 = vor.u32 %v549_v49, %v545_v37  ;;  %v658_v37 = vrot.slane %v3966_v10, 1  ;;  %v3858_v49 = vld [vmem:[%s3954_s25 + $0x24] sm:$0x7] }
  0x46   : > { %613 = vrot.lane.b32.xlu0 %v452_v47, %s3903_s7  ;;  %591 = vrot.lane.b32.xlu1 %v375_v48, %s3903_s7  ;;  %v4234_v47 = vcombine.low %v217_v22, %v217_v22  ;;  %v542_v48 = vrot.slane %v540_v27, 1  ;;  %v816_v27 = vlaneseq }
  0x48   : > { %v568_v58 = vshll.u32 %v4234_v47, 16  ;;  %v543_v59 = vor.u32 %v542_v48, %v538_v46  ;;  %v566_v6 = vshrl.u32 %v4234_v47, 16 }
  0x4a   : > { %625 = vrot.lane.b32.xlu0 %v494_v57, %s3903_s7  ;;  %603 = vrot.lane.b32.xlu1 %v417_v62, %s3903_s7  ;;  %v559_v57 = vshrl.u32 %v4228_v29, 16  ;;  %v563_v62 = vrot.slane %v561_v51, 1  ;;  %v570_v8 = vrot.slane %v568_v58, 1  ;;  %v659_v58 = vrot.slane %v3973_v15, 1 }
  0x4b   : > { %v652_v15 = vrot.slane %v3977_v17, 1 }
  0x4c   : > { %v564_v14 = vor.u32 %v563_v62, %v559_v57  ;;  %v571_v22 = vor.u32 %v570_v8, %v566_v6  ;;  %v661_v57 = vrot.slane %v3968_v11, 1  ;;  %v3860_v6 = vld [vmem:[%s3954_s25 + $0x28] sm:$0x7]  ;;  %v3861_v8 = vld [vmem:[%s3954_s25 + $0x20] sm:$0x7]  ;;  %v653_v11 = vrot.slane %v3975_v16, 1 }
  0x4e   : > { %637 = vrot.lane.b32.xlu0 %v536_v21, %s3903_s7  ;;  %615 = vrot.lane.b32.xlu1 %v459_v24, %s3903_s7  ;;  %v577_v21 = vrot.slane %v575_v0, 1 }
  0x50   : > { %v578_v24 = vor.u32 %v577_v21, %v573_v18 }
  0x52   : > { %589 = vrot.lane.b32.xlu0 %v368_v36, %s3903_s7  ;;  %627 = vrot.lane.b32.xlu1 %v501_v41, %s3903_s7  ;;  %v817_v36 = vshrl.u32 %v816_v27, 7  ;;  %v815_v41 = vunpack.c.0.s8 %v814_v35 }
  0x56   : > { %639 = vrot.lane.b32.xlu0 %v543_v59, %s3903_s7  ;;  %641 = vrot.lane.b32.xlu1 %v550_v60, %s3903_s7  ;;  %v4263_v59 = vsub.s32 %v815_v41, %v817_v36  ;;  %v3862_v36 = vld [vmem:[%s3954_s25 + $0x8] sm:$0x7]  ;;  %v655_v41 = vrot.slane %v3998_v40, 1 }
  0x5a   : > { %643 = vrot.lane.b32.xlu0 %v557_v13, %s3903_s7  ;;  %645 = vrot.lane.b32.xlu1 %v564_v14, %s3903_s7 }
  0x5e   : > { %647 = vrot.lane.b32.xlu0 %v571_v22, %s3903_s7  ;;  %649 = vrot.lane.b32.xlu1 %v578_v24, %s3903_s7 }
  0x8c   : > { %v598_v46 = vpop.permute.xlu1 %597  ;;  %v594_v48 = vpop.permute.xlu0 %593 }
  0x8d   : > { %v717_v51 = vsel %vm687_vm0, %v3858_v49, %v598_v46  ;;  %v711_v55 = vsel %vm687_vm0, %v3859_v54, %v594_v48  ;;  %v654_v46 = vrot.slane %v4005_v45, 1 }
  0x8e   : > { %v868_v9 = vcombine.low %v717_v51, %v660_v39  ;;  %v852_v60 = vcombine.low %v711_v55, %v658_v37  ;;  %v3863_v39 = vld [vmem:[%s3954_s25 + $0x4] sm:$0x7] }
  0x90   : > { %v600_v62 = vpop.permute.xlu1 %599  ;;  %v596_v0 = vpop.permute.xlu0 %595  ;;  %v4272_v21 = vrot.slane %v868_v9, %v4263_v59  ;;  %v4275_v22 = vrot.slane %v852_v60, %v4263_v59  ;;  %v3864_v9 = vld [vmem:[%s3954_s25 + $0x10] sm:$0x7] }
  0x91   : > { %v720_v10 = vsel %vm687_vm0, %v3860_v6, %v600_v62  ;;  %v714_v13 = vsel %vm687_vm0, %v3861_v8, %v596_v0  ;;  %v3865_v62 = vld [vmem:[%s3954_s25 + $0xc] sm:$0x7] }
  0x92   : > { %v976_v14 = vcombine.low %v720_v10, %v661_v57  ;;  %v860_v18 = vcombine.low %v714_v13, %v659_v58  ;;  %v665_v10 = vrot.slane %v4014_v50, 1 }
  0x94   : > { %v4278_v24 = vrot.slane %v976_v14, %v4263_v59  ;;  %v4281_v27 = vrot.slane %v860_v18, %v4263_v59  ;;  %v584_v28 = vpop.permute.xlu1 %583  ;;  %v582_v35 = vpop.permute.xlu0 %581  ;;  %v664_v14 = vrot.slane %v4018_v53, 1  ;;  %v3866_v53 = vld [vmem:[%s3954_s25 + $0x38] sm:$0x7] }
  0x95   : > { %v696_v16 = vsel %vm687_vm0, %v3862_v36, %v584_v28  ;;  %v693_v17 = vsel %vm687_vm0, %v3863_v39, %v582_v35  ;;  %v3771_v28 = vld [vmem:[%s5127_s1 + $0x1e0] sm:$0xff]  }
  0x96   : > { %v1269_v37 = vcombine.low %v4281_v27, %v4272_v21  ;;  %v828_v48 = vcombine.low %v696_v16, %v653_v11  ;;  %v820_v49 = vcombine.low %v693_v17, %v652_v15  ;;  %v1043_v51 = vcombine.low %v4275_v22, %v4281_v27  ;;  %v3867_v17 = vld [vmem:[%s3954_s25 + $0x34] sm:$0x7] }
  0x97   : > { %v1044_v54 = vcombine.low %v4272_v21, %v4278_v24  ;;  %v3880_v21 = vld [vmem:[%s3954_s25 + $0x44] sm:$0x7] }
  0x98   : > { %v4296_v55 = vrot.slane %v828_v48, %v4263_v59  ;;  %v4299_v57 = vrot.slane %v820_v49, %v4263_v59  ;;  %v588_v40 = vpop.permute.xlu1 %587  ;;  %v586_v58 = vpop.permute.xlu0 %585  ;;  %v1051_v45 = vrot.slane %v1043_v51, %v4263_v59  ;;  %v666_v48 = vrot.slane %v4037_v3, 1 }
  0x99   : > { %v702_v60 = vsel %vm687_vm0, %v3864_v9, %v588_v40  ;;  %v699_v0 = vsel %vm687_vm0, %v3865_v62, %v586_v58  ;;  %v1058_v6 = vrot.slane %v1044_v54, %v4263_v59  ;;  %v3773_v58 = vld [vmem:[%s5127_s1 + $0x1e8] sm:$0xff]  }
  0x9a   : > { %v968_v8 = vcombine.low %v702_v60, %v655_v41  ;;  %v836_v13 = vcombine.low %v699_v0, %v654_v46  ;;  %v1025_v18 = vcombine.low %v4299_v57, %v4296_v55  ;;  %v667_v46 = vrot.slane %v4027_v61, 1  ;;  %v3868_v0 = vld [vmem:[%s3954_s25 + $0x40] sm:$0x7] }
  0x9b   : > { %v4311_v11 = vcombine.high %v1051_v45, %v1058_v6  ;;  %v4313_v15 = vcombine.low %v1051_v45, %v1058_v6 }
  0x9c   : > { %v4319_v35 = vrot.slane %v968_v8, %v4263_v59  ;;  %v4322_v50 = vrot.slane %v836_v13, %v4263_v59  ;;  %v608_v36 = vpop.permute.xlu1 %607  ;;  %v606_v16 = vpop.permute.xlu0 %605  ;;  %v1033_v60 = vrot.slane %v1025_v18, %v4263_v59  ;;  %v671_v13 = vrot.slane %v4051_v19, 1  ;;  %v3776_v19 = vld [vmem:[%s5127_s1 + $0x1f0] sm:$0xff]  }
  0x9d   : > { %3379 = vmatprep.mubr.msk.bf16.mxu0 %vm687_vm0, %v4311_v11  ;;  %v732_v39 = vsel %vm687_vm0, %v3866_v53, %v608_v36  ;;  %v729_v41 = vsel %vm687_vm0, %v3867_v17, %v606_v16  ;;  %v3775_v53 = vld [vmem:[%s5127_s1] sm:$0xff]  }
  0x9e   : > { %v1251_v49 = vcombine.low %v4296_v55, %v4322_v50  ;;  %v892_v51 = vcombine.low %v732_v39, %v665_v10  ;;  %v884_v54 = vcombine.low %v729_v41, %v664_v14  ;;  %2126 = vmatmul.mubr.bf16.vlgmr.msra.gmra.mrb[0].mxu0 %v4313_v15  ;;  %v1026_v40 = vcombine.low %v4322_v50, %v4319_v35  ;;  %v3869_v10 = vld [vmem:[%s3954_s25 + $0x3c] sm:$0x7] }
  0x9f   : > { %2287 = vmatpush1.bf16.msra.mxu0 %v3771_v28  ;;  %v670_v14 = vrot.slane %v4057_v23, 1 }
  0xa0   : > { %v4341_v61 = vrot.slane %v892_v51, %v4263_v59  ;;  %v4344_v3 = vrot.slane %v884_v54, %v4263_v59  ;;  %2288 = vmatprep.subr.bf16.mxu0 %v3902_v1  ;;  %v612_v45 = vpop.permute.xlu1 %611  ;;  %v610_v9 = vpop.permute.xlu0 %609  ;;  %v1040_v62 = vrot.slane %v1026_v40, %v4263_v59  ;;  %v3870_v54 = vld [vmem:[%s3954_s25 + $0x50] sm:$0x7] }
  0xa1   : > { %v738_v6 = vsel %vm687_vm0, %v3868_v0, %v612_v45  ;;  %v735_v8 = vsel %vm687_vm0, %v3869_v10, %v610_v9  ;;  %v672_v9 = vrot.slane %v4078_v38, 1  ;;  %v3779_v38 = vld [vmem:[%s5127_s1 + $0x1f8] sm:$0xff]  }
  0xa2   : > { %v1061_v28 = vcombine.low %v4344_v3, %v4341_v61  ;;  %v984_v36 = vcombine.low %v738_v6, %v667_v46  ;;  %v900_v16 = vcombine.low %v735_v8, %v666_v48  ;;  %v1042_v18 = vcombine.high %v1033_v60, %v1040_v62  ;;  %v3778_v6 = vld [vmem:[%s5127_s1 + $0x8] sm:$0xff]  }
  0xa3   : > { %2289 = vmatpush1.bf16.msra.mxu0 %v3773_v58  ;;  %v1041_v39 = vcombine.low %v1033_v60, %v1040_v62  ;;  %v673_v48 = vrot.slane %v4072_v34, 1  ;;  %v3871_v58 = vld [vmem:[%s3954_s25 + $0x4c] sm:$0x7] }
  0xa4   : > { %v4364_v23 = vrot.slane %v984_v36, %v4263_v59  ;;  %v4367_v17 = vrot.slane %v900_v16, %v4263_v59  ;;  %2290 = vmatprep.subr.bf16.mxu0 %v3902_v1  ;;  %v620_v41 = vpop.permute.xlu1 %619  ;;  %3243 = vmatprep.mubr.msk.bf16.mxu1 %vm687_vm0, %v1042_v18  ;;  %v618_v46 = vpop.permute.xlu0 %617  ;;  %v1069_v51 = vrot.slane %v1061_v28, %v4263_v59  ;;  %v3872_v36 = vld [vmem:[%s3954_s25 + $0x58] sm:$0x7] }
  0xa5   : > { %v750_v40 = vsel %vm687_vm0, %v3870_v54, %v620_v41  ;;  %v747_v45 = vsel %vm687_vm0, %v3871_v58, %v618_v46  ;;  %1218 = vmatmul.mubr.bf16.vlgmr.msra.gmra.mrb[0].mxu1 %v1041_v39  ;;  %v676_v39 = vrot.slane %v4098_v56, 1  ;;  %v3780_v54 = vld [vmem:[%s5127_s1 + $0x10] sm:$0xff]  }
  0xa6   : > { %v1062_v60 = vcombine.low %v4367_v17, %v4364_v23  ;;  %v1287_v62 = vcombine.low %v4341_v61, %v4367_v17  ;;  %v924_v0 = vcombine.low %v750_v40, %v671_v13  ;;  %v916_v34 = vcombine.low %v747_v45, %v670_v14  ;;  %1411 = vmatpush1.bf16.msra.mxu1 %v3775_v53  ;;  %v3788_v61 = vld [vmem:[%s5127_s1 + $0x30] sm:$0xff]  }
  0xa7   : > { %2291 = vmatpush1.bf16.msra.mxu0 %v3776_v19  ;;  %3244 = vmatprep.mubr.msk.bf16.mxu1 %vm687_vm0, %v4311_v11  ;;  %v3873_v11 = vld [vmem:[%s3954_s25 + $0x54] sm:$0x7]  ;;  %v677_v53 = vrot.slane %v4086_v44, 1  ;;  %v3781_v44 = vld [vmem:[%s5127_s1 + $0x200] sm:$0xff]  }
  0xa8   : > { %v1076_v10 = vrot.slane %v1062_v60, %v4263_v59  ;;  %v4392_v8 = vrot.slane %v924_v0, %v4263_v59  ;;  %v4395_v13 = vrot.slane %v916_v34, %v4263_v59  ;;  %2292 = vmatprep.subr.bf16.mxu0 %v3902_v1  ;;  %v624_v14 = vpop.permute.xlu1 %623  ;;  %v622_v28 = vpop.permute.xlu0 %621  ;;  %1412 = vmatprep.subr.bf16.mxu1 %v3902_v1  ;;  %v679_v60 = vrot.slane %v4111_v4, 1  ;;  %v3874_v34 = vld [vmem:[%s3954_s25 + $0x68] sm:$0x7] }
  0xa9   : > { %v756_v16 = vsel %vm687_vm0, %v3872_v36, %v624_v14  ;;  %v753_v18 = vsel %vm687_vm0, %v3873_v11, %v622_v28 }
  0xaa   : > { %v1079_v19 = vcombine.low %v4395_v13, %v4392_v8  ;;  %v992_v41 = vcombine.low %v756_v16, %v673_v48  ;;  %v932_v46 = vcombine.low %v753_v18, %v672_v9  ;;  %1413 = vmatpush1.bf16.msra.mxu1 %v3778_v6  ;;  %v4410_v40 = vcombine.high %v1069_v51, %v1076_v10  ;;  %v3875_v6 = vld [vmem:[%s3954_s25 + $0x64] sm:$0x7]  ;;  %v3782_v16 = vld [vmem:[%s5127_s1 + $0x18] sm:$0xff]  }
  0xab   : > { %2293 = vmatpush1.bf16.msra.mxu0 %v3779_v38  ;;  %1414 = vmatprep.subr.bf16.mxu1 %v3902_v1  ;;  %v4416_v56 = vcombine.low %v1069_v51, %v1076_v10  ;;  %v678_v10 = vrot.slane %v4118_v12, 1  ;;  %v3783_v12 = vld [vmem:[%s5127_s1 + $0x208] sm:$0xff]  }
  0xac   : > { %v4419_v48 = vrot.slane %v992_v41, %v4263_v59  ;;  %v4422_v58 = vrot.slane %v932_v46, %v4263_v59  ;;  %2294 = vmatprep.subr.bf16.mxu0 %v3902_v1  ;;  %v632_v45 = vpop.permute.xlu1 %631  ;;  %v630_v9 = vpop.permute.xlu0 %629  ;;  %3380 = vmatprep.mubr.msk.bf16.mxu0 %vm687_vm0, %v4410_v40  ;;  %v1087_v0 = vrot.slane %v1079_v19, %v4263_v59  ;;  %v3876_v19 = vld [vmem:[%s3954_s25 + $0x70] sm:$0x7]  ;;  %v3877_v46 = vld [vmem:[%s3954_s25 + $0x6c] sm:$0x7] }
  0xad   : > { %v768_v51 = vsel %vm687_vm0, %v3874_v34, %v632_v45  ;;  %v765_v38 = vsel %vm687_vm0, %v3875_v6, %v630_v9  ;;  %1226 = vmatmul.mubr.bf16.gmra.mrb[4].mxu1 %v4313_v15  ;;  %2134 = vmatmul.mubr.bf16.gmra.mrb[4].mxu0 %v4416_v56  ;;  %v651_v45 = vrot.slane %v4138_v31, 1  ;;  %v3784_v6 = vld [vmem:[%s5127_s1 + $0x20] sm:$0xff]  }
  0xae   : > { %v1080_v14 = vcombine.low %v4422_v58, %v4419_v48  ;;  %v1305_v4 = vcombine.low %v4392_v8, %v4422_v58  ;;  %v1757_v28 = vcombine.low %v768_v51, %v677_v53  ;;  %v1749_v36 = vcombine.low %v765_v38, %v676_v39  ;;  %1415 = vmatpush1.bf16.msra.mxu1 %v3780_v54 }
  0xaf   : > { %2295 = vmatpush1.bf16.msra.mxu0 %v3781_v44  ;;  %3245 = vmatprep.mubr.msk.bf16.mxu1 %vm687_vm0, %v4410_v40  ;;  %v662_v44 = vrot.slane %v4131_v26, 1  ;;  %v3785_v26 = vld [vmem:[%s5127_s1 + $0x210] sm:$0xff]  }
  0xb0   : > { %v1094_v15 = vrot.slane %v1080_v14, %v4263_v59  ;;  %v4450_v11 = vrot.slane %v1757_v28, %v4263_v59  ;;  %v4453_v18 = vrot.slane %v1749_v36, %v4263_v59  ;;  %2296 = vmatprep.subr.bf16.mxu0 %v3902_v1  ;;  %v636_v53 = vpop.permute.xlu1 %635  ;;  %v634_v39 = vpop.permute.xlu0 %633  ;;  %1416 = vmatprep.subr.bf16.mxu1 %v3902_v1  ;;  %v3878_v36 = vld [vmem:[%s3954_s25 + $0x2c] sm:$0x7] }
  0xb1   : > { %v774_v41 = vsel %vm687_vm0, %v3876_v19, %v636_v53  ;;  %v771_v54 = vsel %vm687_vm0, %v3877_v46, %v634_v39  ;;  %v4540_v17 = vrot.slane %v1305_v4, %v4263_v59 }
  0xb2   : > { %v1999_v9 = vcombine.low %v4453_v18, %v4450_v11  ;;  %v1966_v34 = vcombine.low %v774_v41, %v679_v60  ;;  %v1765_v51 = vcombine.low %v771_v54, %v678_v10  ;;  %1417 = vmatpush1.bf16.msra.mxu1 %v3782_v16  ;;  %v4468_v38 = vcombine.high %v1087_v0, %v1094_v15  ;;  %v3786_v54 = vld [vmem:[%s5127_s1 + $0x28] sm:$0xff]  }
  0xb3   : > { %2297 = vmatpush1.bf16.msra.mxu0 %v3783_v12  ;;  %1418 = vmatprep.subr.bf16.mxu1 %v3902_v1  ;;  %v4474_v31 = vcombine.low %v1087_v0, %v1094_v15  ;;  %v3879_v12 = vld [vmem:[%s3954_s25] sm:$0x7]  ;;  %v668_v0 = vrot.slane %v4150_v42, 1  ;;  %v657_v15 = vrot.slane %v4152_v43, 1  ;;  %v3787_v42 = vld [vmem:[%s5127_s1 + $0x218] sm:$0xff]   ;;  %v674_v43 = vrot.slane %v4169_v63, 1 }
  0xb4   : > { %v4477_v60 = vrot.slane %v1966_v34, %v4263_v59  ;;  %v1772_v10 = vrot.slane %v1765_v51, %v4263_v59  ;;  %2298 = vmatprep.subr.bf16.mxu0 %v3902_v1  ;;  %v602_v14 = vpop.permute.xlu0 %601  ;;  %v580_v28 = vpop.permute.xlu1 %579  ;;  %3381 = vmatprep.mubr.msk.bf16.mxu0 %vm687_vm0, %v4468_v38  ;;  %v2007_v34 = vrot.slane %v1999_v9, %v4263_v59 }
  0xb5   : > { %v723_v16 = vsel %vm687_vm0, %v3878_v36, %v602_v14  ;;  %v690_v53 = vsel %vm687_vm0, %v3879_v12, %v580_v28  ;;  %1234 = vmatmul.mubr.bf16.gmra.mrb[8].mxu1 %v4416_v56  ;;  %2142 = vmatmul.mubr.bf16.gmra.mrb[8].mxu0 %v4474_v31  ;;  %v4518_v63 = vrot.slane %v1251_v49, %v4263_v59  ;;  %v680_v28 = vrot.slane %v4187_v25, 1  ;;  %v3883_v25 = vld [vmem:[%s3954_s25 + $0x30] sm:$0x7] }
  0xb6   : > { %v1799_v39 = vcombine.low %v4450_v11, %v1772_v10  ;;  %v2000_v19 = vcombine.low %v1772_v10, %v4477_v60  ;;  %v1487_v41 = vcombine.low %v723_v16, %v662_v44  ;;  %v812_v46 = vcombine.low %v690_v53, %v651_v45  ;;  %1419 = vmatpush1.bf16.msra.mxu1 %v3784_v6 }
  0xb7   : > { %2299 = vmatpush1.bf16.msra.mxu0 %v3785_v26  ;;  %3246 = vmatprep.mubr.msk.bf16.mxu1 %vm687_vm0, %v4468_v38  ;;  %v663_v11 = vrot.slane %v4176_v7, 1  ;;  %v4508_v44 = vrot.slane %v1269_v37, %v4263_v59  ;;  %v4524_v7 = vrot.slane %v1287_v62, %v4263_v59  ;;  %v3881_v37 = vld [vmem:[%s3954_s25 + $0x18] sm:$0x7] }
  0xb8   : > { %v2014_v45 = vrot.slane %v2000_v19, %v4263_v59  ;;  %v1494_v9 = vrot.slane %v1487_v41, %v4263_v59  ;;  %v819_v51 = vrot.slane %v812_v46, %v4263_v59  ;;  %1420 = vmatprep.subr.bf16.mxu1 %v3902_v1  ;;  %v614_v6 = vpop.permute.xlu0 %613  ;;  %v592_v26 = vpop.permute.xlu1 %591  ;;  %2300 = vmatprep.subr.bf16.mxu0 %v3902_v1  ;;  %v669_v41 = vrot.slane %v4192_v30, 1 }
  0xb9   : > { %v741_v27 = vsel %vm687_vm0, %v3880_v21, %v614_v6  ;;  %v708_v10 = vsel %vm687_vm0, %v3881_v37, %v592_v26  ;;  %v4559_v53 = vrot.slane %v1799_v39, %v4263_v59  ;;  %v656_v26 = vrot.slane %v4194_v32, 1  ;;  %v3884_v37 = vld [vmem:[%s3954_s25 + $0x74] sm:$0x7] }
  0xba   : > { %v1546_v14 = vcombine.low %v4278_v24, %v1494_v9  ;;  %v1250_v55 = vcombine.low %v819_v51, %v4299_v57  ;;  %v1495_v50 = vcombine.low %v741_v27, %v668_v0  ;;  %v844_v49 = vcombine.low %v708_v10, %v657_v15  ;;  %1421 = vmatpush1.bf16.msra.mxu1 %v3786_v54  ;;  %v3789_v24 = vld [vmem:[%s5127_s1 + $0x220] sm:$0xff]   ;;  %v3882_v0 = vld [vmem:[%s3954_s25 + $0x5c] sm:$0x7] }
  0xbb   : > { %2301 = vmatpush1.bf16.msra.mxu0 %v3787_v42  ;;  %1422 = vmatprep.subr.bf16.mxu1 %v3902_v1  ;;  %v4546_v57 = vcombine.high %v2007_v34, %v2014_v45  ;;  %v4548_v62 = vcombine.low %v2007_v34, %v2014_v45  ;;  %v3790_v42 = vld [vmem:[%s5127_s1 + $0x38] sm:$0xff]   ;;  %v675_v32 = vrot.slane %v4196_v33, 1  ;;  %v3793_v33 = vld [vmem:[%s5127_s1 + $0x230] sm:$0xff]  }
  0xbc   : > { %v1553_v36 = vrot.slane %v1546_v14, %v4263_v59  ;;  %v4553_v8 = vrot.slane %v1250_v55, %v4263_v59  ;;  %v1502_v58 = vrot.slane %v1495_v50, %v4263_v59  ;;  %v851_v4 = vrot.slane %v844_v49, %v4263_v59  ;;  %2302 = vmatprep.subr.bf16.mxu0 %v3902_v1  ;;  %v626_v16 = vpop.permute.xlu0 %625  ;;  %v604_v12 = vpop.permute.xlu1 %603  ;;  %v3885_v14 = vld [vmem:[%s3954_s25 + $0x48] sm:$0x7] }
  0xbd   : > { %v759_v15 = vsel %vm687_vm0, %v3882_v0, %v626_v16  ;;  %v726_v19 = vsel %vm687_vm0, %v3883_v25, %v604_v12  ;;  %1242 = vmatmul.mubr.bf16.gmra.mrb[12].mxu1 %v4474_v31  ;;  %3382 = vmatprep.mubr.msk.bf16.mxu0 %vm687_vm0, %v4546_v57 }
  0xbe   : > { %v4570_v46 = vcombine.low %v4508_v44, %v1553_v36  ;;  %v1266_v39 = vcombine.low %v4553_v8, %v4518_v63  ;;  %v1556_v54 = vcombine.low %v4364_v23, %v1502_v58  ;;  %v1268_v34 = vcombine.low %v851_v4, %v4275_v22  ;;  %1423 = vmatpush1.bf16.msra.mxu1 %v3788_v61  ;;  %v3791_v23 = vld [vmem:[%s5127_s1 + $0x228] sm:$0xff]   ;;  %v3792_v61 = vld [vmem:[%s5127_s1 + $0x40] sm:$0xff]  }
  0xbf   : > { %v1503_v45 = vcombine.low %v759_v15, %v674_v43  ;;  %v876_v9 = vcombine.low %v726_v19, %v663_v11  ;;  %2303 = vmatpush1.bf16.msra.mxu0 %v3789_v24  ;;  %1424 = vmatprep.subr.bf16.mxu1 %v3902_v1  ;;  %v4581_v30 = vcombine.high %v4508_v44, %v1553_v36  ;;  %v3886_v19 = vld [vmem:[%s3954_s25 + $0x14] sm:$0x7] }
  0xc0   : > { %v1563_v22 = vrot.slane %v1556_v54, %v4263_v59  ;;  %v1276_v51 = vrot.slane %v1268_v34, %v4263_v59  ;;  %2150 = vmatmul.mubr.bf16.gmra.mrb[12].mxu0 %v4548_v62  ;;  %2304 = vmatprep.subr.bf16.mxu0 %v3902_v1  ;;  %v638_v43 = vpop.permute.xlu0 %637  ;;  %v1267_v11 = vcombine.high %v4553_v8, %v4518_v63  ;;  %v616_v6 = vpop.permute.xlu1 %615  ;;  %v3887_v54 = vld [vmem:[%s3954_s25 + $0x60] sm:$0x7]  ;;  %v3803_v8 = vld [vmem:[%s5127_s1 + $0x258] sm:$0xff]  }
  0xc1   : > { %v1510_v21 = vrot.slane %v1503_v45, %v4263_v59  ;;  %v883_v27 = vrot.slane %v876_v9, %v4263_v59  ;;  %3419 = vmatprep.mubr.msk.bf16.mxu0 %vm687_vm0, %v4581_v30  ;;  %v777_v10 = vsel %vm687_vm0, %v3884_v37, %v638_v43  ;;  %v744_v55 = vsel %vm687_vm0, %v3885_v14, %v616_v6 }
  0xc2   : > { %v2167_v50 = vcombine.low %v777_v10, %v680_v28  ;;  %3259 = vmatprep.mubr.msk.bf16.mxu1 %vm687_vm0, %v1267_v11  ;;  %v908_v49 = vcombine.low %v744_v55, %v669_v41  ;;  %1425 = vmatpush1.bf16.msra.mxu1 %v3790_v42  ;;  %v4607_v24 = vcombine.high %v4524_v7, %v1563_v22  ;;  %v3796_v10 = vld [vmem:[%s5127_s1 + $0x50] sm:$0xff]  }
  0xc3   : > { %v1566_v36 = vcombine.low %v4419_v48, %v1510_v21  ;;  %v1286_v58 = vcombine.low %v883_v27, %v4344_v3  ;;  %2305 = vmatpush1.bf16.msra.mxu0 %v3791_v23  ;;  %1426 = vmatprep.subr.bf16.mxu1 %v3902_v1  ;;  %v4616_v28 = vcombine.low %v4524_v7, %v1563_v22  ;;  %v3795_v22 = vld [vmem:[%s5127_s1 + $0x238] sm:$0xff]  }
  0xc4   : > { %v2174_v4 = vrot.slane %v2167_v50, %v4263_v59  ;;  %v915_v16 = vrot.slane %v908_v49, %v4263_v59  ;;  %2306 = vmatprep.subr.bf16.mxu0 %v3902_v1  ;;  %v590_v48 = vpop.permute.xlu0 %589  ;;  %v628_v12 = vpop.permute.xlu1 %627  ;;  %v4622_v3 = vcombine.high %v1276_v51, %v4508_v44  ;;  %v4625_v0 = vcombine.low %v1276_v51, %v4508_v44  ;;  %v3794_v44 = vld [vmem:[%s5127_s1 + $0x48] sm:$0xff]  }
  0xc5   : > { %v1573_v15 = vrot.slane %v1566_v36, %v4263_v59  ;;  %v1294_v25 = vrot.slane %v1286_v58, %v4263_v59  ;;  %v705_v41 = vsel %vm687_vm0, %v3886_v19, %v590_v48  ;;  %v762_v34 = vsel %vm687_vm0, %v3887_v54, %v628_v12  ;;  %v3799_v36 = vld [vmem:[%s5127_s1 + $0x248] sm:$0xff]   ;;  %v3805_v48 = vld [vmem:[%s5127_s1 + $0x260] sm:$0xff]   ;;  %v3806_v12 = vld [vmem:[%s5127_s1 + $0xd8] sm:$0xff]  }
  0xc6   : > { %v2200_v42 = vcombine.low %v4477_v60, %v2174_v4  ;;  %v1304_v45 = vcombine.low %v915_v16, %v4395_v13  ;;  %v1479_v9 = vcombine.low %v705_v41, %v656_v26  ;;  %v1741_v23 = vcombine.low %v762_v34, %v675_v32  ;;  %1427 = vmatpush1.bf16.msra.mxu1 %v3792_v61  ;;  %v3798_v61 = vld [vmem:[%s5127_s1 + $0x58] sm:$0xff]   ;;  %v3800_v4 = vld [vmem:[%s5127_s1 + $0xc0] sm:$0xff]   ;;  %v3801_v16 = vld [vmem:[%s5127_s1 + $0x250] sm:$0xff]  }
  0xc7   : > { %2307 = vmatpush1.bf16.msra.mxu0 %v3793_v33  ;;  %1428 = vmatprep.subr.bf16.mxu1 %v3902_v1  ;;  %v4643_v51 = vcombine.high %v4540_v17, %v1573_v15  ;;  %v4646_v60 = vcombine.low %v4540_v17, %v1573_v15  ;;  %v4649_v13 = vcombine.high %v1294_v25, %v4524_v7  ;;  %v3807_v15 = vld [vmem:[%s5127_s1 + $0x268] sm:$0xff]   ;;  %v3809_v19 = vld [vmem:[%s5127_s1 + $0x270] sm:$0xff]   ;;  %v3811_v54 = vld [vmem:[%s5127_s1 + $0x278] sm:$0xff]  }
  0xc8   : > { %v2207_v43 = vrot.slane %v2200_v42, %v4263_v59  ;;  %v1312_v11 = vrot.slane %v1304_v45, %v4263_v59  ;;  %v1486_v6 = vrot.slane %v1479_v9, %v4263_v59  ;;  %v1748_v26 = vrot.slane %v1741_v23, %v4263_v59  ;;  %2308 = vmatprep.subr.bf16.mxu0 %v3902_v1  ;;  %v3810_v41 = vld [vmem:[%s5127_s1 + $0xe8] sm:$0xff]   ;;  %v3812_v34 = vld [vmem:[%s5127_s1 + $0xf0] sm:$0xff]   ;;  %v3813_v42 = vld [vmem:[%s5127_s1 + $0x280] sm:$0xff]   ;;  %v640_v23 = vpop.permute.xlu0 %639 }
  0xc9   : > { %v4657_v21 = vcombine.low %v1294_v25, %v4524_v7  ;;  %v3808_v25 = vld [vmem:[%s5127_s1 + $0xe0] sm:$0xff]   ;;  %v3814_v45 = vld [vmem:[%s5127_s1 + $0xf8] sm:$0xff]   ;;  %v3815_v9 = vld [vmem:[%s5127_s1 + $0x288] sm:$0xff]  }
  0xca   : > { %v1536_v27 = vcombine.low %v4319_v35, %v1486_v6  ;;  %v1798_v37 = vcombine.low %v1748_v26, %v4453_v18  ;;  %1429 = vmatpush1.bf16.msra.mxu1 %v3794_v44  ;;  %v4665_v14 = vcombine.high %v4559_v53, %v2207_v43  ;;  %v4668_v55 = vcombine.low %v4559_v53, %v2207_v43  ;;  %v3797_v35 = vld [vmem:[%s5127_s1 + $0x240] sm:$0xff]   ;;  %v642_v44 = vpop.permute.xlu1 %641  ;;  %v3817_v43 = vld [vmem:[%s5127_s1 + $0x290] sm:$0xff]   ;;  %v3818_v26 = vld [vmem:[%s5127_s1 + $0x108] sm:$0xff]  }
  0xcb   : > { %2309 = vmatpush1.bf16.msra.mxu0 %v3795_v22  ;;  %1430 = vmatprep.subr.bf16.mxu1 %v3902_v1  ;;  %v4675_v18 = vcombine.high %v1312_v11, %v4540_v17  ;;  %v4678_v7 = vcombine.low %v1312_v11, %v4540_v17  ;;  %v3816_v22 = vld [vmem:[%s5127_s1 + $0x100] sm:$0xff]  }
  0xcc   : > { %v4681_v50 = vrot.slane %v1536_v27, %v4263_v59  ;;  %v1806_v49 = vrot.slane %v1798_v37, %v4263_v59  ;;  %2514 = vmatprep.subr.bf16.mxu0 %v3902_v1  ;;  %v644_v11 = vpop.permute.xlu0 %643  ;;  %v681_v27 = vrot.slane %v4214_v2, 1  ;;  %v3819_v37 = vld [vmem:[%s5127_s1 + $0x298] sm:$0xff]  }
  0xce   : > { %v1544_v32 = vcombine.low %v4518_v63, %v4681_v50  ;;  %2319 = vmatmul.mubr.bf16.vlgmr.msra.gmra.mrb[0].mxu0 %v4570_v46  ;;  %1431 = vmatpush1.bf16.msra.mxu1 %v3796_v10  ;;  %v1545_v17 = vcombine.high %v4518_v63, %v4681_v50  ;;  %v4699_v58 = vcombine.high %v1806_v49, %v4559_v53  ;;  %v646_v6 = vpop.permute.xlu1 %645  ;;  %v3888_v10 = vld [vmem:[%s3954_s25 + $0x78] sm:$0x7] }
  0xcf   : > { %3420 = vmatprep.mubr.msk.bf16.mxu0 %vm687_vm0, %v4607_v24  ;;  %2515 = vmatpush1.bf16.msra.mxu0 %v3797_v35  ;;  %v4704_v33 = vcombine.low %v1806_v49, %v4559_v53  ;;  %v3802_v53 = vld [vmem:[%s5127_s1 + $0xc8] sm:$0xff]   ;;  %v780_v35 = vsel %vm687_vm0, %v3888_v10, %v640_v23  ;;  %v682_v49 = vrot.slane %v4216_v5, 1  ;;  %v3820_v5 = vld [vmem:[%s5127_s1 + $0x110] sm:$0xff]   ;;  %v3827_v63 = vld [vmem:[%s5127_s1 + $0x2b8] sm:$0xff]  }
  0xd0   : > { %1432 = vmatprep.subr.bf16.mxu1 %v3902_v1  ;;  %2516 = vmatprep.subr.bf16.mxu0 %v3902_v1  ;;  %v3825_v23 = vld [vmem:[%s5127_s1 + $0x2b0] sm:$0xff]   ;;  %v3835_v10 = vld [vmem:[%s5127_s1 + $0x2d8] sm:$0xff]  }
  0xd2   : > { %1433 = vmatpush1.bf16.msra.mxu1 %v3798_v61  ;;  %v683_v61 = vrot.slane %v4221_v20, 1  ;;  %v3821_v20 = vld [vmem:[%s5127_s1 + $0x2a0] sm:$0xff]  }
  0xd3   : > { %2517 = vmatpush1.bf16.msra.mxu0 %v3799_v36  ;;  %1664 = vmatprep.subr.bf16.mxu1 %v3902_v1  ;;  %v3889_v36 = vld [vmem:[%s3954_s25 + $0x7c] sm:$0x7] }
  0xd4   : > { %2518 = vmatprep.subr.bf16.mxu0 %v3902_v1  ;;  %v783_v2 = vsel %vm687_vm0, %v3889_v36, %v642_v44  ;;  %v3842_v36 = vld [vmem:[%s5127_s1 + $0x168] sm:$0xff]  }
  0xd5   : > { %1443 = vmatmul.mubr.bf16.vlgmr.msra.gmra.mrb[0].mxu1 %v1266_v39  ;;  %v3804_v39 = vld [vmem:[%s5127_s1 + $0xd0] sm:$0xff]  }
  0xd6   : > { %2327 = vmatmul.mubr.bf16.gmra.mrb[4].mxu0 %v4616_v28  ;;  %3260 = vmatprep.mubr.msk.bf16.mxu1 %vm687_vm0, %v4622_v3 }
  0xd7   : > { %1665 = vmatpush1.bf16.msra.mxu1 %v3800_v4  ;;  %3421 = vmatprep.mubr.msk.bf16.mxu0 %vm687_vm0, %v4643_v51  ;;  %v3890_v4 = vld [vmem:[%s3954_s25 + $0x80] sm:$0x7] }
  0xd8   : > { %2519 = vmatpush1.bf16.msra.mxu0 %v3801_v16  ;;  %1666 = vmatprep.subr.bf16.mxu1 %v3902_v1  ;;  %v786_v16 = vsel %vm687_vm0, %v3890_v4, %v644_v11  ;;  %v3830_v11 = vld [vmem:[%s5127_s1 + $0x138] sm:$0xff]  }
  0xd9   : > { %2520 = vmatprep.subr.bf16.mxu0 %v3902_v1  ;;  %v3843_v4 = vld [vmem:[%s5127_s1 + $0x2f8] sm:$0xff]  }
  0xdb   : > { %1667 = vmatpush1.bf16.msra.mxu1 %v3802_v53  ;;  %v3891_v53 = vld [vmem:[%s3954_s25 + $0x84] sm:$0x7] }
  0xdc   : > { %2521 = vmatpush1.bf16.msra.mxu0 %v3803_v8  ;;  %1668 = vmatprep.subr.bf16.mxu1 %v3902_v1  ;;  %v789_v8 = vsel %vm687_vm0, %v3891_v53, %v646_v6  ;;  %v3892_v53 = vld [vmem:[%s3954_s25 + $0x88] sm:$0x7] }
  0xdd   : > { %1451 = vmatmul.mubr.bf16.gmra.mrb[4].mxu1 %v4625_v0  ;;  %2522 = vmatprep.subr.bf16.mxu0 %v3902_v1 }
  0xde   : > { %2335 = vmatmul.mubr.bf16.gmra.mrb[8].mxu0 %v4646_v60  ;;  %3261 = vmatprep.mubr.msk.bf16.mxu1 %vm687_vm0, %v4649_v13 }
  0xdf   : > { %1669 = vmatpush1.bf16.msra.mxu1 %v3804_v39  ;;  %3422 = vmatprep.mubr.msk.bf16.mxu0 %vm687_vm0, %v4665_v14  ;;  %v2363_v39 = vcombine.low %v780_v35, %v681_v27  ;;  %v3833_v27 = vld [vmem:[%s5127_s1 + $0x2d0] sm:$0xff]  }
  0xe0   : > { %2523 = vmatpush1.bf16.msra.mxu0 %v3805_v48  ;;  %1670 = vmatprep.subr.bf16.mxu1 %v3902_v1  ;;  %v2379_v48 = vcombine.low %v786_v16, %v683_v61  ;;  %v3836_v35 = vld [vmem:[%s5127_s1 + $0x150] sm:$0xff]   ;;  %v3839_v61 = vld [vmem:[%s5127_s1 + $0x2e8] sm:$0xff]   ;;  %v685_v16 = vrot.slane %v4234_v47, 1  ;;  %v3846_v47 = vld [vmem:[%s5127_s1 + $0x178] sm:$0xff]  }
  0xe1   : > { %2524 = vmatprep.subr.bf16.mxu0 %v3902_v1 }
  0xe3   : > { %1671 = vmatpush1.bf16.msra.mxu1 %v3806_v12 }
  0xe4   : > { %2525 = vmatpush1.bf16.msra.mxu0 %v3807_v15  ;;  %1672 = vmatprep.subr.bf16.mxu1 %v3902_v1  ;;  %v3822_v15 = vld [vmem:[%s5127_s1 + $0x118] sm:$0xff]  }
  0xe5   : > { %1459 = vmatmul.mubr.bf16.gmra.mrb[8].mxu1 %v4657_v21  ;;  %2526 = vmatprep.subr.bf16.mxu0 %v3902_v1 }
  0xe6   : > { %2343 = vmatmul.mubr.bf16.gmra.mrb[12].mxu0 %v4668_v55  ;;  %3262 = vmatprep.mubr.msk.bf16.mxu1 %vm687_vm0, %v4675_v18 }
  0xe7   : > { %1673 = vmatpush1.bf16.msra.mxu1 %v3808_v25  ;;  %3459 = vmatprep.mubr.msk.bf16.mxu0 %vm687_vm0, %v4649_v13  ;;  %v2370_v25 = vrot.slane %v2363_v39, %v4263_v59  ;;  %v3845_v39 = vld [vmem:[%s5127_s1 + $0x300] sm:$0xff]  }
  0xe8   : > { %2527 = vmatpush1.bf16.msra.mxu0 %v3809_v19  ;;  %1674 = vmatprep.subr.bf16.mxu1 %v3902_v1  ;;  %v3823_v19 = vld [vmem:[%s5127_s1 + $0x2a8] sm:$0xff]  }
  0xe9   : > { %2528 = vmatprep.subr.bf16.mxu0 %v3902_v1 }
  0xeb   : > { %1675 = vmatpush1.bf16.msra.mxu1 %v3810_v41 }
  0xec   : > { %2529 = vmatpush1.bf16.msra.mxu0 %v3811_v54  ;;  %1676 = vmatprep.subr.bf16.mxu1 %v3902_v1  ;;  %v4845_v54 = vrot.slane %v2379_v48, %v4263_v59 }
  0xed   : > { %1467 = vmatmul.mubr.bf16.gmra.mrb[12].mxu1 %v4678_v7  ;;  %2530 = vmatprep.subr.bf16.mxu0 %v3902_v1 }
  0xee   : > { %3299 = vmatprep.mubr.msk.bf16.mxu1 %vm687_vm0, %v1545_v17  ;;  %v684_v17 = vrot.slane %v4228_v29, 1  ;;  %v2371_v29 = vcombine.low %v783_v2, %v682_v49  ;;  %v3838_v49 = vld [vmem:[%s5127_s1 + $0x158] sm:$0xff]   ;;  %v648_v2 = vpop.permute.xlu0 %647 }
  0xef   : > { %1677 = vmatpush1.bf16.msra.mxu1 %v3812_v34 }
  0xf0   : > { %2531 = vmatpush1.bf16.msra.mxu0 %v3813_v42  ;;  %1678 = vmatprep.subr.bf16.mxu1 %v3902_v1  ;;  %v2387_v12 = vcombine.low %v789_v8, %v684_v17  ;;  %v4842_v41 = vrot.slane %v2371_v29, %v4263_v59  ;;  %v3841_v17 = vld [vmem:[%s5127_s1 + $0x2f0] sm:$0xff]   ;;  %v792_v8 = vsel %vm687_vm0, %v3892_v53, %v648_v2  ;;  %v3847_v29 = vld [vmem:[%s5127_s1 + $0x308] sm:$0xff]  }
  0xf1   : > { %2532 = vmatprep.subr.bf16.mxu0 %v3902_v1 }
  0xf2   : > { %v4848_v34 = vrot.slane %v2387_v12, %v4263_v59  ;;  %v2420_v42 = vcombine.low %v2370_v25, %v4842_v41 }
  0xf3   : > { %1679 = vmatpush1.bf16.msra.mxu1 %v3814_v45  ;;  %v3824_v45 = vld [vmem:[%s5127_s1 + $0x120] sm:$0xff]  }
  0xf4   : > { %2533 = vmatpush1.bf16.msra.mxu0 %v3815_v9  ;;  %1680 = vmatprep.subr.bf16.mxu1 %v3902_v1  ;;  %v2421_v9 = vcombine.low %v4845_v54, %v4848_v34  ;;  %v2428_v44 = vrot.slane %v2420_v42, %v4263_v59 }
  0xf5   : > { %2534 = vmatprep.subr.bf16.mxu0 %v3902_v1 }
  0xf7   : > { %1681 = vmatpush1.bf16.msra.mxu1 %v3816_v22  ;;  %v4873_v22 = vrot.slane %v2421_v9, %v4263_v59 }
  0xf8   : > { %2535 = vmatpush1.bf16.msra.mxu0 %v3817_v43  ;;  %1682 = vmatprep.subr.bf16.mxu1 %v3902_v1  ;;  %v3826_v43 = vld [vmem:[%s5127_s1 + $0x128] sm:$0xff]  }
  0xf9   : > { %2536 = vmatprep.subr.bf16.mxu0 %v3902_v1  ;;  %v2437_v50 = vcombine.high %v2428_v44, %v4873_v22  ;;  %v2436_v6 = vcombine.low %v2428_v44, %v4873_v22 }
  0xfb   : > { %1683 = vmatpush1.bf16.msra.mxu1 %v3818_v26  ;;  %v3832_v26 = vld [vmem:[%s5127_s1 + $0x140] sm:$0xff]  }
  0xfc   : > { %2537 = vmatpush1.bf16.msra.mxu0 %v3819_v37  ;;  %1684 = vmatprep.subr.bf16.mxu1 %v3902_v1  ;;  %v3834_v37 = vld [vmem:[%s5127_s1 + $0x148] sm:$0xff]  }
  0xfd   : > { %2715 = vmatprep.subr.bf16.mxu0 %v3902_v1 }
  0xff   : > { %2547 = vmatmul.mubr.bf16.vlgmr.msra.gmra.mrb[0].mxu0 %v4657_v21  ;;  %1685 = vmatpush1.bf16.msra.mxu1 %v3820_v5  ;;  %v3844_v5 = vld [vmem:[%s5127_s1 + $0x170] sm:$0xff]  }
 0x100   : > { %3460 = vmatprep.mubr.msk.bf16.mxu0 %vm687_vm0, %v4675_v18  ;;  %2716 = vmatpush1.bf16.msra.mxu0 %v3821_v20  ;;  %v2588_v20 = vcombine.low %v792_v8, %v685_v16 }
 0x101   : > { %1686 = vmatprep.subr.bf16.mxu1 %v3902_v1  ;;  %2717 = vmatprep.subr.bf16.mxu0 %v3902_v1 }
 0x102   : > { %v4985_v48 = vrot.slane %v2588_v20, %v4263_v59 }
 0x103   : > { %1687 = vmatpush1.bf16.msra.mxu1 %v3822_v15  ;;  %v3849_v15 = vld [vmem:[%s5127_s1 + $0x318] sm:$0xff]  }
 0x104   : > { %2718 = vmatpush1.bf16.msra.mxu0 %v3823_v19  ;;  %1892 = vmatprep.subr.bf16.mxu1 %v3902_v1  ;;  %v2622_v12 = vcombine.low %v4848_v34, %v4985_v48  ;;  %v686_v19 = vrot.slane %v4239_v52, 1  ;;  %v3857_v52 = vld [vmem:[%s5127_s1 + $0x358] sm:$0xff]  }
 0x105   : > { %2719 = vmatprep.subr.bf16.mxu0 %v3902_v1 }
 0x106   : > { %1697 = vmatmul.mubr.bf16.vlgmr.msra.gmra.mrb[0].mxu1 %v1544_v32  ;;  %v3829_v32 = vld [vmem:[%s5127_s1 + $0x2c0] sm:$0xff]  }
 0x107   : > { %2555 = vmatmul.mubr.bf16.gmra.mrb[4].mxu0 %v4678_v7  ;;  %3300 = vmatprep.mubr.msk.bf16.mxu1 %vm687_vm0, %v4581_v30  ;;  %v3828_v30 = vld [vmem:[%s5127_s1 + $0x130] sm:$0xff]  }
 0x108   : > { %1893 = vmatpush1.bf16.msra.mxu1 %v3824_v45  ;;  %3461 = vmatprep.mubr.msk.bf16.mxu0 %vm687_vm0, %v4699_v58 }
 0x109   : > { %2720 = vmatpush1.bf16.msra.mxu0 %v3825_v23  ;;  %1894 = vmatprep.subr.bf16.mxu1 %v3902_v1 }
 0x10a   : > { %2721 = vmatprep.subr.bf16.mxu0 %v3902_v1 }
 0x10c   : > { %1895 = vmatpush1.bf16.msra.mxu1 %v3826_v43 }
 0x10d   : > { %2722 = vmatpush1.bf16.msra.mxu0 %v3827_v63  ;;  %1896 = vmatprep.subr.bf16.mxu1 %v3902_v1 }
 0x10e   : > { %1705 = vmatmul.mubr.bf16.gmra.mrb[4].mxu1 %v4570_v46  ;;  %2723 = vmatprep.subr.bf16.mxu0 %v3902_v1  ;;  %v3831_v46 = vld [vmem:[%s5127_s1 + $0x2c8] sm:$0xff]  }
 0x10f   : > { %2563 = vmatmul.mubr.bf16.gmra.mrb[8].mxu0 %v4704_v33  ;;  %3301 = vmatprep.mubr.msk.bf16.mxu1 %vm687_vm0, %v4607_v24 }
 0x110   : > { %1897 = vmatpush1.bf16.msra.mxu1 %v3828_v30  ;;  %3462 = vmatprep.mubr.msk.bf16.mxu0 %vm687_vm0, %v2437_v50 }
 0x111   : > { %2724 = vmatpush1.bf16.msra.mxu0 %v3829_v32  ;;  %1898 = vmatprep.subr.bf16.mxu1 %v3902_v1 }
 0x112   : > { %2725 = vmatprep.subr.bf16.mxu0 %v3902_v1 }
 0x114   : > { %1899 = vmatpush1.bf16.msra.mxu1 %v3830_v11 }
 0x115   : > { %2726 = vmatpush1.bf16.msra.mxu0 %v3831_v46  ;;  %1900 = vmatprep.subr.bf16.mxu1 %v3902_v1 }
 0x116   : > { %1713 = vmatmul.mubr.bf16.gmra.mrb[8].mxu1 %v4616_v28  ;;  %2727 = vmatprep.subr.bf16.mxu0 %v3902_v1 }
 0x117   : > { %2571 = vmatmul.mubr.bf16.gmra.mrb[12].mxu0 %v2436_v6  ;;  %3302 = vmatprep.mubr.msk.bf16.mxu1 %vm687_vm0, %v4643_v51 }
 0x118   : > { %1901 = vmatpush1.bf16.msra.mxu1 %v3832_v26  ;;  %3499 = vmatprep.mubr.msk.bf16.mxu0 %vm687_vm0, %v4410_v40  ;;  %v3837_v40 = vld [vmem:[%s5127_s1 + $0x2e0] sm:$0xff]  }
 0x119   : > { %2728 = vmatpush1.bf16.msra.mxu0 %v3833_v27  ;;  %1902 = vmatprep.subr.bf16.mxu1 %v3902_v1 }
 0x11a   : > { %2729 = vmatprep.subr.bf16.mxu0 %v3902_v1 }
 0x11c   : > { %1903 = vmatpush1.bf16.msra.mxu1 %v3834_v37 }
 0x11d   : > { %2730 = vmatpush1.bf16.msra.mxu0 %v3835_v10  ;;  %1904 = vmatprep.subr.bf16.mxu1 %v3902_v1 }
 0x11e   : > { %1721 = vmatmul.mubr.bf16.gmra.mrb[12].mxu1 %v4646_v60  ;;  %2731 = vmatprep.subr.bf16.mxu0 %v3902_v1 }
 0x11f   : > { %3339 = vmatprep.mubr.msk.bf16.mxu1 %vm687_vm0, %v4622_v3  ;;  %v3840_v3 = vld [vmem:[%s5127_s1 + $0x160] sm:$0xff]  }
 0x120   : > { %1905 = vmatpush1.bf16.msra.mxu1 %v3836_v35 }
 0x121   : > { %2732 = vmatpush1.bf16.msra.mxu0 %v3837_v40  ;;  %1906 = vmatprep.subr.bf16.mxu1 %v3902_v1 }
 0x122   : > { %2733 = vmatprep.subr.bf16.mxu0 %v3902_v1 }
 0x124   : > { %1907 = vmatpush1.bf16.msra.mxu1 %v3838_v49 }
 0x125   : > { %2734 = vmatpush1.bf16.msra.mxu0 %v3839_v61  ;;  %1908 = vmatprep.subr.bf16.mxu1 %v3902_v1 }
 0x126   : > { %2735 = vmatprep.subr.bf16.mxu0 %v3902_v1 }
 0x128   : > { %1909 = vmatpush1.bf16.msra.mxu1 %v3840_v3 }
 0x129   : > { %2736 = vmatpush1.bf16.msra.mxu0 %v3841_v17  ;;  %1910 = vmatprep.subr.bf16.mxu1 %v3902_v1 }
 0x12a   : > { %2737 = vmatprep.subr.bf16.mxu0 %v3902_v1 }
 0x12c   : > { %1911 = vmatpush1.bf16.msra.mxu1 %v3842_v36 }
 0x12d   : > { %2738 = vmatpush1.bf16.msra.mxu0 %v3843_v4  ;;  %1912 = vmatprep.subr.bf16.mxu1 %v3902_v1 }
 0x12e   : > { %2908 = vmatprep.subr.bf16.mxu0 %v3902_v1 }
 0x130   : > { %2748 = vmatmul.mubr.bf16.vlgmr.msra.gmra.mrb[0].mxu0 %v4416_v56  ;;  %1913 = vmatpush1.bf16.msra.mxu1 %v3844_v5  ;;  %v3848_v56 = vld [vmem:[%s5127_s1 + $0x310] sm:$0xff]  }
 0x131   : > { %3500 = vmatprep.mubr.msk.bf16.mxu0 %vm687_vm0, %v4468_v38  ;;  %2909 = vmatpush1.bf16.msra.mxu0 %v3845_v39  ;;  %v2621_v38 = vcombine.low %v4842_v41, %v4845_v54  ;;  %v3893_v41 = vld [vmem:[%s3954_s25 + $0x8c] sm:$0x7]  ;;  %s3553_s25 = sshll.u32 %s5131_s13, 5 }
 0x132   : > { %1914 = vmatprep.subr.bf16.mxu1 %v3902_v1  ;;  %2910 = vmatprep.subr.bf16.mxu0 %v3902_v1  ;;  %s5084_s20 = scalar_lea.vmem %s5128_s2, %s3553_s25 }
 0x133   : > { %v2629_v25 = vrot.slane %v2621_v38, %v4263_v59 }
 0x134   : > { %1915 = vmatpush1.bf16.msra.mxu1 %v3846_v47 }
 0x135   : > { %2911 = vmatpush1.bf16.msra.mxu0 %v3847_v29  ;;  %3562 = vmatprep.subr.bf16.mxu1 %v3902_v1 }
 0x136   : > { %2912 = vmatprep.subr.bf16.mxu0 %v3902_v1 }
 0x137   : > { %1925 = vmatmul.mubr.bf16.vlgmr.msra.gmra.mrb[0].mxu1 %v4625_v0  ;;  %v2636_v0 = vrot.slane %v2622_v12, %v4263_v59 }
 0x138   : > { %2756 = vmatmul.mubr.bf16.gmra.mrb[4].mxu0 %v4474_v31  ;;  %3340 = vmatprep.mubr.msk.bf16.mxu1 %vm687_vm0, %v4649_v13  ;;  %v3850_v31 = vld [vmem:[%s5127_s1 + $0x320] sm:$0xff]   ;;  %v3851_v13 = vld [vmem:[%s5127_s1 + $0x328] sm:$0xff]  }
 0x139   : > { %3501 = vmatprep.mubr.msk.bf16.mxu0 %vm687_vm0, %v4546_v57  ;;  %3574 = vmatpush1.bf16.msra.mxu1 %v3845_v39  ;;  %v2638_v57 = vcombine.high %v2629_v25, %v2636_v0 }
 0x13a   : > { %2913 = vmatpush1.bf16.msra.mxu0 %v3848_v56  ;;  %3563 = vmatprep.subr.bf16.mxu1 %v3902_v1 }
 0x13b   : > { %2914 = vmatprep.subr.bf16.mxu0 %v3902_v1 }
 0x13d   : > { %3575 = vmatpush1.bf16.msra.mxu1 %v3847_v29 }
 0x13e   : > { %2915 = vmatpush1.bf16.msra.mxu0 %v3849_v15  ;;  %3564 = vmatprep.subr.bf16.mxu1 %v3902_v1 }
 0x13f   : > { %1933 = vmatmul.mubr.bf16.gmra.mrb[4].mxu1 %v4657_v21  ;;  %2916 = vmatprep.subr.bf16.mxu0 %v3902_v1  ;;  %v2637_v21 = vcombine.low %v2629_v25, %v2636_v0 }
 0x140   : > { %2764 = vmatmul.mubr.bf16.gmra.mrb[8].mxu0 %v4548_v62  ;;  %3341 = vmatprep.mubr.msk.bf16.mxu1 %vm687_vm0, %v4675_v18  ;;  %v3852_v62 = vld [vmem:[%s5127_s1 + $0x330] sm:$0xff]   ;;  %v3853_v18 = vld [vmem:[%s5127_s1 + $0x338] sm:$0xff]  }
 0x141   : > { %3502 = vmatprep.mubr.msk.bf16.mxu0 %vm687_vm0, %v2638_v57  ;;  %3576 = vmatpush1.bf16.msra.mxu1 %v3848_v56 }
 0x142   : > { %2917 = vmatpush1.bf16.msra.mxu0 %v3850_v31  ;;  %3565 = vmatprep.subr.bf16.mxu1 %v3902_v1 }
 0x143   : > { %2918 = vmatprep.subr.bf16.mxu0 %v3902_v1 }
 0x145   : > { %3577 = vmatpush1.bf16.msra.mxu1 %v3849_v15 }
 0x146   : > { %2919 = vmatpush1.bf16.msra.mxu0 %v3851_v13  ;;  %3566 = vmatprep.subr.bf16.mxu1 %v3902_v1 }
 0x147   : > { %1941 = vmatmul.mubr.bf16.gmra.mrb[8].mxu1 %v4678_v7  ;;  %2920 = vmatprep.subr.bf16.mxu0 %v3902_v1  ;;  %v3854_v7 = vld [vmem:[%s5127_s1 + $0x340] sm:$0xff]  }
 0x148   : > { %2772 = vmatmul.mubr.bf16.gmra.mrb[12].mxu0 %v2637_v21  ;;  %3342 = vmatprep.mubr.msk.bf16.mxu1 %vm687_vm0, %v4699_v58  ;;  %v3855_v58 = vld [vmem:[%s5127_s1 + $0x348] sm:$0xff]  }
 0x149   : > { %3578 = vmatpush1.bf16.msra.mxu1 %v3850_v31  ;;  %3539 = vmatprep.mubr.msk.bf16.mxu0 %vm687_vm0, %v4607_v24  ;;  %v650_v24 = vpop.permute.xlu1 %649 }
 0x14a   : > { %2921 = vmatpush1.bf16.msra.mxu0 %v3852_v62  ;;  %3567 = vmatprep.subr.bf16.mxu1 %v3902_v1 }
 0x14b   : > { %2922 = vmatprep.subr.bf16.mxu0 %v3902_v1 }
 0x14d   : > { %3579 = vmatpush1.bf16.msra.mxu1 %v3851_v13 }
 0x14e   : > { %2923 = vmatpush1.bf16.msra.mxu0 %v3853_v18  ;;  %3568 = vmatprep.subr.bf16.mxu1 %v3902_v1 }
 0x14f   : > { %1949 = vmatmul.mubr.bf16.gmra.mrb[12].mxu1 %v4704_v33  ;;  %2924 = vmatprep.subr.bf16.mxu0 %v3902_v1  ;;  %v795_v33 = vsel %vm687_vm0, %v3893_v41, %v650_v24 }
 0x150   : > { %3541 = vmatprep.mubr.msk.bf16.mxu1 %vm687_vm0, %v4665_v14  ;;  %v3856_v14 = vld [vmem:[%s5127_s1 + $0x350] sm:$0xff]   ;;  %v2789_v54 = vcombine.low %v795_v33, %v686_v19 }
 0x151   : > { %3580 = vmatpush1.bf16.msra.mxu1 %v3852_v62 }
 0x152   : > { %2925 = vmatpush1.bf16.msra.mxu0 %v3854_v7  ;;  %3569 = vmatprep.subr.bf16.mxu1 %v3902_v1  ;;  %v2796_v34 = vrot.slane %v2789_v54, %v4263_v59 }
 0x153   : > { %2926 = vmatprep.subr.bf16.mxu0 %v3902_v1 }
 0x154   : > { %v2822_v42 = vcombine.low %v4985_v48, %v2796_v34 }
 0x155   : > { %3581 = vmatpush1.bf16.msra.mxu1 %v3853_v18 }
 0x156   : > { %2927 = vmatpush1.bf16.msra.mxu0 %v3855_v58  ;;  %3570 = vmatprep.subr.bf16.mxu1 %v3902_v1  ;;  %v2829_v45 = vrot.slane %v2822_v42, %v4263_v59 }
 0x157   : > { %2928 = vmatprep.subr.bf16.mxu0 %v3902_v1 }
 0x158   : > { %v2831_v9 = vcombine.high %v4873_v22, %v2829_v45  ;;  %v2830_v23 = vcombine.low %v4873_v22, %v2829_v45 }
 0x159   : > { %3582 = vmatpush1.bf16.msra.mxu1 %v3854_v7 }
 0x15a   : > { %2929 = vmatpush1.bf16.msra.mxu0 %v3856_v14  ;;  %3571 = vmatprep.subr.bf16.mxu1 %v3902_v1 }
 0x15b   : > { %2930 = vmatprep.subr.bf16.mxu0 %v3902_v1 }
 0x15d   : > { %3583 = vmatpush1.bf16.msra.mxu1 %v3855_v58 }
 0x15e   : > { %2931 = vmatpush1.bf16.msra.mxu0 %v3857_v52  ;;  %3572 = vmatprep.subr.bf16.mxu1 %v3902_v1 }
 0x161   : > { %2941 = vmatmul.mubr.bf16.vlgmr.msra.gmra.mrb[0].mxu0 %v4616_v28  ;;  %3584 = vmatpush1.bf16.msra.mxu1 %v3856_v14 }
 0x162   : > { %3540 = vmatprep.mubr.msk.bf16.mxu0 %vm687_vm0, %v4643_v51  ;;  %3573 = vmatprep.subr.bf16.mxu1 %v3902_v1 }
 0x165   : > { %3585 = vmatpush1.bf16.msra.mxu1 %v3857_v52 }
 0x168   : > { %2957 = vmatmul.mubr.bf16.vlgmr.msra.gmra.mrb[16].mxu1 %v4668_v55 }
 0x169   : > { %2949 = vmatmul.mubr.bf16.gmra.mrb[4].mxu0 %v4646_v60  ;;  %3542 = vmatprep.mubr.msk.bf16.mxu1 %vm687_vm0, %v2831_v9 }
 0x170   : > { %2965 = vmatmul.mubr.bf16.gmra.mrb[20].mxu1 %v2830_v23 }
 0x20a   : > { %v1926_v28 = vpop.f32.mrb[0].mxu1 }
 0x20b   : > { %v1928_v44 = vpop.f32.mrb[1].mxu1 }
 0x20c   : > { %v1929_v43 = vpop.f32.mrb[2].mxu1 }
 0x20d   : > { %v1931_v51 = vpop.f32.mrb[3].mxu1 }
 0x212   : > { %v1934_v63 = vpop.f32.mrb[4].mxu1 }
 0x213   : > { %v2765_v1 = vpop.f32.mrb[8].mxu0  ;;  %v1936_v30 = vpop.f32.mrb[5].mxu1 }
 0x214   : > { %v2767_v59 = vpop.f32.mrb[9].mxu0  ;;  %v1937_v50 = vpop.f32.mrb[6].mxu1 }
 0x215   : > { %v2768_v32 = vpop.f32.mrb[10].mxu0  ;;  %v1939_v11 = vpop.f32.mrb[7].mxu1 }
 0x216   : > { %v2770_v46 = vpop.f32.mrb[11].mxu0 }
 0x21a   : > { %v1942_v55 = vpop.f32.mrb[8].mxu1 }
 0x21b   : > { %v3590_v60 = vadd.f32 %v2765_v1, %v1942_v55  ;;  %v2773_v6 = vpop.f32.mrb[12].mxu0  ;;  %v1944_v26 = vpop.f32.mrb[9].mxu1 }
 0x21c   : > { %v2775_v27 = vpop.f32.mrb[13].mxu0  ;;  %v1945_v22 = vpop.f32.mrb[10].mxu1 }
 0x21d   : > { %v3592_v37 = vadd.f32 %v2768_v32, %v1945_v22  ;;  %v2776_v10 = vpop.f32.mrb[14].mxu0  ;;  %v1947_v35 = vpop.f32.mrb[11].mxu1 }
 0x21e   : > { %v2778_v40 = vpop.f32.mrb[15].mxu0 }
 0x222   : > { %v1950_v49 = vpop.f32.mrb[12].mxu1 }
 0x223   : > { %v3594_v61 = vadd.f32 %v2773_v6, %v1950_v49  ;;  %v1952_v3 = vpop.f32.mrb[13].mxu1 }
 0x224   : > { %v1953_v17 = vpop.f32.mrb[14].mxu1 }
 0x225   : > { %v5078_v36 = vadd.f32 %v2776_v10, %v1953_v17  ;;  %v1955_v2 = vpop.f32.mrb[15].mxu1 }
 0x234   : > { %v2942_v4 = vpop.f32.mrb[0].mxu0 }
 0x235   : > { %v3586_v16 = vadd.f32 %v2942_v4, %v1926_v28  ;;  %v2944_v53 = vpop.f32.mrb[1].mxu0 }
 0x236   : > { %v2945_v8 = vpop.f32.mrb[2].mxu0 }
 0x237   : > { %v3554_v5 = vpack.c.bf16 %v3586_v16, %v3586_v16  ;;  %v3043_v39 = vmul.f32 %v3586_v16, %v3586_v16  ;;  %v3587_v20 = vadd.f32 %v2945_v8, %v1929_v43  ;;  %v2947_v47 = vpop.f32.mrb[3].mxu0  ;;  %v3022_v29 = vsel %vm687_vm0, %v3586_v16, 0.0 }
 0x239   : > { %3014 = vst.msk [vmem:[%s5084_s20] sm:$0xf] %vm3013_vm1, %v3554_v5  ;;  %v3555_v48 = vpack.c.bf16 %v3587_v20, %v3587_v20  ;;  %v3023_v56 = vsel %vm687_vm0, %v3587_v20, 0.0  ;;  %v3044_v38 = vmul.f32 %v3587_v20, %v3587_v20  ;;  %v3051_v15 = vsel %vm687_vm0, %v3043_v39, 0.0 }
 0x23a   : > { %v3024_v12 = vadd.f32 %v3023_v56, %v3022_v29 }
 0x23b   : > { %3015 = vst.msk [vmem:[%s5084_s20 + $0x4] sm:$0xf] %vm3013_vm1, %v3555_v48  ;;  %v3052_v25 = vsel %vm687_vm0, %v3044_v38, 0.0  ;;  %v2958_v0 = vpop.f32.mrb[16].mxu1 }
 0x23c   : > { %v3053_v31 = vadd.f32 %v3052_v25, %v3051_v15  ;;  %v2950_v57 = vpop.f32.mrb[4].mxu0  ;;  %v3591_v13 = vadd.f32 %v3590_v60, %v2958_v0  ;;  %v2960_v21 = vpop.f32.mrb[17].mxu1 }
 0x23d   : > { %v3588_v62 = vadd.f32 %v2950_v57, %v1934_v63  ;;  %v2952_v18 = vpop.f32.mrb[5].mxu0  ;;  %v2961_v7 = vpop.f32.mrb[18].mxu1 }
 0x23e   : > { %v3558_v24 = vpack.c.bf16 %v3591_v13, %v3591_v13  ;;  %v2953_v58 = vpop.f32.mrb[6].mxu0  ;;  %v3593_v19 = vadd.f32 %v3592_v37, %v2961_v7  ;;  %v2963_v41 = vpop.f32.mrb[19].mxu1  ;;  %v3047_v45 = vmul.f32 %v3591_v13, %v3591_v13  ;;  %v3029_v1 = vsel %vm687_vm0, %v3591_v13, 0.0 }
 0x23f   : > { %v3556_v33 = vpack.c.bf16 %v3588_v62, %v3588_v62  ;;  %v3025_v14 = vsel %vm687_vm0, %v3588_v62, 0.0  ;;  %v3045_v54 = vmul.f32 %v3588_v62, %v3588_v62  ;;  %v3589_v52 = vadd.f32 %v2953_v58, %v1937_v50  ;;  %v2955_v34 = vpop.f32.mrb[7].mxu0 }
 0x240   : > { %v3026_v42 = vadd.f32 %v3025_v14, %v3024_v12  ;;  %3018 = vst.msk [vmem:[%s5084_s20 + $0x10] sm:$0xf] %vm3013_vm1, %v3558_v24  ;;  %v3559_v9 = vpack.c.bf16 %v3593_v19, %v3593_v19  ;;  %v3048_v59 = vmul.f32 %v3593_v19, %v3593_v19  ;;  %v3058_v60 = vsel %vm687_vm0, %v3047_v45, 0.0 }
 0x241   : > { %3016 = vst.msk [vmem:[%s5084_s20 + $0x8] sm:$0xf] %vm3013_vm1, %v3556_v33  ;;  %v3054_v23 = vsel %vm687_vm0, %v3045_v54, 0.0  ;;  %v3557_v28 = vpack.c.bf16 %v3589_v52, %v3589_v52  ;;  %v3027_v44 = vsel %vm687_vm0, %v3589_v52, 0.0  ;;  %v3046_v43 = vmul.f32 %v3589_v52, %v3589_v52 }
 0x242   : > { %v3055_v51 = vadd.f32 %v3054_v23, %v3053_v31  ;;  %v3028_v63 = vadd.f32 %v3027_v44, %v3026_v42  ;;  %3019 = vst.msk [vmem:[%s5084_s20 + $0x14] sm:$0xf] %vm3013_vm1, %v3559_v9  ;;  %v3031_v6 = vsel %vm687_vm0, %v3593_v19, 0.0  ;;  %v3060_v40 = vsel %vm687_vm0, %v3048_v59, 0.0 }
 0x243   : > { %3017 = vst.msk [vmem:[%s5084_s20 + $0xc] sm:$0xf] %vm3013_vm1, %v3557_v28  ;;  %v3056_v30 = vsel %vm687_vm0, %v3046_v43, 0.0  ;;  %v2966_v50 = vpop.f32.mrb[20].mxu1 }
 0x244   : > { %v3057_v32 = vadd.f32 %v3056_v30, %v3055_v51  ;;  %v3030_v11 = vadd.f32 %v3029_v1, %v3028_v63  ;;  %v3595_v46 = vadd.f32 %v3594_v61, %v2966_v50  ;;  %v2968_v55 = vpop.f32.mrb[21].mxu1 }
 0x245   : > { %v2969_v26 = vpop.f32.mrb[22].mxu1 }
 0x246   : > { %v3032_v27 = vadd.f32 %v3031_v6, %v3030_v11  ;;  %v3059_v22 = vadd.f32 %v3058_v60, %v3057_v32  ;;  %v3560_v37 = vpack.c.bf16 %v3595_v46, %v3595_v46  ;;  %v3033_v10 = vsel %vm687_vm0, %v3595_v46, 0.0  ;;  %v2971_v35 = vpop.f32.mrb[23].mxu1 }
 0x247   : > { %v3049_v49 = vmul.f32 %v3595_v46, %v3595_v46  ;;  %v3597_v3 = vadd.f32 %v5078_v36, %v2969_v26 }
 0x248   : > { %v3061_v17 = vadd.f32 %v3060_v40, %v3059_v22  ;;  %3020 = vst.msk [vmem:[%s5084_s20 + $0x18] sm:$0xf] %vm3013_vm1, %v3560_v37  ;;  %v3034_v61 = vadd.f32 %v3033_v10, %v3032_v27 }
 0x249   : > { %v3062_v2 = vsel %vm687_vm0, %v3049_v49, 0.0  ;;  %v3561_v4 = vpack.c.bf16 %v3597_v3, %v3597_v3  ;;  %v3035_v16 = vsel %vm687_vm0, %v3597_v3, 0.0  ;;  %v3050_v53 = vmul.f32 %v3597_v3, %v3597_v3 }
 0x24a   : > { %v3063_v8 = vadd.f32 %v3062_v2, %v3061_v17  ;;  %v3036_v5 = vadd.f32 %v3035_v16, %v3034_v61 }
 0x24b   : > { %3021 = vst.msk [vmem:[%s5084_s20 + $0x1c] sm:$0xf] %vm3013_vm1, %v3561_v4  ;;  %v3064_v39 = vsel %vm687_vm0, %v3050_v53, 0.0 }
 0x24c   : > { %v3037_v20 = vrot.slane %v3036_v5, 4  ;;  %v3065_v47 = vadd.f32 %v3064_v39, %v3063_v8 }
 0x24e   : > { %v3038_v36 = vadd.f32 %v3037_v20, %v3036_v5  ;;  %v3066_v29 = vrot.slane %v3065_v47, 4 }
 0x250   : > { %v3039_v48 = vrot.slane %v3038_v36, 2  ;;  %v3067_v56 = vadd.f32 %v3066_v29, %v3065_v47 }
 0x252   : > { %v3040_v38 = vadd.f32 %v3039_v48, %v3038_v36  ;;  %v3068_v12 = vrot.slane %v3067_v56, 2 }
 0x254   : > { %v3041_v15 = vrot.slane %v3040_v38, 1  ;;  %v3069_v25 = vadd.f32 %v3068_v12, %v3067_v56 }
 0x256   : > { %v3070_v0 = vrot.slane %v3069_v25, 1  ;;  %v3042_v31 = vadd.f32 %v3041_v15, %v3040_v38 }
 0x258   : > { %v3071_v57 = vadd.f32 %v3070_v0, %v3069_v25 }
 0x25a   : > { %v3073_v13 = vsel %vm3072_vm2, %v3042_v31, %v3071_v57 }
 0x25b   : > { %3075 = vst.msk [vmem:[%s181_s24] sm:$0x3] %vm3074_vm3, %v3073_v13 }
 0x25c PF: > { %s14_s12 = sadd.s32 1, %s3900_s12  }
 0x25d   : > { %p11_p4 = scmp.ge.s32.totalorder %s14_s12, 4  }
 0x25f   :  { %13 = sbr.rel (!%p11_p4) target bundleno = 1 (0x1), region = 78 }

// kernel: feature_encoder_3d.8
= control target key start
LH: loop header
LB: loop body
LE: loop exit
PB: predicated region body
PF: predicated region fallthrough
CT: control target
= control target key end

     0   :  { %s9397_s12 = smov 0   ;;  %s12018_s0 = inlined_call_operand.vmem [shape: bf16[2,10,10,10,8], index: 0, kind: input, shape index: {}]   ;;  %s12019_s1 = inlined_call_operand.vmem [shape: bf16[9,24,64], index: 1, kind: input, shape index: {}]   ;;  %s12020_s2 = inlined_call_operand.vmem [shape: bf16[2,512,64], index: 2, kind: output, shape index: {0}]   ;;  %s12021_s3 = inlined_call_operand.vmem [shape: f32[2,2,64], index: 3, kind: output, shape index: {1}]  }
   0x1 LB: > { %s7081_s13 = sadd.s32 4294967295, %s9373_s12   ;;  %p7085_p0 = scmp.ge.s32.totalorder %s9373_s12, 1  ;;  %s9373_s12 = sphi %s9397_s12, %s14_s12  }
   0x2   : > { %p140_p1 = scmp.lt.s32.totalorder %s9373_s12, 3 }
   0x4   : > { %p141_p2 = pnand %p7085_p0, %p140_p1 }
   0x6   : > { %144 = sbr.rel (%p141_p2) target bundleno = 1102 (0x44e), region = 28 }
   0xd   : > { %p168_p3 = scmp.lt.s32.totalorder %s7081_s13, 1  ;;  %s9375_s18 = smov 16   ;;  %v9232_v50 = vld [vmem:[%s12019_s1 + $0xc] sm:$0xff]   ;;  %vm2858_vm0 = vcmask 1043456   ;;  %vm2083_vm1 = vcmask 64512   ;;  %vm2384_vm2 = vcmask 130048  }
   0xe   : > { %s9376_s19 = smov 8   ;;  %8047 = vmatprep.subr.bf16.mxu1 %v9232_v50  ;;  %v9234_v57 = vld [vmem:[%s12019_s1 + $0x30] sm:$0xff]   ;;  %vm2761_vm3 = vcmask 195584   ;;  %vm6595_vm4 = vcmask 519168   ;;  %vm6660_vm5 = vcmask 523264   ;;  %vm6991_vm6 = vcmask 1040384  }
   0xf   : > { %s12228_s13 = smov (!%p168_p3, %s7081_s13), 1  ;;  %8048 = vmatpush3.bf16.msra.mxu1 %v9232_v50  ;;  %8319 = vmatprep.subr.bf16.mxu0 %v9234_v57  ;;  %vm6993_vm7 = vcmask 517120  }
  0x10   : > { %s9185_s14 = smul.u32 800, %s12228_s13  ;;  %8320 = vmatpush3.bf16.msra.mxu0 %v9234_v57  ;;  %s7676_s8 = sshll.u32 %s12228_s13, 8 }
  0x11   : > { %s11726_s11 = scalar_lea.vmem %s12020_s2, %s7676_s8 }
  0x12   : > { %s9411_s17 = scalar_lea.vmem %s12018_s0, %s9185_s14  ;;  %s7089_s14 = sshll.u32 %s12228_s13, 1 }
  0x13   : > { %v9414_v0 = vld [vmem:[%s9411_s17 + $0x10] sm:$0xf]  ;;  %v188_v1 = vld [vmem:[%s9411_s17 + $0x14] sm:$0x1]  ;;  %v9418_v2 = vld [vmem:[%s9411_s17 + $0x8] sm:$0xf]  ;;  %s181_s20 = scalar_lea.vmem %s12021_s3, %s7089_s14 }
  0x14   : > { %v7092_v3 = vcombine.low %v9414_v0, %v188_v1  ;;  %v186_v4 = vld [vmem:[%s9411_s17 + $0xc] sm:$0x1]  ;;  %v9423_v5 = vld [vmem:[%s9411_s17 + $0x58] sm:$0xf]  ;;  %v206_v6 = vld [vmem:[%s9411_s17 + $0x5c] sm:$0x1] }
  0x15   : > { %v7091_v7 = vcombine.low %v9418_v2, %v186_v4  ;;  %v9428_v8 = vcombine.low %v9423_v5, %v206_v6  ;;  %v9431_v9 = vld [vmem:[%s9411_s17 + $0x60] sm:$0xf]  ;;  %v208_v10 = vld [vmem:[%s9411_s17 + $0x64] sm:$0x1]  ;;  %v9444_v20 = vld [vmem:[%s9411_s17 + $0x18] sm:$0xf] }
  0x16   : > { %v1785_v11 = vrot.slane %v7092_v3, 1  ;;  %v9435_v12 = vcombine.low %v9431_v9, %v208_v10  ;;  %v900_v13 = vshll.u32 %v7092_v3, 16  ;;  %v9438_v14 = vld [vmem:[%s9411_s17 + $0x20] sm:$0xf]  ;;  %v192_v15 = vld [vmem:[%s9411_s17 + $0x24] sm:$0x1] }
  0x17   : > { %v1784_v16 = vrot.slane %v7091_v7, 1  ;;  %v961_v17 = vshrl.u32 %v9428_v8, 16  ;;  %v963_v18 = vshll.u32 %v9428_v8, 16  ;;  %v898_v19 = vshrl.u32 %v7092_v3, 16  ;;  %v190_v25 = vld [vmem:[%s9411_s17 + $0x1c] sm:$0x1] }
  0x18   : > { %1887 = vrot.lane.b32.xlu1 %v1785_v11, %s9375_s18  ;;  %v891_v21 = vshrl.u32 %v7091_v7, 16  ;;  %v893_v22 = vshll.u32 %v7091_v7, 16  ;;  %v968_v23 = vshrl.u32 %v9435_v12, 16  ;;  %v970_v24 = vshll.u32 %v9435_v12, 16  ;;  %v9458_v30 = vld [vmem:[%s9411_s17 + $0x70] sm:$0xf] }
  0x19   : > { %1885 = vrot.lane.b32.xlu0 %v1784_v16, %s9375_s18  ;;  %v965_v26 = vrot.slane %v963_v18, 1  ;;  %v902_v27 = vrot.slane %v900_v13, 1  ;;  %v9452_v28 = vcombine.low %v9438_v14, %v192_v15  ;;  %v9455_v29 = vcombine.low %v9444_v20, %v190_v25  ;;  %v212_v31 = vld [vmem:[%s9411_s17 + $0x74] sm:$0x1]  ;;  %v9465_v35 = vld [vmem:[%s9411_s17 + $0x68] sm:$0xf] }
  0x1a   : > { %v895_v32 = vrot.slane %v893_v22, 1  ;;  %v972_v33 = vrot.slane %v970_v24, 1  ;;  %v9462_v34 = vcombine.low %v9458_v30, %v212_v31  ;;  %v210_v36 = vld [vmem:[%s9411_s17 + $0x6c] sm:$0x1]  ;;  %v9492_v60 = vld [vmem:[%s9411_s17 + $0x30] sm:$0xf] }
  0x1b   : > { %v966_v37 = vor.u32 %v965_v26, %v961_v17  ;;  %v914_v38 = vshll.u32 %v9452_v28, 16  ;;  %v912_v40 = vshrl.u32 %v9452_v28, 16  ;;  %v907_v41 = vshll.u32 %v9455_v29, 16  ;;  %v196_v61 = vld [vmem:[%s9411_s17 + $0x34] sm:$0x1] }
  0x1c   : > { %v896_v39 = vor.u32 %v895_v32, %v891_v21  ;;  %v973_v42 = vor.u32 %v972_v33, %v968_v23  ;;  %v984_v44 = vshll.u32 %v9462_v34, 16  ;;  %v9474_v45 = vcombine.low %v9465_v35, %v210_v36  ;;  %v9496_v62 = vld [vmem:[%s9411_s17 + $0x28] sm:$0xf]  ;;  %v194_v63 = vld [vmem:[%s9411_s17 + $0x2c] sm:$0x1] }
  0x1d   : > { %1605 = vrot.lane.b32.xlu1 %v966_v37, %s9376_s19  ;;  %v916_v43 = vrot.slane %v914_v38, 1  ;;  %v903_v46 = vor.u32 %v902_v27, %v898_v19  ;;  %v905_v47 = vshrl.u32 %v9455_v29, 16  ;;  %v909_v48 = vrot.slane %v907_v41, 1  ;;  %v9510_v7 = vld [vmem:[%s9411_s17 + $0x80] sm:$0xf] }
  0x1e   : > { %1585 = vrot.lane.b32.xlu0 %v896_v39, %s9376_s19  ;;  %v977_v49 = vshll.u32 %v9474_v45, 16  ;;  %v982_v52 = vshrl.u32 %v9462_v34, 16  ;;  %v986_v53 = vrot.slane %v984_v44, 1  ;;  %v975_v55 = vshrl.u32 %v9474_v45, 16  ;;  %v216_v10 = vld [vmem:[%s9411_s17 + $0x84] sm:$0x1] }
  0x1f   : > { %v917_v51 = vor.u32 %v916_v43, %v912_v40  ;;  %v910_v54 = vor.u32 %v909_v48, %v905_v47  ;;  %v1795_v1 = vrot.slane %v9435_v12, 1  ;;  %v9502_v3 = vcombine.low %v9492_v60, %v196_v61  ;;  %v9514_v11 = vld [vmem:[%s9411_s17 + $0x78] sm:$0xf]  ;;  %v214_v12 = vld [vmem:[%s9411_s17 + $0x7c] sm:$0x1] }
  0x20   : > { %v979_v56 = vrot.slane %v977_v49, 1  ;;  %v987_v58 = vor.u32 %v986_v53, %v982_v52  ;;  %v1794_v4 = vrot.slane %v9428_v8, 1  ;;  %v9507_v6 = vcombine.low %v9496_v62, %v194_v63  ;;  %v9530_v19 = vld [vmem:[%s9411_s17 + $0x40] sm:$0xf]  ;;  %v200_v21 = vld [vmem:[%s9411_s17 + $0x44] sm:$0x1] }
  0x21   : > { %1607 = vrot.lane.b32.xlu1 %v973_v42, %s9376_s19  ;;  %v1787_v13 = vrot.slane %v9452_v28, 1  ;;  %v928_v15 = vshll.u32 %v9502_v3, 16  ;;  %v9521_v16 = vcombine.low %v9510_v7, %v216_v10  ;;  %v1786_v8 = vrot.slane %v9455_v29, 1  ;;  %v9534_v22 = vld [vmem:[%s9411_s17 + $0x38] sm:$0xf] }
  0x22   : > { %1587 = vrot.lane.b32.xlu0 %v903_v46, %s9376_s19  ;;  %v980_v59 = vor.u32 %v979_v56, %v975_v55  ;;  %v921_v17 = vshll.u32 %v9507_v6, 16  ;;  %v9527_v18 = vcombine.low %v9514_v11, %v214_v12  ;;  %v198_v23 = vld [vmem:[%s9411_s17 + $0x3c] sm:$0x1]  ;;  %v1797_v24 = vrot.slane %v9462_v34, 1  ;;  %v9552_v36 = vld [vmem:[%s9411_s17 + $0x90] sm:$0xf] }
  0x23   : > { %v1796_v25 = vrot.slane %v9474_v45, 1  ;;  %v926_v26 = vshrl.u32 %v9502_v3, 16  ;;  %v930_v27 = vrot.slane %v928_v15, 1  ;;  %v919_v28 = vshrl.u32 %v9507_v6, 16  ;;  %v220_v37 = vld [vmem:[%s9411_s17 + $0x94] sm:$0x1] }
  0x24   : > { %v998_v29 = vshll.u32 %v9521_v16, 16  ;;  %v9544_v31 = vcombine.low %v9530_v19, %v200_v21  ;;  %v923_v32 = vrot.slane %v921_v17, 1  ;;  %v991_v33 = vshll.u32 %v9527_v18, 16  ;;  %v9556_v38 = vld [vmem:[%s9411_s17 + $0x88] sm:$0xf] }
  0x25   : > { %1591 = vrot.lane.b32.xlu1 %v917_v51, %s9376_s19  ;;  %v9549_v34 = vcombine.low %v9534_v22, %v198_v23  ;;  %v218_v39 = vld [vmem:[%s9411_s17 + $0x8c] sm:$0x1]  ;;  %v996_v40 = vshrl.u32 %v9521_v16, 16  ;;  %v989_v41 = vshrl.u32 %v9527_v18, 16  ;;  %v931_v42 = vor.u32 %v930_v27, %v926_v26  ;;  %v9235_v15 = vld [vmem:[%s12019_s1 + $0x38] ss:$0 sps:$4 sm:$0xff]  }
  0x26   : > { %1589 = vrot.lane.b32.xlu0 %v910_v54, %s9376_s19  ;;  %v1000_v43 = vrot.slane %v998_v29, 1  ;;  %v942_v44 = vshll.u32 %v9544_v31, 16  ;;  %v9564_v45 = vcombine.low %v9552_v36, %v220_v37  ;;  %v924_v46 = vor.u32 %v923_v32, %v919_v28  ;;  %v9594_v21 = vld [vmem:[%s9411_s17 + $0xb0] sm:$0xf]  ;;  %v228_v23 = vld [vmem:[%s9411_s17 + $0xb4] sm:$0x1]  ;;  %9179 = vmatprep.subr.msk.bf16.mxu0 %vm2858_vm0, %v9235_v15 }
  0x27   : > { %v993_v47 = vrot.slane %v991_v33, 1  ;;  %v935_v48 = vshll.u32 %v9549_v34, 16  ;;  %v9569_v49 = vcombine.low %v9556_v38, %v218_v39  ;;  %v940_v51 = vshrl.u32 %v9544_v31, 16  ;;  %v9610_v28 = vld [vmem:[%s9411_s17 + $0xc0] sm:$0xf] }
  0x28   : > { %v1001_v50 = vor.u32 %v1000_v43, %v996_v40  ;;  %v944_v52 = vrot.slane %v942_v44, 1  ;;  %v1012_v53 = vshll.u32 %v9564_v45, 16  ;;  %v933_v55 = vshrl.u32 %v9549_v34, 16  ;;  %v232_v29 = vld [vmem:[%s9411_s17 + $0xc4] sm:$0x1] }
  0x29   : > { %1611 = vrot.lane.b32.xlu1 %v987_v58, %s9376_s19  ;;  %v994_v54 = vor.u32 %v993_v47, %v989_v41  ;;  %v937_v56 = vrot.slane %v935_v48, 1  ;;  %v1005_v57 = vshll.u32 %v9569_v49, 16  ;;  %v1788_v17 = vrot.slane %v9507_v6, 1  ;;  %v9615_v33 = vld [vmem:[%s9411_s17 + $0xb8] sm:$0xf] }
  0x2a   : > { %1609 = vrot.lane.b32.xlu0 %v980_v59, %s9376_s19  ;;  %v945_v58 = vor.u32 %v944_v52, %v940_v51  ;;  %v1010_v59 = vshrl.u32 %v9564_v45, 16  ;;  %v1014_v61 = vrot.slane %v1012_v53, 1  ;;  %v7112_v26 = vcombine.low %v9594_v21, %v228_v23  ;;  %v230_v37 = vld [vmem:[%s9411_s17 + $0xbc] sm:$0x1]  ;;  %v9633_v52 = vld [vmem:[%s9411_s17 + $0xd0] sm:$0xf] }
  0x2b   : > { %v938_v63 = vor.u32 %v937_v56, %v933_v55  ;;  %v1798_v6 = vrot.slane %v9527_v18, 1  ;;  %v9619_v39 = vsel %vm2858_vm0, %v9235_v15, 0  ;;  %v7114_v40 = vcombine.low %v9610_v28, %v232_v29  ;;  %v238_v15 = vld [vmem:[%s9411_s17 + $0xdc] sm:$0x1] }
  0x2c   : > { %v1015_v10 = vor.u32 %v1014_v61, %v1010_v59  ;;  %12102 = vst [vmem:[#allocation2_spill] sm:$0xff] %v9619_v39  ;;  %8322 = vmatpush3.bf16.msra.mxu0 %v9619_v39  ;;  %v1040_v18 = vshll.u32 %v7112_v26, 16  ;;  %v1790_v41 = vrot.slane %v9549_v34, 1  ;;  %v7113_v43 = vcombine.low %v9615_v33, %v230_v37  ;;  %v234_v59 = vld [vmem:[%s9411_s17 + $0xcc] sm:$0x1] }
  0x2d   : > { %1907 = vrot.lane.b32.xlu1 %v1795_v1, %s9375_s18  ;;  %v1003_v1 = vshrl.u32 %v9569_v49, 16  ;;  %v1801_v44 = vrot.slane %v9564_v45, 1  ;;  %v1054_v48 = vshll.u32 %v7114_v40, 16  ;;  %v1052_v45 = vshrl.u32 %v7114_v40, 16  ;;  %v352_v39 = vld [vmem:[%s9411_s17 + $0x2a4] sm:$0x1] }
  0x2e   : > { %1905 = vrot.lane.b32.xlu0 %v1794_v4, %s9375_s18  ;;  %v1007_v4 = vrot.slane %v1005_v57, 1  ;;  %v1042_v47 = vrot.slane %v1040_v18, 1  ;;  %v1047_v34 = vshll.u32 %v7113_v43, 16  ;;  %v1045_v56 = vshrl.u32 %v7113_v43, 16 }
  0x2f   : > { %v1807_v29 = vrot.slane %v7114_v40, 1 }
  0x30   : > { %v1008_v12 = vor.u32 %v1007_v4, %v1003_v1  ;;  %v1049_v57 = vrot.slane %v1047_v34, 1 }
  0x31   : > { %1891 = vrot.lane.b32.xlu1 %v1787_v13, %s9375_s18  ;;  %v9233_v13 = vld [vmem:[%s12019_s1 + $0x14] ss:$0 sps:$4 sm:$0xff]  }
  0x32   : > { %1889 = vrot.lane.b32.xlu0 %v1786_v8, %s9375_s18  ;;  %v1789_v8 = vrot.slane %v9502_v3, 1  ;;  %9175 = vmatprep.subr.msk.bf16.mxu1 %vm2858_vm0, %v9233_v13  ;;  %v1799_v3 = vrot.slane %v9521_v16, 1  ;;  %v2860_v32 = vsel %vm2858_vm0, %v9233_v13, 0  ;;  %v1791_v16 = vrot.slane %v9544_v31, 1  ;;  %v9651_v13 = vld [vmem:[%s9411_s17 + $0xd8] sm:$0xf] }
  0x33   : > { %8050 = vmatpush3.bf16.msra.mxu1 %v2860_v32  ;;  %v1800_v31 = vrot.slane %v9569_v49, 1  ;;  %v236_v49 = vld [vmem:[%s9411_s17 + $0xd4] sm:$0x1]  ;;  %v1050_v1 = vor.u32 %v1049_v57, %v1045_v56  ;;  %v249_v57 = vld [vmem:[%s9411_s17 + $0x108] sm:$0xf] }
  0x34   : > { %v252_v56 = vld [vmem:[%s9411_s17 + $0x114] sm:$0x1] }
  0x35   : > { %1911 = vrot.lane.b32.xlu1 %v1797_v24, %s9375_s18  ;;  %v9598_v24 = vld [vmem:[%s9411_s17 + $0xa8] sm:$0xf] }
  0x36   : > { %1909 = vrot.lane.b32.xlu0 %v1796_v25, %s9375_s18  ;;  %v226_v25 = vld [vmem:[%s9411_s17 + $0xac] sm:$0x1] }
  0x37   : > { %v7111_v27 = vcombine.low %v9598_v24, %v226_v25 }
  0x39   : > { %1595 = vrot.lane.b32.xlu1 %v931_v42, %s9376_s19  ;;  %v1033_v42 = vshll.u32 %v7111_v27, 16  ;;  %v1804_v25 = vrot.slane %v7111_v27, 1 }
  0x3a   : > { %1593 = vrot.lane.b32.xlu0 %v924_v46, %s9376_s19  ;;  %v1038_v46 = vshrl.u32 %v7112_v26, 16 }
  0x3b   : > { %v1035_v51 = vrot.slane %v1033_v42, 1 }
  0x3c   : > { %v1043_v53 = vor.u32 %v1042_v47, %v1038_v46 }
  0x3d   : > { %1615 = vrot.lane.b32.xlu1 %v1001_v50, %s9376_s19  ;;  %v1031_v50 = vshrl.u32 %v7111_v27, 16 }
  0x3e   : > { %1613 = vrot.lane.b32.xlu0 %v994_v54, %s9376_s19  ;;  %v1056_v54 = vrot.slane %v1054_v48, 1 }
  0x3f   : > { %v1036_v55 = vor.u32 %v1035_v51, %v1031_v50  ;;  %v248_v50 = vld [vmem:[%s9411_s17 + $0x104] sm:$0x1]  ;;  %v246_v51 = vld [vmem:[%s9411_s17 + $0xfc] sm:$0x1] }
  0x40   : > { %v1057_v61 = vor.u32 %v1056_v54, %v1052_v45 }
  0x41   : > { %1599 = vrot.lane.b32.xlu1 %v945_v58, %s9376_s19  ;;  %v9639_v58 = vld [vmem:[%s9411_s17 + $0xc8] sm:$0xf] }
  0x42   : > { %1597 = vrot.lane.b32.xlu0 %v938_v63, %s9376_s19  ;;  %v7116_v63 = vcombine.low %v9633_v52, %v236_v49  ;;  %v7115_v4 = vcombine.low %v9639_v58, %v234_v59  ;;  %v250_v49 = vld [vmem:[%s9411_s17 + $0x10c] sm:$0x1] }
  0x44   : > { %v1066_v32 = vshrl.u32 %v7116_v63, 16  ;;  %v1059_v18 = vshrl.u32 %v7115_v4, 16  ;;  %v1809_v59 = vrot.slane %v7116_v63, 1 }
  0x45   : > { %1619 = vrot.lane.b32.xlu1 %v1015_v10, %s9376_s19  ;;  %v9647_v10 = vld [vmem:[%s9411_s17 + $0xe0] sm:$0xf] }
  0x46   : > { %1617 = vrot.lane.b32.xlu0 %v1008_v12, %s9376_s19  ;;  %v240_v12 = vld [vmem:[%s9411_s17 + $0xe4] sm:$0x1] }
  0x47   : > { %v7118_v23 = vcombine.low %v9647_v10, %v240_v12  ;;  %v1808_v12 = vrot.slane %v7115_v4, 1 }
  0x49   : > { %1895 = vrot.lane.b32.xlu1 %v1789_v8, %s9375_s18  ;;  %v1805_v8 = vrot.slane %v7112_v26, 1  ;;  %v1806_v26 = vrot.slane %v7113_v43, 1  ;;  %v245_v43 = vld [vmem:[%s9411_s17 + $0xf8] sm:$0xf] }
  0x4a   : > { %1893 = vrot.lane.b32.xlu0 %v1788_v17, %s9375_s18  ;;  %v1068_v17 = vshll.u32 %v7116_v63, 16  ;;  %v7121_v54 = vcombine.low %v245_v43, %v246_v51  ;;  %v260_v43 = vld [vmem:[%s9411_s17 + $0x134] sm:$0x1]  ;;  %v257_v51 = vld [vmem:[%s9411_s17 + $0x128] sm:$0xf] }
  0x4c   : > { %v1070_v37 = vrot.slane %v1068_v17, 1  ;;  %v1811_v17 = vrot.slane %v7118_v23, 1 }
  0x4d   : > { %1915 = vrot.lane.b32.xlu1 %v1799_v3, %s9375_s18  ;;  %v1061_v3 = vshll.u32 %v7115_v4, 16 }
  0x4e   : > { %1913 = vrot.lane.b32.xlu0 %v1798_v6, %s9375_s18  ;;  %v7117_v6 = vcombine.low %v9651_v13, %v238_v15  ;;  %v1071_v27 = vor.u32 %v1070_v37, %v1066_v32  ;;  %v1103_v15 = vshll.u32 %v7121_v54, 16  ;;  %v1101_v32 = vshrl.u32 %v7121_v54, 16 }
  0x50   : > { %v1075_v42 = vshll.u32 %v7117_v6, 16  ;;  %v1073_v47 = vshrl.u32 %v7117_v6, 16  ;;  %v1810_v63 = vrot.slane %v7117_v6, 1  ;;  %v1105_v37 = vrot.slane %v1103_v15, 1  ;;  %v253_v6 = vld [vmem:[%s9411_s17 + $0x118] sm:$0xf] }
  0x51   : > { %1899 = vrot.lane.b32.xlu1 %v1791_v16, %s9375_s18  ;;  %v1082_v16 = vshll.u32 %v7118_v23, 16 }
  0x52   : > { %1897 = vrot.lane.b32.xlu0 %v1790_v41, %s9375_s18  ;;  %v1063_v41 = vrot.slane %v1061_v3, 1  ;;  %v1077_v48 = vrot.slane %v1075_v42, 1 }
  0x53   : > { %v1084_v40 = vrot.slane %v1082_v16, 1 }
  0x54   : > { %v1064_v46 = vor.u32 %v1063_v41, %v1059_v18  ;;  %v1078_v45 = vor.u32 %v1077_v48, %v1073_v47 }
  0x55   : > { %1919 = vrot.lane.b32.xlu1 %v1801_v44, %s9375_s18  ;;  %v1080_v44 = vshrl.u32 %v7118_v23, 16  ;;  %v1106_v23 = vor.u32 %v1105_v37, %v1101_v32 }
  0x56   : > { %1917 = vrot.lane.b32.xlu0 %v1800_v31, %s9375_s18  ;;  %v247_v31 = vld [vmem:[%s9411_s17 + $0x100] sm:$0xf] }
  0x57   : > { %v1085_v34 = vor.u32 %v1084_v40, %v1080_v44  ;;  %v256_v44 = vld [vmem:[%s9411_s17 + $0x124] sm:$0x1]  ;;  %v254_v40 = vld [vmem:[%s9411_s17 + $0x11c] sm:$0x1] }
  0x59   : > { %1627 = vrot.lane.b32.xlu1 %v1043_v53, %s9376_s19  ;;  %v7122_v53 = vcombine.low %v247_v31, %v248_v50  ;;  %v9684_v31 = vcombine.low %v253_v6, %v254_v40  ;;  %v259_v50 = vld [vmem:[%s9411_s17 + $0x130] sm:$0xf]  ;;  %v271_v6 = vld [vmem:[%s9411_s17 + $0x160] sm:$0xf]  ;;  %v272_v40 = vld [vmem:[%s9411_s17 + $0x164] sm:$0x1] }
  0x5a   : > { %1625 = vrot.lane.b32.xlu0 %v1036_v55, %s9376_s19  ;;  %v251_v55 = vld [vmem:[%s9411_s17 + $0x110] sm:$0xf] }
  0x5d   : > { %1631 = vrot.lane.b32.xlu1 %v1057_v61, %s9376_s19  ;;  %v1110_v61 = vshll.u32 %v7122_v53, 16 }
  0x5e   : > { %1629 = vrot.lane.b32.xlu0 %v1050_v1, %s9376_s19  ;;  %v7124_v1 = vcombine.low %v251_v55, %v252_v56  ;;  %v9691_v56 = vcombine.low %v259_v50, %v260_v43  ;;  %v270_v50 = vld [vmem:[%s9411_s17 + $0x15c] sm:$0x1] }
  0x5f   : > { %v1112_v3 = vrot.slane %v1110_v61, 1 }
  0x60   : > { %v1817_v61 = vrot.slane %v7124_v1, 1 }
  0x61   : > { %1927 = vrot.lane.b32.xlu1 %v1805_v8, %s9375_s18  ;;  %v7123_v8 = vcombine.low %v249_v57, %v250_v49  ;;  %v1814_v57 = vrot.slane %v7121_v54, 1  ;;  %v1131_v49 = vshll.u32 %v9684_v31, 16  ;;  %v1129_v54 = vshrl.u32 %v9684_v31, 16 }
  0x62   : > { %1925 = vrot.lane.b32.xlu0 %v1804_v25, %s9375_s18  ;;  %v1108_v25 = vshrl.u32 %v7122_v53, 16 }
  0x63   : > { %v1117_v16 = vshll.u32 %v7123_v8, 16  ;;  %v1115_v41 = vshrl.u32 %v7123_v8, 16 }
  0x64   : > { %v1113_v4 = vor.u32 %v1112_v3, %v1108_v25  ;;  %v1133_v25 = vrot.slane %v1131_v49, 1 }
  0x65   : > { %1931 = vrot.lane.b32.xlu1 %v1807_v29, %s9375_s18  ;;  %v1124_v29 = vshll.u32 %v7124_v1, 16  ;;  %v1119_v42 = vrot.slane %v1117_v16, 1  ;;  %v267_v16 = vld [vmem:[%s9411_s17 + $0x150] sm:$0xf] }
  0x66   : > { %1929 = vrot.lane.b32.xlu0 %v1806_v26, %s9375_s18  ;;  %v1122_v26 = vshrl.u32 %v7124_v1, 16  ;;  %v1150_v1 = vshrl.u32 %v9691_v56, 16  ;;  %v1134_v32 = vor.u32 %v1133_v25, %v1129_v54 }
  0x67   : > { %v1126_v18 = vrot.slane %v1124_v29, 1  ;;  %v1120_v48 = vor.u32 %v1119_v42, %v1115_v41 }
  0x69   : > { %1635 = vrot.lane.b32.xlu1 %v1071_v27, %s9376_s19  ;;  %v255_v27 = vld [vmem:[%s9411_s17 + $0x120] sm:$0xf] }
  0x6a   : > { %1633 = vrot.lane.b32.xlu0 %v1064_v46, %s9376_s19  ;;  %v1127_v46 = vor.u32 %v1126_v18, %v1122_v26  ;;  %v7126_v47 = vcombine.low %v255_v27, %v256_v44  ;;  %v265_v26 = vld [vmem:[%s9411_s17 + $0x148] sm:$0xf]  ;;  %v266_v18 = vld [vmem:[%s9411_s17 + $0x14c] sm:$0x1] }
  0x6b   : > { %v9714_v44 = vcombine.low %v265_v26, %v266_v18  ;;  %v275_v26 = vld [vmem:[%s9411_s17 + $0x170] sm:$0xf] }
  0x6c   : > { %v1138_v55 = vshll.u32 %v7126_v47, 16  ;;  %v1819_v43 = vrot.slane %v7126_v47, 1 }
  0x6d   : > { %1639 = vrot.lane.b32.xlu1 %v1085_v34, %s9376_s19  ;;  %v258_v34 = vld [vmem:[%s9411_s17 + $0x12c] sm:$0x1] }
  0x6e   : > { %1637 = vrot.lane.b32.xlu0 %v1078_v45, %s9376_s19  ;;  %v1815_v45 = vrot.slane %v7122_v53, 1  ;;  %v1140_v15 = vrot.slane %v1138_v55, 1  ;;  %v1816_v53 = vrot.slane %v7123_v8, 1  ;;  %v1173_v55 = vshll.u32 %v9714_v44, 16 }
  0x70   : > { %v1175_v54 = vrot.slane %v1173_v55, 1  ;;  %v277_v55 = vld [vmem:[%s9411_s17 + $0x178] sm:$0xf] }
  0x71   : > { %1935 = vrot.lane.b32.xlu1 %v1809_v59, %s9375_s18  ;;  %v9695_v59 = vcombine.low %v257_v51, %v258_v34  ;;  %v9722_v34 = vcombine.low %v271_v6, %v272_v40  ;;  %v274_v6 = vld [vmem:[%s9411_s17 + $0x16c] sm:$0x1] }
  0x72   : > { %1933 = vrot.lane.b32.xlu0 %v1808_v12, %s9375_s18  ;;  %v1136_v12 = vshrl.u32 %v7126_v47, 16 }
  0x73   : > { %v1145_v3 = vshll.u32 %v9695_v59, 16  ;;  %v1143_v37 = vshrl.u32 %v9695_v59, 16 }
  0x74   : > { %v1141_v29 = vor.u32 %v1140_v15, %v1136_v12  ;;  %v1821_v12 = vrot.slane %v9691_v56, 1 }
  0x75   : > { %1939 = vrot.lane.b32.xlu1 %v1811_v17, %s9375_s18  ;;  %v1152_v17 = vshll.u32 %v9691_v56, 16  ;;  %v1147_v8 = vrot.slane %v1145_v3, 1 }
  0x76   : > { %1937 = vrot.lane.b32.xlu0 %v1810_v63, %s9375_s18 }
  0x77   : > { %v1154_v63 = vrot.slane %v1152_v17, 1  ;;  %v1148_v27 = vor.u32 %v1147_v8, %v1143_v37  ;;  %v1194_v17 = vshll.u32 %v9722_v34, 16 }
  0x79   : > { %1647 = vrot.lane.b32.xlu1 %v1113_v4, %s9376_s19  ;;  %v268_v4 = vld [vmem:[%s9411_s17 + $0x154] sm:$0x1] }
  0x7a   : > { %1645 = vrot.lane.b32.xlu0 %v1106_v23, %s9376_s19  ;;  %v1155_v23 = vor.u32 %v1154_v63, %v1150_v1  ;;  %v9711_v41 = vcombine.low %v267_v16, %v268_v4  ;;  %v1192_v1 = vshrl.u32 %v9722_v34, 16 }
  0x7c   : > { %v1180_v51 = vshll.u32 %v9711_v41, 16  ;;  %v1178_v47 = vshrl.u32 %v9711_v41, 16 }
  0x7d   : > { %1651 = vrot.lane.b32.xlu1 %v1127_v46, %s9376_s19 }
  0x7e   : > { %1649 = vrot.lane.b32.xlu0 %v1120_v48, %s9376_s19  ;;  %v269_v48 = vld [vmem:[%s9411_s17 + $0x158] sm:$0xf]  ;;  %v1182_v15 = vrot.slane %v1180_v51, 1  ;;  %v280_v51 = vld [vmem:[%s9411_s17 + $0x184] sm:$0x1] }
  0x80   : > { %v1183_v63 = vor.u32 %v1182_v15, %v1178_v47  ;;  %v1825_v47 = vrot.slane %v9711_v41, 1 }
  0x81   : > { %1947 = vrot.lane.b32.xlu1 %v1815_v45, %s9375_s18  ;;  %v1818_v45 = vrot.slane %v9684_v31, 1  ;;  %v1820_v31 = vrot.slane %v9695_v59, 1 }
  0x82   : > { %1945 = vrot.lane.b32.xlu0 %v1814_v57, %s9375_s18  ;;  %v9727_v57 = vcombine.low %v269_v48, %v270_v50 }
  0x84   : > { %v1187_v25 = vshll.u32 %v9727_v57, 16  ;;  %v1185_v37 = vshrl.u32 %v9727_v57, 16 }
  0x85   : > { %1951 = vrot.lane.b32.xlu1 %v1817_v61, %s9375_s18 }
  0x86   : > { %1949 = vrot.lane.b32.xlu0 %v1816_v53, %s9375_s18  ;;  %v1171_v53 = vshrl.u32 %v9714_v44, 16  ;;  %v1189_v4 = vrot.slane %v1187_v25, 1 }
  0x88   : > { %v1176_v16 = vor.u32 %v1175_v54, %v1171_v53  ;;  %v1190_v48 = vor.u32 %v1189_v4, %v1185_v37 }
  0x89   : > { %1655 = vrot.lane.b32.xlu1 %v1141_v29, %s9376_s19 }
  0x8a   : > { %1653 = vrot.lane.b32.xlu0 %v1134_v32, %s9376_s19  ;;  %v1888_v42 = vpop.permute.xlu1 %1887  ;;  %v1196_v32 = vrot.slane %v1194_v17, 1 }
  0x8b   : > { %v1886_v46 = vpop.permute.xlu0 %1885 }
  0x8d   : > { %1659 = vrot.lane.b32.xlu1 %v1155_v23, %s9376_s19 }
  0x8e   : > { %1657 = vrot.lane.b32.xlu0 %v1148_v27, %s9376_s19  ;;  %v273_v27 = vld [vmem:[%s9411_s17 + $0x168] sm:$0xf] }
  0x8f   : > { %v1606_v49 = vpop.permute.xlu1 %1605  ;;  %v9762_v50 = vcombine.low %v273_v27, %v274_v6 }
  0x90   : > { %v1586_v61 = vpop.permute.xlu0 %1585 }
  0x91   : > { %1955 = vrot.lane.b32.xlu1 %v1819_v43, %s9375_s18  ;;  %v2089_v3 = vsel %vm2083_vm1, %v9418_v2, %v1586_v61  ;;  %v279_v43 = vld [vmem:[%s9411_s17 + $0x180] sm:$0xf]  ;;  %v278_v61 = vld [vmem:[%s9411_s17 + $0x17c] sm:$0x1]  ;;  %v1201_v53 = vshll.u32 %v9762_v50, 16 }
  0x92   : > { %1953 = vrot.lane.b32.xlu0 %v1818_v45, %s9375_s18  ;;  %v9746_v2 = vsel %vm2384_vm2, %v2089_v3, %v1886_v46  ;;  %v9771_v17 = vcombine.low %v279_v43, %v280_v51  ;;  %v9776_v54 = vcombine.low %v277_v55, %v278_v61 }
  0x93   : > { %v1608_v29 = vpop.permute.xlu1 %1607 }
  0x94   : > { %v1588_v56 = vpop.permute.xlu0 %1587  ;;  %v2122_v25 = vsel %vm2083_vm1, %v9431_v9, %v1608_v29  ;;  %v1222_v9 = vshll.u32 %v9771_v17, 16  ;;  %v9268_v29 = vld [vmem:[%s12019_s1] sm:$0xff]   ;;  %v1220_v6 = vshrl.u32 %v9771_v17, 16 }
  0x95   : > { %v2092_v59 = vsel %vm2083_vm1, %v9414_v0, %v1588_v56  ;;  %1959 = vrot.lane.b32.xlu1 %v1821_v12, %s9375_s18  ;;  %v276_v0 = vld [vmem:[%s9411_s17 + $0x174] sm:$0x1]  ;;  %v2119_v56 = vsel %vm2083_vm1, %v9423_v5, %v1606_v49  ;;  %v1199_v49 = vshrl.u32 %v9762_v50, 16  ;;  %8115 = vmatprep.subr.bf16.mxu1 %v9268_v29 }
  0x96   : > { %1957 = vrot.lane.b32.xlu0 %v1820_v31, %s9375_s18  ;;  %v9749_v8 = vsel %vm2384_vm2, %v2092_v59, %v1888_v42  ;;  %v1197_v42 = vor.u32 %v1196_v32, %v1192_v1  ;;  %v9759_v46 = vcombine.low %v275_v26, %v276_v0  ;;  %v1824_v31 = vrot.slane %v9714_v44, 1 }
  0x97   : > { %v1592_v18 = vpop.permute.xlu1 %1591  ;;  %v7193_v23 = vcombine.low %v9746_v2, %v9749_v8  ;;  %v1827_v59 = vrot.slane %v9722_v34, 1  ;;  %v1203_v34 = vrot.slane %v1201_v53, 1 }
  0x98   : > { %v1590_v40 = vpop.permute.xlu0 %1589  ;;  %v1208_v15 = vshll.u32 %v9759_v46, 16  ;;  %v1206_v32 = vshrl.u32 %v9759_v46, 16  ;;  %v2098_v4 = vsel %vm2083_vm1, %v9438_v14, %v1592_v18  ;;  %v1224_v18 = vrot.slane %v1222_v9, 1 }
  0x99   : > { %8051 = vmatprep.mubr.msk.bf16.mxu1 %vm2761_vm3, %v7193_v23  ;;  %1667 = vrot.lane.b32.xlu1 %v1183_v63, %s9376_s19  ;;  %v1826_v63 = vrot.slane %v9727_v57, 1  ;;  %v1215_v57 = vshll.u32 %v9776_v54, 16  ;;  %v2095_v0 = vsel %vm2083_vm1, %v9444_v20, %v1590_v40  ;;  %v1213_v20 = vshrl.u32 %v9776_v54, 16 }
  0x9a   : > { %1665 = vrot.lane.b32.xlu0 %v1176_v16, %s9376_s19  ;;  %v1210_v37 = vrot.slane %v1208_v15, 1  ;;  %v9269_v16 = vld [vmem:[%s12019_s1 + $0x3c] sm:$0xff]   ;;  %v1204_v43 = vor.u32 %v1203_v34, %v1199_v49  ;;  %v291_v49 = vld [vmem:[%s9411_s17 + $0x1b0] sm:$0xf]  ;;  %v1828_v34 = vrot.slane %v9762_v50, 1  ;;  %v1831_v50 = vrot.slane %v9771_v17, 1 }
  0x9b   : > { %v1612_v45 = vpop.permute.xlu1 %1611  ;;  %8387 = vmatprep.subr.bf16.mxu0 %v9269_v16  ;;  %v1217_v51 = vrot.slane %v1215_v57, 1  ;;  %v222_v15 = vld [vmem:[%s9411_s17 + $0x9c] sm:$0x1] }
  0x9c   : > { %v1610_v12 = vpop.permute.xlu0 %1609  ;;  %v1211_v14 = vor.u32 %v1210_v37, %v1206_v32  ;;  %v2128_v55 = vsel %vm2083_vm1, %v9458_v30, %v1612_v45  ;;  %v1225_v30 = vor.u32 %v1224_v18, %v1220_v6  ;;  %v286_v32 = vld [vmem:[%s9411_s17 + $0x19c] sm:$0x1]  ;;  %v290_v6 = vld [vmem:[%s9411_s17 + $0x1ac] sm:$0x1] }
  0x9d   : > { %1671 = vrot.lane.b32.xlu1 %v1197_v42, %s9376_s19 }
  0x9e   : > { %1669 = vrot.lane.b32.xlu0 %v1190_v48, %s9376_s19 }
  0x9f   : > { %v1908_v3 = vpop.permute.xlu1 %1907 }
  0xa0   : > { %v2410_v41 = vsel %vm2384_vm2, %v2122_v25, %v1908_v3  ;;  %v1906_v1 = vpop.permute.xlu0 %1905 }
  0xa1   : > { %v9786_v44 = vsel %vm2384_vm2, %v2119_v56, %v1906_v1  ;;  %1967 = vrot.lane.b32.xlu1 %v1825_v47, %s9375_s18  ;;  %v221_v47 = vld [vmem:[%s9411_s17 + $0x98] sm:$0xf]  ;;  %v287_v56 = vld [vmem:[%s9411_s17 + $0x1a0] sm:$0xf]  ;;  %v288_v1 = vld [vmem:[%s9411_s17 + $0x1a4] sm:$0x1] }
  0xa2   : > { %1965 = vrot.lane.b32.xlu0 %v1824_v31, %s9375_s18  ;;  %v9793_v5 = vcombine.low %v9786_v44, %v2410_v41  ;;  %v2125_v31 = vsel %vm2083_vm1, %v9465_v35, %v1610_v12  ;;  %v1218_v35 = vor.u32 %v1217_v51, %v1213_v20  ;;  %v7109_v12 = vcombine.low %v221_v47, %v222_v15 }
  0xa3   : > { %v1892_v26 = vpop.permute.xlu1 %1891  ;;  %v9847_v9 = vcombine.low %v287_v56, %v288_v1 }
  0xa4   : > { %v9808_v23 = vsel %vm2384_vm2, %v2098_v4, %v1892_v26  ;;  %8323 = vmatprep.mubr.msk.bf16.mxu0 %vm2761_vm3, %v9793_v5  ;;  %v1890_v27 = vpop.permute.xlu0 %1889  ;;  %v1019_v57 = vshll.u32 %v7109_v12, 16  ;;  %v292_v4 = vld [vmem:[%s9411_s17 + $0x1b4] sm:$0x1]  ;;  %v9272_v26 = vld [vmem:[%s12019_s1 + $0x44] ss:$0 sps:$4 sm:$0xff]   ;;  %v1017_v20 = vshrl.u32 %v7109_v12, 16 }
  0xa5   : > { %v2392_v42 = vsel %vm2384_vm2, %v2095_v0, %v1890_v27  ;;  %1971 = vrot.lane.b32.xlu1 %v1827_v59, %s9375_s18  ;;  %v289_v27 = vld [vmem:[%s9411_s17 + $0x1a8] sm:$0xf]  ;;  %v9866_v18 = vcombine.low %v291_v49, %v292_v4  ;;  %v1802_v17 = vrot.slane %v7109_v12, 1  ;;  %v293_v4 = vld [vmem:[%s9411_s17 + $0x1b8] sm:$0xf] }
  0xa6   : > { %v7194_v40 = vcombine.low %v2392_v42, %v9808_v23  ;;  %v9818_v48 = vcombine.low %v9749_v8, %v2392_v42  ;;  %1969 = vrot.lane.b32.xlu0 %v1826_v63, %s9375_s18  ;;  %v285_v63 = vld [vmem:[%s9411_s17 + $0x198] sm:$0xf]  ;;  %v1830_v42 = vrot.slane %v9776_v54, 1  ;;  %v9870_v51 = vcombine.low %v289_v27, %v290_v6 }
  0xa7   : > { %v1912_v61 = vpop.permute.xlu1 %1911  ;;  %v1248_v54 = vshrl.u32 %v9847_v9, 16  ;;  %v1264_v15 = vshll.u32 %v9866_v18, 16  ;;  %v1262_v1 = vshrl.u32 %v9866_v18, 16 }
  0xa8   : > { %v9828_v53 = vsel %vm2384_vm2, %v2128_v55, %v1912_v61  ;;  %8052 = vmatmul.mubr.msk.bf16.vlgmr.msra.gmra.mrb[0].mxu1 %vm2761_vm3, %v7194_v40  ;;  %v1910_v8 = vpop.permute.xlu0 %1909  ;;  %v1021_v40 = vrot.slane %v1019_v57, 1 }
  0xa9   : > { %v2412_v25 = vsel %vm2384_vm2, %v2125_v31, %v1910_v8  ;;  %1675 = vrot.lane.b32.xlu1 %v1211_v14, %s9376_s19  ;;  %8116 = vmatpush3.bf16.msra.mxu1 %v9268_v29  ;;  %v9852_v29 = vcombine.low %v285_v63, %v286_v32  ;;  %v1250_v14 = vshll.u32 %v9847_v9, 16  ;;  %v1266_v63 = vrot.slane %v1264_v15, 1  ;;  %v295_v32 = vld [vmem:[%s9411_s17 + $0x1c0] sm:$0xf]  ;;  %v241_v15 = vld [vmem:[%s9411_s17 + $0xe8] sm:$0xf] }
  0xaa   : > { %v9834_v45 = vcombine.low %v2412_v25, %v9828_v53  ;;  %v9836_v3 = vcombine.low %v2410_v41, %v2412_v25  ;;  %1673 = vrot.lane.b32.xlu0 %v1204_v43, %s9376_s19  ;;  %v1829_v41 = vrot.slane %v9759_v46, 1  ;;  %v1022_v31 = vor.u32 %v1021_v40, %v1017_v20 }
  0xab   : > { %v1596_v59 = vpop.permute.xlu1 %1595  ;;  %v1243_v43 = vshll.u32 %v9852_v29, 16  ;;  %v1252_v47 = vrot.slane %v1250_v14, 1  ;;  %v1241_v8 = vshrl.u32 %v9852_v29, 16  ;;  %v1267_v20 = vor.u32 %v1266_v63, %v1262_v1 }
  0xac   : > { %8324 = vmatmul.mubr.msk.bf16.vlgmr.msra.gmra.mrb[0].mxu0 %vm2761_vm3, %v9834_v45  ;;  %v1594_v37 = vpop.permute.xlu0 %1593  ;;  %v2104_v27 = vsel %vm2083_vm1, %v9492_v60, %v1596_v59  ;;  %v297_v59 = vld [vmem:[%s9411_s17 + $0x1c8] sm:$0xf]  ;;  %v1834_v63 = vrot.slane %v9852_v29, 1 }
  0xad   : > { %1679 = vrot.lane.b32.xlu1 %v1225_v30, %s9376_s19  ;;  %8388 = vmatpush3.bf16.msra.mxu0 %v9269_v16  ;;  %v4821_v16 = vsel %vm2858_vm0, %v9272_v26, 0  ;;  %v1245_v25 = vrot.slane %v1243_v43, 1  ;;  %v1257_v30 = vshll.u32 %v9870_v51, 16  ;;  %v1253_v12 = vor.u32 %v1252_v47, %v1248_v54 }
  0xae   : > { %1677 = vrot.lane.b32.xlu0 %v1218_v35, %s9376_s19  ;;  %9181 = vmatprep.subr.msk.bf16.mxu0 %vm2858_vm0, %v9272_v26  ;;  %v294_v26 = vld [vmem:[%s9411_s17 + $0x1bc] sm:$0x1] }
  0xaf   : > { %v1616_v0 = vpop.permute.xlu1 %1615  ;;  %v1246_v49 = vor.u32 %v1245_v25, %v1241_v8  ;;  %v1259_v57 = vrot.slane %v1257_v30, 1  ;;  %v9901_v43 = vcombine.low %v293_v4, %v294_v26  ;;  %v1835_v30 = vrot.slane %v9847_v9, 1  ;;  %v300_v4 = vld [vmem:[%s9411_s17 + $0x1d4] sm:$0x1] }
  0xb0   : > { %v1614_v46 = vpop.permute.xlu0 %1613  ;;  %v2134_v54 = vsel %vm2083_vm1, %v9510_v7, %v1616_v0 }
  0xb1   : > { %1975 = vrot.lane.b32.xlu1 %v1829_v41, %s9375_s18  ;;  %8390 = vmatpush3.bf16.msra.mxu0 %v4821_v16  ;;  %v296_v41 = vld [vmem:[%s9411_s17 + $0x1c4] sm:$0x1]  ;;  %v2101_v16 = vsel %vm2083_vm1, %v9496_v62, %v1594_v37  ;;  %v298_v37 = vld [vmem:[%s9411_s17 + $0x1cc] sm:$0x1]  ;;  %v2131_v8 = vsel %vm2083_vm1, %v9514_v11, %v1614_v46  ;;  %v1271_v0 = vshll.u32 %v9901_v43, 16 }
  0xb2   : > { %1973 = vrot.lane.b32.xlu0 %v1828_v34, %s9375_s18  ;;  %v1255_v34 = vshrl.u32 %v9870_v51, 16  ;;  %v9899_v40 = vcombine.low %v295_v32, %v296_v41  ;;  %v9922_v1 = vcombine.low %v297_v59, %v298_v37 }
  0xb3   : > { %v1600_v55 = vpop.permute.xlu1 %1599 }
  0xb4   : > { %v9872_v61 = vpop.permute.xlu0 %1597  ;;  %v1260_v62 = vor.u32 %v1259_v57, %v1255_v34  ;;  %v1278_v7 = vshll.u32 %v9899_v40, 16  ;;  %v2110_v32 = vsel %vm2083_vm1, %v9530_v19, %v1600_v55  ;;  %v1836_v34 = vrot.slane %v9870_v51, 1  ;;  %v299_v57 = vld [vmem:[%s9411_s17 + $0x1d0] sm:$0xf] }
  0xb5   : > { %1979 = vrot.lane.b32.xlu1 %v1831_v50, %s9375_s18  ;;  %v1269_v19 = vshrl.u32 %v9901_v43, 16  ;;  %v1273_v55 = vrot.slane %v1271_v0, 1  ;;  %v1283_v59 = vshrl.u32 %v9922_v1, 16  ;;  %v308_v0 = vld [vmem:[%s9411_s17 + $0x1f4] sm:$0x1] }
  0xb6   : > { %1977 = vrot.lane.b32.xlu0 %v1830_v42, %s9375_s18  ;;  %v1280_v51 = vrot.slane %v1278_v7, 1  ;;  %v307_v7 = vld [vmem:[%s9411_s17 + $0x1f0] sm:$0xf] }
  0xb7   : > { %v9880_v35 = vpop.permute.xlu1 %1619 }
  0xb8   : > { %v9882_v56 = vpop.permute.xlu0 %1617 }
  0xb9   : > { %1921 = vrot.lane.b32.xlu1 %v1802_v17, %s9375_s18 }
  0xba   : > { %1621 = vrot.lane.b32.xlu0 %v1022_v31, %s9376_s19  ;;  %v242_v31 = vld [vmem:[%s9411_s17 + $0xec] sm:$0x1] }
  0xbb   : > { %v1896_v6 = vpop.permute.xlu1 %1895  ;;  %v9929_v9 = vcombine.low %v241_v15, %v242_v31 }
  0xbc   : > { %v2398_v50 = vsel %vm2384_vm2, %v2104_v27, %v1896_v6  ;;  %v1894_v42 = vpop.permute.xlu0 %1893  ;;  %v1276_v27 = vshrl.u32 %v9899_v40, 16  ;;  %v1285_v6 = vshll.u32 %v9922_v1, 16 }
  0xbd   : > { %v2396_v14 = vsel %vm2384_vm2, %v2101_v16, %v1894_v42  ;;  %1687 = vrot.lane.b32.xlu1 %v1253_v12, %s9376_s19  ;;  %v1089_v16 = vshll.u32 %v9929_v9, 16  ;;  %v9954_v42 = vcombine.low %v299_v57, %v300_v4  ;;  %v1087_v37 = vshrl.u32 %v9929_v9, 16 }
  0xbe   : > { %v7195_v17 = vcombine.low %v2396_v14, %v2398_v50  ;;  %v9904_v60 = vcombine.low %v9808_v23, %v2396_v14  ;;  %1685 = vrot.lane.b32.xlu0 %v1246_v49, %s9376_s19  ;;  %v1837_v49 = vrot.slane %v9866_v18, 1  ;;  %v2140_v14 = vsel %vm2083_vm1, %v9552_v36, %v9880_v35 }
  0xbf   : > { %v1916_v47 = vpop.permute.xlu1 %1915  ;;  %v1281_v36 = vor.u32 %v1280_v51, %v1276_v27  ;;  %v1274_v35 = vor.u32 %v1273_v55, %v1269_v19  ;;  %v1091_v15 = vrot.slane %v1089_v16, 1  ;;  %v1292_v31 = vshll.u32 %v9954_v42, 16  ;;  %v312_v27 = vld [vmem:[%s9411_s17 + $0x204] sm:$0x1]  ;;  %v310_v51 = vld [vmem:[%s9411_s17 + $0x1fc] sm:$0x1] }
  0xc0   : > { %v2418_v25 = vsel %vm2384_vm2, %v2134_v54, %v1916_v47  ;;  %8055 = vmatprep.mubr.msk.bf16.mxu1 %vm2761_vm3, %v7195_v17  ;;  %v1914_v23 = vpop.permute.xlu0 %1913  ;;  %v2137_v17 = vsel %vm2083_vm1, %v9556_v38, %v9882_v56  ;;  %v1287_v38 = vrot.slane %v1285_v6, 1  ;;  %v9990_v57 = vcombine.low %v307_v7, %v308_v0  ;;  %v316_v7 = vld [vmem:[%s9411_s17 + $0x214] sm:$0x1] }
  0xc1   : > { %v2416_v12 = vsel %vm2384_vm2, %v2131_v8, %v1914_v23  ;;  %1691 = vrot.lane.b32.xlu1 %v1267_v20, %s9376_s19 }
  0xc2   : > { %v7199_v11 = vcombine.low %v2416_v12, %v2418_v25  ;;  %v9925_v46 = vcombine.low %v9828_v53, %v2416_v12  ;;  %1689 = vrot.lane.b32.xlu0 %v1260_v62, %s9376_s19  ;;  %v2107_v53 = vsel %vm2083_vm1, %v9534_v22, %v9872_v61  ;;  %v1288_v23 = vor.u32 %v1287_v38, %v1283_v59 }
  0xc3   : > { %v1900_v41 = vpop.permute.xlu1 %1899  ;;  %v1294_v12 = vrot.slane %v1292_v31, 1  ;;  %v1320_v16 = vshll.u32 %v9990_v57, 16 }
  0xc4   : > { %v9941_v26 = vsel %vm2384_vm2, %v2110_v32, %v1900_v41  ;;  %8327 = vmatprep.mubr.msk.bf16.mxu0 %vm2761_vm3, %v7199_v11  ;;  %v1898_v29 = vpop.permute.xlu0 %1897  ;;  %v305_v32 = vld [vmem:[%s9411_s17 + $0x1e8] sm:$0xf]  ;;  %v306_v41 = vld [vmem:[%s9411_s17 + $0x1ec] sm:$0x1] }
  0xc5   : > { %12103 = vst [vmem:[#allocation3_spill] sm:$0xff] %v9941_v26  ;;  %v2400_v18 = vsel %vm2384_vm2, %v2107_v53, %v1898_v29  ;;  %1987 = vrot.lane.b32.xlu1 %v1835_v30, %s9375_s18  ;;  %v1092_v30 = vor.u32 %v1091_v15, %v1087_v37  ;;  %v9993_v53 = vcombine.low %v305_v32, %v306_v41  ;;  %v311_v29 = vld [vmem:[%s9411_s17 + $0x200] sm:$0xf]  ;;  %v313_v41 = vld [vmem:[%s9411_s17 + $0x208] sm:$0xf] }
  0xc6   : > { %v7196_v22 = vcombine.low %v2400_v18, %v9941_v26  ;;  %v9950_v61 = vcombine.low %v2398_v50, %v2400_v18  ;;  %1985 = vrot.lane.b32.xlu0 %v1834_v63, %s9375_s18  ;;  %v309_v18 = vld [vmem:[%s9411_s17 + $0x1f8] sm:$0xf]  ;;  %v10648_v26 = vld [vmem:[%s9411_s17 + $0x48] sm:$0xf] }
  0xc7   : > { %v1920_v20 = vpop.permute.xlu1 %1919  ;;  %12136 = vst [vmem:[#allocation36_spill] sm:$0xff] %v10648_v26 }
  0xc8   : > { %v9963_v62 = vsel %vm2384_vm2, %v2140_v14, %v1920_v20  ;;  %8056 = vmatmul.mubr.msk.bf16.gmra.mrb[4].mxu1 %vm2761_vm3, %v7196_v22  ;;  %v1918_v50 = vpop.permute.xlu0 %1917  ;;  %v1812_v22 = vrot.slane %v9929_v9, 1  ;;  %v10010_v14 = vcombine.low %v311_v29, %v312_v27  ;;  %v1313_v20 = vshll.u32 %v9993_v53, 16 }
  0xc9   : > { %v2420_v54 = vsel %vm2384_vm2, %v2137_v17, %v1918_v50  ;;  %8059 = vmatprep.mubr.msk.bf16.mxu1 %vm2761_vm3, %v9793_v5  ;;  %1991 = vrot.lane.b32.xlu1 %v1837_v49, %s9375_s18  ;;  %v10018_v17 = vcombine.low %v309_v18, %v310_v51  ;;  %v1841_v9 = vrot.slane %v9954_v42, 1  ;;  %v318_v51 = vld [vmem:[%s9411_s17 + $0x21c] sm:$0x1] }
  0xca   : > { %v7200_v56 = vcombine.low %v2420_v54, %v9963_v62  ;;  %v9973_v47 = vcombine.low %v2418_v25, %v2420_v54  ;;  %1989 = vrot.lane.b32.xlu0 %v1836_v34, %s9375_s18  ;;  %v1290_v25 = vshrl.u32 %v9954_v42, 16  ;;  %v1838_v34 = vrot.slane %v9901_v43, 1 }
  0xcb   : > { %v1628_v8 = vpop.permute.xlu1 %1627  ;;  %v1311_v42 = vshrl.u32 %v9993_v53, 16  ;;  %v1334_v38 = vshll.u32 %v10010_v14, 16  ;;  %v1315_v15 = vrot.slane %v1313_v20, 1  ;;  %v1327_v31 = vshll.u32 %v10018_v17, 16 }
  0xcc   : > { %8328 = vmatmul.mubr.msk.bf16.gmra.mrb[4].mxu0 %vm2761_vm3, %v7200_v56  ;;  %v1626_v5 = vpop.permute.xlu0 %1625  ;;  %v1295_v4 = vor.u32 %v1294_v12, %v1290_v25  ;;  %v2152_v19 = vsel %vm2083_vm1, %v9594_v21, %v1628_v8  ;;  %v315_v12 = vld [vmem:[%s9411_s17 + $0x210] sm:$0xf] }
  0xcd   : > { %1695 = vrot.lane.b32.xlu1 %v1281_v36, %s9376_s19  ;;  %v1840_v36 = vrot.slane %v9922_v1, 1  ;;  %v1336_v25 = vrot.slane %v1334_v38, 1  ;;  %v1316_v0 = vor.u32 %v1315_v15, %v1311_v42  ;;  %v1329_v32 = vrot.slane %v1327_v31, 1 }
  0xce   : > { %1693 = vrot.lane.b32.xlu0 %v1274_v35, %s9376_s19  ;;  %v1318_v35 = vshrl.u32 %v9990_v57, 16  ;;  %v10058_v29 = vcombine.low %v315_v12, %v316_v7  ;;  %v1847_v15 = vrot.slane %v10010_v14, 1  ;;  %v1846_v31 = vrot.slane %v10018_v17, 1 }
  0xcf   : > { %v1632_v63 = vpop.permute.xlu1 %1631 }
  0xd0   : > { %8060 = vmatmul.mubr.msk.bf16.gmra.mrb[8].mxu1 %vm2761_vm3, %v9834_v45  ;;  %v1630_v49 = vpop.permute.xlu0 %1629  ;;  %v2158_v50 = vsel %vm2083_vm1, %v9610_v28, %v1632_v63  ;;  %v1325_v63 = vshrl.u32 %v10018_v17, 16 }
  0xd1   : > { %8063 = vmatprep.mubr.msk.bf16.mxu1 %vm2761_vm3, %v7199_v11  ;;  %1697 = vrot.lane.b32.xlu1 %v1288_v23, %s9376_s19  ;;  %v2149_v11 = vsel %vm2083_vm1, %v9598_v24, %v1626_v5  ;;  %v1839_v24 = vrot.slane %v9899_v40, 1  ;;  %v2155_v37 = vsel %vm2083_vm1, %v9615_v33, %v1630_v49  ;;  %v1322_v33 = vrot.slane %v1320_v16, 1  ;;  %v314_v49 = vld [vmem:[%s9411_s17 + $0x20c] sm:$0x1]  ;;  %v261_v16 = vld [vmem:[%s9411_s17 + $0x138] sm:$0xf] }
  0xd2   : > { %1641 = vrot.lane.b32.xlu0 %v1092_v30, %s9376_s19  ;;  %v1332_v30 = vshrl.u32 %v10010_v14, 16  ;;  %v1330_v18 = vor.u32 %v1329_v32, %v1325_v63 }
  0xd3   : > { %v1928_v45 = vpop.permute.xlu1 %1927  ;;  %v1323_v23 = vor.u32 %v1322_v33, %v1318_v35  ;;  %v1844_v33 = vrot.slane %v9993_v53, 1  ;;  %v1346_v53 = vshrl.u32 %v10058_v29, 16 }
  0xd4   : > { %v2430_v43 = vsel %vm2384_vm2, %v2152_v19, %v1928_v45  ;;  %v1926_v55 = vpop.permute.xlu0 %1925  ;;  %v1337_v27 = vor.u32 %v1336_v25, %v1332_v30  ;;  %v10061_v19 = vcombine.low %v313_v41, %v314_v49  ;;  %v317_v45 = vld [vmem:[%s9411_s17 + $0x218] sm:$0xf] }
  0xd5   : > { %v10005_v6 = vsel %vm2384_vm2, %v2149_v11, %v1926_v55  ;;  %1993 = vrot.lane.b32.xlu1 %v1838_v34, %s9375_s18  ;;  %v9286_v11 = vld [vmem:[%s12019_s1 + $0x8] ss:$0 sps:$4 sm:$0xff]  }
  0xd6   : > { %v10013_v21 = vcombine.low %v10005_v6, %v2430_v43  ;;  %1699 = vrot.lane.b32.xlu0 %v1295_v4, %s9376_s19  ;;  %9176 = vmatprep.subr.msk.bf16.mxu1 %vm2858_vm0, %v9286_v11  ;;  %v1339_v30 = vshrl.u32 %v10061_v19, 16 }
  0xd7   : > { %v1932_v59 = vpop.permute.xlu1 %1931 }
  0xd8   : > { %12104 = vst [vmem:[#allocation4_spill] sm:$0xff] %v10013_v21  ;;  %v10026_v54 = vsel %vm2384_vm2, %v2158_v50, %v1932_v59  ;;  %8064 = vmatmul.mubr.msk.bf16.gmra.mrb[12].mxu1 %vm2761_vm3, %v7200_v56  ;;  %8331 = vmatprep.mubr.msk.bf16.mxu0 %vm2761_vm3, %v10013_v21  ;;  %v1930_v40 = vpop.permute.xlu0 %1929 }
  0xd9   : > { %v2432_v28 = vsel %vm2384_vm2, %v2155_v37, %v1930_v40  ;;  %8067 = vmatprep.mubr.msk.bf16.mxu1 %vm2761_vm3, %v10013_v21  ;;  %1941 = vrot.lane.b32.xlu1 %v1812_v22, %s9375_s18  ;;  %v3305_v37 = vsel %vm2858_vm0, %v9286_v11, 0  ;;  %v1845_v40 = vrot.slane %v9990_v57, 1 }
  0xda   : > { %v10040_v56 = vcombine.low %v2432_v28, %v10026_v54  ;;  %v10042_v1 = vcombine.low %v2430_v43, %v2432_v28  ;;  %1995 = vrot.lane.b32.xlu0 %v1839_v24, %s9375_s18  ;;  %v10072_v43 = vld [vmem:[%s12019_s1 + $0x48] sm:$0xff]   ;;  %v262_v24 = vld [vmem:[%s9411_s17 + $0x13c] sm:$0x1]  ;;  %8118 = vmatpush3.bf16.msra.mxu1 %v3305_v37 }
  0xdb   : > { %v1636_v8 = vpop.permute.xlu1 %1635  ;;  %8455 = vmatprep.subr.bf16.mxu0 %v10072_v43  ;;  %v10098_v42 = vcombine.low %v261_v16, %v262_v24 }
  0xdc   : > { %12105 = vst [vmem:[#allocation5_spill] sm:$0xff] %v10040_v56  ;;  %8332 = vmatmul.mubr.msk.bf16.gmra.mrb[8].mxu0 %vm2761_vm3, %v10040_v56  ;;  %v1634_v5 = vpop.permute.xlu0 %1633  ;;  %v2164_v55 = vsel %vm2083_vm1, %v9633_v52, %v1636_v8  ;;  %v319_v8 = vld [vmem:[%s9411_s17 + $0x220] sm:$0xf] }
  0xdd   : > { %1999 = vrot.lane.b32.xlu1 %v1841_v9, %s9375_s18  ;;  %v2161_v20 = vsel %vm2083_vm1, %v9639_v58, %v1634_v5  ;;  %v1348_v9 = vshll.u32 %v10058_v29, 16  ;;  %v1341_v58 = vshll.u32 %v10061_v19, 16  ;;  %v320_v5 = vld [vmem:[%s9411_s17 + $0x224] sm:$0x1] }
  0xde   : > { %1997 = vrot.lane.b32.xlu0 %v1840_v36, %s9375_s18  ;;  %v10089_v36 = vcombine.low %v317_v45, %v318_v51  ;;  %v10127_v63 = vcombine.low %v319_v8, %v320_v5  ;;  %v1157_v45 = vshrl.u32 %v10098_v42, 16  ;;  %v1848_v8 = vrot.slane %v10061_v19, 1 }
  0xdf   : > { %v1640_v34 = vpop.permute.xlu1 %1639  ;;  %v1350_v14 = vrot.slane %v1348_v9, 1  ;;  %v9314_v9 = vld [vmem:[%s9411_s17 + $0x100] sm:$0xf] }
  0xe0   : > { %8068 = vmatmul.mubr.msk.bf16.gmra.mrb[16].mxu1 %vm2761_vm3, %v10040_v56  ;;  %v1638_v4 = vpop.permute.xlu0 %1637  ;;  %v2170_v38 = vsel %vm2083_vm1, %v9647_v10, %v1640_v34  ;;  %v1355_v25 = vshll.u32 %v10089_v36, 16  ;;  %v1353_v34 = vshrl.u32 %v10089_v36, 16  ;;  %v1362_v51 = vshll.u32 %v10127_v63, 16 }
  0xe1   : > { %1707 = vrot.lane.b32.xlu1 %v1323_v23, %s9376_s19  ;;  %v1351_v49 = vor.u32 %v1350_v14, %v1346_v53  ;;  %v1360_v24 = vshrl.u32 %v10127_v63, 16  ;;  %v331_v14 = vld [vmem:[%s9411_s17 + $0x250] sm:$0xf] }
  0xe2   : > { %1705 = vrot.lane.b32.xlu0 %v1316_v0, %s9376_s19  ;;  %v1159_v0 = vshll.u32 %v10098_v42, 16 }
  0xe3   : > { %v1936_v22 = vpop.permute.xlu1 %1935 }
  0xe4   : > { %v2438_v50 = vsel %vm2384_vm2, %v2164_v55, %v1936_v22  ;;  %v1934_v59 = vpop.permute.xlu0 %1933 }
  0xe5   : > { %v2436_v52 = vsel %vm2384_vm2, %v2161_v20, %v1934_v59  ;;  %1711 = vrot.lane.b32.xlu1 %v1337_v27, %s9376_s19  ;;  %v1364_v20 = vrot.slane %v1362_v51, 1  ;;  %v328_v59 = vld [vmem:[%s9411_s17 + $0x244] sm:$0x1] }
  0xe6   : > { %v10091_v35 = vcombine.low %v2436_v52, %v2438_v50  ;;  %v10094_v28 = vcombine.low %v10026_v54, %v2436_v52  ;;  %1709 = vrot.lane.b32.xlu0 %v1330_v18, %s9376_s19  ;;  %v2167_v54 = vsel %vm2083_vm1, %v9651_v13, %v1638_v4  ;;  %v1343_v13 = vrot.slane %v1341_v58, 1  ;;  %v326_v58 = vld [vmem:[%s9411_s17 + $0x23c] sm:$0x1] }
  0xe7   : > { %v1940_v57 = vpop.permute.xlu1 %1939  ;;  %v1357_v4 = vrot.slane %v1355_v25, 1  ;;  %v1161_v18 = vrot.slane %v1159_v0, 1  ;;  %v329_v0 = vld [vmem:[%s9411_s17 + $0x248] sm:$0xf] }
  0xe8   : > { %12106 = vst [vmem:[#allocation6_spill] sm:$0xff] %v10091_v35  ;;  %v10109_v23 = vsel %vm2384_vm2, %v2170_v38, %v1940_v57  ;;  %8071 = vmatprep.mubr.msk.bf16.mxu1 %vm2761_vm3, %v10091_v35  ;;  %8335 = vmatprep.mubr.msk.bf16.mxu0 %vm2761_vm3, %v10091_v35  ;;  %v1938_v10 = vpop.permute.xlu0 %1937  ;;  %v1344_v27 = vor.u32 %v1343_v13, %v1339_v30  ;;  %v9316_v30 = vld [vmem:[%s9411_s17 + $0x110] sm:$0xf]  ;;  %v9337_v35 = vld [vmem:[%s9411_s17 + $0x1c0] sm:$0xf] }
  0xe9   : > { %v2440_v17 = vsel %vm2384_vm2, %v2167_v54, %v1938_v10  ;;  %2007 = vrot.lane.b32.xlu1 %v1845_v40, %s9375_s18  ;;  %v1358_v22 = vor.u32 %v1357_v4, %v1353_v34  ;;  %v1162_v16 = vor.u32 %v1161_v18, %v1157_v45  ;;  %v325_v40 = vld [vmem:[%s9411_s17 + $0x238] sm:$0xf]  ;;  %v1365_v10 = vor.u32 %v1364_v20, %v1360_v24 }
  0xea   : > { %v10121_v12 = vcombine.low %v2440_v17, %v10109_v23  ;;  %v10123_v7 = vcombine.low %v2438_v50, %v2440_v17  ;;  %2005 = vrot.lane.b32.xlu0 %v1844_v33, %s9375_s18  ;;  %v327_v50 = vld [vmem:[%s9411_s17 + $0x240] sm:$0xf]  ;;  %v9315_v33 = vld [vmem:[%s9411_s17 + $0xf8] sm:$0xf]  ;;  %v10161_v53 = vcombine.low %v325_v40, %v326_v58  ;;  %v332_v17 = vld [vmem:[%s9411_s17 + $0x254] sm:$0x1] }
  0xeb   : > { %v1648_v32 = vpop.permute.xlu1 %1647  ;;  %v10155_v5 = vcombine.low %v327_v50, %v328_v59  ;;  %v1822_v4 = vrot.slane %v10098_v42, 1  ;;  %v1849_v45 = vrot.slane %v10058_v29, 1  ;;  %v10181_v51 = vcombine.low %v331_v14, %v332_v17  ;;  %v336_v14 = vld [vmem:[%s9411_s17 + $0x264] sm:$0x1]  ;;  %v9318_v17 = vld [vmem:[%s9411_s17 + $0x120] sm:$0xf] }
  0xec   : > { %12107 = vst [vmem:[#allocation7_spill] sm:$0xff] %v10121_v12  ;;  %8072 = vmatmul.mubr.msk.bf16.gmra.mrb[20].mxu1 %vm2761_vm3, %v10121_v12  ;;  %8336 = vmatmul.mubr.msk.bf16.gmra.mrb[12].mxu0 %vm2761_vm3, %v10121_v12  ;;  %v1646_v41 = vpop.permute.xlu0 %1645  ;;  %v2182_v37 = vsel %vm2083_vm1, %v9314_v9, %v1648_v32  ;;  %v330_v32 = vld [vmem:[%s9411_s17 + $0x24c] sm:$0x1]  ;;  %v1851_v24 = vrot.slane %v10127_v63, 1  ;;  %v1850_v9 = vrot.slane %v10089_v36, 1 }
  0xed   : > { %2011 = vrot.lane.b32.xlu1 %v1847_v15, %s9375_s18  ;;  %v2179_v38 = vsel %vm2083_vm1, %v9315_v33, %v1646_v41  ;;  %v9317_v41 = vld [vmem:[%s9411_s17 + $0x108] sm:$0xf]  ;;  %v1390_v18 = vshll.u32 %v10155_v5, 16  ;;  %v1388_v20 = vshrl.u32 %v10155_v5, 16  ;;  %v1404_v59 = vshll.u32 %v10181_v51, 16 }
  0xee   : > { %2009 = vrot.lane.b32.xlu0 %v1846_v31, %s9375_s18 }
  0xef   : > { %v1652_v11 = vpop.permute.xlu1 %1651  ;;  %v1392_v50 = vrot.slane %v1390_v18, 1 }
  0xf0   : > { %v1650_v55 = vpop.permute.xlu0 %1649  ;;  %v2188_v13 = vsel %vm2083_vm1, %v9316_v30, %v1652_v11 }
  0xf1   : > { %1715 = vrot.lane.b32.xlu1 %v1351_v49, %s9376_s19  ;;  %v2185_v19 = vsel %vm2083_vm1, %v9317_v41, %v1650_v55  ;;  %v1393_v33 = vor.u32 %v1392_v50, %v1388_v20  ;;  %v338_v20 = vld [vmem:[%s9411_s17 + $0x26c] sm:$0x1]  ;;  %v9320_v50 = vld [vmem:[%s9411_s17 + $0x130] sm:$0xf] }
  0xf2   : > { %1713 = vrot.lane.b32.xlu0 %v1344_v27, %s9376_s19 }
  0xf3   : > { %v1948_v52 = vpop.permute.xlu1 %1947 }
  0xf4   : > { %v2450_v57 = vsel %vm2384_vm2, %v2182_v37, %v1948_v52  ;;  %v1946_v15 = vpop.permute.xlu0 %1945  ;;  %v1381_v37 = vshrl.u32 %v10161_v53, 16 }
  0xf5   : > { %v10151_v31 = vsel %vm2384_vm2, %v2179_v38, %v1946_v15  ;;  %1717 = vrot.lane.b32.xlu1 %v1358_v22, %s9376_s19  ;;  %v1383_v22 = vshll.u32 %v10161_v53, 16  ;;  %v1402_v38 = vshrl.u32 %v10181_v51, 16 }
  0xf6   : > { %v10158_v54 = vcombine.low %v10151_v31, %v2450_v57  ;;  %1661 = vrot.lane.b32.xlu0 %v1162_v16, %s9376_s19  ;;  %v10189_v16 = vcombine.low %v329_v0, %v330_v32  ;;  %v334_v0 = vld [vmem:[%s9411_s17 + $0x25c] sm:$0x1]  ;;  %v9319_v32 = vld [vmem:[%s9411_s17 + $0x118] sm:$0xf] }
  0xf7   : > { %v1952_v25 = vpop.permute.xlu1 %1951  ;;  %v1385_v52 = vrot.slane %v1383_v22, 1 }
  0xf8   : > { %12108 = vst [vmem:[#allocation8_spill] sm:$0xff] %v10158_v54  ;;  %v2454_v49 = vsel %vm2384_vm2, %v2188_v13, %v1952_v25  ;;  %8075 = vmatprep.mubr.msk.bf16.mxu1 %vm2761_vm3, %v10158_v54  ;;  %8339 = vmatprep.mubr.msk.bf16.mxu0 %vm2761_vm3, %v10158_v54  ;;  %v1950_v34 = vpop.permute.xlu0 %1949  ;;  %v1397_v40 = vshll.u32 %v10189_v16, 16  ;;  %v1395_v15 = vshrl.u32 %v10189_v16, 16  ;;  %v333_v25 = vld [vmem:[%s9411_s17 + $0x258] sm:$0xf] }
  0xf9   : > { %v2452_v27 = vsel %vm2384_vm2, %v2185_v19, %v1950_v34  ;;  %2013 = vrot.lane.b32.xlu1 %v1848_v8, %s9375_s18  ;;  %v1386_v36 = vor.u32 %v1385_v52, %v1381_v37  ;;  %v281_v37 = vld [vmem:[%s9411_s17 + $0x188] sm:$0xf]  ;;  %v282_v52 = vld [vmem:[%s9411_s17 + $0x18c] sm:$0x1] }
  0xfa   : > { %v10183_v11 = vcombine.low %v2452_v27, %v2454_v49  ;;  %v10185_v55 = vcombine.low %v2450_v57, %v2452_v27  ;;  %1719 = vrot.lane.b32.xlu0 %v1365_v10, %s9376_s19  ;;  %v1406_v57 = vrot.slane %v1404_v59, 1  ;;  %v1399_v8 = vrot.slane %v1397_v40, 1  ;;  %v335_v10 = vld [vmem:[%s9411_s17 + $0x260] sm:$0xf]  ;;  %v9321_v40 = vld [vmem:[%s9411_s17 + $0x128] sm:$0xf] }
  0xfb   : > { %v1656_v42 = vpop.permute.xlu1 %1655  ;;  %v10449_v54 = vld [vmem:[%s9411_s17 + $0x2a8] sm:$0xf] }
  0xfc   : > { %12109 = vst [vmem:[#allocation9_spill] sm:$0xff] %v10183_v11  ;;  %12110 = vst [vmem:[#allocation10_spill] sm:$0xff] %v10185_v55  ;;  %8076 = vmatmul.mubr.msk.bf16.gmra.mrb[24].mxu1 %vm2761_vm3, %v10183_v11  ;;  %8340 = vmatmul.mubr.msk.bf16.gmra.mrb[16].mxu0 %vm2761_vm3, %v10183_v11  ;;  %v1654_v29 = vpop.permute.xlu0 %1653  ;;  %v2194_v30 = vsel %vm2083_vm1, %v9318_v17, %v1656_v42  ;;  %v1407_v27 = vor.u32 %v1406_v57, %v1402_v38 }
  0xfd   : > { %1961 = vrot.lane.b32.xlu1 %v1822_v4, %s9375_s18  ;;  %v2191_v41 = vsel %vm2083_vm1, %v9319_v32, %v1654_v29  ;;  %v1400_v42 = vor.u32 %v1399_v8, %v1395_v15  ;;  %v10225_v29 = vcombine.low %v333_v25, %v334_v0  ;;  %v1857_v25 = vrot.slane %v10181_v51, 1 }
  0xfe   : > { %2015 = vrot.lane.b32.xlu0 %v1849_v45, %s9375_s18  ;;  %v10218_v45 = vcombine.low %v335_v10, %v336_v14  ;;  %v1856_v0 = vrot.slane %v10189_v16, 1 }
  0xff   : > { %v1660_v58 = vpop.permute.xlu1 %1659  ;;  %v1411_v14 = vshll.u32 %v10225_v29, 16 }
 0x100   : > { %v1658_v63 = vpop.permute.xlu0 %1657  ;;  %v2200_v59 = vsel %vm2083_vm1, %v9320_v50, %v1660_v58  ;;  %v1855_v58 = vrot.slane %v10155_v5, 1  ;;  %v10256_v5 = vcombine.low %v281_v37, %v282_v52  ;;  %v1416_v32 = vshrl.u32 %v10218_v45, 16 }
 0x101   : > { %2019 = vrot.lane.b32.xlu1 %v1851_v24, %s9375_s18  ;;  %v337_v24 = vld [vmem:[%s9411_s17 + $0x268] sm:$0xf] }
 0x102   : > { %2017 = vrot.lane.b32.xlu0 %v1850_v9, %s9375_s18  ;;  %v10247_v15 = vcombine.low %v337_v24, %v338_v20 }
 0x103   : > { %v1956_v13 = vpop.permute.xlu1 %1955 }
 0x104   : > { %v2458_v19 = vsel %vm2384_vm2, %v2194_v30, %v1956_v13  ;;  %v1954_v34 = vpop.permute.xlu0 %1953  ;;  %v339_v30 = vld [vmem:[%s9411_s17 + $0x270] sm:$0xf]  ;;  %v340_v13 = vld [vmem:[%s9411_s17 + $0x274] sm:$0x1]  ;;  %v1423_v20 = vshrl.u32 %v10247_v15, 16 }
 0x105   : > { %v2456_v4 = vsel %vm2384_vm2, %v2191_v41, %v1954_v34  ;;  %1727 = vrot.lane.b32.xlu1 %v1393_v33, %s9376_s19  ;;  %v2197_v33 = vsel %vm2083_vm1, %v9321_v40, %v1658_v63  ;;  %v1854_v63 = vrot.slane %v10161_v53, 1  ;;  %v1409_v34 = vshrl.u32 %v10225_v29, 16  ;;  %v9322_v40 = vld [vmem:[%s9411_s17 + $0x150] sm:$0xf] }
 0x106   : > { %v10220_v18 = vcombine.low %v2456_v4, %v2458_v19  ;;  %v10222_v22 = vcombine.low %v2454_v49, %v2456_v4  ;;  %1725 = vrot.lane.b32.xlu0 %v1386_v36, %s9376_s19  ;;  %v1418_v36 = vshll.u32 %v10218_v45, 16  ;;  %v1413_v4 = vrot.slane %v1411_v14, 1 }
 0x107   : > { %v1960_v9 = vpop.permute.xlu1 %1959 }
 0x108   : > { %12111 = vst [vmem:[#allocation11_spill] sm:$0xff] %v10220_v18  ;;  %12112 = vst [vmem:[#allocation12_spill] sm:$0xff] %v10222_v22  ;;  %v10236_v38 = vsel %vm2384_vm2, %v2200_v59, %v1960_v9  ;;  %8079 = vmatprep.mubr.msk.bf16.mxu1 %vm2761_vm3, %v10220_v18  ;;  %8343 = vmatprep.mubr.msk.bf16.mxu0 %vm2761_vm3, %v10220_v18  ;;  %v1958_v49 = vpop.permute.xlu0 %1957  ;;  %v1420_v41 = vrot.slane %v1418_v36, 1  ;;  %v1414_v59 = vor.u32 %v1413_v4, %v1409_v34  ;;  %v184_v34 = vld [vmem:[%s9411_s17 + $0x4] sm:$0x1] }
 0x109   : > { %v2460_v57 = vsel %vm2384_vm2, %v2197_v33, %v1958_v49  ;;  %1731 = vrot.lane.b32.xlu1 %v1407_v27, %s9376_s19  ;;  %v1229_v27 = vshll.u32 %v10256_v5, 16  ;;  %v1227_v9 = vshrl.u32 %v10256_v5, 16  ;;  %v9325_v4 = vld [vmem:[%s9411_s17 + $0x158] sm:$0xf] }
 0x10a   : > { %v10250_v8 = vcombine.low %v2460_v57, %v10236_v38  ;;  %v10252_v10 = vcombine.low %v2458_v19, %v2460_v57  ;;  %1729 = vrot.lane.b32.xlu0 %v1400_v42, %s9376_s19  ;;  %v1425_v19 = vshll.u32 %v10247_v15, 16  ;;  %v10272_v42 = vcombine.low %v339_v30, %v340_v13 }
 0x10b   : > { %v1668_v17 = vpop.permute.xlu1 %1667  ;;  %v1421_v16 = vor.u32 %v1420_v41, %v1416_v32  ;;  %v1231_v37 = vrot.slane %v1229_v27, 1 }
 0x10c   : > { %12113 = vst [vmem:[#allocation13_spill] sm:$0xff] %v10250_v8  ;;  %12114 = vst [vmem:[#allocation14_spill] sm:$0xff] %v10252_v10  ;;  %8080 = vmatmul.mubr.msk.bf16.gmra.mrb[28].mxu1 %vm2761_vm3, %v10250_v8  ;;  %8344 = vmatmul.mubr.msk.bf16.gmra.mrb[20].mxu0 %vm2761_vm3, %v10250_v8  ;;  %v1666_v53 = vpop.permute.xlu0 %1665  ;;  %v1427_v50 = vrot.slane %v1425_v19, 1  ;;  %v1432_v52 = vshll.u32 %v10272_v42, 16  ;;  %v2212_v33 = vsel %vm2083_vm1, %v9322_v40, %v1668_v17  ;;  %v183_v19 = vld [vmem:[%s9411_s17] sm:$0xf] }
 0x10d   : > { %2027 = vrot.lane.b32.xlu1 %v1855_v58, %s9375_s18  ;;  %v9323_v58 = vld [vmem:[%s9411_s17 + $0x148] sm:$0xf]  ;;  %v1232_v17 = vor.u32 %v1231_v37, %v1227_v9  ;;  %v7090_v37 = vcombine.low %v183_v19, %v184_v34  ;;  %v302_v40 = vld [vmem:[%s9411_s17 + $0x1dc] sm:$0x1]  ;;  %v9326_v19 = vld [vmem:[%s9411_s17 + $0x170] sm:$0xf] }
 0x10e   : > { %2025 = vrot.lane.b32.xlu0 %v1854_v63, %s9375_s18  ;;  %v2209_v57 = vsel %vm2083_vm1, %v9323_v58, %v1666_v53  ;;  %v1428_v30 = vor.u32 %v1427_v50, %v1423_v20  ;;  %v9324_v53 = vld [vmem:[%s9411_s17 + $0x160] sm:$0xf] }
 0x10f   : > { %v1672_v51 = vpop.permute.xlu1 %1671 }
 0x110   : > { %v1670_v24 = vpop.permute.xlu0 %1669  ;;  %v2218_v32 = vsel %vm2083_vm1, %v9324_v53, %v1672_v51  ;;  %v1858_v51 = vrot.slane %v10225_v29, 1 }
 0x111   : > { %2031 = vrot.lane.b32.xlu1 %v1857_v25, %s9375_s18  ;;  %v1430_v25 = vshrl.u32 %v10272_v42, 16  ;;  %v2215_v27 = vsel %vm2083_vm1, %v9325_v4, %v1670_v24 }
 0x112   : > { %2029 = vrot.lane.b32.xlu0 %v1856_v0, %s9375_s18  ;;  %v1434_v0 = vrot.slane %v1432_v52, 1  ;;  %v301_v52 = vld [vmem:[%s9411_s17 + $0x1d8] sm:$0xf] }
 0x113   : > { %v1968_v49 = vpop.permute.xlu1 %1967  ;;  %v10320_v58 = vcombine.low %v301_v52, %v302_v40  ;;  %v1783_v52 = vrot.slane %v7090_v37, 1 }
 0x114   : > { %v2470_v63 = vsel %vm2384_vm2, %v2212_v33, %v1968_v49  ;;  %v1966_v36 = vpop.permute.xlu0 %1965  ;;  %v1435_v24 = vor.u32 %v1434_v0, %v1430_v25  ;;  %v1832_v49 = vrot.slane %v10256_v5, 1  ;;  %v1861_v0 = vrot.slane %v10272_v42, 1  ;;  %v10340_v42 = vld [vmem:[%s12019_s1 + $0x18] sm:$0xff]  }
 0x115   : > { %v10285_v14 = vsel %vm2384_vm2, %v2209_v57, %v1966_v36  ;;  %1735 = vrot.lane.b32.xlu1 %v1421_v16, %s9376_s19  ;;  %v1859_v57 = vrot.slane %v10218_v45, 1  ;;  %v203_v36 = vld [vmem:[%s9411_s17 + $0x50] sm:$0xf]  ;;  %v1299_v5 = vshll.u32 %v10320_v58, 16  ;;  %v1860_v45 = vrot.slane %v10247_v15, 1  ;;  %8183 = vmatprep.subr.bf16.mxu1 %v10340_v42 }
 0x116   : > { %12115 = vst [vmem:[#allocation15_spill] sm:$0xff] %v10285_v14  ;;  %v10289_v13 = vcombine.low %v10285_v14, %v2470_v63  ;;  %1733 = vrot.lane.b32.xlu0 %v1414_v59, %s9376_s19 }
 0x117   : > { %v1972_v41 = vpop.permute.xlu1 %1971 }
 0x118   : > { %12116 = vst [vmem:[#allocation16_spill] sm:$0xff] %v10289_v13  ;;  %v2474_v16 = vsel %vm2384_vm2, %v2218_v32, %v1972_v41  ;;  %8083 = vmatprep.mubr.msk.bf16.mxu1 %vm2761_vm3, %v10289_v13  ;;  %8347 = vmatprep.mubr.msk.bf16.mxu0 %vm2761_vm3, %v10289_v13  ;;  %v1970_v20 = vpop.permute.xlu0 %1969  ;;  %v884_v32 = vshrl.u32 %v7090_v37, 16 }
 0x119   : > { %v2472_v50 = vsel %vm2384_vm2, %v2215_v27, %v1970_v20  ;;  %1737 = vrot.lane.b32.xlu1 %v1428_v30, %s9376_s19  ;;  %v204_v30 = vld [vmem:[%s9411_s17 + $0x54] sm:$0x1]  ;;  %v321_v27 = vld [vmem:[%s9411_s17 + $0x228] sm:$0xf]  ;;  %v322_v20 = vld [vmem:[%s9411_s17 + $0x22c] sm:$0x1] }
 0x11a   : > { %v10307_v59 = vcombine.low %v2472_v50, %v2474_v16  ;;  %v10309_v9 = vcombine.low %v2470_v63, %v2472_v50  ;;  %1681 = vrot.lane.b32.xlu0 %v1232_v17, %s9376_s19  ;;  %v886_v63 = vshll.u32 %v7090_v37, 16  ;;  %v10329_v53 = vcombine.low %v203_v36, %v204_v30  ;;  %v9327_v50 = vld [vmem:[%s9411_s17 + $0x168] sm:$0xf]  ;;  %v9328_v30 = vld [vmem:[%s9411_s17 + $0x180] sm:$0xf] }
 0x11b   : > { %v1676_v33 = vpop.permute.xlu1 %1675  ;;  %v10355_v36 = vcombine.low %v321_v27, %v322_v20 }
 0x11c   : > { %12117 = vst [vmem:[#allocation17_spill] sm:$0xff] %v10307_v59  ;;  %12118 = vst [vmem:[#allocation18_spill] sm:$0xff] %v10309_v9  ;;  %8084 = vmatmul.mubr.msk.bf16.gmra.mrb[32].mxu1 %vm2761_vm3, %v10307_v59  ;;  %8348 = vmatmul.mubr.msk.bf16.gmra.mrb[24].mxu0 %vm2761_vm3, %v10307_v59  ;;  %v1674_v29 = vpop.permute.xlu0 %1673  ;;  %v888_v41 = vrot.slane %v886_v63, 1  ;;  %v2224_v34 = vsel %vm2083_vm1, %v9326_v19, %v1676_v33  ;;  %v1297_v33 = vshrl.u32 %v10320_v58, 16 }
 0x11d   : > { %2033 = vrot.lane.b32.xlu1 %v1858_v51, %s9375_s18  ;;  %v2221_v51 = vsel %vm2083_vm1, %v9327_v50, %v1674_v29 }
 0x11e   : > { %1739 = vrot.lane.b32.xlu0 %v1435_v24, %s9376_s19  ;;  %v889_v37 = vor.u32 %v888_v41, %v884_v32  ;;  %v954_v32 = vshrl.u32 %v10329_v53, 16 }
 0x11f   : > { %v1680_v17 = vpop.permute.xlu1 %1679 }
 0x120   : > { %v1678_v25 = vpop.permute.xlu0 %1677  ;;  %v2230_v19 = vsel %vm2083_vm1, %v9328_v30, %v1680_v17  ;;  %v1842_v17 = vrot.slane %v10320_v58, 1  ;;  %v348_v30 = vld [vmem:[%s9411_s17 + $0x294] sm:$0x1] }
 0x121   : > { %1981 = vrot.lane.b32.xlu1 %v1832_v49, %s9375_s18  ;;  %v1301_v49 = vrot.slane %v1299_v5, 1  ;;  %v9329_v5 = vld [vmem:[%s9411_s17 + $0x178] sm:$0xf] }
 0x122   : > { %2035 = vrot.lane.b32.xlu0 %v1859_v57, %s9375_s18  ;;  %v956_v57 = vshll.u32 %v10329_v53, 16  ;;  %v2227_v50 = vsel %vm2083_vm1, %v9329_v5, %v1678_v25 }
 0x123   : > { %v1976_v4 = vpop.permute.xlu1 %1975  ;;  %v1302_v25 = vor.u32 %v1301_v49, %v1297_v33  ;;  %v347_v49 = vld [vmem:[%s9411_s17 + $0x290] sm:$0xf] }
 0x124   : > { %v2478_v24 = vsel %vm2384_vm2, %v2224_v34, %v1976_v4  ;;  %v1974_v15 = vpop.permute.xlu0 %1973  ;;  %v223_v34 = vld [vmem:[%s9411_s17 + $0xa0] sm:$0xf]  ;;  %v224_v4 = vld [vmem:[%s9411_s17 + $0xa4] sm:$0x1]  ;;  %v958_v41 = vrot.slane %v956_v57, 1  ;;  %v1793_v57 = vrot.slane %v10329_v53, 1 }
 0x125   : > { %v2476_v40 = vsel %vm2384_vm2, %v2221_v51, %v1974_v15  ;;  %2039 = vrot.lane.b32.xlu1 %v1861_v0, %s9375_s18  ;;  %v1369_v15 = vshll.u32 %v10355_v36, 16  ;;  %v10381_v58 = vcombine.low %v223_v34, %v224_v4  ;;  %v244_v34 = vld [vmem:[%s9411_s17 + $0xf4] sm:$0x1]  ;;  %v1367_v4 = vshrl.u32 %v10355_v36, 16 }
 0x126   : > { %v10350_v63 = vcombine.low %v2476_v40, %v2478_v24  ;;  %v10352_v29 = vcombine.low %v2474_v16, %v2476_v40  ;;  %2037 = vrot.lane.b32.xlu0 %v1860_v45, %s9375_s18  ;;  %v10384_v40 = vld [vmem:[%s9411_s17 + $0x278] sm:$0xf] }
 0x127   : > { %v1980_v0 = vpop.permute.xlu1 %1979  ;;  %v1371_v5 = vrot.slane %v1369_v15, 1 }
 0x128   : > { %12119 = vst [vmem:[#allocation19_spill] sm:$0xff] %v10350_v63  ;;  %12120 = vst [vmem:[#allocation20_spill] sm:$0xff] %v10352_v29  ;;  %v10364_v51 = vsel %vm2384_vm2, %v2230_v19, %v1980_v0  ;;  %8087 = vmatprep.mubr.msk.bf16.mxu1 %vm2761_vm3, %v10350_v63  ;;  %8351 = vmatprep.mubr.msk.bf16.mxu0 %vm2761_vm3, %v10350_v63  ;;  %v1978_v16 = vpop.permute.xlu0 %1977  ;;  %v243_v0 = vld [vmem:[%s9411_s17 + $0xf0] sm:$0xf] }
 0x129   : > { %v2480_v45 = vsel %vm2384_vm2, %v2227_v50, %v1978_v16  ;;  %1883 = vrot.lane.b32.xlu1 %v1783_v52, %s9375_s18  ;;  %v342_v52 = vld [vmem:[%s9411_s17 + $0x27c] sm:$0x1]  ;;  %v1026_v50 = vshll.u32 %v10381_v58, 16  ;;  %v10405_v16 = vcombine.low %v347_v49, %v348_v30  ;;  %v1372_v15 = vor.u32 %v1371_v5, %v1367_v4  ;;  %v10416_v30 = vld [vmem:[%s9411_s17 + $0x2a0] sm:$0xf] }
 0x12a   : > { %v10375_v27 = vcombine.low %v2480_v45, %v10364_v51  ;;  %v10377_v20 = vcombine.low %v2478_v24, %v2480_v45  ;;  %1583 = vrot.lane.b32.xlu0 %v889_v37, %s9376_s19  ;;  %v959_v37 = vor.u32 %v958_v41, %v954_v32  ;;  %v10398_v19 = vcombine.low %v10384_v40, %v342_v52 }
 0x12b   : > { %v1922_v33 = vpop.permute.xlu1 %1921  ;;  %v10407_v45 = vcombine.low %v243_v0, %v244_v34  ;;  %v1024_v32 = vshrl.u32 %v10381_v58, 16  ;;  %v1028_v52 = vrot.slane %v1026_v50, 1  ;;  %v1460_v49 = vshll.u32 %v10405_v16, 16  ;;  %v10420_v0 = vld [vmem:[%s9411_s17 + $0x298] sm:$0xf] }
 0x12c   : > { %12121 = vst [vmem:[#allocation21_spill] sm:$0xff] %v10375_v27  ;;  %12122 = vst [vmem:[#allocation22_spill] sm:$0xff] %v10377_v20  ;;  %8088 = vmatmul.mubr.msk.bf16.gmra.mrb[36].mxu1 %vm2761_vm3, %v10375_v27  ;;  %8352 = vmatmul.mubr.msk.bf16.gmra.mrb[28].mxu0 %vm2761_vm3, %v10375_v27  ;;  %v1622_v24 = vpop.permute.xlu0 %1621  ;;  %v1439_v41 = vshll.u32 %v10398_v19, 16  ;;  %v350_v34 = vld [vmem:[%s9411_s17 + $0x29c] sm:$0x1]  ;;  %v1803_v5 = vrot.slane %v10381_v58, 1 }
 0x12d   : > { %8391 = vmatprep.mubr.msk.bf16.mxu0 %vm2761_vm3, %v9836_v3  ;;  %2001 = vrot.lane.b32.xlu1 %v1842_v17, %s9375_s18  ;;  %v1096_v4 = vshll.u32 %v10407_v45, 16  ;;  %v1437_v50 = vshrl.u32 %v10398_v19, 16  ;;  %v1458_v13 = vshrl.u32 %v10405_v16, 16  ;;  %v10442_v8 = vcombine.low %v10420_v0, %v350_v34  ;;  %v9331_v58 = vld [vmem:[%s9411_s17 + $0x1a0] sm:$0xf] }
 0x12e   : > { %1701 = vrot.lane.b32.xlu0 %v1302_v25, %s9376_s19  ;;  %v1852_v25 = vrot.slane %v10355_v36, 1  ;;  %v9295_v36 = vld [vmem:[%s12019_s1 + $0x50] ss:$0 sps:$4 sm:$0xff]   ;;  %v1441_v59 = vrot.slane %v1439_v41, 1  ;;  %v1462_v11 = vrot.slane %v1460_v49, 1  ;;  %v1862_v49 = vrot.slane %v10398_v19, 1 }
 0x12f   : > { %v1688_v53 = vpop.permute.xlu1 %1687 }
 0x130   : > { %v1686_v17 = vpop.permute.xlu0 %1685  ;;  %v2242_v18 = vsel %vm2083_vm1, %v9331_v58, %v1688_v53  ;;  %v1442_v58 = vor.u32 %v1441_v59, %v1437_v50  ;;  %v1463_v50 = vor.u32 %v1462_v11, %v1458_v13 }
 0x131   : > { %1903 = vrot.lane.b32.xlu1 %v1793_v57, %s9375_s18  ;;  %v9330_v57 = vld [vmem:[%s9411_s17 + $0x98] sm:$0xf] }
 0x132   : > { %1603 = vrot.lane.b32.xlu0 %v959_v37, %s9376_s19  ;;  %v2143_v63 = vsel %vm2083_vm1, %v9330_v57, %v1622_v24  ;;  %v10437_v24 = vcombine.low %v10416_v30, %v352_v39  ;;  %v1029_v57 = vor.u32 %v1028_v52, %v1024_v32  ;;  %v354_v39 = vld [vmem:[%s9411_s17 + $0x2ac] sm:$0x1]  ;;  %v5222_v32 = vsel %vm2858_vm0, %v9295_v36, 0 }
 0x133   : > { %v1692_v27 = vpop.permute.xlu1 %1691 }
 0x134   : > { %8392 = vmatmul.mubr.msk.bf16.vlgmr.msra.gmra.mrb[0].mxu0 %vm2761_vm3, %v9925_v46  ;;  %v1690_v37 = vpop.permute.xlu0 %1689  ;;  %v1472_v11 = vshrl.u32 %v10437_v24, 16 }
 0x135   : > { %8395 = vmatprep.mubr.msk.bf16.mxu0 %vm2761_vm3, %v9973_v47  ;;  %2021 = vrot.lane.b32.xlu1 %v1852_v25, %s9375_s18  ;;  %v2424_v25 = vsel %vm2384_vm2, %v2143_v63, %v1922_v33  ;;  %v1094_v63 = vshrl.u32 %v10407_v45, 16  ;;  %v1098_v33 = vrot.slane %v1096_v4, 1  ;;  %v1467_v4 = vshll.u32 %v10442_v8, 16 }
 0x136   : > { %1721 = vrot.lane.b32.xlu0 %v1372_v15, %s9376_s19  ;;  %8456 = vmatpush3.bf16.msra.mxu0 %v10072_v43  ;;  %v9332_v15 = vld [vmem:[%s9411_s17 + $0x198] sm:$0xf] }
 0x137   : > { %v1988_v41 = vpop.permute.xlu1 %1987  ;;  %9182 = vmatprep.subr.msk.bf16.mxu0 %vm2858_vm0, %v9295_v36  ;;  %v2239_v52 = vsel %vm2083_vm1, %v9332_v15, %v1686_v17  ;;  %v1474_v36 = vshll.u32 %v10437_v24, 16  ;;  %v10465_v17 = vcombine.low %v9963_v62, %v2424_v25  ;;  %v9334_v15 = vld [vmem:[%s9411_s17 + $0x1a8] sm:$0xf] }
 0x138   : > { %v2490_v43 = vsel %vm2384_vm2, %v2242_v18, %v1988_v41  ;;  %v1986_v34 = vpop.permute.xlu0 %1985  ;;  %v10473_v41 = vcombine.low %v10449_v54, %v354_v39  ;;  %v2245_v62 = vsel %vm2083_vm1, %v9334_v15, %v1690_v37  ;;  %v1099_v39 = vor.u32 %v1098_v33, %v1094_v63  ;;  %v356_v15 = vld [vmem:[%s9411_s17 + $0x2b4] sm:$0x1] }
 0x139   : > { %v10459_v53 = vsel %vm2384_vm2, %v2239_v52, %v1986_v34  ;;  %1923 = vrot.lane.b32.xlu1 %v1803_v5, %s9375_s18  ;;  %12124 = vst [vmem:[#allocation24_spill] sm:$0xff] %v10465_v17  ;;  %v9333_v5 = vld [vmem:[%s9411_s17 + $0x1b0] sm:$0xf]  ;;  %v1476_v13 = vrot.slane %v1474_v36, 1  ;;  %v1469_v34 = vrot.slane %v1467_v4, 1 }
 0x13a   : > { %12123 = vst [vmem:[#allocation23_spill] sm:$0xff] %v10459_v53  ;;  %v10468_v18 = vcombine.low %v10459_v53, %v2490_v43  ;;  %1623 = vrot.lane.b32.xlu0 %v1029_v57, %s9376_s19  ;;  %8458 = vmatpush3.bf16.msra.mxu0 %v5222_v32  ;;  %v2248_v19 = vsel %vm2083_vm1, %v9333_v5, %v1692_v27  ;;  %v1465_v27 = vshrl.u32 %v10442_v8, 16  ;;  %v1481_v63 = vshll.u32 %v10473_v41, 16  ;;  %v10500_v5 = vld [vmem:[%s9411_s17 + $0x2b8] sm:$0xf] }
 0x13b   : > { %v1992_v59 = vpop.permute.xlu1 %1991  ;;  %v1477_v36 = vor.u32 %v1476_v13, %v1472_v11  ;;  %v10523_v13 = vld [vmem:[%s9411_s17 + $0x2c8] sm:$0xf] }
 0x13c   : > { %12125 = vst [vmem:[#allocation25_spill] sm:$0xff] %v10468_v18  ;;  %v2494_v25 = vsel %vm2384_vm2, %v2248_v19, %v1992_v59  ;;  %8091 = vmatprep.mubr.msk.bf16.mxu1 %vm2761_vm3, %v10468_v18  ;;  %8396 = vmatmul.mubr.msk.bf16.gmra.mrb[4].mxu0 %vm2761_vm3, %v10465_v17  ;;  %v1990_v57 = vpop.permute.xlu0 %1989  ;;  %v358_v19 = vld [vmem:[%s9411_s17 + $0x2bc] sm:$0x1]  ;;  %v1483_v4 = vrot.slane %v1481_v63, 1  ;;  %v10506_v59 = vld [vmem:[%s9411_s17 + $0x2b0] sm:$0xf] }
 0x13d   : > { %v2492_v32 = vsel %vm2384_vm2, %v2245_v62, %v1990_v57  ;;  %8399 = vmatprep.mubr.msk.bf16.mxu0 %vm2761_vm3, %v10042_v1  ;;  %2041 = vrot.lane.b32.xlu1 %v1862_v49, %s9375_s18  ;;  %v10512_v57 = vcombine.low %v10500_v5, %v358_v19  ;;  %v360_v18 = vld [vmem:[%s9411_s17 + $0x2c4] sm:$0x1] }
 0x13e   : > { %v10490_v37 = vcombine.low %v2492_v32, %v2494_v25  ;;  %v10492_v52 = vcombine.low %v2490_v43, %v2492_v32  ;;  %1741 = vrot.lane.b32.xlu0 %v1442_v58, %s9376_s19  ;;  %v1470_v43 = vor.u32 %v1469_v34, %v1465_v27  ;;  %v1479_v58 = vshrl.u32 %v10473_v41, 16  ;;  %v362_v27 = vld [vmem:[%s9411_s17 + $0x2cc] sm:$0x1]  ;;  %v9335_v34 = vld [vmem:[%s9411_s17 + $0x1b8] sm:$0xf] }
 0x13f   : > { %v1696_v33 = vpop.permute.xlu1 %1695  ;;  %v10519_v32 = vcombine.low %v10506_v59, %v356_v15  ;;  %v1495_v15 = vshll.u32 %v10512_v57, 16 }
 0x140   : > { %12126 = vst [vmem:[#allocation26_spill] sm:$0xff] %v10490_v37  ;;  %8092 = vmatmul.mubr.msk.bf16.gmra.mrb[40].mxu1 %vm2761_vm3, %v10490_v37  ;;  %v1694_v49 = vpop.permute.xlu0 %1693  ;;  %v1484_v11 = vor.u32 %v1483_v4, %v1479_v58  ;;  %v10529_v37 = vld [vmem:[%s9411_s17 + $0x2c0] sm:$0xf]  ;;  %v1865_v4 = vrot.slane %v10405_v16, 1 }
 0x141   : > { %1747 = vrot.lane.b32.xlu1 %v1463_v50, %s9376_s19  ;;  %v2251_v63 = vsel %vm2083_vm1, %v9335_v34, %v1694_v49  ;;  %v1488_v58 = vshll.u32 %v10519_v32, 16  ;;  %v10540_v49 = vcombine.low %v10523_v13, %v362_v27  ;;  %v10545_v34 = vcombine.low %v10529_v37, %v360_v18 }
 0x142   : > { %1643 = vrot.lane.b32.xlu0 %v1099_v39, %s9376_s19  ;;  %v1813_v39 = vrot.slane %v10407_v45, 1  ;;  %v2254_v27 = vsel %vm2083_vm1, %v9337_v35, %v1696_v33  ;;  %v1497_v16 = vrot.slane %v1495_v15, 1  ;;  %v1486_v18 = vshrl.u32 %v10519_v32, 16  ;;  %v9338_v15 = vld [vmem:[%s9411_s17 + $0x1d0] sm:$0xf] }
 0x143   : > { %v1698_v62 = vpop.permute.xlu1 %1697  ;;  %v1867_v35 = vrot.slane %v10437_v24, 1  ;;  %v1502_v33 = vshll.u32 %v10545_v34, 16 }
 0x144   : > { %8400 = vmatmul.mubr.msk.bf16.gmra.mrb[8].mxu0 %vm2761_vm3, %v10094_v28  ;;  %v1642_v50 = vpop.permute.xlu0 %1641 }
 0x145   : > { %8403 = vmatprep.mubr.msk.bf16.mxu0 %vm2761_vm3, %v10123_v7  ;;  %1751 = vrot.lane.b32.xlu1 %v1477_v36, %s9376_s19 }
 0x146   : > { %1749 = vrot.lane.b32.xlu0 %v1470_v43, %s9376_s19  ;;  %v1866_v43 = vrot.slane %v10442_v8, 1  ;;  %v1493_v8 = vshrl.u32 %v10512_v57, 16 }
 0x147   : > { %v1994_v19 = vpop.permute.xlu1 %1993 }
 0x148   : > { %v2496_v36 = vsel %vm2384_vm2, %v2251_v63, %v1994_v19  ;;  %v1700_v45 = vpop.permute.xlu0 %1699  ;;  %v9336_v63 = vld [vmem:[%s9411_s17 + $0xe8] sm:$0xf] }
 0x149   : > { %v10534_v12 = vcombine.low %v2494_v25, %v2496_v36  ;;  %1943 = vrot.lane.b32.xlu1 %v1813_v39, %s9375_s18  ;;  %v2173_v25 = vsel %vm2083_vm1, %v9336_v63, %v1642_v50  ;;  %v1868_v39 = vrot.slane %v10473_v41, 1  ;;  %v1490_v41 = vrot.slane %v1488_v58, 1 }
 0x14a   : > { %1753 = vrot.lane.b32.xlu0 %v1484_v11, %s9376_s19  ;;  %v1509_v63 = vshll.u32 %v10540_v49, 16 }
 0x14b   : > { %v1942_v19 = vpop.permute.xlu1 %1941 }
 0x14c   : > { %v2444_v56 = vsel %vm2384_vm2, %v2173_v25, %v1942_v19  ;;  %v1996_v11 = vpop.permute.xlu0 %1995  ;;  %v2260_v25 = vsel %vm2083_vm1, %v9338_v15, %v1700_v45  ;;  %v1498_v45 = vor.u32 %v1497_v16, %v1493_v8  ;;  %v1511_v19 = vrot.slane %v1509_v63, 1  ;;  %v10590_v16 = vld [vmem:[%s9411_s17 + $0x140] sm:$0xf] }
 0x14d   : > { %v10556_v21 = vcombine.low %v10109_v23, %v2444_v56  ;;  %v2498_v50 = vsel %vm2384_vm2, %v2254_v27, %v1996_v11  ;;  %2049 = vrot.lane.b32.xlu1 %v1866_v43, %s9375_s18  ;;  %v9339_v23 = vld [vmem:[%s9411_s17 + $0x1c8] sm:$0xf]  ;;  %v1500_v15 = vshrl.u32 %v10545_v34, 16  ;;  %v1504_v8 = vrot.slane %v1502_v33, 1  ;;  %12130 = vst [vmem:[#allocation30_spill] sm:$0xff] %v10590_v16 }
 0x14e   : > { %v10561_v17 = vcombine.low %v2496_v36, %v2498_v50  ;;  %2047 = vrot.lane.b32.xlu0 %v1865_v4, %s9375_s18  ;;  %v2257_v43 = vsel %vm2083_vm1, %v9339_v23, %v1698_v62  ;;  %v1491_v4 = vor.u32 %v1490_v41, %v1486_v18  ;;  %v1507_v62 = vshrl.u32 %v10540_v49, 16  ;;  %v284_v33 = vld [vmem:[%s9411_s17 + $0x194] sm:$0x1] }
 0x14f   : > { %12127 = vst [vmem:[#allocation27_spill] sm:$0xff] %v10556_v21  ;;  %v2000_v56 = vpop.permute.xlu1 %1999  ;;  %8404 = vmatmul.mubr.msk.bf16.gmra.mrb[12].mxu0 %vm2761_vm3, %v10556_v21  ;;  %v1505_v63 = vor.u32 %v1504_v8, %v1500_v15  ;;  %v10616_v15 = vld [vmem:[%s9411_s17 + $0x1e0] sm:$0xf]  ;;  %v304_v8 = vld [vmem:[%s9411_s17 + $0x1e4] sm:$0x1] }
 0x150   : > { %12128 = vst [vmem:[#allocation28_spill] sm:$0xff] %v10561_v17  ;;  %v10573_v36 = vsel %vm2384_vm2, %v2260_v25, %v2000_v56  ;;  %8095 = vmatprep.mubr.msk.bf16.mxu1 %vm2761_vm3, %v10561_v17  ;;  %v1998_v24 = vpop.permute.xlu0 %1997  ;;  %8407 = vmatprep.mubr.msk.bf16.mxu0 %vm2761_vm3, %v10185_v55  ;;  %v264_v25 = vld [vmem:[%s9411_s17 + $0x144] sm:$0x1]  ;;  %v1512_v41 = vor.u32 %v1511_v19, %v1507_v62  ;;  %12132 = vst [vmem:[#allocation32_spill] sm:$0xff] %v10616_v15 }
 0x151   : > { %v2500_v58 = vsel %vm2384_vm2, %v2257_v43, %v1998_v24  ;;  %2053 = vrot.lane.b32.xlu1 %v1868_v39, %s9375_s18  ;;  %v1870_v43 = vrot.slane %v10512_v57, 1 }
 0x152   : > { %v10583_v27 = vcombine.low %v2500_v58, %v10573_v36  ;;  %v10585_v11 = vcombine.low %v2498_v50, %v2500_v58  ;;  %2051 = vrot.lane.b32.xlu0 %v1867_v35, %s9375_s18  ;;  %v7130_v50 = vcombine.low %v10590_v16, %v264_v25  ;;  %v10599_v35 = vld [vmem:[%s9411_s17 + $0x190] sm:$0xf]  ;;  %v1869_v58 = vrot.slane %v10519_v32, 1  ;;  %v9341_v25 = vld [vmem:[%s9411_s17 + $0x1e8] sm:$0xf] }
 0x153   : > { %v1708_v39 = vpop.permute.xlu1 %1707  ;;  %12131 = vst [vmem:[#allocation31_spill] sm:$0xff] %v10599_v35  ;;  %v9345_v16 = vld [vmem:[%s9411_s17 + $0x210] sm:$0xf] }
 0x154   : > { %12129 = vst [vmem:[#allocation29_spill] sm:$0xff] %v10583_v27  ;;  %8096 = vmatmul.mubr.msk.bf16.gmra.mrb[44].mxu1 %vm2761_vm3, %v10583_v27  ;;  %v1706_v18 = vpop.permute.xlu0 %1705  ;;  %v1166_v24 = vshll.u32 %v7130_v50, 16 }
 0x155   : > { %1757 = vrot.lane.b32.xlu1 %v1498_v45, %s9376_s19  ;;  %v10609_v45 = vcombine.low %v10599_v35, %v284_v33 }
 0x156   : > { %1755 = vrot.lane.b32.xlu0 %v1491_v4, %s9376_s19  ;;  %v9340_v4 = vld [vmem:[%s9411_s17 + $0x1f0] sm:$0xf] }
 0x157   : > { %v1712_v56 = vpop.permute.xlu1 %1711  ;;  %8408 = vmatmul.mubr.msk.bf16.gmra.mrb[16].mxu0 %vm2761_vm3, %v10222_v22  ;;  %v2272_v62 = vsel %vm2083_vm1, %v9340_v4, %v1708_v39  ;;  %v1164_v39 = vshrl.u32 %v7130_v50, 16  ;;  %v1168_v4 = vrot.slane %v1166_v24, 1  ;;  %v1236_v27 = vshll.u32 %v10609_v45, 16  ;;  %v324_v24 = vld [vmem:[%s9411_s17 + $0x234] sm:$0x1] }
 0x158   : > { %v1710_v23 = vpop.permute.xlu0 %1709  ;;  %8411 = vmatprep.mubr.msk.bf16.mxu0 %vm2761_vm3, %v10252_v10 }
 0x159   : > { %1761 = vrot.lane.b32.xlu1 %v1512_v41, %s9376_s19  ;;  %v2269_v41 = vsel %vm2083_vm1, %v9341_v25, %v1706_v18 }
 0x15a   : > { %1759 = vrot.lane.b32.xlu0 %v1505_v63, %s9376_s19  ;;  %v1872_v63 = vrot.slane %v10540_v49, 1  ;;  %v7150_v49 = vcombine.low %v10616_v15, %v304_v8  ;;  %v202_v8 = vld [vmem:[%s9411_s17 + $0x4c] sm:$0x1] }
 0x15b   : > { %v2008_v19 = vpop.permute.xlu1 %2007 }
 0x15c   : > { %v2510_v57 = vsel %vm2384_vm2, %v2272_v62, %v2008_v19  ;;  %v2006_v33 = vpop.permute.xlu0 %2005  ;;  %v1871_v62 = vrot.slane %v10545_v34, 1  ;;  %v9342_v19 = vld [vmem:[%s9411_s17 + $0x200] sm:$0xf]  ;;  %v1823_v34 = vrot.slane %v7130_v50, 1  ;;  %v1306_v50 = vshll.u32 %v7150_v49, 16 }
 0x15d   : > { %v10624_v32 = vsel %vm2384_vm2, %v2269_v41, %v2006_v33  ;;  %2057 = vrot.lane.b32.xlu1 %v1870_v43, %s9375_s18  ;;  %v2278_v25 = vsel %vm2083_vm1, %v9342_v19, %v1712_v56  ;;  %v10637_v43 = vld [vmem:[%s9411_s17 + $0x230] sm:$0xf]  ;;  %v9343_v33 = vld [vmem:[%s9411_s17 + $0x1f8] sm:$0xf]  ;;  %v1169_v19 = vor.u32 %v1168_v4, %v1164_v39  ;;  %v10674_v39 = vld [vmem:[%s9411_s17 + $0x288] sm:$0xf] }
 0x15e   : > { %12133 = vst [vmem:[#allocation33_spill] sm:$0xff] %v10624_v32  ;;  %v10629_v18 = vcombine.low %v10624_v32, %v2510_v57  ;;  %2055 = vrot.lane.b32.xlu0 %v1869_v58, %s9375_s18  ;;  %12135 = vst [vmem:[#allocation35_spill] sm:$0xff] %v10637_v43  ;;  %v2275_v17 = vsel %vm2083_vm1, %v9343_v33, %v1710_v23  ;;  %v1234_v23 = vshrl.u32 %v10609_v45, 16  ;;  %v1238_v33 = vrot.slane %v1236_v27, 1  ;;  %v346_v4 = vld [vmem:[%s9411_s17 + $0x28c] sm:$0x1] }
 0x15f   : > { %v2012_v41 = vpop.permute.xlu1 %2011  ;;  %12139 = vst [vmem:[#allocation39_spill] sm:$0xff] %v10674_v39  ;;  %v1843_v15 = vrot.slane %v7150_v49, 1 }
 0x160   : > { %12134 = vst [vmem:[#allocation34_spill] sm:$0xff] %v10629_v18  ;;  %v10643_v21 = vsel %vm2384_vm2, %v2278_v25, %v2012_v41  ;;  %8099 = vmatprep.mubr.msk.bf16.mxu1 %vm2761_vm3, %v10629_v18  ;;  %v2010_v58 = vpop.permute.xlu0 %2009  ;;  %v7160_v18 = vcombine.low %v10637_v43, %v324_v24  ;;  %v1304_v24 = vshrl.u32 %v7150_v49, 16  ;;  %v344_v43 = vld [vmem:[%s9411_s17 + $0x284] sm:$0x1] }
 0x161   : > { %v2512_v56 = vsel %vm2384_vm2, %v2275_v17, %v2010_v58  ;;  %2061 = vrot.lane.b32.xlu1 %v1872_v63, %s9375_s18  ;;  %v10662_v17 = vcombine.low %v10648_v26, %v202_v8  ;;  %v10667_v63 = vld [vmem:[%s12019_s1 + $0x54] sm:$0xff]   ;;  %v1308_v58 = vrot.slane %v1306_v50, 1 }
 0x162   : > { %v10655_v25 = vcombine.low %v2512_v56, %v10643_v21  ;;  %v10657_v41 = vcombine.low %v2510_v57, %v2512_v56  ;;  %2059 = vrot.lane.b32.xlu0 %v1871_v62, %s9375_s18  ;;  %12138 = vst [vmem:[#allocation38_spill] sm:$0xff] %v10667_v63  ;;  %v1833_v57 = vrot.slane %v10609_v45, 1  ;;  %8523 = vmatprep.subr.bf16.mxu0 %v10667_v63  ;;  %v1376_v8 = vshll.u32 %v7160_v18, 16 }
 0x163   : > { %v1716_v32 = vpop.permute.xlu1 %1715  ;;  %v1239_v62 = vor.u32 %v1238_v33, %v1234_v23  ;;  %v949_v26 = vshll.u32 %v10662_v17, 16  ;;  %v10685_v45 = vcombine.low %v10674_v39, %v346_v4  ;;  %v1374_v23 = vshrl.u32 %v7160_v18, 16 }
 0x164   : > { %12137 = vst [vmem:[#allocation37_spill] sm:$0xff] %v10655_v25  ;;  %8100 = vmatmul.mubr.msk.bf16.gmra.mrb[48].mxu1 %vm2761_vm3, %v10655_v25  ;;  %v1714_v27 = vpop.permute.xlu0 %1713  ;;  %v10681_v25 = vld [vmem:[%s9411_s17 + $0x280] sm:$0xf]  ;;  %v1378_v33 = vrot.slane %v1376_v8, 1  ;;  %v947_v35 = vshrl.u32 %v10662_v17, 16  ;;  %v1792_v39 = vrot.slane %v10662_v17, 1 }
 0x165   : > { %1963 = vrot.lane.b32.xlu1 %v1823_v34, %s9375_s18  ;;  %12140 = vst [vmem:[#allocation40_spill] sm:$0xff] %v10681_v25  ;;  %v10690_v50 = vcombine.low %v10681_v25, %v344_v43  ;;  %v951_v63 = vrot.slane %v949_v26, 1  ;;  %v1453_v49 = vshll.u32 %v10685_v45, 16  ;;  %v9344_v8 = vld [vmem:[%s9411_s17 + $0x138] sm:$0xf]  ;;  %v1451_v14 = vshrl.u32 %v10685_v45, 16 }
 0x166   : > { %1663 = vrot.lane.b32.xlu0 %v1169_v19, %s9376_s19  ;;  %v1309_v19 = vor.u32 %v1308_v58, %v1304_v24  ;;  %v10698_v24 = vld [vmem:[%s9411_s17 + $0x2d8] sm:$0xf]  ;;  %v366_v58 = vld [vmem:[%s9411_s17 + $0x2dc] sm:$0x1] }
 0x167   : > { %v1718_v56 = vpop.permute.xlu1 %1717  ;;  %v1446_v43 = vshll.u32 %v10690_v50, 16  ;;  %12141 = vst [vmem:[#allocation41_spill] sm:$0xff] %v10698_v24  ;;  %v952_v10 = vor.u32 %v951_v63, %v947_v35  ;;  %v1455_v22 = vrot.slane %v1453_v49, 1  ;;  %v370_v49 = vld [vmem:[%s9411_s17 + $0x2ec] sm:$0x1] }
 0x168   : > { %v1662_v34 = vpop.permute.xlu0 %1661 }
 0x169   : > { %1983 = vrot.lane.b32.xlu1 %v1833_v57, %s9375_s18  ;;  %v1853_v57 = vrot.slane %v7160_v18, 1  ;;  %v2203_v26 = vsel %vm2083_vm1, %v9344_v8, %v1662_v34  ;;  %v364_v18 = vld [vmem:[%s9411_s17 + $0x2d4] sm:$0x1] }
 0x16a   : > { %1683 = vrot.lane.b32.xlu0 %v1239_v62, %s9376_s19  ;;  %v1379_v62 = vor.u32 %v1378_v33, %v1374_v23  ;;  %v9346_v23 = vld [vmem:[%s9411_s17 + $0x208] sm:$0xf] }
 0x16b   : > { %v2014_v53 = vpop.permute.xlu1 %2013  ;;  %v2281_v33 = vsel %vm2083_vm1, %v9346_v23, %v1714_v27  ;;  %v10737_v27 = vld [vmem:[%s9411_s17 + $0x2e8] sm:$0xf]  ;;  %v368_v23 = vld [vmem:[%s9411_s17 + $0x2e4] sm:$0x1] }
 0x16c   : > { %v1720_v4 = vpop.permute.xlu0 %1719  ;;  %v10715_v35 = vsel %vm2384_vm2, %v2281_v33, %v2014_v53  ;;  %v1444_v53 = vshrl.u32 %v10690_v50, 16  ;;  %12145 = vst [vmem:[#allocation45_spill] sm:$0xff] %v10737_v27 }
 0x16d   : > { %2003 = vrot.lane.b32.xlu1 %v1843_v15, %s9375_s18  ;;  %v10706_v15 = vld [vmem:[%s9411_s17 + $0x2d0] sm:$0xf] }
 0x16e   : > { %1703 = vrot.lane.b32.xlu0 %v1309_v19, %s9376_s19  ;;  %12142 = vst [vmem:[#allocation42_spill] sm:$0xff] %v10706_v15  ;;  %v2284_v19 = vsel %vm2083_vm1, %v9345_v16, %v1716_v32  ;;  %v10725_v32 = vcombine.low %v10698_v24, %v366_v58  ;;  %v10734_v63 = vcombine.low %v10706_v15, %v364_v18  ;;  %v374_v15 = vld [vmem:[%s9411_s17 + $0x2fc] sm:$0x1] }
 0x16f   : > { %v1962_v25 = vpop.permute.xlu1 %1961 }
 0x170   : > { %v2464_v34 = vsel %vm2384_vm2, %v2203_v26, %v1962_v25  ;;  %v2016_v8 = vpop.permute.xlu0 %2015  ;;  %v9347_v26 = vld [vmem:[%s9411_s17 + $0x220] sm:$0xf] }
 0x171   : > { %v10718_v17 = vcombine.low %v10236_v38, %v2464_v34  ;;  %v10721_v16 = vsel %vm2384_vm2, %v2284_v19, %v2016_v8  ;;  %2023 = vrot.lane.b32.xlu1 %v1853_v57, %s9375_s18  ;;  %v1448_v38 = vrot.slane %v1446_v43, 1  ;;  %v2290_v57 = vsel %vm2083_vm1, %v9347_v26, %v1720_v4  ;;  %v10745_v19 = vld [vmem:[%s9411_s17 + $0x2e0] sm:$0xf] }
 0x172   : > { %v10729_v25 = vcombine.low %v10715_v35, %v10721_v16  ;;  %1723 = vrot.lane.b32.xlu0 %v1379_v62, %s9376_s19  ;;  %12146 = vst [vmem:[#allocation46_spill] sm:$0xff] %v10745_v19  ;;  %v9348_v62 = vld [vmem:[%s9411_s17 + $0x218] sm:$0xf]  ;;  %v1456_v34 = vor.u32 %v1455_v22, %v1451_v14  ;;  %v1523_v8 = vshll.u32 %v10725_v32, 16  ;;  %v1864_v14 = vrot.slane %v10685_v45, 1 }
 0x173   : > { %12143 = vst [vmem:[#allocation43_spill] sm:$0xff] %v10718_v17  ;;  %v2020_v58 = vpop.permute.xlu1 %2019  ;;  %8412 = vmatmul.mubr.msk.bf16.gmra.mrb[20].mxu0 %vm2761_vm3, %v10718_v17  ;;  %v2287_v33 = vsel %vm2083_vm1, %v9348_v62, %v1718_v56  ;;  %v10763_v56 = vcombine.low %v10737_v27, %v370_v49  ;;  %v10772_v62 = vcombine.low %v10745_v19, %v368_v23  ;;  %v10793_v17 = vld [vmem:[%s9411_s17 + $0x2f8] sm:$0xf]  ;;  %v9349_v27 = vld [vmem:[%s9411_s17 + $0x240] sm:$0xf] }
 0x174   : > { %12144 = vst [vmem:[#allocation44_spill] sm:$0xff] %v10729_v25  ;;  %v10751_v43 = vsel %vm2384_vm2, %v2290_v57, %v2020_v58  ;;  %8103 = vmatprep.mubr.msk.bf16.mxu1 %vm2761_vm3, %v10729_v25  ;;  %v2018_v18 = vpop.permute.xlu0 %2017  ;;  %8415 = vmatprep.mubr.msk.bf16.mxu0 %vm2761_vm3, %v10309_v9  ;;  %v1449_v57 = vor.u32 %v1448_v38, %v1444_v53  ;;  %v1516_v58 = vshll.u32 %v10734_v63, 16  ;;  %v1525_v49 = vrot.slane %v1523_v8, 1  ;;  %v9355_v9 = vld [vmem:[%s9411_s17 + $0x258] sm:$0xf] }
 0x175   : > { %v10758_v4 = vsel %vm2384_vm2, %v2287_v33, %v2018_v18  ;;  %1901 = vrot.lane.b32.xlu1 %v1792_v39, %s9375_s18  ;;  %v1521_v39 = vshrl.u32 %v10725_v32, 16  ;;  %v1863_v53 = vrot.slane %v10690_v50, 1  ;;  %v1514_v38 = vshrl.u32 %v10734_v63, 16  ;;  %12148 = vst [vmem:[#allocation48_spill] sm:$0xff] %v10793_v17 }
 0x176   : > { %v10767_v26 = vcombine.low %v10758_v4, %v10751_v43  ;;  %1601 = vrot.lane.b32.xlu0 %v952_v10, %s9376_s19  ;;  %v1537_v10 = vshll.u32 %v10763_v56, 16  ;;  %v1518_v23 = vrot.slane %v1516_v58, 1  ;;  %v1530_v18 = vshll.u32 %v10772_v62, 16 }
 0x177   : > { %v1728_v33 = vpop.permute.xlu1 %1727  ;;  %v1526_v50 = vor.u32 %v1525_v49, %v1521_v39  ;;  %v1535_v8 = vshrl.u32 %v10763_v56, 16  ;;  %v372_v39 = vld [vmem:[%s9411_s17 + $0x2f4] sm:$0x1]  ;;  %v9350_v49 = vld [vmem:[%s9411_s17 + $0x238] sm:$0xf] }
 0x178   : > { %12147 = vst [vmem:[#allocation47_spill] sm:$0xff] %v10767_v26  ;;  %8104 = vmatmul.mubr.msk.bf16.gmra.mrb[52].mxu1 %vm2761_vm3, %v10767_v26  ;;  %v1726_v22 = vpop.permute.xlu0 %1725  ;;  %v1519_v58 = vor.u32 %v1518_v23, %v1514_v38  ;;  %v1528_v26 = vshrl.u32 %v10772_v62, 16  ;;  %v1532_v25 = vrot.slane %v1530_v18, 1  ;;  %v2302_v19 = vsel %vm2083_vm1, %v9349_v27, %v1728_v33 }
 0x179   : > { %1745 = vrot.lane.b32.xlu1 %v1456_v34, %s9376_s19  ;;  %v10812_v33 = vcombine.low %v10793_v17, %v374_v15  ;;  %v376_v15 = vld [vmem:[%s9411_s17 + $0x304] sm:$0x1] }
 0x17a   : > { %1743 = vrot.lane.b32.xlu0 %v1449_v57, %s9376_s19  ;;  %v1539_v57 = vrot.slane %v1537_v10, 1  ;;  %v2299_v10 = vsel %vm2083_vm1, %v9350_v49, %v1726_v22  ;;  %v10823_v22 = vld [vmem:[%s9411_s17 + $0x308] sm:$0xf]  ;;  %v378_v49 = vld [vmem:[%s9411_s17 + $0x30c] sm:$0x1] }
 0x17b   : > { %v1732_v34 = vpop.permute.xlu1 %1731  ;;  %8416 = vmatmul.mubr.msk.bf16.gmra.mrb[24].mxu0 %vm2761_vm3, %v10352_v29  ;;  %12152 = vst [vmem:[#allocation52_spill] sm:$0xff] %v10823_v22 }
 0x17c   : > { %v1730_v45 = vpop.permute.xlu0 %1729  ;;  %8419 = vmatprep.mubr.msk.bf16.mxu0 %vm2761_vm3, %v10377_v20  ;;  %v1540_v27 = vor.u32 %v1539_v57, %v1535_v8  ;;  %v10829_v57 = vld [vmem:[%s9411_s17 + $0x300] sm:$0xf]  ;;  %v380_v20 = vld [vmem:[%s9411_s17 + $0x314] sm:$0x1] }
 0x17d   : > { %2045 = vrot.lane.b32.xlu1 %v1864_v14, %s9375_s18  ;;  %v10799_v14 = vld [vmem:[%s9411_s17 + $0x2f0] sm:$0xf]  ;;  %12153 = vst [vmem:[#allocation53_spill] sm:$0xff] %v10829_v57 }
 0x17e   : > { %2043 = vrot.lane.b32.xlu0 %v1863_v53, %s9375_s18  ;;  %12149 = vst [vmem:[#allocation49_spill] sm:$0xff] %v10799_v14 }
 0x17f   : > { %v2028_v24 = vpop.permute.xlu1 %2027 }
 0x180   : > { %v10805_v53 = vsel %vm2384_vm2, %v2302_v19, %v2028_v24  ;;  %v2026_v38 = vpop.permute.xlu0 %2025  ;;  %v1533_v24 = vor.u32 %v1532_v25, %v1528_v26  ;;  %v10820_v19 = vcombine.low %v10799_v14, %v372_v39  ;;  %v10846_v39 = vcombine.low %v10823_v22, %v378_v49  ;;  %v10873_v14 = vld [vmem:[%s9411_s17 + $0x310] sm:$0xf] }
 0x181   : > { %v10808_v23 = vsel %vm2384_vm2, %v2299_v10, %v2026_v38  ;;  %1765 = vrot.lane.b32.xlu1 %v1526_v50, %s9376_s19  ;;  %v9351_v10 = vld [vmem:[%s9411_s17 + $0x250] sm:$0xf]  ;;  %v9352_v38 = vld [vmem:[%s9411_s17 + $0x248] sm:$0xf]  ;;  %v1876_v49 = vrot.slane %v10763_v56, 1  ;;  %12155 = vst [vmem:[#allocation55_spill] sm:$0xff] %v10873_v14 }
 0x182   : > { %12150 = vst [vmem:[#allocation50_spill] sm:$0xff] %v10808_v23  ;;  %v10816_v18 = vcombine.low %v10808_v23, %v10805_v53  ;;  %1763 = vrot.lane.b32.xlu0 %v1519_v58, %s9376_s19  ;;  %v2308_v50 = vsel %vm2083_vm1, %v9351_v10, %v1732_v34  ;;  %v2305_v17 = vsel %vm2083_vm1, %v9352_v38, %v1730_v45  ;;  %v1874_v34 = vrot.slane %v10725_v32, 1 }
 0x183   : > { %v2032_v8 = vpop.permute.xlu1 %2031  ;;  %v1551_v58 = vshll.u32 %v10812_v33, 16  ;;  %v1873_v10 = vrot.slane %v10734_v63, 1  ;;  %v1875_v63 = vrot.slane %v10772_v62, 1 }
 0x184   : > { %12151 = vst [vmem:[#allocation51_spill] sm:$0xff] %v10816_v18  ;;  %v10835_v23 = vsel %vm2384_vm2, %v2308_v50, %v2032_v8  ;;  %8107 = vmatprep.mubr.msk.bf16.mxu1 %vm2761_vm3, %v10816_v18  ;;  %v2030_v25 = vpop.permute.xlu0 %2029  ;;  %v10856_v50 = vcombine.low %v10829_v57, %v376_v15  ;;  %v1549_v8 = vshrl.u32 %v10812_v33, 16  ;;  %v1542_v15 = vshrl.u32 %v10820_v19, 16 }
 0x185   : > { %v10840_v26 = vsel %vm2384_vm2, %v2305_v17, %v2030_v25  ;;  %1769 = vrot.lane.b32.xlu1 %v1540_v27, %s9376_s19  ;;  %v1544_v17 = vshll.u32 %v10820_v19, 16  ;;  %v1553_v38 = vrot.slane %v1551_v58, 1  ;;  %v1563_v58 = vshrl.u32 %v10846_v39, 16 }
 0x186   : > { %v10850_v45 = vcombine.low %v10840_v26, %v10835_v23  ;;  %1767 = vrot.lane.b32.xlu0 %v1533_v24, %s9376_s19  ;;  %v1565_v24 = vshll.u32 %v10846_v39, 16  ;;  %v1556_v62 = vshrl.u32 %v10856_v50, 16 }
 0x187   : > { %v1736_v27 = vpop.permute.xlu1 %1735  ;;  %v1546_v25 = vrot.slane %v1544_v17, 1  ;;  %v1554_v56 = vor.u32 %v1553_v38, %v1549_v8  ;;  %v7188_v38 = vcombine.low %v10873_v14, %v380_v20 }
 0x188   : > { %12154 = vst [vmem:[#allocation54_spill] sm:$0xff] %v10850_v45  ;;  %8108 = vmatmul.mubr.msk.bf16.gmra.mrb[56].mxu1 %vm2761_vm3, %v10850_v45  ;;  %v1734_v32 = vpop.permute.xlu0 %1733  ;;  %v1558_v45 = vshll.u32 %v10856_v50, 16  ;;  %v1567_v22 = vrot.slane %v1565_v24, 1  ;;  %v9353_v24 = vld [vmem:[%s9411_s17 + $0x188] sm:$0xf] }
 0x189   : > { %2065 = vrot.lane.b32.xlu1 %v1874_v34, %s9375_s18  ;;  %v2311_v55 = vsel %vm2083_vm1, %v9355_v9, %v1734_v32  ;;  %v1877_v32 = vrot.slane %v10820_v19, 1  ;;  %v1880_v19 = vrot.slane %v10846_v39, 1  ;;  %v1881_v39 = vrot.slane %v7188_v38, 1 }
 0x18a   : > { %2063 = vrot.lane.b32.xlu0 %v1873_v10, %s9375_s18  ;;  %v1547_v10 = vor.u32 %v1546_v25, %v1542_v15  ;;  %v1560_v57 = vrot.slane %v1558_v45, 1  ;;  %v9354_v25 = vld [vmem:[%s9411_s17 + $0x260] sm:$0xf] }
 0x18b   : > { %v1738_v18 = vpop.permute.xlu1 %1737  ;;  %v2314_v45 = vsel %vm2083_vm1, %v9354_v25, %v1736_v27  ;;  %v1878_v27 = vrot.slane %v10812_v33, 1 }
 0x18c   : > { %v1682_v34 = vpop.permute.xlu0 %1681  ;;  %v1561_v8 = vor.u32 %v1560_v57, %v1556_v62  ;;  %v9357_v62 = vld [vmem:[%s9411_s17 + $0x268] sm:$0xf] }
 0x18d   : > { %2069 = vrot.lane.b32.xlu1 %v1876_v49, %s9375_s18  ;;  %v1568_v49 = vor.u32 %v1567_v22, %v1563_v58 }
 0x18e   : > { %2067 = vrot.lane.b32.xlu0 %v1875_v63, %s9375_s18  ;;  %v2233_v63 = vsel %vm2083_vm1, %v9353_v24, %v1682_v34  ;;  %v9356_v34 = vld [vmem:[%s9411_s17 + $0x270] sm:$0xf]  ;;  %v1570_v24 = vshrl.u32 %v7188_v38, 16 }
 0x18f   : > { %v2034_v17 = vpop.permute.xlu1 %2033 }
 0x190   : > { %v1740_v29 = vpop.permute.xlu0 %1739  ;;  %v10887_v58 = vsel %vm2384_vm2, %v2311_v55, %v2034_v17  ;;  %v1572_v55 = vshll.u32 %v7188_v38, 16  ;;  %v2317_v17 = vsel %vm2083_vm1, %v9357_v62, %v1738_v18 }
 0x191   : > { %1773 = vrot.lane.b32.xlu1 %v1554_v56, %s9376_s19 }
 0x192   : > { %1771 = vrot.lane.b32.xlu0 %v1547_v10, %s9376_s19 }
 0x193   : > { %v1982_v15 = vpop.permute.xlu1 %1981 }
 0x194   : > { %v2484_v56 = vsel %vm2384_vm2, %v2233_v63, %v1982_v15  ;;  %v2036_v22 = vpop.permute.xlu0 %2035  ;;  %v1574_v63 = vrot.slane %v1572_v55, 1 }
 0x195   : > { %v10890_v20 = vcombine.low %v10364_v51, %v2484_v56  ;;  %v10893_v57 = vsel %vm2384_vm2, %v2314_v45, %v2036_v22  ;;  %1777 = vrot.lane.b32.xlu1 %v1568_v49, %s9376_s19  ;;  %v2320_v51 = vsel %vm2083_vm1, %v9356_v34, %v1740_v29  ;;  %v9358_v45 = vld [vmem:[%s9411_s17] sm:$0xf]  ;;  %v9359_v34 = vld [vmem:[%s9411_s17 + $0x1d8] sm:$0xf] }
 0x196   : > { %v10899_v9 = vcombine.low %v10887_v58, %v10893_v57  ;;  %1775 = vrot.lane.b32.xlu0 %v1561_v8, %s9376_s19  ;;  %v1879_v8 = vrot.slane %v10856_v50, 1 }
 0x197   : > { %v2040_v10 = vpop.permute.xlu1 %2039  ;;  %8420 = vmatmul.mubr.msk.bf16.gmra.mrb[28].mxu0 %vm2761_vm3, %v10890_v20 }
 0x198   : > { %v10910_v33 = vsel %vm2384_vm2, %v2320_v51, %v2040_v10  ;;  %8111 = vmatprep.mubr.msk.bf16.mxu1 %vm2761_vm3, %v10899_v9  ;;  %v2038_v49 = vpop.permute.xlu0 %2037  ;;  %8423 = vmatprep.mubr.msk.bf16.mxu0 %vm2761_vm3, %v10492_v52 }
 0x199   : > { %v10917_v29 = vsel %vm2384_vm2, %v2317_v17, %v2038_v49  ;;  %2073 = vrot.lane.b32.xlu1 %v1878_v27, %s9375_s18  ;;  %v1575_v27 = vor.u32 %v1574_v63, %v1570_v24  ;;  %v9360_v49 = vld [vmem:[%s9411_s17 + $0x50] sm:$0xf]  ;;  %v10963_v24 = vld [vmem:[%s12019_s1 + $0x24] sm:$0xff]  }
 0x19a   : > { %v10923_v18 = vcombine.low %v10917_v29, %v10910_v33  ;;  %2071 = vrot.lane.b32.xlu0 %v1877_v32, %s9375_s18 }
 0x19b   : > { %v1884_v15 = vpop.permute.xlu1 %1883 }
 0x19c   : > { %8112 = vmatmul.mubr.msk.bf16.gmra.mrb[60].mxu1 %vm2761_vm3, %v10923_v18  ;;  %v1584_v25 = vpop.permute.xlu0 %1583 }
 0x19d   : > { %v2086_v56 = vsel %vm2083_vm1, %v9358_v45, %v1584_v25  ;;  %2077 = vrot.lane.b32.xlu1 %v1880_v19, %s9375_s18 }
 0x19e   : > { %v2386_v22 = vsel %vm2384_vm2, %v2086_v56, %v1884_v15  ;;  %2075 = vrot.lane.b32.xlu0 %v1879_v8, %s9375_s18  ;;  %v10978_v56 = vcombine.low %v10643_v21, %v10715_v35 }
 0x19f   : > { %v7259_v50 = vcombine.low %v2386_v22, %v9746_v2  ;;  %8424 = vmatmul.mubr.msk.bf16.gmra.mrb[32].mxu0 %vm2761_vm3, %v10534_v12  ;;  %v2002_v32 = vpop.permute.xlu1 %2001  ;;  %v9306_v2 = vld [vmem:[%s12019_s1 + $0x20] ss:$0 sps:$4 sm:$0xff]   ;;  %v9361_v22 = vld [vmem:[%s9411_s17 + $0x228] sm:$0xf] }
 0x1a0   : > { %v1702_v55 = vpop.permute.xlu0 %1701  ;;  %8427 = vmatprep.mubr.msk.bf16.mxu0 %vm2761_vm3, %v10585_v11  ;;  %v3658_v8 = vsel %vm2858_vm0, %v9306_v2, 0 }
 0x1a1   : > { %v2263_v51 = vsel %vm2083_vm1, %v9359_v34, %v1702_v55  ;;  %8119 = vmatprep.mubr.msk.bf16.mxu1 %vm2761_vm3, %v7259_v50  ;;  %2079 = vrot.lane.b32.xlu1 %v1881_v39, %s9375_s18  ;;  %v10984_v39 = vcombine.low %v10721_v16, %v10758_v4  ;;  %v9362_v4 = vld [vmem:[%s9411_s17 + $0xa0] sm:$0xf]  ;;  %v11004_v34 = vcombine.low %v10805_v53, %v10840_v26 }
 0x1a2   : > { %v2504_v38 = vsel %vm2384_vm2, %v2263_v51, %v2002_v32  ;;  %1779 = vrot.lane.b32.xlu0 %v1575_v27, %s9376_s19  ;;  %v11018_v26 = vcombine.low %v10835_v23, %v10887_v58  ;;  %v9363_v58 = vld [vmem:[%s9411_s17 + $0x290] sm:$0xf] }
 0x1a3   : > { %v1904_v10 = vpop.permute.xlu1 %1903  ;;  %v10951_v17 = vcombine.low %v10573_v36, %v2504_v38 }
 0x1a4   : > { %8120 = vmatmul.mubr.msk.bf16.vlgmr.msra.gmra.mrb[0].mxu1 %vm2761_vm3, %v9818_v48  ;;  %v1604_v62 = vpop.permute.xlu0 %1603 }
 0x1a5   : > { %8184 = vmatpush3.bf16.msra.mxu1 %v10340_v42  ;;  %v2116_v19 = vsel %vm2083_vm1, %v9360_v49, %v1604_v62  ;;  %8123 = vmatprep.mubr.msk.bf16.mxu1 %vm2761_vm3, %v9904_v60  ;;  %v11024_v62 = vcombine.low %v10893_v57, %v10917_v29 }
 0x1a6   : > { %9177 = vmatprep.subr.msk.bf16.mxu1 %vm2858_vm0, %v9306_v2  ;;  %v2406_v42 = vsel %vm2384_vm2, %v2116_v19, %v1904_v10 }
 0x1a7   : > { %v2022_v36 = vpop.permute.xlu1 %2021  ;;  %8428 = vmatmul.mubr.msk.bf16.gmra.mrb[36].mxu0 %vm2761_vm3, %v10951_v17  ;;  %v10972_v15 = vcombine.low %v2406_v42, %v9786_v44 }
 0x1a8   : > { %v1722_v63 = vpop.permute.xlu0 %1721  ;;  %8431 = vmatprep.mubr.msk.bf16.mxu0 %vm2761_vm3, %v10657_v41 }
 0x1a9   : > { %8186 = vmatpush3.bf16.msra.mxu1 %v3658_v8  ;;  %v2293_v44 = vsel %vm2083_vm1, %v9361_v22, %v1722_v63 }
 0x1aa   : > { %8251 = vmatprep.subr.bf16.mxu1 %v10963_v24  ;;  %v2524_v21 = vsel %vm2384_vm2, %v2293_v44, %v2022_v36  ;;  %v9364_v44 = vld [vmem:[%s9411_s17 + $0xf0] sm:$0xf] }
 0x1ab   : > { %v1924_v25 = vpop.permute.xlu1 %1923  ;;  %v10996_v16 = vcombine.low %v10751_v43, %v2524_v21 }
 0x1ac   : > { %8124 = vmatmul.mubr.msk.bf16.gmra.mrb[4].mxu1 %vm2761_vm3, %v9950_v61  ;;  %v1624_v45 = vpop.permute.xlu0 %1623 }
 0x1ad   : > { %8127 = vmatprep.mubr.msk.bf16.mxu1 %vm2761_vm3, %v10972_v15  ;;  %v2146_v55 = vsel %vm2083_vm1, %v9362_v4, %v1624_v45 }
 0x1ae   : > { %v2426_v38 = vsel %vm2384_vm2, %v2146_v55, %v1924_v25 }
 0x1af   : > { %v2042_v27 = vpop.permute.xlu1 %2041  ;;  %8432 = vmatmul.mubr.msk.bf16.gmra.mrb[40].mxu0 %vm2761_vm3, %v10978_v56  ;;  %v11012_v43 = vcombine.low %v2426_v38, %v10005_v6 }
 0x1b0   : > { %v1742_v50 = vpop.permute.xlu0 %1741  ;;  %8435 = vmatprep.mubr.msk.bf16.mxu0 %vm2761_vm3, %v10984_v39 }
 0x1b1   : > { %v2323_v6 = vsel %vm2083_vm1, %v10384_v40, %v1742_v50 }
 0x1b2   : > { %v2544_v23 = vsel %vm2384_vm2, %v2323_v6, %v2042_v27 }
 0x1b3   : > { %v1748_v35 = vpop.permute.xlu1 %1747  ;;  %v11046_v25 = vcombine.low %v10910_v33, %v2544_v23 }
 0x1b4   : > { %8128 = vmatmul.mubr.msk.bf16.gmra.mrb[8].mxu1 %vm2761_vm3, %v9836_v3  ;;  %v1644_v32 = vpop.permute.xlu0 %1643  ;;  %v2332_v8 = vsel %vm2083_vm1, %v9363_v58, %v1748_v35 }
 0x1b5   : > { %8131 = vmatprep.mubr.msk.bf16.mxu1 %vm2761_vm3, %v9925_v46 }
 0x1b7   : > { %v1752_v51 = vpop.permute.xlu1 %1751  ;;  %8436 = vmatmul.mubr.msk.bf16.gmra.mrb[44].mxu0 %vm2761_vm3, %v10996_v16 }
 0x1b8   : > { %v1750_v2 = vpop.permute.xlu0 %1749  ;;  %8439 = vmatprep.mubr.msk.bf16.mxu0 %vm2761_vm3, %v11004_v34  ;;  %v2338_v42 = vsel %vm2083_vm1, %v10416_v30, %v1752_v51  ;;  %v2176_v30 = vsel %vm2083_vm1, %v9364_v44, %v1644_v32 }
 0x1b9   : > { %v2335_v57 = vsel %vm2083_vm1, %v10420_v0, %v1750_v2 }
 0x1bb   : > { %v1944_v10 = vpop.permute.xlu1 %1943 }
 0x1bc   : > { %8132 = vmatmul.mubr.msk.bf16.gmra.mrb[12].mxu1 %vm2761_vm3, %v9973_v47  ;;  %v1754_v53 = vpop.permute.xlu0 %1753  ;;  %v2446_v33 = vsel %vm2384_vm2, %v2176_v30, %v1944_v10  ;;  %v12164_v30 = vld [vmem:[#allocation15_spill] sm:$0xff] }
 0x1bd   : > { %8135 = vmatprep.mubr.msk.bf16.mxu1 %vm2761_vm3, %v11012_v43  ;;  %v2341_v21 = vsel %vm2083_vm1, %v10449_v54, %v1754_v53  ;;  %v11067_v4 = vcombine.low %v2446_v33, %v10151_v31 }
 0x1bf   : > { %v2050_v49 = vpop.permute.xlu1 %2049  ;;  %8440 = vmatmul.mubr.msk.bf16.gmra.mrb[48].mxu0 %vm2761_vm3, %v11018_v26  ;;  %12157 = vst [vmem:[#allocation57_spill] sm:$0xff] %v11067_v4 }
 0x1c0   : > { %v2048_v19 = vpop.permute.xlu0 %2047  ;;  %8443 = vmatprep.mubr.msk.bf16.mxu0 %vm2761_vm3, %v11024_v62  ;;  %v2552_v29 = vsel %vm2384_vm2, %v2335_v57, %v2050_v49 }
 0x1c1   : > { %v11039_v40 = vsel %vm2384_vm2, %v2332_v8, %v2048_v19  ;;  %v12159_v8 = vld [vmem:[#allocation10_spill] sm:$0xff] }
 0x1c2   : > { %v11052_v0 = vcombine.low %v11039_v40, %v2552_v29 }
 0x1c3   : > { %v2054_v36 = vpop.permute.xlu1 %2053 }
 0x1c4   : > { %8136 = vmatmul.mubr.msk.bf16.gmra.mrb[16].mxu1 %vm2761_vm3, %v10042_v1  ;;  %v2052_v63 = vpop.permute.xlu0 %2051  ;;  %v2556_v35 = vsel %vm2384_vm2, %v2341_v21, %v2054_v36 }
 0x1c5   : > { %v2554_v45 = vsel %vm2384_vm2, %v2338_v42, %v2052_v63  ;;  %8139 = vmatprep.mubr.msk.bf16.mxu1 %vm2761_vm3, %v10094_v28  ;;  %v12163_v63 = vld [vmem:[#allocation30_spill] sm:$0xff] }
 0x1c6   : > { %v11054_v22 = vcombine.low %v2552_v29, %v2554_v45  ;;  %v11071_v51 = vcombine.low %v2554_v45, %v2556_v35  ;;  %v12160_v29 = vld [vmem:[#allocation12_spill] sm:$0xff] }
 0x1c7   : > { %v1758_v27 = vpop.permute.xlu1 %1757  ;;  %8444 = vmatmul.mubr.msk.bf16.gmra.mrb[52].mxu0 %vm2761_vm3, %v11046_v25 }
 0x1c8   : > { %12156 = vst [vmem:[#allocation56_spill] sm:$0xff] %v11054_v22  ;;  %v1756_v50 = vpop.permute.xlu0 %1755  ;;  %8447 = vmatprep.mubr.msk.bf16.mxu0 %vm2761_vm3, %v11052_v0  ;;  %v2347_v38 = vsel %vm2083_vm1, %v10500_v5, %v1758_v27  ;;  %v12182_v22 = vld [vmem:[#allocation49_spill] sm:$0xff] }
 0x1c9   : > { %v2344_v31 = vsel %vm2083_vm1, %v10506_v59, %v1756_v50  ;;  %v12166_v50 = vld [vmem:[#allocation14_spill] sm:$0xff] }
 0x1cb   : > { %v1762_v55 = vpop.permute.xlu1 %1761 }
 0x1cc   : > { %8140 = vmatmul.mubr.msk.bf16.gmra.mrb[20].mxu1 %vm2761_vm3, %v10123_v7  ;;  %v1760_v32 = vpop.permute.xlu0 %1759  ;;  %v2353_v19 = vsel %vm2083_vm1, %v10523_v13, %v1762_v55  ;;  %v382_v55 = vld [vmem:[%s9411_s17 + $0x31c] sm:$0x1] }
 0x1cd   : > { %8143 = vmatprep.mubr.msk.bf16.mxu1 %vm2761_vm3, %v11067_v4  ;;  %v2350_v23 = vsel %vm2083_vm1, %v10529_v37, %v1760_v32 }
 0x1cf   : > { %v2058_v2 = vpop.permute.xlu1 %2057  ;;  %8448 = vmatmul.mubr.msk.bf16.gmra.mrb[56].mxu0 %vm2761_vm3, %v11071_v51 }
 0x1d0   : > { %v2560_v54 = vsel %vm2384_vm2, %v2347_v38, %v2058_v2  ;;  %v2056_v10 = vpop.permute.xlu0 %2055  ;;  %v9309_v38 = vld [vmem:[%s12019_s1 + $0x5c] ss:$0 sps:$4 sm:$0xff]  }
 0x1d1   : > { %v2558_v53 = vsel %vm2384_vm2, %v2344_v31, %v2056_v10  ;;  %v12168_v10 = vld [vmem:[#allocation38_spill] sm:$0xff] }
 0x1d2   : > { %v11083_v6 = vcombine.low %v2558_v53, %v2560_v54  ;;  %v11085_v49 = vcombine.low %v2556_v35, %v2558_v53  ;;  %v11116_v35 = vld [vmem:[%s9411_s17 + $0x318] sm:$0xf] }
 0x1d3   : > { %v2062_v5 = vpop.permute.xlu1 %2061  ;;  %12167 = vst [vmem:[#allocation15_spill] sm:$0xff] %v11116_v35  ;;  %v7189_v32 = vcombine.low %v11116_v35, %v382_v55 }
 0x1d4   : > { %12158 = vst [vmem:[#allocation58_spill] sm:$0xff] %v11085_v49  ;;  %v2564_v58 = vsel %vm2384_vm2, %v2353_v19, %v2062_v5  ;;  %8144 = vmatmul.mubr.msk.bf16.gmra.mrb[24].mxu1 %vm2761_vm3, %v12159_v8  ;;  %8451 = vmatprep.mubr.msk.bf16.mxu0 %vm2761_vm3, %v11083_v6  ;;  %v2060_v59 = vpop.permute.xlu0 %2059  ;;  %v5609_v5 = vsel %vm2858_vm0, %v9309_v38, 0 }
 0x1d5   : > { %v2562_v57 = vsel %vm2384_vm2, %v2350_v23, %v2060_v59  ;;  %8147 = vmatprep.mubr.msk.bf16.mxu1 %vm2761_vm3, %v12160_v29  ;;  %v1579_v31 = vshll.u32 %v7189_v32, 16  ;;  %v1577_v53 = vshrl.u32 %v7189_v32, 16  ;;  %v11135_v23 = vld [vmem:[%s12019_s1 + $0x60] sm:$0xff]  }
 0x1d6   : > { %v11099_v13 = vcombine.low %v2560_v54, %v2562_v57  ;;  %v11101_v36 = vcombine.low %v2562_v57, %v2564_v58  ;;  %v12169_v57 = vld [vmem:[#allocation18_spill] sm:$0xff] }
 0x1d7   : > { %v1964_v37 = vpop.permute.xlu1 %1963  ;;  %v1581_v19 = vrot.slane %v1579_v31, 1 }
 0x1d8   : > { %12161 = vst [vmem:[#allocation10_spill] sm:$0xff] %v11099_v13  ;;  %12162 = vst [vmem:[#allocation12_spill] sm:$0xff] %v11101_v36  ;;  %8452 = vmatmul.mubr.msk.bf16.gmra.mrb[60].mxu0 %vm2761_vm3, %v11101_v36  ;;  %v1664_v42 = vpop.permute.xlu0 %1663 }
 0x1d9   : > { %v2206_v45 = vsel %vm2083_vm1, %v12163_v63, %v1664_v42  ;;  %8459 = vmatprep.mubr.msk.bf16.mxu0 %vm2761_vm3, %v11012_v43  ;;  %v1582_v59 = vor.u32 %v1581_v19, %v1577_v53  ;;  %v1882_v42 = vrot.slane %v7189_v32, 1  ;;  %v12170_v63 = vld [vmem:[#allocation31_spill] sm:$0xff] }
 0x1da   : > { %v2466_v44 = vsel %vm2384_vm2, %v2206_v45, %v1964_v37  ;;  %v12175_v19 = vld [vmem:[#allocation39_spill] sm:$0xff] }
 0x1db   : > { %v11111_v27 = vcombine.low %v2466_v44, %v12164_v30  ;;  %v1984_v33 = vpop.permute.xlu1 %1983  ;;  %v12171_v44 = vld [vmem:[#allocation20_spill] sm:$0xff]  ;;  %1781 = vrot.lane.b32.xlu0 %v1582_v59, %s9376_s19  ;;  %2081 = vrot.lane.b32.xlu1 %v1882_v42, %s9375_s18 }
 0x1dc   : > { %8148 = vmatmul.mubr.msk.bf16.gmra.mrb[28].mxu1 %vm2761_vm3, %v12166_v50  ;;  %v1684_v21 = vpop.permute.xlu0 %1683 }
 0x1dd   : > { %12165 = vst [vmem:[#allocation30_spill] sm:$0xff] %v11111_v27  ;;  %8151 = vmatprep.mubr.msk.bf16.mxu1 %vm2761_vm3, %v11111_v27  ;;  %v2236_v45 = vsel %vm2083_vm1, %v12170_v63, %v1684_v21  ;;  %v12172_v21 = vld [vmem:[#allocation23_spill] sm:$0xff] }
 0x1de   : > { %v2486_v55 = vsel %vm2384_vm2, %v2236_v45, %v1984_v33 }
 0x1df   : > { %v2004_v2 = vpop.permute.xlu1 %2003 }
 0x1e0   : > { %8460 = vmatmul.mubr.msk.bf16.vlgmr.msra.gmra.mrb[0].mxu0 %vm2761_vm3, %v10042_v1  ;;  %v1704_v54 = vpop.permute.xlu0 %1703 }
 0x1e1   : > { %8463 = vmatprep.mubr.msk.bf16.mxu0 %vm2761_vm3, %v10094_v28  ;;  %8524 = vmatpush3.bf16.msra.mxu0 %v12168_v10  ;;  %v12174_v10 = vld [vmem:[#allocation22_spill] sm:$0xff] }
 0x1e2   : > { %9183 = vmatprep.subr.msk.bf16.mxu0 %vm2858_vm0, %v9309_v38  ;;  %v11156_v38 = vcombine.low %v2486_v55, %v12172_v21  ;;  %v12176_v21 = vld [vmem:[#allocation32_spill] sm:$0xff] }
 0x1e3   : > { %v2024_v58 = vpop.permute.xlu1 %2023 }
 0x1e4   : > { %8152 = vmatmul.mubr.msk.bf16.gmra.mrb[32].mxu1 %vm2761_vm3, %v12169_v57  ;;  %v1724_v37 = vpop.permute.xlu0 %1723  ;;  %12173 = vst [vmem:[#allocation14_spill] sm:$0xff] %v11156_v38 }
 0x1e5   : > { %8155 = vmatprep.mubr.msk.bf16.mxu1 %vm2761_vm3, %v12171_v44  ;;  %8526 = vmatpush3.bf16.msra.mxu0 %v5609_v5 }
 0x1e6   : > { %8591 = vmatprep.subr.bf16.mxu0 %v11135_v23 }
 0x1e7   : > { %v11145_v30 = vpop.permute.xlu1 %1901 }
 0x1e8   : > { %8464 = vmatmul.mubr.msk.bf16.gmra.mrb[4].mxu0 %vm2761_vm3, %v10123_v7  ;;  %v11151_v32 = vpop.permute.xlu0 %1601 }
 0x1e9   : > { %8467 = vmatprep.mubr.msk.bf16.mxu0 %vm2761_vm3, %v11067_v4 }
 0x1eb   : > { %v1746_v31 = vpop.permute.xlu1 %1745 }
 0x1ec   : > { %8156 = vmatmul.mubr.msk.bf16.gmra.mrb[36].mxu1 %vm2761_vm3, %v12174_v10  ;;  %v11160_v53 = vpop.permute.xlu0 %1743  ;;  %v2329_v33 = vsel %vm2083_vm1, %v12175_v19, %v1746_v31  ;;  %v2266_v31 = vsel %vm2083_vm1, %v12176_v21, %v1704_v54  ;;  %v12178_v54 = vld [vmem:[#allocation41_spill] sm:$0xff] }
 0x1ed   : > { %8159 = vmatprep.mubr.msk.bf16.mxu1 %vm2761_vm3, %v11156_v38 }
 0x1ef   : > { %v2046_v5 = vpop.permute.xlu1 %2045 }
 0x1f0   : > { %v11167_v59 = vsel %vm2384_vm2, %v2329_v33, %v2046_v5  ;;  %8468 = vmatmul.mubr.msk.bf16.gmra.mrb[8].mxu0 %vm2761_vm3, %v12159_v8  ;;  %v11171_v42 = vpop.permute.xlu0 %2043  ;;  %v2506_v33 = vsel %vm2384_vm2, %v2266_v31, %v2004_v2  ;;  %v12177_v5 = vld [vmem:[#allocation33_spill] sm:$0xff]  ;;  %v12179_v2 = vld [vmem:[#allocation46_spill] sm:$0xff] }
 0x1f1   : > { %v11175_v63 = vcombine.low %v11167_v59, %v11039_v40  ;;  %8471 = vmatprep.mubr.msk.bf16.mxu0 %vm2761_vm3, %v12160_v29  ;;  %v11193_v35 = vcombine.low %v2506_v33, %v12177_v5 }
 0x1f3   : > { %v1766_v45 = vpop.permute.xlu1 %1765 }
 0x1f4   : > { %8160 = vmatmul.mubr.msk.bf16.gmra.mrb[40].mxu1 %vm2761_vm3, %v10492_v52  ;;  %v11181_v55 = vpop.permute.xlu0 %1763  ;;  %v2359_v21 = vsel %vm2083_vm1, %v12178_v54, %v1766_v45 }
 0x1f5   : > { %8163 = vmatprep.mubr.msk.bf16.mxu1 %vm2761_vm3, %v10534_v12 }
 0x1f7   : > { %v1770_v19 = vpop.permute.xlu1 %1769 }
 0x1f8   : > { %8472 = vmatmul.mubr.msk.bf16.gmra.mrb[12].mxu0 %vm2761_vm3, %v12166_v50  ;;  %v1768_v40 = vpop.permute.xlu0 %1767 }
 0x1f9   : > { %8475 = vmatprep.mubr.msk.bf16.mxu0 %vm2761_vm3, %v11111_v27  ;;  %v2362_v31 = vsel %vm2083_vm1, %v12179_v2, %v1768_v40  ;;  %v12180_v40 = vld [vmem:[#allocation35_spill] sm:$0xff] }
 0x1fb   : > { %v2066_v36 = vpop.permute.xlu1 %2065 }
 0x1fc   : > { %8164 = vmatmul.mubr.msk.bf16.gmra.mrb[44].mxu1 %vm2761_vm3, %v10585_v11  ;;  %v11199_v14 = vpop.permute.xlu0 %2063  ;;  %v11206_v27 = vsel %vm2384_vm2, %v2359_v21, %v2066_v36  ;;  %v2296_v21 = vsel %vm2083_vm1, %v12180_v40, %v1724_v37  ;;  %v12183_v40 = vld [vmem:[#allocation50_spill] sm:$0xff] }
 0x1fd   : > { %8167 = vmatprep.mubr.msk.bf16.mxu1 %vm2761_vm3, %v11193_v35  ;;  %v2526_v2 = vsel %vm2384_vm2, %v2296_v21, %v2024_v58  ;;  %v12184_v21 = vld [vmem:[#allocation48_spill] sm:$0xff] }
 0x1fe   : > { %v11235_v4 = vcombine.low %v2526_v2, %v12183_v40  ;;  %v9310_v40 = vld [vmem:[%s12019_s1 + $0x2c] ss:$0 sps:$4 sm:$0xff]  }
 0x1ff   : > { %v2070_v33 = vpop.permute.xlu1 %2069 }
 0x200   : > { %8476 = vmatmul.mubr.msk.bf16.gmra.mrb[16].mxu0 %vm2761_vm3, %v12169_v57  ;;  %v2068_v5 = vpop.permute.xlu0 %2067 }
 0x201   : > { %8479 = vmatprep.mubr.msk.bf16.mxu0 %vm2761_vm3, %v12171_v44  ;;  %v11213_v45 = vsel %vm2384_vm2, %v2362_v31, %v2068_v5  ;;  %v12181_v31 = vld [vmem:[#allocation45_spill] sm:$0xff] }
 0x202   : > { %v2365_v5 = vsel %vm2083_vm1, %v12181_v31, %v1770_v19 }
 0x203   : > { %v1774_v13 = vpop.permute.xlu1 %1773  ;;  %v11238_v58 = vsel %vm2384_vm2, %v2365_v5, %v2070_v33 }
 0x204   : > { %8168 = vmatmul.mubr.msk.bf16.gmra.mrb[48].mxu1 %vm2761_vm3, %v10657_v41  ;;  %v1772_v36 = vpop.permute.xlu0 %1771  ;;  %v2371_v19 = vsel %vm2083_vm1, %v12184_v21, %v1774_v13  ;;  %v12186_v21 = vld [vmem:[#allocation36_spill] sm:$0xff] }
 0x205   : > { %8171 = vmatprep.mubr.msk.bf16.mxu1 %vm2761_vm3, %v10978_v56  ;;  %v2368_v37 = vsel %vm2083_vm1, %v12182_v22, %v1772_v36  ;;  %v12185_v22 = vld [vmem:[#allocation53_spill] sm:$0xff] }
 0x207   : > { %v11228_v49 = vpop.permute.xlu1 %1777 }
 0x208   : > { %8480 = vmatmul.mubr.msk.bf16.gmra.mrb[20].mxu0 %vm2761_vm3, %v12174_v10  ;;  %v1776_v54 = vpop.permute.xlu0 %1775 }
 0x209   : > { %8483 = vmatprep.mubr.msk.bf16.mxu0 %vm2761_vm3, %v11156_v38  ;;  %v2374_v36 = vsel %vm2083_vm1, %v12185_v22, %v1776_v54 }
 0x20b   : > { %v2074_v2 = vpop.permute.xlu1 %2073 }
 0x20c   : > { %8172 = vmatmul.mubr.msk.bf16.gmra.mrb[52].mxu1 %vm2761_vm3, %v10984_v39  ;;  %v2072_v31 = vpop.permute.xlu0 %2071  ;;  %v11254_v5 = vsel %vm2384_vm2, %v2371_v19, %v2074_v2  ;;  %v2113_v19 = vsel %vm2083_vm1, %v12186_v21, %v11151_v32  ;;  %v12192_v21 = vld [vmem:[#allocation52_spill] sm:$0xff] }
 0x20d   : > { %8175 = vmatprep.mubr.msk.bf16.mxu1 %vm2761_vm3, %v11235_v4  ;;  %v11247_v38 = vsel %vm2384_vm2, %v2368_v37, %v2072_v31  ;;  %v2404_v31 = vsel %vm2384_vm2, %v2113_v19, %v11145_v30  ;;  %v2377_v19 = vsel %vm2083_vm1, %v12192_v21, %v11228_v49  ;;  %v12193_v49 = vld [vmem:[#allocation4_spill] sm:$0xff] }
 0x20e   : > { %v7535_v33 = vcombine.low %v11238_v58, %v11247_v38  ;;  %v12202_v21 = vld [vmem:[#allocation16_spill] sm:$0xff] }
 0x210   : > { %8484 = vmatmul.mubr.msk.bf16.gmra.mrb[24].mxu0 %vm2761_vm3, %v10492_v52  ;;  %v2076_v13 = vpop.permute.xlu0 %2075 }
 0x211   : > { %8487 = vmatprep.mubr.msk.bf16.mxu0 %vm2761_vm3, %v10534_v12  ;;  %v11261_v37 = vsel %vm2384_vm2, %v2374_v36, %v2076_v13 }
 0x212   : > { %v7536_v54 = vcombine.low %v11254_v5, %v11261_v37 }
 0x214   : > { %8176 = vmatmul.mubr.msk.bf16.gmra.mrb[56].mxu1 %vm2761_vm3, %v11004_v34 }
 0x215   : > { %8179 = vmatprep.mubr.msk.bf16.mxu1 %vm2761_vm3, %v11018_v26 }
 0x218   : > { %8488 = vmatmul.mubr.msk.bf16.gmra.mrb[28].mxu0 %vm2761_vm3, %v10585_v11 }
 0x219   : > { %8491 = vmatprep.mubr.msk.bf16.mxu0 %vm2761_vm3, %v11193_v35 }
 0x21c   : > { %8180 = vmatmul.mubr.msk.bf16.gmra.mrb[60].mxu1 %vm2761_vm3, %v11024_v62 }
 0x21d   : > { %8187 = vmatprep.mubr.msk.bf16.mxu1 %vm2761_vm3, %v9818_v48  ;;  %v4059_v48 = vsel %vm2858_vm0, %v9310_v40, 0 }
 0x220   : > { %8492 = vmatmul.mubr.msk.bf16.gmra.mrb[32].mxu0 %vm2761_vm3, %v10657_v41 }
 0x221   : > { %8495 = vmatprep.mubr.msk.bf16.mxu0 %vm2761_vm3, %v10978_v56 }
 0x224   : > { %8188 = vmatmul.mubr.msk.bf16.vlgmr.msra.gmra.mrb[0].mxu1 %vm2761_vm3, %v9904_v60  ;;  %v12187_v60 = vld [vmem:[#allocation3_spill] sm:$0xff] }
 0x225   : > { %8252 = vmatpush3.bf16.msra.mxu1 %v10963_v24  ;;  %8191 = vmatprep.mubr.msk.bf16.mxu1 %vm2761_vm3, %v9950_v61  ;;  %v7328_v32 = vcombine.low %v12187_v60, %v2404_v31  ;;  %v11304_v61 = vld [vmem:[%s12019_s1 + $0x30] sm:$0xff]  }
 0x226   : > { %9178 = vmatprep.subr.msk.bf16.mxu1 %vm2858_vm0, %v9310_v40  ;;  %v12188_v24 = vld [vmem:[#allocation40_spill] sm:$0xff]  ;;  %v11355_v40 = vcombine.low %v11247_v38, %v11254_v5  ;;  %v12224_v38 = vld [vmem:[#allocation14_spill] sm:$0xff] }
 0x227   : > { %v2326_v30 = vsel %vm2083_vm1, %v12188_v24, %v11160_v53  ;;  %v12189_v53 = vld [vmem:[#allocation24_spill] sm:$0xff]  ;;  %v9313_v24 = vld [vmem:[%s12019_s1 + $0x68] ss:$0 sps:$4 sm:$0xff]  }
 0x228   : > { %8496 = vmatmul.mubr.msk.bf16.gmra.mrb[36].mxu0 %vm2761_vm3, %v10984_v39  ;;  %v2546_v22 = vsel %vm2384_vm2, %v2326_v30, %v11171_v42  ;;  %v12195_v30 = vld [vmem:[#allocation5_spill] sm:$0xff] }
 0x229   : > { %8499 = vmatprep.mubr.msk.bf16.mxu0 %vm2761_vm3, %v11235_v4  ;;  %8254 = vmatpush3.bf16.msra.mxu1 %v4059_v48  ;;  %v11322_v36 = vcombine.low %v2546_v22, %v11167_v59  ;;  %v12190_v59 = vld [vmem:[#allocation42_spill] sm:$0xff]  ;;  %v2078_v48 = vpop.permute.xlu1 %2077 }
 0x22a   : > { %8659 = vmatprep.subr.bf16.mxu1 %v11304_v61  ;;  %v2356_v42 = vsel %vm2083_vm1, %v12190_v59, %v11181_v55  ;;  %v12191_v55 = vld [vmem:[#allocation27_spill] sm:$0xff]  ;;  %v11371_v31 = vsel %vm2384_vm2, %v2377_v19, %v2078_v48  ;;  %v12196_v22 = vld [vmem:[#allocation6_spill] sm:$0xff]  ;;  %v12203_v19 = vld [vmem:[#allocation17_spill] sm:$0xff] }
 0x22b   : > { %v2566_v2 = vsel %vm2384_vm2, %v2356_v42, %v11199_v14  ;;  %v11361_v14 = vcombine.low %v11213_v45, %v11238_v58  ;;  %v11379_v60 = vcombine.low %v11261_v37, %v11371_v31  ;;  %v12197_v59 = vld [vmem:[#allocation7_spill] sm:$0xff]  ;;  %v12198_v42 = vld [vmem:[#allocation8_spill] sm:$0xff] }
 0x22c   : > { %8192 = vmatmul.mubr.msk.bf16.gmra.mrb[4].mxu1 %vm2761_vm3, %v7328_v32  ;;  %v7493_v13 = vcombine.low %v2566_v2, %v11206_v27  ;;  %v12194_v32 = vld [vmem:[#allocation43_spill] sm:$0xff] }
 0x22d   : > { %8195 = vmatprep.mubr.msk.bf16.mxu1 %vm2761_vm3, %v9836_v3  ;;  %v12200_v2 = vld [vmem:[#allocation11_spill] sm:$0xff] }
 0x22e   : > { %v12204_v48 = vld [vmem:[#allocation19_spill] sm:$0xff] }
 0x230   : > { %8500 = vmatmul.mubr.msk.bf16.gmra.mrb[40].mxu0 %vm2761_vm3, %v11004_v34 }
 0x231   : > { %8503 = vmatprep.mubr.msk.bf16.mxu0 %vm2761_vm3, %v11018_v26 }
 0x234   : > { %8196 = vmatmul.mubr.msk.bf16.gmra.mrb[8].mxu1 %vm2761_vm3, %v9925_v46 }
 0x235   : > { %8199 = vmatprep.mubr.msk.bf16.mxu1 %vm2761_vm3, %v9973_v47 }
 0x238   : > { %8504 = vmatmul.mubr.msk.bf16.gmra.mrb[44].mxu0 %vm2761_vm3, %v11024_v62 }
 0x239   : > { %8507 = vmatprep.mubr.msk.bf16.mxu0 %vm2761_vm3, %v11322_v36 }
 0x23c   : > { %8200 = vmatmul.mubr.msk.bf16.gmra.mrb[12].mxu1 %vm2761_vm3, %v12189_v53  ;;  %v5984_v53 = vsel %vm2858_vm0, %v9313_v24, 0 }
 0x23d   : > { %8203 = vmatprep.mubr.msk.bf16.mxu1 %vm2761_vm3, %v10042_v1 }
 0x240   : > { %8508 = vmatmul.mubr.msk.bf16.gmra.mrb[48].mxu0 %vm2761_vm3, %v11052_v0 }
 0x241   : > { %8511 = vmatprep.mubr.msk.bf16.mxu0 %vm2761_vm3, %v11071_v51 }
 0x244   : > { %8204 = vmatmul.mubr.msk.bf16.gmra.mrb[16].mxu1 %vm2761_vm3, %v10094_v28 }
 0x245   : > { %8207 = vmatprep.mubr.msk.bf16.mxu1 %vm2761_vm3, %v10123_v7 }
 0x248   : > { %8512 = vmatmul.mubr.msk.bf16.gmra.mrb[52].mxu0 %vm2761_vm3, %v11083_v6 }
 0x249   : > { %8515 = vmatprep.mubr.msk.bf16.mxu0 %vm2761_vm3, %v7493_v13  ;;  %v12201_v13 = vld [vmem:[#allocation13_spill] sm:$0xff] }
 0x24c   : > { %8208 = vmatmul.mubr.msk.bf16.gmra.mrb[20].mxu1 %vm2761_vm3, %v12191_v55 }
 0x24d   : > { %8211 = vmatprep.mubr.msk.bf16.mxu1 %vm2761_vm3, %v12159_v8 }
 0x250   : > { %8516 = vmatmul.mubr.msk.bf16.gmra.mrb[56].mxu0 %vm2761_vm3, %v11361_v14 }
 0x251   : > { %8519 = vmatprep.mubr.msk.bf16.mxu0 %vm2761_vm3, %v11355_v40 }
 0x254   : > { %8212 = vmatmul.mubr.msk.bf16.gmra.mrb[24].mxu1 %vm2761_vm3, %v12160_v29 }
 0x255   : > { %8215 = vmatprep.mubr.msk.bf16.mxu1 %vm2761_vm3, %v12166_v50 }
 0x258   : > { %8520 = vmatmul.mubr.msk.bf16.gmra.mrb[60].mxu0 %vm2761_vm3, %v11379_v60 }
 0x259   : > { %8527 = vmatprep.mubr.msk.bf16.mxu0 %vm2761_vm3, %v12193_v49  ;;  %v12205_v49 = vld [vmem:[#allocation21_spill] sm:$0xff] }
 0x25c   : > { %8216 = vmatmul.mubr.msk.bf16.gmra.mrb[28].mxu1 %vm2761_vm3, %v12194_v32 }
 0x25d   : > { %8219 = vmatprep.mubr.msk.bf16.mxu1 %vm2761_vm3, %v12169_v57 }
 0x260   : > { %8528 = vmatmul.mubr.msk.bf16.vlgmr.msra.gmra.mrb[0].mxu0 %vm2761_vm3, %v12195_v30  ;;  %v12207_v30 = vld [vmem:[#allocation26_spill] sm:$0xff] }
 0x261   : > { %8531 = vmatprep.mubr.msk.bf16.mxu0 %vm2761_vm3, %v12196_v22  ;;  %8592 = vmatpush3.bf16.msra.mxu0 %v11135_v23  ;;  %v12199_v23 = vld [vmem:[#allocation9_spill] sm:$0xff]  ;;  %v12208_v22 = vld [vmem:[#allocation28_spill] sm:$0xff] }
 0x262   : > { %9184 = vmatprep.subr.msk.bf16.mxu0 %vm2858_vm0, %v9313_v24  ;;  %v12206_v24 = vld [vmem:[#allocation25_spill] sm:$0xff] }
 0x264   : > { %8220 = vmatmul.mubr.msk.bf16.gmra.mrb[32].mxu1 %vm2761_vm3, %v12171_v44 }
 0x265   : > { %8223 = vmatprep.mubr.msk.bf16.mxu1 %vm2761_vm3, %v12174_v10  ;;  %8594 = vmatpush3.bf16.msra.mxu0 %v5984_v53  ;;  %v12209_v53 = vld [vmem:[#allocation29_spill] sm:$0xff] }
 0x268   : > { %8532 = vmatmul.mubr.msk.bf16.gmra.mrb[4].mxu0 %vm2761_vm3, %v12197_v59  ;;  %v12210_v59 = vld [vmem:[#allocation34_spill] sm:$0xff] }
 0x269   : > { %8535 = vmatprep.mubr.msk.bf16.mxu0 %vm2761_vm3, %v12198_v42  ;;  %v12211_v42 = vld [vmem:[#allocation37_spill] sm:$0xff] }
 0x26c   : > { %8224 = vmatmul.mubr.msk.bf16.gmra.mrb[36].mxu1 %vm2761_vm3, %v10890_v20 }
 0x26d   : > { %8227 = vmatprep.mubr.msk.bf16.mxu1 %vm2761_vm3, %v10492_v52 }
 0x270   : > { %8536 = vmatmul.mubr.msk.bf16.gmra.mrb[8].mxu0 %vm2761_vm3, %v12199_v23  ;;  %v12212_v23 = vld [vmem:[#allocation44_spill] sm:$0xff] }
 0x271   : > { %8539 = vmatprep.mubr.msk.bf16.mxu0 %vm2761_vm3, %v12200_v2  ;;  %v9366_v2 = vld [vmem:[%s12019_s1 + $0x38] ss:$0 sps:$4 sm:$0xff]  }
 0x274   : > { %8228 = vmatmul.mubr.msk.bf16.gmra.mrb[40].mxu1 %vm2761_vm3, %v10534_v12 }
 0x275   : > { %8231 = vmatprep.mubr.msk.bf16.mxu1 %vm2761_vm3, %v10585_v11 }
 0x278   : > { %8540 = vmatmul.mubr.msk.bf16.gmra.mrb[12].mxu0 %vm2761_vm3, %v12201_v13  ;;  %v12214_v13 = vld [vmem:[#allocation51_spill] sm:$0xff] }
 0x279   : > { %8543 = vmatprep.mubr.msk.bf16.mxu0 %vm2761_vm3, %v12202_v21  ;;  %v12215_v21 = vld [vmem:[#allocation2_spill] sm:$0xff] }
 0x27c   : > { %8232 = vmatmul.mubr.msk.bf16.gmra.mrb[44].mxu1 %vm2761_vm3, %v10951_v17 }
 0x27d   : > { %8235 = vmatprep.mubr.msk.bf16.mxu1 %vm2761_vm3, %v10657_v41 }
 0x280   : > { %8544 = vmatmul.mubr.msk.bf16.gmra.mrb[16].mxu0 %vm2761_vm3, %v12203_v19  ;;  %v12221_v19 = vcombine.low %v11206_v27, %v11213_v45 }
 0x281   : > { %8547 = vmatprep.mubr.msk.bf16.mxu0 %vm2761_vm3, %v12204_v48  ;;  %v1780_v48 = vpop.permute.xlu0 %1779 }
 0x284   : > { %8236 = vmatmul.mubr.msk.bf16.gmra.mrb[48].mxu1 %vm2761_vm3, %v10978_v56 }
 0x285   : > { %8239 = vmatprep.mubr.msk.bf16.mxu1 %vm2761_vm3, %v10984_v39 }
 0x288   : > { %8548 = vmatmul.mubr.msk.bf16.gmra.mrb[20].mxu0 %vm2761_vm3, %v12205_v49  ;;  %v12222_v49 = vld [vmem:[#allocation30_spill] sm:$0xff] }
 0x289   : > { %8551 = vmatprep.mubr.msk.bf16.mxu0 %vm2761_vm3, %v12206_v24 }
 0x28c   : > { %8240 = vmatmul.mubr.msk.bf16.gmra.mrb[52].mxu1 %vm2761_vm3, %v10996_v16 }
 0x28d   : > { %8243 = vmatprep.mubr.msk.bf16.mxu1 %vm2761_vm3, %v11004_v34 }
 0x290   : > { %8552 = vmatmul.mubr.msk.bf16.gmra.mrb[24].mxu0 %vm2761_vm3, %v12207_v30 }
 0x291   : > { %8555 = vmatprep.mubr.msk.bf16.mxu0 %vm2761_vm3, %v12208_v22 }
 0x294   : > { %8244 = vmatmul.mubr.msk.bf16.gmra.mrb[56].mxu1 %vm2761_vm3, %v11018_v26 }
 0x295   : > { %8247 = vmatprep.mubr.msk.bf16.mxu1 %vm2761_vm3, %v11024_v62 }
 0x298   : > { %8556 = vmatmul.mubr.msk.bf16.gmra.mrb[28].mxu0 %vm2761_vm3, %v12209_v53 }
 0x299   : > { %8559 = vmatprep.mubr.msk.bf16.mxu0 %vm2761_vm3, %v12210_v59 }
 0x29c   : > { %8248 = vmatmul.mubr.msk.bf16.gmra.mrb[60].mxu1 %vm2761_vm3, %v11046_v25 }
 0x29d   : > { %8255 = vmatprep.mubr.msk.bf16.mxu1 %vm2761_vm3, %v10972_v15  ;;  %v12213_v15 = vld [vmem:[#allocation47_spill] sm:$0xff] }
 0x2a0   : > { %8560 = vmatmul.mubr.msk.bf16.gmra.mrb[32].mxu0 %vm2761_vm3, %v12211_v42 }
 0x2a1   : > { %8563 = vmatprep.mubr.msk.bf16.mxu0 %vm2761_vm3, %v12212_v23 }
 0x2a4   : > { %8256 = vmatmul.mubr.msk.bf16.vlgmr.msra.gmra.mrb[0].mxu1 %vm2761_vm3, %v9836_v3  ;;  %v12216_v3 = vld [vmem:[#allocation54_spill] sm:$0xff] }
 0x2a5   : > { %8661 = vmatpush3.bf16.msra.mxu1 %v11304_v61  ;;  %8259 = vmatprep.mubr.msk.bf16.mxu1 %vm2761_vm3, %v9925_v46  ;;  %v12217_v46 = vld [vmem:[#allocation57_spill] sm:$0xff]  ;;  %v12220_v61 = vld [vmem:[#allocation10_spill] sm:$0xff] }
 0x2a6   : > { %9180 = vmatprep.subr.msk.bf16.mxu1 %vm2858_vm0, %v9366_v2  ;;  %v12223_v2 = vld [vmem:[#allocation55_spill] sm:$0xff] }
 0x2a8   : > { %8564 = vmatmul.mubr.msk.bf16.gmra.mrb[36].mxu0 %vm2761_vm3, %v12213_v15 }
 0x2a9   : > { %8567 = vmatprep.mubr.msk.bf16.mxu0 %vm2761_vm3, %v12214_v13  ;;  %8662 = vmatpush3.bf16.msra.mxu1 %v12215_v21  ;;  %v2380_v21 = vsel %vm2083_vm1, %v12223_v2, %v1780_v48 }
 0x2ac   : > { %8260 = vmatmul.mubr.msk.bf16.gmra.mrb[4].mxu1 %vm2761_vm3, %v9973_v47  ;;  %v12218_v47 = vld [vmem:[#allocation56_spill] sm:$0xff] }
 0x2ad   : > { %8263 = vmatprep.mubr.msk.bf16.mxu1 %vm2761_vm3, %v11012_v43  ;;  %v12219_v43 = vld [vmem:[#allocation58_spill] sm:$0xff] }
 0x2b0   : > { %8568 = vmatmul.mubr.msk.bf16.gmra.mrb[40].mxu0 %vm2761_vm3, %v12216_v3 }
 0x2b1   : > { %8571 = vmatprep.mubr.msk.bf16.mxu0 %vm2761_vm3, %v10899_v9 }
 0x2b4   : > { %8264 = vmatmul.mubr.msk.bf16.gmra.mrb[8].mxu1 %vm2761_vm3, %v10042_v1 }
 0x2b5   : > { %8267 = vmatprep.mubr.msk.bf16.mxu1 %vm2761_vm3, %v10094_v28 }
 0x2b8   : > { %8572 = vmatmul.mubr.msk.bf16.gmra.mrb[44].mxu0 %vm2761_vm3, %v10923_v18 }
 0x2b9   : > { %8575 = vmatprep.mubr.msk.bf16.mxu0 %vm2761_vm3, %v11175_v63 }
 0x2bc   : > { %8268 = vmatmul.mubr.msk.bf16.gmra.mrb[12].mxu1 %vm2761_vm3, %v10123_v7 }
 0x2bd   : > { %8271 = vmatprep.mubr.msk.bf16.mxu1 %vm2761_vm3, %v12217_v46  ;;  %v2080_v46 = vpop.permute.xlu1 %2079 }
 0x2be   : > { %v11526_v27 = vsel %vm2384_vm2, %v2380_v21, %v2080_v46 }
 0x2bf   : > { %v7537_v45 = vcombine.low %v11371_v31, %v11526_v27 }
 0x2c0   : > { %8576 = vmatmul.mubr.msk.bf16.gmra.mrb[48].mxu0 %vm2761_vm3, %v12218_v47 }
 0x2c1   : > { %8579 = vmatprep.mubr.msk.bf16.mxu0 %vm2761_vm3, %v12219_v43 }
 0x2c4   : > { %8272 = vmatmul.mubr.msk.bf16.gmra.mrb[16].mxu1 %vm2761_vm3, %v12159_v8 }
 0x2c5   : > { %8275 = vmatprep.mubr.msk.bf16.mxu1 %vm2761_vm3, %v12160_v29 }
 0x2c8   : > { %8580 = vmatmul.mubr.msk.bf16.gmra.mrb[52].mxu0 %vm2761_vm3, %v12220_v61 }
 0x2c9   : > { %8583 = vmatprep.mubr.msk.bf16.mxu0 %vm2761_vm3, %v12221_v19 }
 0x2cc   : > { %8276 = vmatmul.mubr.msk.bf16.gmra.mrb[20].mxu1 %vm2761_vm3, %v12166_v50 }
 0x2cd   : > { %8279 = vmatprep.mubr.msk.bf16.mxu1 %vm2761_vm3, %v12222_v49 }
 0x2d0   : > { %8584 = vmatmul.mubr.msk.bf16.gmra.mrb[56].mxu0 %vm2761_vm3, %v7535_v33 }
 0x2d1   : > { %8587 = vmatprep.mubr.msk.bf16.mxu0 %vm2761_vm3, %v7536_v54 }
 0x2d4   : > { %8280 = vmatmul.mubr.msk.bf16.gmra.mrb[24].mxu1 %vm2761_vm3, %v12169_v57 }
 0x2d5   : > { %8283 = vmatprep.mubr.msk.bf16.mxu1 %vm2761_vm3, %v12171_v44 }
 0x2d8   : > { %8588 = vmatmul.mubr.msk.bf16.gmra.mrb[60].mxu0 %vm2761_vm3, %v7537_v45 }
 0x2d9   : > { %8595 = vmatprep.mubr.msk.bf16.mxu0 %vm2761_vm3, %v10042_v1  ;;  %v12225_v1 = vld [vmem:[#allocation12_spill] sm:$0xff] }
 0x2dc   : > { %8284 = vmatmul.mubr.msk.bf16.gmra.mrb[28].mxu1 %vm2761_vm3, %v12174_v10 }
 0x2dd   : > { %8287 = vmatprep.mubr.msk.bf16.mxu1 %vm2761_vm3, %v12224_v38 }
 0x2e0   : > { %8596 = vmatmul.mubr.msk.bf16.vlgmr.msra.gmra.mrb[0].mxu0 %vm2761_vm3, %v10094_v28  ;;  %v1782_v28 = vpop.permute.xlu0 %1781 }
 0x2e1   : > { %8599 = vmatprep.mubr.msk.bf16.mxu0 %vm2761_vm3, %v10123_v7 }
 0x2e4   : > { %8288 = vmatmul.mubr.msk.bf16.gmra.mrb[32].mxu1 %vm2761_vm3, %v10492_v52 }
 0x2e5   : > { %8291 = vmatprep.mubr.msk.bf16.mxu1 %vm2761_vm3, %v10534_v12 }
 0x2e8   : > { %8600 = vmatmul.mubr.msk.bf16.gmra.mrb[4].mxu0 %vm2761_vm3, %v12191_v55 }
 0x2e9   : > { %8603 = vmatprep.mubr.msk.bf16.mxu0 %vm2761_vm3, %v12159_v8 }
 0x2ec   : > { %8292 = vmatmul.mubr.msk.bf16.gmra.mrb[36].mxu1 %vm2761_vm3, %v10585_v11 }
 0x2ed   : > { %8295 = vmatprep.mubr.msk.bf16.mxu1 %vm2761_vm3, %v11193_v35 }
 0x2f0   : > { %8604 = vmatmul.mubr.msk.bf16.gmra.mrb[8].mxu0 %vm2761_vm3, %v12160_v29 }
 0x2f1   : > { %8607 = vmatprep.mubr.msk.bf16.mxu0 %vm2761_vm3, %v12166_v50 }
 0x2f4   : > { %8296 = vmatmul.mubr.msk.bf16.gmra.mrb[40].mxu1 %vm2761_vm3, %v10657_v41 }
 0x2f5   : > { %8299 = vmatprep.mubr.msk.bf16.mxu1 %vm2761_vm3, %v10978_v56 }
 0x2f8   : > { %8608 = vmatmul.mubr.msk.bf16.gmra.mrb[12].mxu0 %vm2761_vm3, %v12194_v32 }
 0x2f9   : > { %8611 = vmatprep.mubr.msk.bf16.mxu0 %vm2761_vm3, %v12169_v57 }
 0x2fc   : > { %8300 = vmatmul.mubr.msk.bf16.gmra.mrb[44].mxu1 %vm2761_vm3, %v10984_v39 }
 0x2fd   : > { %8303 = vmatprep.mubr.msk.bf16.mxu1 %vm2761_vm3, %v11235_v4 }
 0x300   : > { %8612 = vmatmul.mubr.msk.bf16.gmra.mrb[16].mxu0 %vm2761_vm3, %v12171_v44 }
 0x301   : > { %8615 = vmatprep.mubr.msk.bf16.mxu0 %vm2761_vm3, %v12174_v10 }
 0x304   : > { %8304 = vmatmul.mubr.msk.bf16.gmra.mrb[48].mxu1 %vm2761_vm3, %v11004_v34 }
 0x305   : > { %8307 = vmatprep.mubr.msk.bf16.mxu1 %vm2761_vm3, %v11018_v26 }
 0x308   : > { %8616 = vmatmul.mubr.msk.bf16.gmra.mrb[20].mxu0 %vm2761_vm3, %v10890_v20 }
 0x309   : > { %8619 = vmatprep.mubr.msk.bf16.mxu0 %vm2761_vm3, %v10492_v52  ;;  %v2082_v52 = vpop.permute.xlu1 %2081 }
 0x30c   : > { %8308 = vmatmul.mubr.msk.bf16.gmra.mrb[52].mxu1 %vm2761_vm3, %v11024_v62 }
 0x30d   : > { %8311 = vmatprep.mubr.msk.bf16.mxu1 %vm2761_vm3, %v11322_v36 }
 0x310   : > { %8620 = vmatmul.mubr.msk.bf16.gmra.mrb[24].mxu0 %vm2761_vm3, %v10534_v12  ;;  %v12226_v12 = vld [vmem:[#allocation15_spill] sm:$0xff] }
 0x311   : > { %8623 = vmatprep.mubr.msk.bf16.mxu0 %vm2761_vm3, %v10585_v11  ;;  %v2383_v7 = vsel %vm2083_vm1, %v12226_v12, %v1782_v28 }
 0x312   : > { %v2584_v11 = vsel %vm2384_vm2, %v2383_v7, %v2082_v52 }
 0x314   : > { %8312 = vmatmul.mubr.msk.bf16.gmra.mrb[56].mxu1 %vm2761_vm3, %v11052_v0 }
 0x315   : > { %8315 = vmatprep.mubr.msk.bf16.mxu1 %vm2761_vm3, %v11071_v51 }
 0x318   : > { %8624 = vmatmul.mubr.msk.bf16.gmra.mrb[28].mxu0 %vm2761_vm3, %v10951_v17 }
 0x319   : > { %8627 = vmatprep.mubr.msk.bf16.mxu0 %vm2761_vm3, %v10657_v41  ;;  %v7575_v41 = vcombine.low %v11526_v27, %v2584_v11 }
 0x31c   : > { %8316 = vmatmul.mubr.msk.bf16.gmra.mrb[60].mxu1 %vm2761_vm3, %v11083_v6 }
 0x31d   : > { %8355 = vmatprep.mubr.msk.bf16.mxu1 %vm2761_vm3, %v12206_v24 }
 0x320   : > { %8628 = vmatmul.mubr.msk.bf16.gmra.mrb[32].mxu0 %vm2761_vm3, %v10978_v56 }
 0x321   : > { %8631 = vmatprep.mubr.msk.bf16.mxu0 %vm2761_vm3, %v10984_v39 }
 0x324   : > { %8356 = vmatmul.mubr.msk.bf16.vlgmr.msra.gmra.mrb[32].mxu1 %vm2761_vm3, %v12207_v30 }
 0x325   : > { %8359 = vmatprep.mubr.msk.bf16.mxu1 %vm2761_vm3, %v12208_v22 }
 0x328   : > { %8632 = vmatmul.mubr.msk.bf16.gmra.mrb[36].mxu0 %vm2761_vm3, %v10996_v16 }
 0x329   : > { %8635 = vmatprep.mubr.msk.bf16.mxu0 %vm2761_vm3, %v11004_v34 }
 0x32c   : > { %8360 = vmatmul.mubr.msk.bf16.gmra.mrb[36].mxu1 %vm2761_vm3, %v12209_v53 }
 0x32d   : > { %8363 = vmatprep.mubr.msk.bf16.mxu1 %vm2761_vm3, %v12210_v59 }
 0x330   : > { %8636 = vmatmul.mubr.msk.bf16.gmra.mrb[40].mxu0 %vm2761_vm3, %v11018_v26 }
 0x331   : > { %8639 = vmatprep.mubr.msk.bf16.mxu0 %vm2761_vm3, %v11024_v62 }
 0x334   : > { %8364 = vmatmul.mubr.msk.bf16.gmra.mrb[40].mxu1 %vm2761_vm3, %v12211_v42 }
 0x335   : > { %8367 = vmatprep.mubr.msk.bf16.mxu1 %vm2761_vm3, %v12212_v23 }
 0x338   : > { %8640 = vmatmul.mubr.msk.bf16.gmra.mrb[44].mxu0 %vm2761_vm3, %v11046_v25 }
 0x339   : > { %8643 = vmatprep.mubr.msk.bf16.mxu0 %vm2761_vm3, %v11052_v0 }
 0x33c   : > { %8368 = vmatmul.mubr.msk.bf16.gmra.mrb[44].mxu1 %vm2761_vm3, %v12213_v15 }
 0x33d   : > { %8371 = vmatprep.mubr.msk.bf16.mxu1 %vm2761_vm3, %v12214_v13 }
 0x340   : > { %8644 = vmatmul.mubr.msk.bf16.gmra.mrb[48].mxu0 %vm2761_vm3, %v11071_v51 }
 0x341   : > { %8647 = vmatprep.mubr.msk.bf16.mxu0 %vm2761_vm3, %v11083_v6 }
 0x344   : > { %8372 = vmatmul.mubr.msk.bf16.gmra.mrb[48].mxu1 %vm2761_vm3, %v12216_v3 }
 0x345   : > { %8375 = vmatprep.mubr.msk.bf16.mxu1 %vm2761_vm3, %v10899_v9 }
 0x348   : > { %8648 = vmatmul.mubr.msk.bf16.gmra.mrb[52].mxu0 %vm2761_vm3, %v12225_v1 }
 0x349   : > { %8651 = vmatprep.mubr.msk.bf16.mxu0 %vm2761_vm3, %v11361_v14 }
 0x34c   : > { %8376 = vmatmul.mubr.msk.bf16.gmra.mrb[52].mxu1 %vm2761_vm3, %v10923_v18 }
 0x34d   : > { %8379 = vmatprep.mubr.msk.bf16.mxu1 %vm2761_vm3, %v11175_v63 }
 0x350   : > { %8652 = vmatmul.mubr.msk.bf16.gmra.mrb[56].mxu0 %vm2761_vm3, %v11355_v40 }
 0x351   : > { %8655 = vmatprep.mubr.msk.bf16.mxu0 %vm2761_vm3, %v11379_v60 }
 0x354   : > { %8380 = vmatmul.mubr.msk.bf16.gmra.mrb[56].mxu1 %vm2761_vm3, %v12218_v47 }
 0x355   : > { %8383 = vmatprep.mubr.msk.bf16.mxu1 %vm2761_vm3, %v12219_v43 }
 0x358   : > { %8656 = vmatmul.mubr.msk.bf16.gmra.mrb[60].mxu0 %vm2761_vm3, %v7575_v41 }
 0x35c   : > { %8384 = vmatmul.mubr.msk.bf16.gmra.mrb[60].mxu1 %vm2761_vm3, %v12220_v61 }
 0x377   : > { %v8257_v20 = vpop.f32.mrb[0].mxu1 }
 0x378   : > { %v4095_v9 = vpop.f32.mrb[1].mxu1 }
 0x379   : > { %v8258_v18 = vpop.f32.mrb[2].mxu1 }
 0x37a   : > { %v4098_v17 = vpop.f32.mrb[3].mxu1 }
 0x37f   : > { %v8261_v56 = vpop.f32.mrb[4].mxu1 }
 0x380   : > { %v11668_v39 = vpop.f32.mrb[5].mxu1 }
 0x381   : > { %v11670_v16 = vpop.f32.mrb[6].mxu1 }
 0x382   : > { %v11672_v34 = vpop.f32.mrb[7].mxu1 }
 0x387   : > { %v11674_v26 = vpop.f32.mrb[8].mxu1 }
 0x388   : > { %v11676_v62 = vpop.f32.mrb[9].mxu1 }
 0x389   : > { %v11678_v25 = vpop.f32.mrb[10].mxu1 }
 0x38a   : > { %v11680_v0 = vpop.f32.mrb[11].mxu1 }
 0x38f   : > { %v11682_v4 = vpop.f32.mrb[12].mxu1 }
 0x390   : > { %v11684_v51 = vpop.f32.mrb[13].mxu1 }
 0x391   : > { %v11686_v6 = vpop.f32.mrb[14].mxu1 }
 0x392   : > { %v11688_v8 = vpop.f32.mrb[15].mxu1 }
 0x397   : > { %v11690_v29 = vpop.f32.mrb[16].mxu1 }
 0x398   : > { %v11692_v50 = vpop.f32.mrb[17].mxu1 }
 0x399   : > { %v11694_v35 = vpop.f32.mrb[18].mxu1 }
 0x39a   : > { %v11696_v57 = vpop.f32.mrb[19].mxu1 }
 0x39f   : > { %v11698_v44 = vpop.f32.mrb[20].mxu1 }
 0x3a0   : > { %v11700_v10 = vpop.f32.mrb[21].mxu1 }
 0x3a1   : > { %v11702_v63 = vpop.f32.mrb[22].mxu1 }
 0x3a2   : > { %v11704_v58 = vpop.f32.mrb[23].mxu1 }
 0x3a7   : > { %v11706_v33 = vpop.f32.mrb[24].mxu1 }
 0x3a8   : > { %v11708_v5 = vpop.f32.mrb[25].mxu1 }
 0x3a9   : > { %v11710_v37 = vpop.f32.mrb[26].mxu1 }
 0x3aa   : > { %v11712_v54 = vpop.f32.mrb[27].mxu1 }
 0x3af   : > { %v11714_v36 = vpop.f32.mrb[28].mxu1 }
 0x3b0   : > { %v11716_v55 = vpop.f32.mrb[29].mxu1 }
 0x3b1   : > { %v11718_v40 = vpop.f32.mrb[30].mxu1 }
 0x3b2   : > { %v11720_v14 = vpop.f32.mrb[31].mxu1 }
 0x3b3   : > { %v8597_v31 = vpop.f32.mrb[0].mxu0 }
 0x3b4   : > { %v8663_v60 = vadd.f32 %v8597_v31, %v8257_v20  ;;  %v6020_v32 = vpop.f32.mrb[1].mxu0 }
 0x3b5   : > { %v8664_v24 = vadd.f32 %v6020_v32, %v4095_v9  ;;  %v8598_v30 = vpop.f32.mrb[2].mxu0 }
 0x3b6   : > { %v7679_v22 = vpack.c.bf16 %v8663_v60, %v8663_v60  ;;  %v8665_v53 = vadd.f32 %v8598_v30, %v8258_v18  ;;  %v6023_v59 = vpop.f32.mrb[3].mxu0  ;;  %v6796_v13 = vmul.f32 %v8663_v60, %v8663_v60  ;;  %v6664_v2 = vsel %vm6660_vm5, %v8663_v60, 0.0 }
 0x3b7   : > { %v7677_v42 = vpack.c.bf16 %v8664_v24, %v8664_v24  ;;  %v6794_v23 = vmul.f32 %v8664_v24, %v8664_v24  ;;  %v8666_v15 = vadd.f32 %v6023_v59, %v4098_v17  ;;  %v6661_v47 = vsel %vm6660_vm5, %v8664_v24, 0.0 }
 0x3b8   : > { %6598 = vst.msk [vmem:[%s11726_s11 + $0x8] sm:$0xf] %vm6595_vm4, %v7679_v22  ;;  %v7680_v3 = vpack.c.bf16 %v8665_v53, %v8665_v53  ;;  %v6797_v48 = vmul.f32 %v8665_v53, %v8665_v53  ;;  %v6861_v12 = vsel %vm6660_vm5, %v6796_v13, 0.0  ;;  %v6666_v11 = vsel %vm6660_vm5, %v8665_v53, 0.0 }
 0x3b9   : > { %6596 = vst.msk [vmem:[%s11726_s11] sm:$0xf] %vm6595_vm4, %v7677_v42  ;;  %v7678_v43 = vpack.c.bf16 %v8666_v15, %v8666_v15  ;;  %v6662_v61 = vsel %vm6660_vm5, %v8666_v15, 0.0  ;;  %v6795_v19 = vmul.f32 %v8666_v15, %v8666_v15  ;;  %v6858_v21 = vsel %vm6660_vm5, %v6794_v23, 0.0 }
 0x3ba   : > { %6599 = vst.msk [vmem:[%s11726_s11 + $0xc] sm:$0xf] %vm6595_vm4, %v7680_v3  ;;  %v6663_v49 = vadd.f32 %v6662_v61, %v6661_v47  ;;  %v6863_v41 = vsel %vm6660_vm5, %v6797_v48, 0.0 }
 0x3bb   : > { %6597 = vst.msk [vmem:[%s11726_s11 + $0x4] sm:$0xf] %vm6595_vm4, %v7678_v43  ;;  %v6859_v46 = vsel %vm6660_vm5, %v6795_v19, 0.0  ;;  %v8601_v27 = vpop.f32.mrb[4].mxu0 }
 0x3bc   : > { %v6665_v45 = vadd.f32 %v6664_v2, %v6663_v49  ;;  %v6860_v38 = vadd.f32 %v6859_v46, %v6858_v21  ;;  %v8667_v1 = vadd.f32 %v8601_v27, %v8261_v56  ;;  %v6036_v28 = vpop.f32.mrb[5].mxu0 }
 0x3bd   : > { %v8668_v7 = vadd.f32 %v6036_v28, %v11668_v39  ;;  %v8602_v52 = vpop.f32.mrb[6].mxu0 }
 0x3be   : > { %v6862_v20 = vadd.f32 %v6861_v12, %v6860_v38  ;;  %v7683_v9 = vpack.c.bf16 %v8667_v1, %v8667_v1  ;;  %v6039_v18 = vpop.f32.mrb[7].mxu0  ;;  %v6667_v31 = vadd.f32 %v6666_v11, %v6665_v45  ;;  %v8669_v24 = vadd.f32 %v8602_v52, %v11670_v16 }
 0x3bf   : > { %v7681_v17 = vpack.c.bf16 %v8668_v7, %v8668_v7  ;;  %v6668_v60 = vsel %vm6660_vm5, %v8668_v7, 0.0  ;;  %v6798_v56 = vmul.f32 %v8668_v7, %v8668_v7  ;;  %v8670_v39 = vadd.f32 %v6039_v18, %v11672_v34 }
 0x3c0   : > { %6602 = vst.msk [vmem:[%s11726_s11 + $0x18] sm:$0xf] %vm6595_vm4, %v7683_v9  ;;  %v6864_v32 = vadd.f32 %v6863_v41, %v6862_v20  ;;  %v6669_v30 = vadd.f32 %v6668_v60, %v6667_v31  ;;  %v6800_v53 = vmul.f32 %v8667_v1, %v8667_v1  ;;  %v7684_v42 = vpack.c.bf16 %v8669_v24, %v8669_v24 }
 0x3c1   : > { %6600 = vst.msk [vmem:[%s11726_s11 + $0x10] sm:$0xf] %vm6595_vm4, %v7681_v17  ;;  %v6865_v22 = vsel %vm6660_vm5, %v6798_v56, 0.0  ;;  %v7682_v23 = vpack.c.bf16 %v8670_v39, %v8670_v39  ;;  %v6670_v15 = vsel %vm6660_vm5, %v8670_v39, 0.0  ;;  %v6799_v13 = vmul.f32 %v8670_v39, %v8670_v39 }
 0x3c2   : > { %v6866_v59 = vadd.f32 %v6865_v22, %v6864_v32  ;;  %6603 = vst.msk [vmem:[%s11726_s11 + $0x1c] sm:$0xf] %vm6595_vm4, %v7684_v42  ;;  %v6671_v47 = vadd.f32 %v6670_v15, %v6669_v30  ;;  %v6672_v43 = vsel %vm6660_vm5, %v8667_v1, 0.0  ;;  %v6801_v61 = vmul.f32 %v8669_v24, %v8669_v24 }
 0x3c3   : > { %v8605_v3 = vpop.f32.mrb[8].mxu0  ;;  %6601 = vst.msk [vmem:[%s11726_s11 + $0x14] sm:$0xf] %vm6595_vm4, %v7682_v23  ;;  %v6867_v19 = vsel %vm6660_vm5, %v6799_v13, 0.0  ;;  %v6869_v2 = vsel %vm6660_vm5, %v6800_v53, 0.0 }
 0x3c4   : > { %v8671_v16 = vadd.f32 %v8605_v3, %v11674_v26  ;;  %v6052_v34 = vpop.f32.mrb[9].mxu0  ;;  %v6673_v21 = vadd.f32 %v6672_v43, %v6671_v47  ;;  %v6868_v46 = vadd.f32 %v6867_v19, %v6866_v59  ;;  %v6674_v26 = vsel %vm6660_vm5, %v8669_v24, 0.0 }
 0x3c5   : > { %v8672_v48 = vadd.f32 %v6052_v34, %v11676_v62  ;;  %v8606_v49 = vpop.f32.mrb[10].mxu0  ;;  %v6871_v11 = vsel %vm6660_vm5, %v6801_v61, 0.0 }
 0x3c6   : > { %v7687_v27 = vpack.c.bf16 %v8671_v16, %v8671_v16  ;;  %v6055_v45 = vpop.f32.mrb[11].mxu0  ;;  %v6870_v12 = vadd.f32 %v6869_v2, %v6868_v46  ;;  %v6675_v7 = vadd.f32 %v6674_v26, %v6673_v21  ;;  %v8673_v62 = vadd.f32 %v8606_v49, %v11678_v25 }
 0x3c7   : > { %v7685_v38 = vpack.c.bf16 %v8672_v48, %v8672_v48  ;;  %v6676_v1 = vsel %vm6660_vm5, %v8672_v48, 0.0  ;;  %v6802_v28 = vmul.f32 %v8672_v48, %v8672_v48  ;;  %v8674_v52 = vadd.f32 %v6055_v45, %v11680_v0 }
 0x3c8   : > { %6606 = vst.msk [vmem:[%s11726_s11 + $0x28] sm:$0xf] %vm6595_vm4, %v7687_v27  ;;  %v6804_v20 = vmul.f32 %v8671_v16, %v8671_v16  ;;  %v6677_v9 = vadd.f32 %v6676_v1, %v6675_v7  ;;  %v6872_v18 = vadd.f32 %v6871_v11, %v6870_v12  ;;  %v7688_v17 = vpack.c.bf16 %v8673_v62, %v8673_v62 }
 0x3c9   : > { %6604 = vst.msk [vmem:[%s11726_s11 + $0x20] sm:$0xf] %vm6595_vm4, %v7685_v38  ;;  %v6873_v41 = vsel %vm6660_vm5, %v6802_v28, 0.0  ;;  %v7686_v31 = vpack.c.bf16 %v8674_v52, %v8674_v52  ;;  %v6678_v60 = vsel %vm6660_vm5, %v8674_v52, 0.0  ;;  %v6803_v56 = vmul.f32 %v8674_v52, %v8674_v52 }
 0x3ca   : > { %v6874_v24 = vadd.f32 %v6873_v41, %v6872_v18  ;;  %6607 = vst.msk [vmem:[%s11726_s11 + $0x2c] sm:$0xf] %vm6595_vm4, %v7688_v17  ;;  %v6679_v25 = vadd.f32 %v6678_v60, %v6677_v9  ;;  %v6680_v30 = vsel %vm6660_vm5, %v8671_v16, 0.0  ;;  %v6805_v22 = vmul.f32 %v8673_v62, %v8673_v62 }
 0x3cb   : > { %v8609_v32 = vpop.f32.mrb[12].mxu0  ;;  %6605 = vst.msk [vmem:[%s11726_s11 + $0x24] sm:$0xf] %vm6595_vm4, %v7686_v31  ;;  %v6875_v53 = vsel %vm6660_vm5, %v6803_v56, 0.0  ;;  %v6877_v23 = vsel %vm6660_vm5, %v6804_v20, 0.0 }
 0x3cc   : > { %v8675_v0 = vadd.f32 %v8609_v32, %v11682_v4  ;;  %v6068_v39 = vpop.f32.mrb[13].mxu0  ;;  %v6681_v15 = vadd.f32 %v6680_v30, %v6679_v25  ;;  %v6876_v13 = vadd.f32 %v6875_v53, %v6874_v24  ;;  %v6682_v4 = vsel %vm6660_vm5, %v8673_v62, 0.0 }
 0x3cd   : > { %v8676_v59 = vadd.f32 %v6068_v39, %v11684_v51  ;;  %v8610_v42 = vpop.f32.mrb[14].mxu0  ;;  %v6879_v49 = vsel %vm6660_vm5, %v6805_v22, 0.0 }
 0x3ce   : > { %v7691_v3 = vpack.c.bf16 %v8675_v0, %v8675_v0  ;;  %v6071_v47 = vpop.f32.mrb[15].mxu0  ;;  %v6878_v61 = vadd.f32 %v6877_v23, %v6876_v13  ;;  %v6683_v19 = vadd.f32 %v6682_v4, %v6681_v15  ;;  %v8677_v51 = vadd.f32 %v8610_v42, %v11686_v6 }
 0x3cf   : > { %v7689_v34 = vpack.c.bf16 %v8676_v59, %v8676_v59  ;;  %v6684_v16 = vsel %vm6660_vm5, %v8676_v59, 0.0  ;;  %v6806_v43 = vmul.f32 %v8676_v59, %v8676_v59  ;;  %v8678_v48 = vadd.f32 %v6071_v47, %v11688_v8 }
 0x3d0   : > { %6610 = vst.msk [vmem:[%s11726_s11 + $0x38] sm:$0xf] %vm6595_vm4, %v7691_v3  ;;  %v6808_v21 = vmul.f32 %v8675_v0, %v8675_v0  ;;  %v6685_v46 = vadd.f32 %v6684_v16, %v6683_v19  ;;  %v6880_v27 = vadd.f32 %v6879_v49, %v6878_v61  ;;  %v7692_v45 = vpack.c.bf16 %v8677_v51, %v8677_v51 }
 0x3d1   : > { %6608 = vst.msk [vmem:[%s11726_s11 + $0x30] sm:$0xf] %vm6595_vm4, %v7689_v34  ;;  %v6881_v2 = vsel %vm6660_vm5, %v6806_v43, 0.0  ;;  %v7690_v26 = vpack.c.bf16 %v8678_v48, %v8678_v48  ;;  %v6686_v38 = vsel %vm6660_vm5, %v8678_v48, 0.0  ;;  %v6807_v1 = vmul.f32 %v8678_v48, %v8678_v48 }
 0x3d2   : > { %v6882_v12 = vadd.f32 %v6881_v2, %v6880_v27  ;;  %6611 = vst.msk [vmem:[%s11726_s11 + $0x3c] sm:$0xf] %vm6595_vm4, %v7692_v45  ;;  %v6687_v6 = vadd.f32 %v6686_v38, %v6685_v46  ;;  %v6688_v62 = vsel %vm6660_vm5, %v8675_v0, 0.0  ;;  %v6809_v52 = vmul.f32 %v8677_v51, %v8677_v51 }
 0x3d3   : > { %v8613_v28 = vpop.f32.mrb[16].mxu0  ;;  %6609 = vst.msk [vmem:[%s11726_s11 + $0x34] sm:$0xf] %vm6595_vm4, %v7690_v26  ;;  %v6883_v11 = vsel %vm6660_vm5, %v6807_v1, 0.0  ;;  %v6885_v9 = vsel %vm6660_vm5, %v6808_v21, 0.0 }
 0x3d4   : > { %v8679_v8 = vadd.f32 %v8613_v28, %v11690_v29  ;;  %v6084_v7 = vpop.f32.mrb[17].mxu0  ;;  %v6689_v18 = vadd.f32 %v6688_v62, %v6687_v6  ;;  %v6884_v17 = vadd.f32 %v6883_v11, %v6882_v12  ;;  %v6690_v29 = vsel %vm6660_vm5, %v8677_v51, 0.0 }
 0x3d5   : > { %v8680_v41 = vadd.f32 %v6084_v7, %v11692_v50  ;;  %v8614_v20 = vpop.f32.mrb[18].mxu0  ;;  %v6887_v30 = vsel %vm6660_vm5, %v6809_v52, 0.0 }
 0x3d6   : > { %v7695_v31 = vpack.c.bf16 %v8679_v8, %v8679_v8  ;;  %v6087_v60 = vpop.f32.mrb[19].mxu0  ;;  %v6886_v25 = vadd.f32 %v6885_v9, %v6884_v17  ;;  %v6691_v0 = vadd.f32 %v6690_v29, %v6689_v18  ;;  %v8681_v50 = vadd.f32 %v8614_v20, %v11694_v35 }
 0x3d7   : > { %v7693_v56 = vpack.c.bf16 %v8680_v41, %v8680_v41  ;;  %v6692_v32 = vsel %vm6660_vm5, %v8680_v41, 0.0  ;;  %v6810_v24 = vmul.f32 %v8680_v41, %v8680_v41  ;;  %v8682_v39 = vadd.f32 %v6087_v60, %v11696_v57 }
 0x3d8   : > { %6614 = vst.msk [vmem:[%s11726_s11 + $0x48] sm:$0xf] %vm6595_vm4, %v7695_v31  ;;  %v6812_v53 = vmul.f32 %v8679_v8, %v8679_v8  ;;  %v6693_v59 = vadd.f32 %v6692_v32, %v6691_v0  ;;  %v6888_v42 = vadd.f32 %v6887_v30, %v6886_v25  ;;  %v7696_v23 = vpack.c.bf16 %v8681_v50, %v8681_v50 }
 0x3d9   : > { %6612 = vst.msk [vmem:[%s11726_s11 + $0x40] sm:$0xf] %vm6595_vm4, %v7693_v56  ;;  %v6889_v22 = vsel %vm6660_vm5, %v6810_v24, 0.0  ;;  %v7694_v15 = vpack.c.bf16 %v8682_v39, %v8682_v39  ;;  %v6694_v13 = vsel %vm6660_vm5, %v8682_v39, 0.0  ;;  %v6811_v3 = vmul.f32 %v8682_v39, %v8682_v39 }
 0x3da   : > { %v6890_v4 = vadd.f32 %v6889_v22, %v6888_v42  ;;  %6615 = vst.msk [vmem:[%s11726_s11 + $0x4c] sm:$0xf] %vm6595_vm4, %v7696_v23  ;;  %v6695_v35 = vadd.f32 %v6694_v13, %v6693_v59  ;;  %v6696_v16 = vsel %vm6660_vm5, %v8679_v8, 0.0  ;;  %v6813_v43 = vmul.f32 %v8681_v50, %v8681_v50 }
 0x3db   : > { %v8617_v47 = vpop.f32.mrb[20].mxu0  ;;  %6613 = vst.msk [vmem:[%s11726_s11 + $0x44] sm:$0xf] %vm6595_vm4, %v7694_v15  ;;  %v6891_v61 = vsel %vm6660_vm5, %v6811_v3, 0.0  ;;  %v6893_v48 = vsel %vm6660_vm5, %v6812_v53, 0.0 }
 0x3dc   : > { %v8683_v57 = vadd.f32 %v8617_v47, %v11698_v44  ;;  %v6100_v34 = vpop.f32.mrb[21].mxu0  ;;  %v6697_v49 = vadd.f32 %v6696_v16, %v6695_v35  ;;  %v6892_v2 = vadd.f32 %v6891_v61, %v6890_v4  ;;  %v6698_v44 = vsel %vm6660_vm5, %v8681_v50, 0.0 }
 0x3dd   : > { %v8684_v19 = vadd.f32 %v6100_v34, %v11700_v10  ;;  %v8618_v51 = vpop.f32.mrb[22].mxu0  ;;  %v6895_v12 = vsel %vm6660_vm5, %v6813_v43, 0.0 }
 0x3de   : > { %v7699_v21 = vpack.c.bf16 %v8683_v57, %v8683_v57  ;;  %v6103_v46 = vpop.f32.mrb[23].mxu0  ;;  %v6894_v38 = vadd.f32 %v6893_v48, %v6892_v2  ;;  %v6699_v1 = vadd.f32 %v6698_v44, %v6697_v49  ;;  %v8685_v10 = vadd.f32 %v8618_v51, %v11702_v63 }
 0x3df   : > { %v7697_v27 = vpack.c.bf16 %v8684_v19, %v8684_v19  ;;  %v6700_v45 = vsel %vm6660_vm5, %v8684_v19, 0.0  ;;  %v6814_v26 = vmul.f32 %v8684_v19, %v8684_v19  ;;  %v8686_v28 = vadd.f32 %v6103_v46, %v11704_v58 }
 0x3e0   : > { %6618 = vst.msk [vmem:[%s11726_s11 + $0x58] sm:$0xf] %vm6595_vm4, %v7699_v21  ;;  %v6816_v8 = vmul.f32 %v8683_v57, %v8683_v57  ;;  %v6701_v7 = vadd.f32 %v6700_v45, %v6699_v1  ;;  %v6896_v62 = vadd.f32 %v6895_v12, %v6894_v38  ;;  %v7700_v52 = vpack.c.bf16 %v8685_v10, %v8685_v10 }
 0x3e1   : > { %6616 = vst.msk [vmem:[%s11726_s11 + $0x50] sm:$0xf] %vm6595_vm4, %v7697_v27  ;;  %v6897_v6 = vsel %vm6660_vm5, %v6814_v26, 0.0  ;;  %v7698_v11 = vpack.c.bf16 %v8686_v28, %v8686_v28  ;;  %v6702_v41 = vsel %vm6660_vm5, %v8686_v28, 0.0  ;;  %v6815_v20 = vmul.f32 %v8686_v28, %v8686_v28 }
 0x3e2   : > { %v6898_v18 = vadd.f32 %v6897_v6, %v6896_v62  ;;  %6619 = vst.msk [vmem:[%s11726_s11 + $0x5c] sm:$0xf] %vm6595_vm4, %v7700_v52  ;;  %v6703_v63 = vadd.f32 %v6702_v41, %v6701_v7  ;;  %v6704_v31 = vsel %vm6660_vm5, %v8683_v57, 0.0  ;;  %v6817_v60 = vmul.f32 %v8685_v10, %v8685_v10 }
 0x3e3   : > { %v8621_v9 = vpop.f32.mrb[24].mxu0  ;;  %6617 = vst.msk [vmem:[%s11726_s11 + $0x54] sm:$0xf] %vm6595_vm4, %v7698_v11  ;;  %v6899_v29 = vsel %vm6660_vm5, %v6815_v20, 0.0  ;;  %v6901_v24 = vsel %vm6660_vm5, %v6816_v8, 0.0 }
 0x3e4   : > { %v8687_v58 = vadd.f32 %v8621_v9, %v11706_v33  ;;  %v6116_v17 = vpop.f32.mrb[25].mxu0  ;;  %v6705_v25 = vadd.f32 %v6704_v31, %v6703_v63  ;;  %v6900_v0 = vadd.f32 %v6899_v29, %v6898_v18  ;;  %v6706_v33 = vsel %vm6660_vm5, %v8685_v10, 0.0 }
 0x3e5   : > { %v8688_v56 = vadd.f32 %v6116_v17, %v11708_v5  ;;  %v8622_v32 = vpop.f32.mrb[26].mxu0  ;;  %v6903_v15 = vsel %vm6660_vm5, %v6817_v60, 0.0 }
 0x3e6   : > { %v7703_v50 = vpack.c.bf16 %v8687_v58, %v8687_v58  ;;  %v6119_v39 = vpop.f32.mrb[27].mxu0  ;;  %v6902_v59 = vadd.f32 %v6901_v24, %v6900_v0  ;;  %v6707_v42 = vadd.f32 %v6706_v33, %v6705_v25  ;;  %v8689_v5 = vadd.f32 %v8622_v32, %v11710_v37 }
 0x3e7   : > { %v7701_v30 = vpack.c.bf16 %v8688_v56, %v8688_v56  ;;  %v6708_v22 = vsel %vm6660_vm5, %v8688_v56, 0.0  ;;  %v6818_v53 = vmul.f32 %v8688_v56, %v8688_v56  ;;  %v8690_v23 = vadd.f32 %v6119_v39, %v11712_v54 }
 0x3e8   : > { %6622 = vst.msk [vmem:[%s11726_s11 + $0x68] sm:$0xf] %vm6595_vm4, %v7703_v50  ;;  %v6820_v3 = vmul.f32 %v8687_v58, %v8687_v58  ;;  %v6709_v47 = vadd.f32 %v6708_v22, %v6707_v42  ;;  %v6904_v4 = vadd.f32 %v6903_v15, %v6902_v59  ;;  %v7704_v35 = vpack.c.bf16 %v8689_v5, %v8689_v5 }
 0x3e9   : > { %6620 = vst.msk [vmem:[%s11726_s11 + $0x60] sm:$0xf] %vm6595_vm4, %v7701_v30  ;;  %v6905_v13 = vsel %vm6660_vm5, %v6818_v53, 0.0  ;;  %v7702_v57 = vpack.c.bf16 %v8690_v23, %v8690_v23  ;;  %v6710_v34 = vsel %vm6660_vm5, %v8690_v23, 0.0  ;;  %v6819_v16 = vmul.f32 %v8690_v23, %v8690_v23 }
 0x3ea   : > { %v6906_v61 = vadd.f32 %v6905_v13, %v6904_v4  ;;  %6623 = vst.msk [vmem:[%s11726_s11 + $0x6c] sm:$0xf] %vm6595_vm4, %v7704_v35  ;;  %v6711_v37 = vadd.f32 %v6710_v34, %v6709_v47  ;;  %v6712_v51 = vsel %vm6660_vm5, %v8687_v58, 0.0  ;;  %v6821_v48 = vmul.f32 %v8689_v5, %v8689_v5 }
 0x3eb   : > { %v8625_v43 = vpop.f32.mrb[28].mxu0  ;;  %6621 = vst.msk [vmem:[%s11726_s11 + $0x64] sm:$0xf] %vm6595_vm4, %v7702_v57  ;;  %v6907_v49 = vsel %vm6660_vm5, %v6819_v16, 0.0  ;;  %v6909_v46 = vsel %vm6660_vm5, %v6820_v3, 0.0 }
 0x3ec   : > { %v8691_v54 = vadd.f32 %v8625_v43, %v11714_v36  ;;  %v6132_v19 = vpop.f32.mrb[29].mxu0  ;;  %v6713_v44 = vadd.f32 %v6712_v51, %v6711_v37  ;;  %v6908_v27 = vadd.f32 %v6907_v49, %v6906_v61  ;;  %v6714_v36 = vsel %vm6660_vm5, %v8689_v5, 0.0 }
 0x3ed   : > { %v8692_v2 = vadd.f32 %v6132_v19, %v11716_v55  ;;  %v8626_v21 = vpop.f32.mrb[30].mxu0  ;;  %v6911_v8 = vsel %vm6660_vm5, %v6821_v48, 0.0 }
 0x3ee   : > { %v7707_v45 = vpack.c.bf16 %v8691_v54, %v8691_v54  ;;  %v6135_v26 = vpop.f32.mrb[31].mxu0  ;;  %v6910_v28 = vadd.f32 %v6909_v46, %v6908_v27  ;;  %v6715_v12 = vadd.f32 %v6714_v36, %v6713_v44  ;;  %v8693_v55 = vadd.f32 %v8626_v21, %v11718_v40 }
 0x3ef   : > { %v7705_v38 = vpack.c.bf16 %v8692_v2, %v8692_v2  ;;  %v6716_v1 = vsel %vm6660_vm5, %v8692_v2, 0.0  ;;  %v6822_v10 = vmul.f32 %v8692_v2, %v8692_v2  ;;  %v8694_v6 = vadd.f32 %v6135_v26, %v11720_v14 }
 0x3f0   : > { %6626 = vst.msk [vmem:[%s11726_s11 + $0x78] sm:$0xf] %vm6595_vm4, %v7707_v45  ;;  %v6717_v62 = vadd.f32 %v6716_v1, %v6715_v12  ;;  %v6912_v52 = vadd.f32 %v6911_v8, %v6910_v28  ;;  %v7708_v11 = vpack.c.bf16 %v8693_v55, %v8693_v55  ;;  %v6824_v41 = vmul.f32 %v8691_v54, %v8691_v54 }
 0x3f1   : > { %6624 = vst.msk [vmem:[%s11726_s11 + $0x70] sm:$0xf] %vm6595_vm4, %v7705_v38  ;;  %v6913_v7 = vsel %vm6660_vm5, %v6822_v10, 0.0  ;;  %v7706_v20 = vpack.c.bf16 %v8694_v6, %v8694_v6  ;;  %v6718_v9 = vsel %vm6660_vm5, %v8694_v6, 0.0  ;;  %v6823_v18 = vmul.f32 %v8694_v6, %v8694_v6 }
 0x3f2   : > { %v6914_v58 = vadd.f32 %v6913_v7, %v6912_v52  ;;  %6627 = vst.msk [vmem:[%s11726_s11 + $0x7c] sm:$0xf] %vm6595_vm4, %v7708_v11  ;;  %v6719_v40 = vadd.f32 %v6718_v9, %v6717_v62  ;;  %v6720_v17 = vsel %vm6660_vm5, %v8691_v54, 0.0  ;;  %v6825_v31 = vmul.f32 %v8693_v55, %v8693_v55 }
 0x3f3   : > { %v8629_v63 = vpop.f32.mrb[32].mxu0  ;;  %6625 = vst.msk [vmem:[%s11726_s11 + $0x74] sm:$0xf] %vm6595_vm4, %v7706_v20  ;;  %v6915_v60 = vsel %vm6660_vm5, %v6823_v18, 0.0  ;;  %v6917_v25 = vsel %vm6660_vm5, %v6824_v41, 0.0  ;;  %v6722_v0 = vsel %vm6660_vm5, %v8693_v55, 0.0 }
 0x3f4   : > { %v6148_v14 = vpop.f32.mrb[33].mxu0  ;;  %v6721_v56 = vadd.f32 %v6720_v17, %v6719_v40  ;;  %v6916_v32 = vadd.f32 %v6915_v60, %v6914_v58  ;;  %v6919_v53 = vsel %vm6660_vm5, %v6825_v31, 0.0 }
 0x3f5   : > { %v8630_v29 = vpop.f32.mrb[34].mxu0 }
 0x3f6   : > { %v6151_v24 = vpop.f32.mrb[35].mxu0  ;;  %v6918_v39 = vadd.f32 %v6917_v25, %v6916_v32  ;;  %v6723_v22 = vadd.f32 %v6722_v0, %v6721_v56 }
 0x3f7   : > { %v8357_v50 = vpop.f32.mrb[32].mxu1 }
 0x3f8   : > { %v8695_v33 = vadd.f32 %v8629_v63, %v8357_v50  ;;  %v4610_v30 = vpop.f32.mrb[33].mxu1  ;;  %v6920_v23 = vadd.f32 %v6919_v53, %v6918_v39 }
 0x3f9   : > { %v8696_v59 = vadd.f32 %v6148_v14, %v4610_v30  ;;  %v8358_v42 = vpop.f32.mrb[34].mxu1 }
 0x3fa   : > { %v7711_v5 = vpack.c.bf16 %v8695_v33, %v8695_v33  ;;  %v4613_v15 = vpop.f32.mrb[35].mxu1  ;;  %v8697_v4 = vadd.f32 %v8630_v29, %v8358_v42  ;;  %v6828_v43 = vmul.f32 %v8695_v33, %v8695_v33  ;;  %v6728_v44 = vsel %vm6660_vm5, %v8695_v33, 0.0 }
 0x3fb   : > { %v7709_v13 = vpack.c.bf16 %v8696_v59, %v8696_v59  ;;  %v6724_v3 = vsel %vm6660_vm5, %v8696_v59, 0.0  ;;  %v6826_v47 = vmul.f32 %v8696_v59, %v8696_v59  ;;  %v8633_v35 = vpop.f32.mrb[36].mxu0  ;;  %v8698_v34 = vadd.f32 %v6151_v24, %v4613_v15 }
 0x3fc   : > { %6630 = vst.msk [vmem:[%s11726_s11 + $0x88] sm:$0xf] %vm6595_vm4, %v7711_v5  ;;  %v6725_v57 = vadd.f32 %v6724_v3, %v6723_v22  ;;  %v6164_v16 = vpop.f32.mrb[37].mxu0  ;;  %v7712_v37 = vpack.c.bf16 %v8697_v4, %v8697_v4  ;;  %v6829_v27 = vmul.f32 %v8697_v4, %v8697_v4  ;;  %v6925_v12 = vsel %vm6660_vm5, %v6828_v43, 0.0 }
 0x3fd   : > { %6628 = vst.msk [vmem:[%s11726_s11 + $0x80] sm:$0xf] %vm6595_vm4, %v7709_v13  ;;  %v6921_v61 = vsel %vm6660_vm5, %v6826_v47, 0.0  ;;  %v8634_v54 = vpop.f32.mrb[38].mxu0  ;;  %v7710_v51 = vpack.c.bf16 %v8698_v34, %v8698_v34  ;;  %v6726_v48 = vsel %vm6660_vm5, %v8698_v34, 0.0  ;;  %v6827_v49 = vmul.f32 %v8698_v34, %v8698_v34 }
 0x3fe   : > { %v6922_v19 = vadd.f32 %v6921_v61, %v6920_v23  ;;  %v6167_v2 = vpop.f32.mrb[39].mxu0  ;;  %6631 = vst.msk [vmem:[%s11726_s11 + $0x8c] sm:$0xf] %vm6595_vm4, %v7712_v37  ;;  %v6727_v21 = vadd.f32 %v6726_v48, %v6725_v57  ;;  %v6730_v55 = vsel %vm6660_vm5, %v8697_v4, 0.0  ;;  %v6927_v9 = vsel %vm6660_vm5, %v6829_v27, 0.0 }
 0x3ff   : > { %v8361_v46 = vpop.f32.mrb[36].mxu1  ;;  %6629 = vst.msk [vmem:[%s11726_s11 + $0x84] sm:$0xf] %vm6595_vm4, %v7710_v51  ;;  %v6923_v45 = vsel %vm6660_vm5, %v6827_v49, 0.0 }
 0x400   : > { %v8699_v26 = vadd.f32 %v8633_v35, %v8361_v46  ;;  %v4626_v36 = vpop.f32.mrb[37].mxu1  ;;  %v6729_v38 = vadd.f32 %v6728_v44, %v6727_v21  ;;  %v6924_v1 = vadd.f32 %v6923_v45, %v6922_v19 }
 0x401   : > { %v8700_v10 = vadd.f32 %v6164_v16, %v4626_v36  ;;  %v8362_v28 = vpop.f32.mrb[38].mxu1 }
 0x402   : > { %v7715_v6 = vpack.c.bf16 %v8699_v26, %v8699_v26  ;;  %v8701_v8 = vadd.f32 %v8634_v54, %v8362_v28  ;;  %v4629_v7 = vpop.f32.mrb[39].mxu1  ;;  %v6926_v62 = vadd.f32 %v6925_v12, %v6924_v1  ;;  %v6731_v11 = vadd.f32 %v6730_v55, %v6729_v38 }
 0x403   : > { %v7713_v52 = vpack.c.bf16 %v8700_v10, %v8700_v10  ;;  %v6732_v41 = vsel %vm6660_vm5, %v8700_v10, 0.0  ;;  %v8637_v20 = vpop.f32.mrb[40].mxu0  ;;  %v6830_v18 = vmul.f32 %v8700_v10, %v8700_v10  ;;  %v6832_v40 = vmul.f32 %v8699_v26, %v8699_v26 }
 0x404   : > { %6634 = vst.msk [vmem:[%s11726_s11 + $0x98] sm:$0xf] %vm6595_vm4, %v7715_v6  ;;  %v7716_v63 = vpack.c.bf16 %v8701_v8, %v8701_v8  ;;  %v6180_v58 = vpop.f32.mrb[41].mxu0  ;;  %v6733_v14 = vadd.f32 %v6732_v41, %v6731_v11  ;;  %v6928_v17 = vadd.f32 %v6927_v9, %v6926_v62  ;;  %v8702_v31 = vadd.f32 %v6167_v2, %v4629_v7 }
 0x405   : > { %6632 = vst.msk [vmem:[%s11726_s11 + $0x90] sm:$0xf] %vm6595_vm4, %v7713_v52  ;;  %v8638_v60 = vpop.f32.mrb[42].mxu0  ;;  %v6929_v29 = vsel %vm6660_vm5, %v6830_v18, 0.0  ;;  %v6736_v22 = vsel %vm6660_vm5, %v8699_v26, 0.0  ;;  %v6933_v53 = vsel %vm6660_vm5, %v6832_v40, 0.0  ;;  %v6833_v5 = vmul.f32 %v8701_v8, %v8701_v8 }
 0x406   : > { %6635 = vst.msk [vmem:[%s11726_s11 + $0x9c] sm:$0xf] %vm6595_vm4, %v7716_v63  ;;  %v6183_v56 = vpop.f32.mrb[43].mxu0  ;;  %v6930_v32 = vadd.f32 %v6929_v29, %v6928_v17  ;;  %v7714_v24 = vpack.c.bf16 %v8702_v31, %v8702_v31  ;;  %v6734_v25 = vsel %vm6660_vm5, %v8702_v31, 0.0  ;;  %v6831_v39 = vmul.f32 %v8702_v31, %v8702_v31 }
 0x407   : > { %v8365_v0 = vpop.f32.mrb[40].mxu1  ;;  %v6735_v50 = vadd.f32 %v6734_v25, %v6733_v14  ;;  %v6738_v47 = vsel %vm6660_vm5, %v8701_v8, 0.0  ;;  %v6935_v49 = vsel %vm6660_vm5, %v6833_v5, 0.0 }
 0x408   : > { %v8703_v33 = vadd.f32 %v8637_v20, %v8365_v0  ;;  %v4642_v30 = vpop.f32.mrb[41].mxu1  ;;  %6633 = vst.msk [vmem:[%s11726_s11 + $0x94] sm:$0xf] %vm6595_vm4, %v7714_v24  ;;  %v6931_v15 = vsel %vm6660_vm5, %v6831_v39, 0.0 }
 0x409   : > { %v8704_v59 = vadd.f32 %v6180_v58, %v4642_v30  ;;  %v8366_v42 = vpop.f32.mrb[42].mxu1  ;;  %v6737_v23 = vadd.f32 %v6736_v22, %v6735_v50  ;;  %v6932_v4 = vadd.f32 %v6931_v15, %v6930_v32 }
 0x40a   : > { %v7719_v13 = vpack.c.bf16 %v8703_v33, %v8703_v33  ;;  %v4645_v3 = vpop.f32.mrb[43].mxu1  ;;  %v8705_v61 = vadd.f32 %v8638_v60, %v8366_v42  ;;  %v6836_v51 = vmul.f32 %v8703_v33, %v8703_v33  ;;  %v6744_v12 = vsel %vm6660_vm5, %v8703_v33, 0.0 }
 0x40b   : > { %v7717_v35 = vpack.c.bf16 %v8704_v59, %v8704_v59  ;;  %v6740_v57 = vsel %vm6660_vm5, %v8704_v59, 0.0  ;;  %v8641_v34 = vpop.f32.mrb[44].mxu0  ;;  %v6739_v16 = vadd.f32 %v6738_v47, %v6737_v23  ;;  %v6834_v43 = vmul.f32 %v8704_v59, %v8704_v59 }
 0x40c   : > { %6638 = vst.msk [vmem:[%s11726_s11 + $0xa8] sm:$0xf] %vm6595_vm4, %v7719_v13  ;;  %v8706_v37 = vadd.f32 %v6183_v56, %v4645_v3  ;;  %v6196_v54 = vpop.f32.mrb[45].mxu0  ;;  %v6934_v19 = vadd.f32 %v6933_v53, %v6932_v4  ;;  %v7720_v46 = vpack.c.bf16 %v8705_v61, %v8705_v61  ;;  %v6941_v55 = vsel %vm6660_vm5, %v6836_v51, 0.0 }
 0x40d   : > { %6636 = vst.msk [vmem:[%s11726_s11 + $0xa0] sm:$0xf] %vm6595_vm4, %v7717_v35  ;;  %v8642_v48 = vpop.f32.mrb[46].mxu0  ;;  %v6741_v2 = vadd.f32 %v6740_v57, %v6739_v16  ;;  %v6937_v21 = vsel %vm6660_vm5, %v6834_v43, 0.0  ;;  %v6837_v62 = vmul.f32 %v8705_v61, %v8705_v61  ;;  %v6746_v9 = vsel %vm6660_vm5, %v8705_v61, 0.0 }
 0x40e   : > { %v6199_v44 = vpop.f32.mrb[47].mxu0  ;;  %v6936_v27 = vadd.f32 %v6935_v49, %v6934_v19  ;;  %v7718_v45 = vpack.c.bf16 %v8706_v37, %v8706_v37  ;;  %v6742_v26 = vsel %vm6660_vm5, %v8706_v37, 0.0  ;;  %6639 = vst.msk [vmem:[%s11726_s11 + $0xac] sm:$0xf] %vm6595_vm4, %v7720_v46  ;;  %v6835_v1 = vmul.f32 %v8706_v37, %v8706_v37 }
 0x40f   : > { %v8369_v36 = vpop.f32.mrb[44].mxu1  ;;  %v6743_v38 = vadd.f32 %v6742_v26, %v6741_v2  ;;  %v6943_v25 = vsel %vm6660_vm5, %v6837_v62, 0.0 }
 0x410   : > { %v8707_v10 = vadd.f32 %v8641_v34, %v8369_v36  ;;  %v4658_v28 = vpop.f32.mrb[45].mxu1  ;;  %v6938_v6 = vadd.f32 %v6937_v21, %v6936_v27  ;;  %6637 = vst.msk [vmem:[%s11726_s11 + $0xa4] sm:$0xf] %vm6595_vm4, %v7718_v45  ;;  %v6939_v11 = vsel %vm6660_vm5, %v6835_v1, 0.0 }
 0x411   : > { %v8708_v8 = vadd.f32 %v6196_v54, %v4658_v28  ;;  %v8370_v7 = vpop.f32.mrb[46].mxu1  ;;  %v6745_v52 = vadd.f32 %v6744_v12, %v6743_v38 }
 0x412   : > { %v7723_v41 = vpack.c.bf16 %v8707_v10, %v8707_v10  ;;  %v4661_v20 = vpop.f32.mrb[47].mxu1  ;;  %v6940_v18 = vadd.f32 %v6939_v11, %v6938_v6  ;;  %v8709_v31 = vadd.f32 %v8642_v48, %v8370_v7  ;;  %v6840_v32 = vmul.f32 %v8707_v10, %v8707_v10 }
 0x413   : > { %v7721_v63 = vpack.c.bf16 %v8708_v8, %v8708_v8  ;;  %v6748_v58 = vsel %vm6660_vm5, %v8708_v8, 0.0  ;;  %v8645_v40 = vpop.f32.mrb[48].mxu0  ;;  %v6747_v14 = vadd.f32 %v6746_v9, %v6745_v52  ;;  %v6838_v17 = vmul.f32 %v8708_v8, %v8708_v8 }
 0x414   : > { %6642 = vst.msk [vmem:[%s11726_s11 + $0xb8] sm:$0xf] %vm6595_vm4, %v7723_v41  ;;  %v8710_v60 = vadd.f32 %v6199_v44, %v4661_v20  ;;  %v6212_v29 = vpop.f32.mrb[49].mxu0  ;;  %v6942_v56 = vadd.f32 %v6941_v55, %v6940_v18  ;;  %v7724_v39 = vpack.c.bf16 %v8709_v31, %v8709_v31  ;;  %v6752_v13 = vsel %vm6660_vm5, %v8707_v10, 0.0 }
 0x415   : > { %6640 = vst.msk [vmem:[%s11726_s11 + $0xb0] sm:$0xf] %vm6595_vm4, %v7721_v63  ;;  %v8646_v24 = vpop.f32.mrb[50].mxu0  ;;  %v6749_v0 = vadd.f32 %v6748_v58, %v6747_v14  ;;  %v6945_v50 = vsel %vm6660_vm5, %v6838_v17, 0.0  ;;  %v6949_v3 = vsel %vm6660_vm5, %v6840_v32, 0.0  ;;  %v6841_v57 = vmul.f32 %v8709_v31, %v8709_v31 }
 0x416   : > { %v6215_v33 = vpop.f32.mrb[51].mxu0  ;;  %v6944_v30 = vadd.f32 %v6943_v25, %v6942_v56  ;;  %v7722_v22 = vpack.c.bf16 %v8710_v60, %v8710_v60  ;;  %v6750_v53 = vsel %vm6660_vm5, %v8710_v60, 0.0  ;;  %6643 = vst.msk [vmem:[%s11726_s11 + $0xbc] sm:$0xf] %vm6595_vm4, %v7724_v39  ;;  %v6839_v5 = vmul.f32 %v8710_v60, %v8710_v60 }
 0x417   : > { %v8373_v59 = vpop.f32.mrb[48].mxu1  ;;  %v6751_v42 = vadd.f32 %v6750_v53, %v6749_v0  ;;  %v6754_v37 = vsel %vm6660_vm5, %v8709_v31, 0.0  ;;  %v6951_v36 = vsel %vm6660_vm5, %v6841_v57, 0.0 }
 0x418   : > { %v8711_v23 = vadd.f32 %v8645_v40, %v8373_v59  ;;  %v4674_v15 = vpop.f32.mrb[49].mxu1  ;;  %v6946_v47 = vadd.f32 %v6945_v50, %v6944_v30  ;;  %6641 = vst.msk [vmem:[%s11726_s11 + $0xb4] sm:$0xf] %vm6595_vm4, %v7722_v22  ;;  %v6947_v16 = vsel %vm6660_vm5, %v6839_v5, 0.0 }
 0x419   : > { %v8712_v4 = vadd.f32 %v6212_v29, %v4674_v15  ;;  %v8374_v35 = vpop.f32.mrb[50].mxu1  ;;  %v6753_v34 = vadd.f32 %v6752_v13, %v6751_v42 }
 0x41a   : > { %v7727_v43 = vpack.c.bf16 %v8711_v23, %v8711_v23  ;;  %v4677_v61 = vpop.f32.mrb[51].mxu1  ;;  %v6948_v54 = vadd.f32 %v6947_v16, %v6946_v47  ;;  %v8713_v21 = vadd.f32 %v8646_v24, %v8374_v35  ;;  %v6844_v45 = vmul.f32 %v8711_v23, %v8711_v23 }
 0x41b   : > { %v7725_v19 = vpack.c.bf16 %v8712_v4, %v8712_v4  ;;  %v6756_v51 = vsel %vm6660_vm5, %v8712_v4, 0.0  ;;  %v8649_v48 = vpop.f32.mrb[52].mxu0  ;;  %v6755_v49 = vadd.f32 %v6754_v37, %v6753_v34  ;;  %v6842_v2 = vmul.f32 %v8712_v4, %v8712_v4 }
 0x41c   : > { %6646 = vst.msk [vmem:[%s11726_s11 + $0xc8] sm:$0xf] %vm6595_vm4, %v7727_v43  ;;  %v8714_v46 = vadd.f32 %v6215_v33, %v4677_v61  ;;  %v6228_v44 = vpop.f32.mrb[53].mxu0  ;;  %v6950_v27 = vadd.f32 %v6949_v3, %v6948_v54  ;;  %v7728_v10 = vpack.c.bf16 %v8713_v21, %v8713_v21  ;;  %v6760_v41 = vsel %vm6660_vm5, %v8711_v23, 0.0 }
 0x41d   : > { %6644 = vst.msk [vmem:[%s11726_s11 + $0xc0] sm:$0xf] %vm6595_vm4, %v7725_v19  ;;  %v8650_v26 = vpop.f32.mrb[54].mxu0  ;;  %v6757_v38 = vadd.f32 %v6756_v51, %v6755_v49  ;;  %v6953_v1 = vsel %vm6660_vm5, %v6842_v2, 0.0  ;;  %v6957_v20 = vsel %vm6660_vm5, %v6844_v45, 0.0  ;;  %v6845_v58 = vmul.f32 %v8713_v21, %v8713_v21 }
 0x41e   : > { %v6231_v28 = vpop.f32.mrb[55].mxu0  ;;  %v6952_v12 = vadd.f32 %v6951_v36, %v6950_v27  ;;  %v7726_v55 = vpack.c.bf16 %v8714_v46, %v8714_v46  ;;  %v6758_v6 = vsel %vm6660_vm5, %v8714_v46, 0.0  ;;  %6647 = vst.msk [vmem:[%s11726_s11 + $0xcc] sm:$0xf] %vm6595_vm4, %v7728_v10  ;;  %v6843_v62 = vmul.f32 %v8714_v46, %v8714_v46 }
 0x41f   : > { %v8377_v8 = vpop.f32.mrb[52].mxu1  ;;  %v6759_v7 = vadd.f32 %v6758_v6, %v6757_v38  ;;  %v6762_v60 = vsel %vm6660_vm5, %v8713_v21, 0.0  ;;  %v6959_v59 = vsel %vm6660_vm5, %v6845_v58, 0.0 }
 0x420   : > { %v8715_v52 = vadd.f32 %v8649_v48, %v8377_v8  ;;  %v4690_v11 = vpop.f32.mrb[53].mxu1  ;;  %v6954_v9 = vadd.f32 %v6953_v1, %v6952_v12  ;;  %6645 = vst.msk [vmem:[%s11726_s11 + $0xc4] sm:$0xf] %vm6595_vm4, %v7726_v55  ;;  %v6955_v14 = vsel %vm6660_vm5, %v6843_v62, 0.0 }
 0x421   : > { %v8716_v18 = vadd.f32 %v6228_v44, %v4690_v11  ;;  %v8378_v63 = vpop.f32.mrb[54].mxu1  ;;  %v6761_v40 = vadd.f32 %v6760_v41, %v6759_v7 }
 0x422   : > { %v7731_v17 = vpack.c.bf16 %v8715_v52, %v8715_v52  ;;  %v4693_v31 = vpop.f32.mrb[55].mxu1  ;;  %v6956_v29 = vadd.f32 %v6955_v14, %v6954_v9  ;;  %v8717_v50 = vadd.f32 %v8650_v26, %v8378_v63  ;;  %v6848_v22 = vmul.f32 %v8715_v52, %v8715_v52 }
 0x423   : > { %v7729_v56 = vpack.c.bf16 %v8716_v18, %v8716_v18  ;;  %v6764_v32 = vsel %vm6660_vm5, %v8716_v18, 0.0  ;;  %v8653_v24 = vpop.f32.mrb[56].mxu0  ;;  %v6763_v25 = vadd.f32 %v6762_v60, %v6761_v40  ;;  %v6846_v0 = vmul.f32 %v8716_v18, %v8716_v18 }
 0x424   : > { %6650 = vst.msk [vmem:[%s11726_s11 + $0xd8] sm:$0xf] %vm6595_vm4, %v7731_v17  ;;  %v8718_v39 = vadd.f32 %v6231_v28, %v4693_v31  ;;  %v6244_v33 = vpop.f32.mrb[57].mxu0  ;;  %v6958_v30 = vadd.f32 %v6957_v20, %v6956_v29  ;;  %v7732_v23 = vpack.c.bf16 %v8717_v50, %v8717_v50  ;;  %v6768_v43 = vsel %vm6660_vm5, %v8715_v52, 0.0 }
 0x425   : > { %6648 = vst.msk [vmem:[%s11726_s11 + $0xd0] sm:$0xf] %vm6595_vm4, %v7729_v56  ;;  %v8654_v53 = vpop.f32.mrb[58].mxu0  ;;  %v6765_v42 = vadd.f32 %v6764_v32, %v6763_v25  ;;  %v6961_v5 = vsel %vm6660_vm5, %v6846_v0, 0.0  ;;  %v6965_v61 = vsel %vm6660_vm5, %v6848_v22, 0.0  ;;  %v6849_v51 = vmul.f32 %v8717_v50, %v8717_v50 }
 0x426   : > { %v6247_v15 = vpop.f32.mrb[59].mxu0  ;;  %v6960_v13 = vadd.f32 %v6959_v59, %v6958_v30  ;;  %v7730_v3 = vpack.c.bf16 %v8718_v39, %v8718_v39  ;;  %v6766_v47 = vsel %vm6660_vm5, %v8718_v39, 0.0  ;;  %6651 = vst.msk [vmem:[%s11726_s11 + $0xdc] sm:$0xf] %vm6595_vm4, %v7732_v23  ;;  %v6847_v57 = vmul.f32 %v8718_v39, %v8718_v39 }
 0x427   : > { %v8381_v4 = vpop.f32.mrb[56].mxu1  ;;  %v6767_v35 = vadd.f32 %v6766_v47, %v6765_v42  ;;  %v6770_v46 = vsel %vm6660_vm5, %v8717_v50, 0.0  ;;  %v6967_v8 = vsel %vm6660_vm5, %v6849_v51, 0.0 }
 0x428   : > { %v8719_v34 = vadd.f32 %v8653_v24, %v8381_v4  ;;  %v4706_v16 = vpop.f32.mrb[57].mxu1  ;;  %v6962_v37 = vadd.f32 %v6961_v5, %v6960_v13  ;;  %6649 = vst.msk [vmem:[%s11726_s11 + $0xd4] sm:$0xf] %vm6595_vm4, %v7730_v3  ;;  %v6963_v49 = vsel %vm6660_vm5, %v6847_v57, 0.0 }
 0x429   : > { %v8720_v54 = vadd.f32 %v6244_v33, %v4706_v16  ;;  %v8382_v19 = vpop.f32.mrb[58].mxu1  ;;  %v6769_v48 = vadd.f32 %v6768_v43, %v6767_v35 }
 0x42a   : > { %v7735_v2 = vpack.c.bf16 %v8719_v34, %v8719_v34  ;;  %v4709_v21 = vpop.f32.mrb[59].mxu1  ;;  %v6964_v44 = vadd.f32 %v6963_v49, %v6962_v37  ;;  %v8721_v1 = vadd.f32 %v8654_v53, %v8382_v19  ;;  %v6852_v55 = vmul.f32 %v8719_v34, %v8719_v34 }
 0x42b   : > { %v7733_v27 = vpack.c.bf16 %v8720_v54, %v8720_v54  ;;  %v6772_v45 = vsel %vm6660_vm5, %v8720_v54, 0.0  ;;  %v8657_v26 = vpop.f32.mrb[60].mxu0  ;;  %v6771_v36 = vadd.f32 %v6770_v46, %v6769_v48  ;;  %v6850_v38 = vmul.f32 %v8720_v54, %v8720_v54 }
 0x42c   : > { %6654 = vst.msk [vmem:[%s11726_s11 + $0xe8] sm:$0xf] %vm6595_vm4, %v7735_v2  ;;  %v8722_v10 = vadd.f32 %v6247_v15, %v4709_v21  ;;  %v6260_v28 = vpop.f32.mrb[61].mxu0  ;;  %v6966_v12 = vadd.f32 %v6965_v61, %v6964_v44  ;;  %v7736_v52 = vpack.c.bf16 %v8721_v1, %v8721_v1  ;;  %v6776_v17 = vsel %vm6660_vm5, %v8719_v34, 0.0 }
 0x42d   : > { %6652 = vst.msk [vmem:[%s11726_s11 + $0xe0] sm:$0xf] %vm6595_vm4, %v7733_v27  ;;  %v8658_v6 = vpop.f32.mrb[62].mxu0  ;;  %v6773_v7 = vadd.f32 %v6772_v45, %v6771_v36  ;;  %v6969_v62 = vsel %vm6660_vm5, %v6850_v38, 0.0  ;;  %v6973_v31 = vsel %vm6660_vm5, %v6852_v55, 0.0  ;;  %v6853_v32 = vmul.f32 %v8721_v1, %v8721_v1 }
 0x42e   : > { %v6263_v11 = vpop.f32.mrb[63].mxu0  ;;  %v6968_v41 = vadd.f32 %v6967_v8, %v6966_v12  ;;  %v7734_v20 = vpack.c.bf16 %v8722_v10, %v8722_v10  ;;  %v6774_v9 = vsel %vm6660_vm5, %v8722_v10, 0.0  ;;  %6655 = vst.msk [vmem:[%s11726_s11 + $0xec] sm:$0xf] %vm6595_vm4, %v7736_v52  ;;  %v6851_v58 = vmul.f32 %v8722_v10, %v8722_v10 }
 0x42f   : > { %v8385_v18 = vpop.f32.mrb[60].mxu1  ;;  %v6775_v63 = vadd.f32 %v6774_v9, %v6773_v7  ;;  %v6778_v39 = vsel %vm6660_vm5, %v8721_v1, 0.0  ;;  %v6975_v15 = vsel %vm6660_vm5, %v6853_v32, 0.0 }
 0x430   : > { %v8723_v40 = vadd.f32 %v8657_v26, %v8385_v18  ;;  %v4722_v14 = vpop.f32.mrb[61].mxu1  ;;  %v6970_v60 = vadd.f32 %v6969_v62, %v6968_v41  ;;  %6653 = vst.msk [vmem:[%s11726_s11 + $0xe4] sm:$0xf] %vm6595_vm4, %v7734_v20  ;;  %v6971_v25 = vsel %vm6660_vm5, %v6851_v58, 0.0 }
 0x431   : > { %v8724_v29 = vadd.f32 %v6260_v28, %v4722_v14  ;;  %v8386_v56 = vpop.f32.mrb[62].mxu1  ;;  %v6777_v24 = vadd.f32 %v6776_v17, %v6775_v63 }
 0x432   : > { %v7739_v0 = vpack.c.bf16 %v8723_v40, %v8723_v40  ;;  %v4725_v50 = vpop.f32.mrb[63].mxu1  ;;  %v6972_v33 = vadd.f32 %v6971_v25, %v6970_v60  ;;  %v8725_v42 = vadd.f32 %v8658_v6, %v8386_v56  ;;  %v6856_v34 = vmul.f32 %v8723_v40, %v8723_v40 }
 0x433   : > { %v7737_v30 = vpack.c.bf16 %v8724_v29, %v8724_v29  ;;  %v6780_v22 = vsel %vm6660_vm5, %v8724_v29, 0.0  ;;  %v6779_v53 = vadd.f32 %v6778_v39, %v6777_v24  ;;  %v6854_v59 = vmul.f32 %v8724_v29, %v8724_v29 }
 0x434   : > { %6658 = vst.msk [vmem:[%s11726_s11 + $0xf8] sm:$0xf] %vm6595_vm4, %v7739_v0  ;;  %v8726_v5 = vadd.f32 %v6263_v11, %v4725_v50  ;;  %v6974_v23 = vadd.f32 %v6973_v31, %v6972_v33  ;;  %v7740_v47 = vpack.c.bf16 %v8725_v42, %v8725_v42  ;;  %v6784_v61 = vsel %vm6660_vm5, %v8723_v40, 0.0 }
 0x435   : > { %6656 = vst.msk [vmem:[%s11726_s11 + $0xf0] sm:$0xf] %vm6595_vm4, %v7737_v30  ;;  %v6781_v13 = vadd.f32 %v6780_v22, %v6779_v53  ;;  %v6977_v3 = vsel %vm6660_vm5, %v6854_v59, 0.0  ;;  %v6857_v54 = vmul.f32 %v8725_v42, %v8725_v42  ;;  %v6786_v48 = vsel %vm6660_vm5, %v8725_v42, 0.0 }
 0x436   : > { %v6976_v4 = vadd.f32 %v6975_v15, %v6974_v23  ;;  %v7738_v35 = vpack.c.bf16 %v8726_v5, %v8726_v5  ;;  %v6782_v57 = vsel %vm6660_vm5, %v8726_v5, 0.0  ;;  %6659 = vst.msk [vmem:[%s11726_s11 + $0xfc] sm:$0xf] %vm6595_vm4, %v7740_v47  ;;  %v6855_v43 = vmul.f32 %v8726_v5, %v8726_v5 }
 0x437   : > { %v6783_v16 = vadd.f32 %v6782_v57, %v6781_v13  ;;  %v6981_v2 = vsel %vm6660_vm5, %v6856_v34, 0.0  ;;  %v6983_v44 = vsel %vm6660_vm5, %v6857_v54, 0.0 }
 0x438   : > { %v6978_v37 = vadd.f32 %v6977_v3, %v6976_v4  ;;  %6657 = vst.msk [vmem:[%s11726_s11 + $0xf4] sm:$0xf] %vm6595_vm4, %v7738_v35  ;;  %v6979_v51 = vsel %vm6660_vm5, %v6855_v43, 0.0 }
 0x439   : > { %v6785_v19 = vadd.f32 %v6784_v61, %v6783_v16 }
 0x43a   : > { %v6980_v49 = vadd.f32 %v6979_v51, %v6978_v37 }
 0x43b   : > { %v6787_v21 = vadd.f32 %v6786_v48, %v6785_v19 }
 0x43c   : > { %v6982_v46 = vadd.f32 %v6981_v2, %v6980_v49 }
 0x43d   : > { %v6788_v27 = vrot.slane %v6787_v21, 4 }
 0x43e   : > { %v6984_v45 = vadd.f32 %v6983_v44, %v6982_v46 }
 0x43f   : > { %v6789_v26 = vadd.f32 %v6788_v27, %v6787_v21 }
 0x440   : > { %v6985_v36 = vrot.slane %v6984_v45, 4 }
 0x441   : > { %v6790_v38 = vrot.slane %v6789_v26, 2 }
 0x442   : > { %v6986_v1 = vadd.f32 %v6985_v36, %v6984_v45 }
 0x443   : > { %v6791_v10 = vadd.f32 %v6790_v38, %v6789_v26 }
 0x444   : > { %v6987_v28 = vrot.slane %v6986_v1, 2 }
 0x445   : > { %v6792_v12 = vrot.slane %v6791_v10, 1 }
 0x446   : > { %v6988_v55 = vadd.f32 %v6987_v28, %v6986_v1 }
 0x447   : > { %v6793_v8 = vadd.f32 %v6792_v12, %v6791_v10 }
 0x448   : > { %v6989_v6 = vrot.slane %v6988_v55, 1 }
 0x44a   : > { %v6990_v7 = vadd.f32 %v6989_v6, %v6988_v55 }
 0x44c   : > { %v6992_v62 = vsel %vm6991_vm6, %v6793_v8, %v6990_v7 }
 0x44d   : > { %6994 = vst.msk [vmem:[%s181_s20] sm:$0x3] %vm6993_vm7, %v6992_v62 }
 0x44e PF: > { %s14_s12 = sadd.s32 1, %s9373_s12  }
 0x44f   : > { %p11_p4 = scmp.ge.s32.totalorder %s14_s12, 4  }
 0x451   :  { %13 = sbr.rel (!%p11_p4) target bundleno = 1 (0x1), region = 78 }

// kernel: feature_encoder_3d.12
= control target key start
LH: loop header
LB: loop body
LE: loop exit
PB: predicated region body
PF: predicated region fallthrough
CT: control target
= control target key end

     0   :  { %s2913_s12 = smov 0   ;;  %s3724_s0 = inlined_call_operand.vmem [shape: bf16[2,4,4,4,64], index: 0, kind: input, shape index: {}]   ;;  %s3725_s1 = inlined_call_operand.vmem [shape: bf16[9,192,64], index: 1, kind: input, shape index: {}]   ;;  %s3726_s2 = inlined_call_operand.vmem [shape: bf16[2,8,64], index: 2, kind: output, shape index: {0}]   ;;  %s3727_s3 = inlined_call_operand.vmem [shape: f32[2,2,64], index: 3, kind: output, shape index: {1}]  }
   0x1 LB: > { %s2411_s13 = sadd.s32 4294967295, %s2887_s12   ;;  %p2415_p0 = scmp.ge.s32.totalorder %s2887_s12, 1  ;;  %s2887_s12 = sphi %s2913_s12, %s14_s12  }
   0x2   : > { %p140_p1 = scmp.lt.s32.totalorder %s2887_s12, 3 }
   0x4   : > { %p141_p2 = pnand %p2415_p0, %p140_p1 }
   0x5   : > { %p167_p3 = scmp.lt.s32.totalorder (!%p141_p2), %s2411_s13, 1  ;;  %v216_v0 = vlaneseq (!%p141_p2)  ;;  %v2889_v1 = vmov (!%p141_p2), 1983009808   ;;  %v2773_v3 = vld [vmem:[%s3725_s1 + $0x180] sm:$0xff] (!%p141_p2)   ;;  %v2890_v5 = vmov (!%p141_p2), 0   ;;  %v2775_v8 = vld [vmem:[%s3725_s1 + $0x188] sm:$0xff] (!%p141_p2)  }
   0x6   : > { %144 = sbr.rel (%p141_p2) target bundleno = 583 (0x247), region = 28  ;;  %v214_v2 = vunpack.c.l.s4 (!%p141_p2), %v2889_v1  ;;  %1520 = vmatprep.subr.bf16.mxu0 (!%p141_p2), %v2890_v5  ;;  %787 = vmatprep.subr.bf16.mxu1 (!%p141_p2), %v2890_v5  ;;  %v2774_v7 = vld [vmem:[%s3725_s1 + $0x60] sm:$0xff] (!%p141_p2)   ;;  %v2776_v10 = vld [vmem:[%s3725_s1 + $0x68] sm:$0xff] (!%p141_p2)   ;;  %v2777_v48 = vld [vmem:[%s3725_s1 + $0x190] sm:$0xff] (!%p141_p2)   ;;  %s2891_s30 = smov (!%p141_p2), 64   ;;  %vm485_vm0 = vcmask (!%p141_p2), 523264  }
   0x7   : > { %v2926_v4 = vshrl.u32 (!%p141_p2), %v216_v0, 7  ;;  %1521 = vmatpush1.bf16.msra.mxu0 (!%p141_p2), %v2773_v3  ;;  %788 = vmatpush1.bf16.msra.mxu1 (!%p141_p2), %v2774_v7  ;;  %v2778_v52 = vld [vmem:[%s3725_s1 + $0x70] sm:$0xff] (!%p141_p2)   ;;  %v2779_v59 = vld [vmem:[%s3725_s1 + $0x198] sm:$0xff] (!%p141_p2)   ;;  %vm2306_vm1 = vcmask (!%p141_p2), 519168   ;;  %vm2323_vm2 = vcmask (!%p141_p2), 1040384   ;;  %vm2325_vm3 = vcmask (!%p141_p2), 517120  }
   0x8   : > { %v215_v6 = vunpack.c.0.s8 (!%p141_p2), %v214_v2  ;;  %1522 = vmatprep.subr.bf16.mxu0 (!%p141_p2), %v2890_v5  ;;  %789 = vmatprep.subr.bf16.mxu1 (!%p141_p2), %v2890_v5  ;;  %v2780_v60 = vld [vmem:[%s3725_s1 + $0x78] sm:$0xff] (!%p141_p2)  }
   0xa   : > { %v2944_v9 = vsub.s32 (!%p141_p2), %v215_v6, %v2926_v4 }
   0xb   : > { %1523 = vmatpush1.bf16.msra.mxu0 (!%p141_p2), %v2775_v8  ;;  %790 = vmatpush1.bf16.msra.mxu1 (!%p141_p2), %v2776_v10 }
   0xc   : > { %1524 = vmatprep.subr.bf16.mxu0 (!%p141_p2), %v2890_v5  ;;  %791 = vmatprep.subr.bf16.mxu1 (!%p141_p2), %v2890_v5 }
   0xd   : > { %s3729_s13 = smov (!%p167_p3, %s2411_s13), 1 }
   0xe   : > { %s2731_s18 = sshll.u32 %s3729_s13, 5  ;;  %s2418_s9 = sshll.u32 %s3729_s13, 2 }
   0xf   : > { %s2941_s23 = scalar_lea.vmem %s3724_s0, %s2731_s18  ;;  %1525 = vmatpush1.bf16.msra.mxu0 %v2777_v48  ;;  %792 = vmatpush1.bf16.msra.mxu1 %v2778_v52  ;;  %s175_s14 = scalar_lea.vmem %s3726_s2, %s2418_s9 }
  0x10   : > { %v2950_v11 = vld [vmem:[%s2941_s23 + $0x12] sm:$0x3]  ;;  %v2953_v12 = vld [vmem:[%s2941_s23 + $0xa] sm:$0x3]  ;;  %v2956_v13 = vld [vmem:[%s2941_s23 + $0x14] sm:$0x3]  ;;  %1526 = vmatprep.subr.bf16.mxu0 %v2890_v5  ;;  %793 = vmatprep.subr.bf16.mxu1 %v2890_v5 }
  0x11   : > { %v2961_v14 = vrot.slane %v2950_v11, %v2944_v9  ;;  %v2965_v15 = vrot.slane %v2953_v12, %v2944_v9  ;;  %v2969_v16 = vrot.slane %v2956_v13, %v2944_v9  ;;  %v2972_v17 = vld [vmem:[%s2941_s23 + $0xc] sm:$0x3]  ;;  %v2975_v18 = vld [vmem:[%s2941_s23 + $0x4] sm:$0x3]  ;;  %v2978_v19 = vld [vmem:[%s2941_s23 + $0x2] sm:$0x3] }
  0x12   : > { %v2982_v20 = vrot.slane %v2972_v17, %v2944_v9  ;;  %v2986_v21 = vrot.slane %v2975_v18, %v2944_v9  ;;  %v2990_v22 = vrot.slane %v2978_v19, %v2944_v9  ;;  %v2998_v27 = vld [vmem:[%s2941_s23 + $0x16] sm:$0x3]  ;;  %v3004_v31 = vld [vmem:[%s2941_s23 + $0xe] sm:$0x3]  ;;  %v3010_v36 = vld [vmem:[%s2941_s23 + $0x8] sm:$0x3] }
  0x13   : > { %v389_v23 = vshrl.u32 %v2961_v14, 16  ;;  %v391_v24 = vshll.u32 %v2961_v14, 16  ;;  %v361_v25 = vshrl.u32 %v2965_v15, 16  ;;  %v363_v26 = vshll.u32 %v2965_v15, 16  ;;  %v3015_v41 = vld [vmem:[%s2941_s23] sm:$0x3]  ;;  %1527 = vmatpush1.bf16.msra.mxu0 %v2779_v59  ;;  %794 = vmatpush1.bf16.msra.mxu1 %v2780_v60 }
  0x14   : > { %v396_v28 = vshrl.u32 %v2969_v16, 16  ;;  %v398_v29 = vshll.u32 %v2969_v16, 16  ;;  %v370_v30 = vshll.u32 %v2982_v20, 16  ;;  %v368_v34 = vshrl.u32 %v2982_v20, 16  ;;  %v3022_v46 = vld [vmem:[%s2941_s23 + $0x18] sm:$0x3]  ;;  %1528 = vmatprep.subr.bf16.mxu0 %v2890_v5  ;;  %795 = vmatprep.subr.bf16.mxu1 %v2890_v5 }
  0x15   : > { %v393_v32 = vrot.slane %v391_v24, 1  ;;  %v365_v33 = vrot.slane %v363_v26, 1  ;;  %v342_v35 = vshll.u32 %v2986_v21, 16  ;;  %v340_v39 = vshrl.u32 %v2986_v21, 16  ;;  %v3025_v47 = vld [vmem:[%s2941_s23 + $0x10] sm:$0x3] }
  0x16   : > { %v400_v37 = vrot.slane %v398_v29, 1  ;;  %v372_v38 = vrot.slane %v370_v30, 1  ;;  %v335_v40 = vshll.u32 %v2990_v22, 16  ;;  %v3019_v45 = vrot.slane %v2998_v27, %v2944_v9  ;;  %v3061_v63 = vld [vmem:[%s2941_s23 + $0x6] sm:$0x3]  ;;  %s2419_s15 = sshll.u32 %s3729_s13, 1 }
  0x17   : > { %v394_v42 = vor.u32 %v393_v32, %v389_v23  ;;  %v366_v43 = vor.u32 %v365_v33, %v361_v25  ;;  %v344_v44 = vrot.slane %v342_v35, 1  ;;  %v333_v49 = vshrl.u32 %v2990_v22, 16  ;;  %v3072_v6 = vld [vmem:[%s2941_s23 + $0x1a] sm:$0x3]  ;;  %v2781_v25 = vld [vmem:[%s3725_s1 + $0x1a0] sm:$0xff]   ;;  %s179_s17 = scalar_lea.vmem %s3727_s3, %s2419_s15 }
  0x18   : > { %v337_v50 = vrot.slane %v335_v40, 1  ;;  %v3033_v51 = vrot.slane %v3004_v31, %v2944_v9  ;;  %v401_v53 = vor.u32 %v400_v37, %v396_v28  ;;  %v373_v54 = vor.u32 %v372_v38, %v368_v34  ;;  %v2782_v26 = vld [vmem:[%s3725_s1 + $0x80] sm:$0xff]   ;;  %v3088_v30 = vld [vmem:[%s2941_s23 + $0x1e] sm:$0x3]  ;;  %v3104_v40 = vld [vmem:[%s2941_s23 + $0x1c] sm:$0x3]  ;;  %1529 = vmatpush1.bf16.msra.mxu0 %v2781_v25 }
  0x19   : > { %455 = vrot.lane.b32.xlu1 %v394_v42, %s2891_s30  ;;  %447 = vrot.lane.b32.xlu0 %v366_v43, %s2891_s30  ;;  %v405_v55 = vshll.u32 %v3019_v45, 16  ;;  %v3043_v56 = vrot.slane %v3010_v36, %v2944_v9  ;;  %v3048_v58 = vrot.slane %v3015_v41, %v2944_v9  ;;  %v345_v61 = vor.u32 %v344_v44, %v340_v39  ;;  %v2783_v42 = vld [vmem:[%s3725_s1 + $0x1a8] sm:$0xff]   ;;  %v2788_v25 = vld [vmem:[%s3725_s1 + $0x98] sm:$0xff]  }
  0x1a   : > { %v377_v57 = vshll.u32 %v3033_v51, 16  ;;  %v3058_v62 = vrot.slane %v3022_v46, %v2944_v9  ;;  %v338_v0 = vor.u32 %v337_v50, %v333_v49  ;;  %v403_v1 = vshrl.u32 %v3019_v45, 16  ;;  %796 = vmatpush1.bf16.msra.mxu1 %v2782_v26  ;;  %v2784_v43 = vld [vmem:[%s3725_s1 + $0x88] sm:$0xff]   ;;  %1530 = vmatprep.subr.bf16.mxu0 %v2890_v5 }
  0x1b   : > { %v356_v2 = vshll.u32 %v3043_v56, 16  ;;  %v3069_v3 = vrot.slane %v3025_v47, %v2944_v9  ;;  %v407_v7 = vrot.slane %v405_v55, 1  ;;  %v375_v8 = vshrl.u32 %v3033_v51, 16  ;;  %797 = vmatprep.subr.bf16.mxu1 %v2890_v5  ;;  %v2785_v55 = vld [vmem:[%s3725_s1 + $0x1b0] sm:$0xff]  }
  0x1c   : > { %v379_v10 = vrot.slane %v377_v57, 1  ;;  %v328_v23 = vshll.u32 %v3048_v58, 16  ;;  %v354_v24 = vshrl.u32 %v3043_v56, 16  ;;  %v326_v28 = vshrl.u32 %v3048_v58, 16  ;;  %v2786_v57 = vld [vmem:[%s3725_s1 + $0x90] sm:$0xff]   ;;  %1531 = vmatpush1.bf16.msra.mxu0 %v2783_v42  ;;  %v2791_v42 = vld [vmem:[%s3725_s1 + $0x1c8] sm:$0xff]  }
  0x1d   : > { %457 = vrot.lane.b32.xlu1 %v401_v53, %s2891_s30  ;;  %449 = vrot.lane.b32.xlu0 %v373_v54, %s2891_s30  ;;  %v412_v29 = vshll.u32 %v3058_v62, 16  ;;  %v358_v32 = vrot.slane %v356_v2, 1  ;;  %v384_v33 = vshll.u32 %v3069_v3, 16  ;;  %v3095_v34 = vrot.slane %v3061_v63, %v2944_v9 }
  0x1e   : > { %v408_v35 = vor.u32 %v407_v7, %v403_v1  ;;  %v380_v37 = vor.u32 %v379_v10, %v375_v8  ;;  %v330_v38 = vrot.slane %v328_v23, 1  ;;  %v3101_v39 = vrot.slane %v3072_v6, %v2944_v9  ;;  %798 = vmatpush1.bf16.msra.mxu1 %v2784_v43  ;;  %1532 = vmatprep.subr.bf16.mxu0 %v2890_v5  ;;  %v2787_v8 = vld [vmem:[%s3725_s1 + $0x1b8] sm:$0xff]  }
  0x1f   : > { %v410_v44 = vshrl.u32 %v3058_v62, 16  ;;  %v414_v48 = vrot.slane %v412_v29, 1  ;;  %v382_v49 = vshrl.u32 %v3069_v3, 16  ;;  %v359_v50 = vor.u32 %v358_v32, %v354_v24  ;;  %799 = vmatprep.subr.bf16.mxu1 %v2890_v5 }
  0x20   : > { %v386_v52 = vrot.slane %v384_v33, 1  ;;  %v349_v53 = vshll.u32 %v3095_v34, 16  ;;  %v3119_v54 = vrot.slane %v3088_v30, %v2944_v9  ;;  %v331_v59 = vor.u32 %v330_v38, %v326_v28  ;;  %1533 = vmatpush1.bf16.msra.mxu0 %v2785_v55  ;;  %v2790_v38 = vld [vmem:[%s3725_s1 + $0xa0] sm:$0xff]  }
  0x21   : > { %441 = vrot.lane.b32.xlu1 %v345_v61, %s2891_s30  ;;  %439 = vrot.lane.b32.xlu0 %v338_v0, %s2891_s30  ;;  %v347_v60 = vshrl.u32 %v3095_v34, 16  ;;  %v419_v61 = vshll.u32 %v3101_v39, 16  ;;  %v3133_v0 = vrot.slane %v3104_v40, %v2944_v9  ;;  %v417_v2 = vshrl.u32 %v3101_v39, 16 }
  0x22   : > { %v351_v1 = vrot.slane %v349_v53, 1  ;;  %v433_v7 = vshll.u32 %v3119_v54, 16  ;;  %v415_v9 = vor.u32 %v414_v48, %v410_v44  ;;  %v387_v10 = vor.u32 %v386_v52, %v382_v49  ;;  %800 = vmatpush1.bf16.msra.mxu1 %v2786_v57  ;;  %1534 = vmatprep.subr.bf16.mxu0 %v2890_v5  ;;  %v2792_v48 = vld [vmem:[%s3725_s1 + $0xa8] sm:$0xff]   ;;  %v2793_v49 = vld [vmem:[%s3725_s1 + $0x1d0] sm:$0xff]   ;;  %v2795_v52 = vld [vmem:[%s3725_s1 + $0x1d8] sm:$0xff]  }
  0x23   : > { %v421_v23 = vrot.slane %v419_v61, 1  ;;  %v426_v24 = vshll.u32 %v3133_v0, 16  ;;  %801 = vmatprep.subr.bf16.mxu1 %v2890_v5  ;;  %v431_v26 = vshrl.u32 %v3119_v54, 16  ;;  %v424_v28 = vshrl.u32 %v3133_v0, 16  ;;  %v2796_v53 = vld [vmem:[%s3725_s1 + $0xb8] sm:$0xff]  }
  0x24   : > { %v352_v29 = vor.u32 %v351_v1, %v347_v60  ;;  %v435_v33 = vrot.slane %v433_v7, 1  ;;  %1535 = vmatpush1.bf16.msra.mxu0 %v2787_v8  ;;  %v2892_v55 = vmov 1966171168   ;;  %v478_v60 = vrot.slane %v2961_v14, 1 }
  0x25   : > { %459 = vrot.lane.b32.xlu1 %v408_v35, %s2891_s30  ;;  %451 = vrot.lane.b32.xlu0 %v380_v37, %s2891_s30  ;;  %v422_v32 = vor.u32 %v421_v23, %v417_v2  ;;  %v428_v35 = vrot.slane %v426_v24, 1  ;;  %v2789_v37 = vld [vmem:[%s3725_s1 + $0x1c0] sm:$0xff]   ;;  %v540_v57 = vunpack.c.l.s4 %v2892_v55  ;;  %v474_v61 = vrot.slane %v2965_v15, 1 }
  0x26   : > { %802 = vmatpush1.bf16.msra.mxu1 %v2788_v25  ;;  %1536 = vmatprep.subr.bf16.mxu0 %v2890_v5  ;;  %v436_v43 = vor.u32 %v435_v33, %v431_v26  ;;  %v479_v24 = vrot.slane %v2969_v16, 1  ;;  %v475_v14 = vrot.slane %v2982_v20, 1 }
  0x27   : > { %803 = vmatprep.subr.bf16.mxu1 %v2890_v5  ;;  %v429_v44 = vor.u32 %v428_v35, %v424_v28 }
  0x28   : > { %1537 = vmatpush1.bf16.msra.mxu0 %v2789_v37 }
  0x29   : > { %445 = vrot.lane.b32.xlu1 %v359_v50, %s2891_s30  ;;  %437 = vrot.lane.b32.xlu0 %v331_v59, %s2891_s30  ;;  %v2794_v50 = vld [vmem:[%s3725_s1 + $0xb0] sm:$0xff]   ;;  %v541_v59 = vunpack.c.0.s8 %v540_v57 }
  0x2a   : > { %804 = vmatpush1.bf16.msra.mxu1 %v2790_v38  ;;  %1538 = vmatprep.subr.bf16.mxu0 %v2890_v5 }
  0x2b   : > { %805 = vmatprep.subr.bf16.mxu1 %v2890_v5  ;;  %v3195_v1 = vsub.s32 %v541_v59, %v2926_v4 }
  0x2c   : > { %1539 = vmatpush1.bf16.msra.mxu0 %v2791_v42 }
  0x2d   : > { %461 = vrot.lane.b32.xlu1 %v415_v9, %s2891_s30  ;;  %453 = vrot.lane.b32.xlu0 %v387_v10, %s2891_s30 }
  0x2e   : > { %806 = vmatpush1.bf16.msra.mxu1 %v2792_v48  ;;  %1540 = vmatprep.subr.bf16.mxu0 %v2890_v5  ;;  %v480_v48 = vrot.slane %v3019_v45, 1  ;;  %v473_v45 = vrot.slane %v3043_v56, 1 }
  0x2f   : > { %807 = vmatprep.subr.bf16.mxu1 %v2890_v5 }
  0x30   : > { %1541 = vmatpush1.bf16.msra.mxu0 %v2793_v49  ;;  %v476_v49 = vrot.slane %v3033_v51, 1  ;;  %v469_v51 = vrot.slane %v3048_v58, 1  ;;  %v477_v58 = vrot.slane %v3069_v3, 1 }
  0x31   : > { %443 = vrot.lane.b32.xlu1 %v352_v29, %s2891_s30  ;;  %463 = vrot.lane.b32.xlu0 %v422_v32, %s2891_s30  ;;  %v470_v29 = vrot.slane %v2990_v22, 1 }
  0x32   : > { %808 = vmatpush1.bf16.msra.mxu1 %v2794_v50  ;;  %1542 = vmatprep.subr.bf16.mxu0 %v2890_v5 }
  0x33   : > { %809 = vmatprep.subr.bf16.mxu1 %v2890_v5 }
  0x34   : > { %1543 = vmatpush1.bf16.msra.mxu0 %v2795_v52 }
  0x35   : > { %467 = vrot.lane.b32.xlu1 %v436_v43, %s2891_s30  ;;  %465 = vrot.lane.b32.xlu0 %v429_v44, %s2891_s30 }
  0x36   : > { %810 = vmatpush1.bf16.msra.mxu1 %v2796_v53  ;;  %1702 = vmatprep.subr.bf16.mxu0 %v2890_v5 }
  0x37   : > { %935 = vmatprep.subr.bf16.mxu1 %v2890_v5 }
  0x8b   : > { %v456_v2 = vpop.permute.xlu1 %455  ;;  %v448_v7 = vpop.permute.xlu0 %447 }
  0x8c   : > { %v515_v8 = vsel %vm485_vm0, %v2950_v11, %v456_v2  ;;  %v503_v9 = vsel %vm485_vm0, %v2953_v12, %v448_v7  ;;  %v471_v12 = vrot.slane %v2986_v21, 1 }
  0x8d   : > { %v1198_v10 = vcombine.low %v515_v8, %v478_v60  ;;  %v583_v23 = vcombine.low %v503_v9, %v474_v61 }
  0x8f   : > { %v1205_v25 = vrot.slane %v1198_v10, %v3195_v1  ;;  %v590_v15 = vrot.slane %v583_v23, %v3195_v1  ;;  %v458_v4 = vpop.permute.xlu1 %457  ;;  %v450_v26 = vpop.permute.xlu0 %449 }
  0x90   : > { %v518_v28 = vsel %vm485_vm0, %v2956_v13, %v458_v4  ;;  %v506_v11 = vsel %vm485_vm0, %v2972_v17, %v450_v26 }
  0x91   : > { %v3212_v16 = vrot.slane %v1205_v25, %v3195_v1  ;;  %v3215_v20 = vrot.slane %v590_v15, %v3195_v1  ;;  %v1380_v32 = vcombine.low %v518_v28, %v479_v24  ;;  %v639_v33 = vcombine.low %v506_v11, %v475_v14  ;;  %v2797_v11 = vld [vmem:[%s3725_s1 + $0x1e0] sm:$0xff]  }
  0x93   : > { %v1387_v35 = vrot.slane %v1380_v32, %v3195_v1  ;;  %v646_v37 = vrot.slane %v639_v33, %v3195_v1  ;;  %v442_v13 = vpop.permute.xlu1 %441  ;;  %v440_v38 = vpop.permute.xlu0 %439  ;;  %v472_v32 = vrot.slane %v3095_v34, 1 }
  0x94   : > { %v494_v17 = vsel %vm485_vm0, %v2975_v18, %v442_v13  ;;  %v491_v21 = vsel %vm485_vm0, %v2978_v19, %v440_v38  ;;  %v482_v13 = vrot.slane %v3101_v39, 1  ;;  %v484_v38 = vrot.slane %v3119_v54, 1  ;;  %v2799_v39 = vld [vmem:[%s3725_s1 + $0x1e8] sm:$0xff]  }
  0x95   : > { %v1394_v22 = vrot.slane %v1387_v35, %v3195_v1  ;;  %v653_v42 = vrot.slane %v646_v37, %v3195_v1  ;;  %v624_v43 = vcombine.low %v494_v17, %v471_v12  ;;  %v553_v44 = vcombine.low %v491_v21, %v470_v29 }
  0x97   : > { %v1420_v50 = vcombine.low %v3212_v16, %v1394_v22  ;;  %v680_v52 = vcombine.low %v3215_v20, %v653_v42  ;;  %v631_v53 = vrot.slane %v624_v43, %v3195_v1  ;;  %v560_v18 = vrot.slane %v553_v44, %v3195_v1  ;;  %v460_v55 = vpop.permute.xlu1 %459  ;;  %v452_v19 = vpop.permute.xlu0 %451 }
  0x98   : > { %v521_v57 = vsel %vm485_vm0, %v2998_v27, %v460_v55  ;;  %v509_v59 = vsel %vm485_vm0, %v3004_v31, %v452_v19  ;;  %v481_v27 = vrot.slane %v3058_v62, 1 }
  0x99   : > { %v3238_v60 = vrot.slane %v1420_v50, %v3195_v1  ;;  %v694_v61 = vrot.slane %v680_v52, %v3195_v1  ;;  %v3242_v2 = vrot.slane %v631_v53, %v3195_v1  ;;  %v567_v7 = vrot.slane %v560_v18, %v3195_v1 }
  0x9a   : > { %v1562_v8 = vcombine.low %v521_v57, %v480_v48  ;;  %v992_v9 = vcombine.low %v509_v59, %v476_v49 }
  0x9b   : > { %v446_v10 = vpop.permute.xlu1 %445  ;;  %v438_v31 = vpop.permute.xlu0 %437  ;;  %v1429_v56 = vcombine.high %v694_v61, %v3238_v60  ;;  %v1428_v23 = vcombine.low %v694_v61, %v3238_v60  ;;  %v679_v24 = vcombine.low %v567_v7, %v3242_v2 }
  0x9c   : > { %v1569_v14 = vrot.slane %v1562_v8, %v3195_v1  ;;  %v999_v25 = vrot.slane %v992_v9, %v3195_v1  ;;  %v500_v15 = vsel %vm485_vm0, %v3010_v36, %v446_v10  ;;  %v488_v62 = vsel %vm485_vm0, %v3015_v41, %v438_v31 }
  0x9d   : > { %v568_v4 = vcombine.low %v500_v15, %v473_v45  ;;  %v538_v26 = vcombine.low %v488_v62, %v469_v51  ;;  %v1443_v28 = vrot.slane %v1429_v56, %v3195_v1  ;;  %v1436_v3 = vrot.slane %v1428_v23, %v3195_v1 }
  0x9e   : > { %v1576_v12 = vrot.slane %v1569_v14, %v3195_v1  ;;  %v1006_v29 = vrot.slane %v999_v25, %v3195_v1  ;;  %v687_v36 = vrot.slane %v679_v24, %v3195_v1  ;;  %v483_v31 = vrot.slane %v3133_v0, 1 }
  0x9f   : > { %v575_v41 = vrot.slane %v568_v4, %v3195_v1  ;;  %v545_v33 = vrot.slane %v538_v26, %v3195_v1  ;;  %2580 = vmatprep.mubr.msk.bf16.mxu0 %vm485_vm0, %v1443_v28  ;;  %v462_v35 = vpop.permute.xlu1 %461  ;;  %v454_v37 = vpop.permute.xlu0 %453 }
  0xa0   : > { %v1602_v17 = vcombine.low %v1394_v22, %v1576_v12  ;;  %v1033_v21 = vcombine.low %v653_v42, %v1006_v29  ;;  %v524_v43 = vsel %vm485_vm0, %v3022_v46, %v462_v35  ;;  %v512_v34 = vsel %vm485_vm0, %v3025_v47, %v454_v37  ;;  %1553 = vmatmul.mubr.bf16.vlgmr.msra.gmra.mrb[0].mxu0 %v1436_v3 }
  0xa1   : > { %v582_v44 = vrot.slane %v575_v41, %v3195_v1  ;;  %v552_v48 = vrot.slane %v545_v33, %v3195_v1  ;;  %v1745_v49 = vcombine.low %v524_v43, %v481_v27  ;;  %v1183_v50 = vcombine.low %v512_v34, %v477_v58  ;;  %1703 = vmatpush1.bf16.msra.mxu0 %v2797_v11  ;;  %v2803_v11 = vld [vmem:[%s3725_s1 + $0x1f8] sm:$0xff]  }
  0xa2   : > { %v3280_v54 = vrot.slane %v1602_v17, %v3195_v1  ;;  %v3283_v46 = vrot.slane %v1033_v21, %v3195_v1  ;;  %1704 = vmatprep.subr.bf16.mxu0 %v2890_v5  ;;  %v696_v47 = vcombine.high %v687_v36, %v694_v61  ;;  %v695_v22 = vcombine.low %v687_v36, %v694_v61  ;;  %v2805_v21 = vld [vmem:[%s3725_s1 + $0x200] sm:$0xff]  }
  0xa3   : > { %v828_v42 = vcombine.low %v582_v44, %v3215_v20  ;;  %v827_v52 = vcombine.low %v552_v48, %v567_v7  ;;  %v1752_v53 = vrot.slane %v1745_v49, %v3195_v1  ;;  %v1190_v18 = vrot.slane %v1183_v50, %v3195_v1  ;;  %v444_v55 = vpop.permute.xlu1 %443  ;;  %v464_v19 = vpop.permute.xlu0 %463  ;;  %v2798_v20 = vld [vmem:[%s3725_s1] sm:$0xff]  }
  0xa4   : > { %v497_v57 = vsel %vm485_vm0, %v3061_v63, %v444_v55  ;;  %v710_v59 = vrot.slane %v696_v47, %v3195_v1  ;;  %v527_v45 = vsel %vm485_vm0, %v3072_v6, %v464_v19  ;;  %v703_v51 = vrot.slane %v695_v22, %v3195_v1  ;;  %v2801_v63 = vld [vmem:[%s3725_s1 + $0x1f0] sm:$0xff]   ;;  %v2804_v47 = vld [vmem:[%s3725_s1 + $0x18] sm:$0xff]  }
  0xa5   : > { %v842_v61 = vrot.slane %v828_v42, %v3195_v1  ;;  %v835_v7 = vrot.slane %v827_v52, %v3195_v1  ;;  %v1759_v8 = vrot.slane %v1752_v53, %v3195_v1  ;;  %v1197_v9 = vrot.slane %v1190_v18, %v3195_v1  ;;  %1705 = vmatpush1.bf16.msra.mxu0 %v2799_v39  ;;  %v2807_v52 = vld [vmem:[%s3725_s1 + $0x208] sm:$0xff]  }
  0xa6   : > { %v977_v6 = vcombine.low %v497_v57, %v472_v32  ;;  %2456 = vmatprep.mubr.msk.bf16.mxu1 %vm485_vm0, %v710_v59  ;;  %v1760_v27 = vcombine.low %v527_v45, %v482_v13  ;;  %1706 = vmatprep.subr.bf16.mxu0 %v2890_v5  ;;  %v1611_v10 = vcombine.high %v3283_v46, %v3280_v54 }
  0xa7   : > { %v1238_v56 = vcombine.low %v1197_v9, %v3212_v16  ;;  %820 = vmatmul.mubr.bf16.vlgmr.msra.gmra.mrb[0].mxu1 %v703_v51  ;;  %v468_v58 = vpop.permute.xlu1 %467  ;;  %v466_v23 = vpop.permute.xlu0 %465  ;;  %v844_v24 = vcombine.high %v835_v7, %v842_v61  ;;  %v1610_v14 = vcombine.low %v3283_v46, %v3280_v54  ;;  %v843_v25 = vcombine.low %v835_v7, %v842_v61  ;;  %v2800_v16 = vld [vmem:[%s3725_s1 + $0x8] sm:$0xff]   ;;  %v2809_v9 = vld [vmem:[%s3725_s1 + $0x210] sm:$0xff]  }
  0xa8   : > { %v984_v15 = vrot.slane %v977_v6, %v3195_v1  ;;  %v1767_v62 = vrot.slane %v1760_v27, %v3195_v1  ;;  %936 = vmatpush1.bf16.msra.mxu1 %v2798_v20  ;;  %v533_v4 = vsel %vm485_vm0, %v3088_v30, %v468_v58  ;;  %v1625_v0 = vrot.slane %v1611_v10, %v3195_v1  ;;  %v2808_v27 = vld [vmem:[%s3725_s1 + $0x28] sm:$0xff]   ;;  %v2811_v10 = vld [vmem:[%s3725_s1 + $0x218] sm:$0xff]  }
  0xa9   : > { %v1245_v26 = vrot.slane %v1238_v56, %v3195_v1  ;;  %v2124_v28 = vcombine.low %v533_v4, %v484_v38  ;;  %937 = vmatprep.subr.bf16.mxu1 %v2890_v5  ;;  %v530_v3 = vsel %vm485_vm0, %v3104_v40, %v466_v23  ;;  %1707 = vmatpush1.bf16.msra.mxu0 %v2801_v63  ;;  %v2802_v38 = vld [vmem:[%s3725_s1 + $0x10] sm:$0xff]   ;;  %v2812_v56 = vld [vmem:[%s3725_s1 + $0x38] sm:$0xff]   ;;  %v2815_v58 = vld [vmem:[%s3725_s1 + $0x228] sm:$0xff]  }
  0xaa   : > { %v991_v30 = vrot.slane %v984_v15, %v3195_v1  ;;  %v1774_v12 = vrot.slane %v1767_v62, %v3195_v1  ;;  %2617 = vmatprep.mubr.msk.bf16.mxu0 %vm485_vm0, %v1625_v0  ;;  %v1942_v29 = vcombine.low %v530_v3, %v483_v31  ;;  %v858_v32 = vrot.slane %v844_v24, %v3195_v1  ;;  %v2813_v31 = vld [vmem:[%s3725_s1 + $0x220] sm:$0xff]   ;;  %v2817_v24 = vld [vmem:[%s3725_s1 + $0x230] sm:$0xff]   ;;  %v2820_v4 = vld [vmem:[%s3725_s1 + $0x58] sm:$0xff]  }
  0xab   : > { %v2131_v36 = vrot.slane %v2124_v28, %v3195_v1  ;;  %1708 = vmatprep.subr.bf16.mxu0 %v2890_v5  ;;  %v3335_v40 = vrot.slane %v1610_v14, %v3195_v1  ;;  %v3338_v41 = vrot.slane %v843_v25, %v3195_v1  ;;  %v1247_v33 = vcombine.high %v842_v61, %v1245_v26  ;;  %v2814_v23 = vld [vmem:[%s3725_s1 + $0x40] sm:$0xff]   ;;  %v2816_v14 = vld [vmem:[%s3725_s1 + $0x48] sm:$0xff]   ;;  %v2819_v25 = vld [vmem:[%s3725_s1 + $0x238] sm:$0xff]  }
  0xac   : > { %v1032_v35 = vcombine.low %v3242_v2, %v991_v30  ;;  %v1800_v37 = vcombine.low %v1759_v8, %v1774_v12  ;;  %v1949_v13 = vrot.slane %v1942_v29, %v3195_v1  ;;  %938 = vmatpush1.bf16.msra.mxu1 %v2800_v16  ;;  %2469 = vmatprep.mubr.msk.bf16.mxu1 %vm485_vm0, %v858_v32  ;;  %v2818_v15 = vld [vmem:[%s3725_s1 + $0x50] sm:$0xff]   ;;  %v2821_v62 = vld [vmem:[%s3725_s1 + $0x240] sm:$0xff]   ;;  %v2823_v0 = vld [vmem:[%s3725_s1 + $0x248] sm:$0xff]  }
  0xad   : > { %v2138_v17 = vrot.slane %v2131_v36, %v3195_v1  ;;  %939 = vmatprep.subr.bf16.mxu1 %v2890_v5  ;;  %1709 = vmatpush1.bf16.msra.mxu0 %v2803_v11  ;;  %v3352_v2 = vrot.slane %v1247_v33, %v3195_v1  ;;  %v1246_v43 = vcombine.low %v842_v61, %v1245_v26  ;;  %v2822_v16 = vld [vmem:[%s3725_s1 + $0xc0] sm:$0xff]   ;;  %v2824_v28 = vld [vmem:[%s3725_s1 + $0xc8] sm:$0xff]   ;;  %v2827_v3 = vld [vmem:[%s3725_s1 + $0x258] sm:$0xff]  }
  0xae   : > { %v1040_v34 = vrot.slane %v1032_v35, %v3195_v1  ;;  %v1807_v44 = vrot.slane %v1800_v37, %v3195_v1  ;;  %v1956_v48 = vrot.slane %v1949_v13, %v3195_v1  ;;  %1710 = vmatprep.subr.bf16.mxu0 %v2890_v5  ;;  %v2826_v11 = vld [vmem:[%s3725_s1 + $0xd0] sm:$0xff]   ;;  %v2829_v30 = vld [vmem:[%s3725_s1 + $0x260] sm:$0xff]   ;;  %v2831_v29 = vld [vmem:[%s3725_s1 + $0x268] sm:$0xff]  }
  0xaf   : > { %v3359_v49 = vrot.slane %v1246_v43, %v3195_v1  ;;  %v2830_v32 = vld [vmem:[%s3725_s1 + $0xe0] sm:$0xff]   ;;  %v2833_v36 = vld [vmem:[%s3725_s1 + $0x270] sm:$0xff]   ;;  %v2836_v37 = vld [vmem:[%s3725_s1 + $0xf8] sm:$0xff]  }
  0xb0   : > { %v1982_v50 = vcombine.low %v1774_v12, %v1956_v48  ;;  %v2164_v39 = vcombine.low %v1956_v48, %v2138_v17  ;;  %940 = vmatpush1.bf16.msra.mxu1 %v2802_v38  ;;  %v1809_v22 = vcombine.high %v1245_v26, %v1807_v44  ;;  %v1049_v42 = vcombine.high %v1040_v34, %v3283_v46  ;;  %v2828_v12 = vld [vmem:[%s3725_s1 + $0xd8] sm:$0xff]   ;;  %v2834_v33 = vld [vmem:[%s3725_s1 + $0xf0] sm:$0xff]   ;;  %v2837_v35 = vld [vmem:[%s3725_s1 + $0x280] sm:$0xff]  }
  0xb1   : > { %941 = vmatprep.subr.bf16.mxu1 %v2890_v5  ;;  %1711 = vmatpush1.bf16.msra.mxu0 %v2805_v21  ;;  %v1808_v53 = vcombine.low %v1245_v26, %v1807_v44  ;;  %v1048_v18 = vcombine.low %v1040_v34, %v3283_v46  ;;  %v2806_v46 = vld [vmem:[%s3725_s1 + $0x20] sm:$0xff]   ;;  %v2825_v26 = vld [vmem:[%s3725_s1 + $0x250] sm:$0xff]   ;;  %v2839_v13 = vld [vmem:[%s3725_s1 + $0x288] sm:$0xff]  }
  0xb2   : > { %v1989_v55 = vrot.slane %v1982_v50, %v3195_v1  ;;  %v2171_v19 = vrot.slane %v2164_v39, %v3195_v1  ;;  %1712 = vmatprep.subr.bf16.mxu0 %v2890_v5  ;;  %v1823_v57 = vrot.slane %v1809_v22, %v3195_v1  ;;  %v3375_v59 = vrot.slane %v1049_v42, %v3195_v1  ;;  %v2838_v38 = vld [vmem:[%s3725_s1 + $0x100] sm:$0xff]   ;;  %v2841_v17 = vld [vmem:[%s3725_s1 + $0x290] sm:$0xff]   ;;  %v2840_v21 = vld [vmem:[%s3725_s1 + $0x108] sm:$0xff]  }
  0xb3   : > { %v3378_v45 = vrot.slane %v1808_v53, %v3195_v1  ;;  %v3381_v51 = vrot.slane %v1048_v18, %v3195_v1  ;;  %v2843_v43 = vld [vmem:[%s3725_s1 + $0x298] sm:$0xff]   ;;  %v2842_v34 = vld [vmem:[%s3725_s1 + $0x110] sm:$0xff]   ;;  %v2845_v44 = vld [vmem:[%s3725_s1 + $0x2a0] sm:$0xff]  }
  0xb4   : > { %942 = vmatpush1.bf16.msra.mxu1 %v2804_v47  ;;  %v1991_v20 = vcombine.high %v3238_v60, %v1989_v55  ;;  %v1990_v61 = vcombine.low %v3238_v60, %v1989_v55  ;;  %v2173_v7 = vcombine.high %v3280_v54, %v2171_v19  ;;  %v2172_v8 = vcombine.low %v3280_v54, %v2171_v19  ;;  %v2844_v48 = vld [vmem:[%s3725_s1 + $0x118] sm:$0xff]   ;;  %v2847_v50 = vld [vmem:[%s3725_s1 + $0x2a8] sm:$0xff]   ;;  %v2846_v39 = vld [vmem:[%s3725_s1 + $0x120] sm:$0xff]  }
  0xb5   : > { %943 = vmatprep.subr.bf16.mxu1 %v2890_v5  ;;  %1713 = vmatpush1.bf16.msra.mxu0 %v2807_v52  ;;  %v2849_v47 = vld [vmem:[%s3725_s1 + $0x2b0] sm:$0xff]   ;;  %v2848_v22 = vld [vmem:[%s3725_s1 + $0x128] sm:$0xff]   ;;  %v2851_v42 = vld [vmem:[%s3725_s1 + $0x2b8] sm:$0xff]  }
  0xb6   : > { %1714 = vmatprep.subr.bf16.mxu0 %v2890_v5  ;;  %v3396_v63 = vrot.slane %v1991_v20, %v3195_v1  ;;  %v3399_v6 = vrot.slane %v1990_v61, %v3195_v1  ;;  %v3402_v60 = vrot.slane %v2173_v7, %v3195_v1  ;;  %v3405_v54 = vrot.slane %v2172_v8, %v3195_v1  ;;  %v2810_v1 = vld [vmem:[%s3725_s1 + $0x30] sm:$0xff]   ;;  %v2852_v53 = vld [vmem:[%s3725_s1 + $0x138] sm:$0xff]   ;;  %v2855_v18 = vld [vmem:[%s3725_s1 + $0x2c8] sm:$0xff]  }
  0xb7   : > { %v2850_v52 = vld [vmem:[%s3725_s1 + $0x130] sm:$0xff]   ;;  %v2854_v55 = vld [vmem:[%s3725_s1 + $0x140] sm:$0xff]   ;;  %v2863_v20 = vld [vmem:[%s3725_s1 + $0x2e8] sm:$0xff]  }
  0xb8   : > { %944 = vmatpush1.bf16.msra.mxu1 %v2806_v46  ;;  %v2857_v19 = vld [vmem:[%s3725_s1 + $0x2d0] sm:$0xff]   ;;  %v2860_v46 = vld [vmem:[%s3725_s1 + $0x158] sm:$0xff]   ;;  %v2862_v61 = vld [vmem:[%s3725_s1 + $0x160] sm:$0xff]  }
  0xb9   : > { %945 = vmatprep.subr.bf16.mxu1 %v2890_v5  ;;  %1715 = vmatpush1.bf16.msra.mxu0 %v2809_v9  ;;  %v2865_v7 = vld [vmem:[%s3725_s1 + $0x2f0] sm:$0xff]   ;;  %v2864_v8 = vld [vmem:[%s3725_s1 + $0x168] sm:$0xff]   ;;  %v2867_v9 = vld [vmem:[%s3725_s1 + $0x2f8] sm:$0xff]  }
  0xba   : > { %1716 = vmatprep.subr.bf16.mxu0 %v2890_v5 }
  0xbc   : > { %946 = vmatpush1.bf16.msra.mxu1 %v2808_v27  ;;  %v2869_v27 = vld [vmem:[%s3725_s1 + $0x300] sm:$0xff]  }
  0xbd   : > { %947 = vmatprep.subr.bf16.mxu1 %v2890_v5  ;;  %1717 = vmatpush1.bf16.msra.mxu0 %v2811_v10  ;;  %v2868_v10 = vld [vmem:[%s3725_s1 + $0x178] sm:$0xff]  }
  0xbe   : > { %1718 = vmatprep.subr.bf16.mxu0 %v2890_v5 }
  0xc0   : > { %948 = vmatpush1.bf16.msra.mxu1 %v2810_v1  ;;  %v2870_v1 = vld [vmem:[%s3725_s1 + $0x308] sm:$0xff]  }
  0xc1   : > { %949 = vmatprep.subr.bf16.mxu1 %v2890_v5  ;;  %1719 = vmatpush1.bf16.msra.mxu0 %v2813_v31  ;;  %v2872_v31 = vld [vmem:[%s3725_s1 + $0x318] sm:$0xff]  }
  0xc2   : > { %1720 = vmatprep.subr.bf16.mxu0 %v2890_v5 }
  0xc4   : > { %950 = vmatpush1.bf16.msra.mxu1 %v2812_v56  ;;  %v2874_v56 = vld [vmem:[%s3725_s1 + $0x328] sm:$0xff]  }
  0xc5   : > { %951 = vmatprep.subr.bf16.mxu1 %v2890_v5  ;;  %1721 = vmatpush1.bf16.msra.mxu0 %v2815_v58  ;;  %v2876_v58 = vld [vmem:[%s3725_s1 + $0x338] sm:$0xff]  }
  0xc6   : > { %1722 = vmatprep.subr.bf16.mxu0 %v2890_v5 }
  0xc8   : > { %952 = vmatpush1.bf16.msra.mxu1 %v2814_v23  ;;  %v2877_v23 = vld [vmem:[%s3725_s1 + $0x340] sm:$0xff]  }
  0xc9   : > { %953 = vmatprep.subr.bf16.mxu1 %v2890_v5  ;;  %1723 = vmatpush1.bf16.msra.mxu0 %v2817_v24  ;;  %v2878_v24 = vld [vmem:[%s3725_s1 + $0x348] sm:$0xff]  }
  0xca   : > { %1724 = vmatprep.subr.bf16.mxu0 %v2890_v5 }
  0xcc   : > { %954 = vmatpush1.bf16.msra.mxu1 %v2816_v14  ;;  %v2879_v14 = vld [vmem:[%s3725_s1 + $0x350] sm:$0xff]  }
  0xcd   : > { %955 = vmatprep.subr.bf16.mxu1 %v2890_v5  ;;  %1725 = vmatpush1.bf16.msra.mxu0 %v2819_v25  ;;  %v2880_v25 = vld [vmem:[%s3725_s1 + $0x358] sm:$0xff]  }
  0xce   : > { %1900 = vmatprep.subr.bf16.mxu0 %v2890_v5 }
  0xd0   : > { %956 = vmatpush1.bf16.msra.mxu1 %v2818_v15  ;;  %1735 = vmatmul.mubr.bf16.vlgmr.msra.gmra.mrb[0].mxu0 %v3335_v40  ;;  %v2832_v40 = vld [vmem:[%s3725_s1 + $0xe8] sm:$0xff]  }
  0xd1   : > { %957 = vmatprep.subr.bf16.mxu1 %v2890_v5  ;;  %1901 = vmatpush1.bf16.msra.mxu0 %v2821_v62 }
  0xd2   : > { %2654 = vmatprep.mubr.msk.bf16.mxu0 %vm485_vm0, %v1823_v57  ;;  %1902 = vmatprep.subr.bf16.mxu0 %v2890_v5  ;;  %v2856_v57 = vld [vmem:[%s3725_s1 + $0x148] sm:$0xff]  }
  0xd4   : > { %958 = vmatpush1.bf16.msra.mxu1 %v2820_v4 }
  0xd5   : > { %1140 = vmatprep.subr.bf16.mxu1 %v2890_v5  ;;  %1903 = vmatpush1.bf16.msra.mxu0 %v2823_v0 }
  0xd6   : > { %1904 = vmatprep.subr.bf16.mxu0 %v2890_v5 }
  0xd7   : > { %968 = vmatmul.mubr.bf16.vlgmr.msra.gmra.mrb[0].mxu1 %v3338_v41  ;;  %v2835_v41 = vld [vmem:[%s3725_s1 + $0x278] sm:$0xff]  }
  0xd8   : > { %1141 = vmatpush1.bf16.msra.mxu1 %v2822_v16  ;;  %2506 = vmatprep.mubr.msk.bf16.mxu1 %vm485_vm0, %v3375_v59  ;;  %v2859_v59 = vld [vmem:[%s3725_s1 + $0x2d8] sm:$0xff]  }
  0xd9   : > { %1142 = vmatprep.subr.bf16.mxu1 %v2890_v5  ;;  %1905 = vmatpush1.bf16.msra.mxu0 %v2825_v26 }
  0xda   : > { %1906 = vmatprep.subr.bf16.mxu0 %v2890_v5 }
  0xdc   : > { %1143 = vmatpush1.bf16.msra.mxu1 %v2824_v28 }
  0xdd   : > { %1144 = vmatprep.subr.bf16.mxu1 %v2890_v5  ;;  %1907 = vmatpush1.bf16.msra.mxu0 %v2827_v3 }
  0xde   : > { %1908 = vmatprep.subr.bf16.mxu0 %v2890_v5 }
  0xe0   : > { %1145 = vmatpush1.bf16.msra.mxu1 %v2826_v11 }
  0xe1   : > { %1146 = vmatprep.subr.bf16.mxu1 %v2890_v5  ;;  %1909 = vmatpush1.bf16.msra.mxu0 %v2829_v30 }
  0xe2   : > { %1910 = vmatprep.subr.bf16.mxu0 %v2890_v5 }
  0xe4   : > { %1147 = vmatpush1.bf16.msra.mxu1 %v2828_v12 }
  0xe5   : > { %1148 = vmatprep.subr.bf16.mxu1 %v2890_v5  ;;  %1911 = vmatpush1.bf16.msra.mxu0 %v2831_v29 }
  0xe6   : > { %1912 = vmatprep.subr.bf16.mxu0 %v2890_v5 }
  0xe8   : > { %1149 = vmatpush1.bf16.msra.mxu1 %v2830_v32 }
  0xe9   : > { %1150 = vmatprep.subr.bf16.mxu1 %v2890_v5  ;;  %1913 = vmatpush1.bf16.msra.mxu0 %v2833_v36 }
  0xea   : > { %1914 = vmatprep.subr.bf16.mxu0 %v2890_v5 }
  0xec   : > { %1151 = vmatpush1.bf16.msra.mxu1 %v2832_v40 }
  0xed   : > { %1152 = vmatprep.subr.bf16.mxu1 %v2890_v5  ;;  %1915 = vmatpush1.bf16.msra.mxu0 %v2835_v41 }
  0xee   : > { %1916 = vmatprep.subr.bf16.mxu0 %v2890_v5 }
  0xf0   : > { %1153 = vmatpush1.bf16.msra.mxu1 %v2834_v33 }
  0xf1   : > { %1154 = vmatprep.subr.bf16.mxu1 %v2890_v5  ;;  %1917 = vmatpush1.bf16.msra.mxu0 %v2837_v35 }
  0xf2   : > { %1918 = vmatprep.subr.bf16.mxu0 %v2890_v5 }
  0xf4   : > { %1155 = vmatpush1.bf16.msra.mxu1 %v2836_v37 }
  0xf5   : > { %1156 = vmatprep.subr.bf16.mxu1 %v2890_v5  ;;  %1919 = vmatpush1.bf16.msra.mxu0 %v2839_v13 }
  0xf6   : > { %1920 = vmatprep.subr.bf16.mxu0 %v2890_v5 }
  0xf8   : > { %1157 = vmatpush1.bf16.msra.mxu1 %v2838_v38 }
  0xf9   : > { %1158 = vmatprep.subr.bf16.mxu1 %v2890_v5  ;;  %1921 = vmatpush1.bf16.msra.mxu0 %v2841_v17 }
  0xfa   : > { %1922 = vmatprep.subr.bf16.mxu0 %v2890_v5 }
  0xfc   : > { %1159 = vmatpush1.bf16.msra.mxu1 %v2840_v21 }
  0xfd   : > { %1160 = vmatprep.subr.bf16.mxu1 %v2890_v5  ;;  %1923 = vmatpush1.bf16.msra.mxu0 %v2843_v43 }
  0xfe   : > { %2082 = vmatprep.subr.bf16.mxu0 %v2890_v5 }
 0x100   : > { %1161 = vmatpush1.bf16.msra.mxu1 %v2842_v34  ;;  %1933 = vmatmul.mubr.bf16.vlgmr.msra.gmra.mrb[0].mxu0 %v3378_v45  ;;  %v2858_v45 = vld [vmem:[%s3725_s1 + $0x150] sm:$0xff]  }
 0x101   : > { %1162 = vmatprep.subr.bf16.mxu1 %v2890_v5  ;;  %2083 = vmatpush1.bf16.msra.mxu0 %v2845_v44 }
 0x102   : > { %2691 = vmatprep.mubr.msk.bf16.mxu0 %vm485_vm0, %v3396_v63  ;;  %2084 = vmatprep.subr.bf16.mxu0 %v2890_v5  ;;  %v2866_v63 = vld [vmem:[%s3725_s1 + $0x170] sm:$0xff]  }
 0x104   : > { %1163 = vmatpush1.bf16.msra.mxu1 %v2844_v48 }
 0x105   : > { %1338 = vmatprep.subr.bf16.mxu1 %v2890_v5  ;;  %2085 = vmatpush1.bf16.msra.mxu0 %v2847_v50 }
 0x106   : > { %2086 = vmatprep.subr.bf16.mxu0 %v2890_v5 }
 0x107   : > { %1173 = vmatmul.mubr.bf16.vlgmr.msra.gmra.mrb[0].mxu1 %v3381_v51  ;;  %v2861_v51 = vld [vmem:[%s3725_s1 + $0x2e0] sm:$0xff]  }
 0x108   : > { %1339 = vmatpush1.bf16.msra.mxu1 %v2846_v39  ;;  %2543 = vmatprep.mubr.msk.bf16.mxu1 %vm485_vm0, %v3352_v2  ;;  %v2853_v2 = vld [vmem:[%s3725_s1 + $0x2c0] sm:$0xff]  }
 0x109   : > { %1340 = vmatprep.subr.bf16.mxu1 %v2890_v5  ;;  %2087 = vmatpush1.bf16.msra.mxu0 %v2849_v47 }
 0x10a   : > { %2088 = vmatprep.subr.bf16.mxu0 %v2890_v5 }
 0x10c   : > { %1341 = vmatpush1.bf16.msra.mxu1 %v2848_v22 }
 0x10d   : > { %1342 = vmatprep.subr.bf16.mxu1 %v2890_v5  ;;  %2089 = vmatpush1.bf16.msra.mxu0 %v2851_v42 }
 0x10e   : > { %2090 = vmatprep.subr.bf16.mxu0 %v2890_v5 }
 0x110   : > { %1343 = vmatpush1.bf16.msra.mxu1 %v2850_v52 }
 0x111   : > { %1344 = vmatprep.subr.bf16.mxu1 %v2890_v5  ;;  %2091 = vmatpush1.bf16.msra.mxu0 %v2853_v2 }
 0x112   : > { %2092 = vmatprep.subr.bf16.mxu0 %v2890_v5 }
 0x114   : > { %1345 = vmatpush1.bf16.msra.mxu1 %v2852_v53 }
 0x115   : > { %1346 = vmatprep.subr.bf16.mxu1 %v2890_v5  ;;  %2093 = vmatpush1.bf16.msra.mxu0 %v2855_v18 }
 0x116   : > { %2094 = vmatprep.subr.bf16.mxu0 %v2890_v5 }
 0x118   : > { %1347 = vmatpush1.bf16.msra.mxu1 %v2854_v55 }
 0x119   : > { %1348 = vmatprep.subr.bf16.mxu1 %v2890_v5  ;;  %2095 = vmatpush1.bf16.msra.mxu0 %v2857_v19 }
 0x11a   : > { %2096 = vmatprep.subr.bf16.mxu0 %v2890_v5 }
 0x11c   : > { %1349 = vmatpush1.bf16.msra.mxu1 %v2856_v57 }
 0x11d   : > { %1350 = vmatprep.subr.bf16.mxu1 %v2890_v5  ;;  %2097 = vmatpush1.bf16.msra.mxu0 %v2859_v59 }
 0x11e   : > { %2098 = vmatprep.subr.bf16.mxu0 %v2890_v5 }
 0x120   : > { %1351 = vmatpush1.bf16.msra.mxu1 %v2858_v45 }
 0x121   : > { %1352 = vmatprep.subr.bf16.mxu1 %v2890_v5  ;;  %2099 = vmatpush1.bf16.msra.mxu0 %v2861_v51 }
 0x122   : > { %2100 = vmatprep.subr.bf16.mxu0 %v2890_v5 }
 0x124   : > { %1353 = vmatpush1.bf16.msra.mxu1 %v2860_v46 }
 0x125   : > { %1354 = vmatprep.subr.bf16.mxu1 %v2890_v5  ;;  %2101 = vmatpush1.bf16.msra.mxu0 %v2863_v20 }
 0x126   : > { %2102 = vmatprep.subr.bf16.mxu0 %v2890_v5 }
 0x128   : > { %1355 = vmatpush1.bf16.msra.mxu1 %v2862_v61 }
 0x129   : > { %1356 = vmatprep.subr.bf16.mxu1 %v2890_v5  ;;  %2103 = vmatpush1.bf16.msra.mxu0 %v2865_v7 }
 0x12a   : > { %2104 = vmatprep.subr.bf16.mxu0 %v2890_v5 }
 0x12c   : > { %1357 = vmatpush1.bf16.msra.mxu1 %v2864_v8 }
 0x12d   : > { %1358 = vmatprep.subr.bf16.mxu1 %v2890_v5  ;;  %2105 = vmatpush1.bf16.msra.mxu0 %v2867_v9 }
 0x12e   : > { %2264 = vmatprep.subr.bf16.mxu0 %v2890_v5 }
 0x130   : > { %1359 = vmatpush1.bf16.msra.mxu1 %v2866_v63  ;;  %2115 = vmatmul.mubr.bf16.vlgmr.msra.gmra.mrb[0].mxu0 %v3399_v6  ;;  %v2871_v6 = vld [vmem:[%s3725_s1 + $0x310] sm:$0xff]  }
 0x131   : > { %1360 = vmatprep.subr.bf16.mxu1 %v2890_v5  ;;  %2265 = vmatpush1.bf16.msra.mxu0 %v2869_v27 }
 0x132   : > { %2728 = vmatprep.mubr.msk.bf16.mxu0 %vm485_vm0, %v3402_v60  ;;  %2266 = vmatprep.subr.bf16.mxu0 %v2890_v5  ;;  %v2873_v60 = vld [vmem:[%s3725_s1 + $0x320] sm:$0xff]  }
 0x134   : > { %1361 = vmatpush1.bf16.msra.mxu1 %v2868_v10 }
 0x135   : > { %2267 = vmatpush1.bf16.msra.mxu0 %v2870_v1 }
 0x136   : > { %2268 = vmatprep.subr.bf16.mxu0 %v2890_v5 }
 0x137   : > { %1371 = vmatmul.mubr.bf16.vlgmr.msra.gmra.mrb[0].mxu1 %v3359_v49  ;;  %v2875_v49 = vld [vmem:[%s3725_s1 + $0x330] sm:$0xff]  }
 0x139   : > { %2269 = vmatpush1.bf16.msra.mxu0 %v2871_v6 }
 0x13a   : > { %2270 = vmatprep.subr.bf16.mxu0 %v2890_v5 }
 0x13d   : > { %2271 = vmatpush1.bf16.msra.mxu0 %v2872_v31 }
 0x13e   : > { %2272 = vmatprep.subr.bf16.mxu0 %v2890_v5 }
 0x141   : > { %2273 = vmatpush1.bf16.msra.mxu0 %v2873_v60 }
 0x142   : > { %2274 = vmatprep.subr.bf16.mxu0 %v2890_v5 }
 0x145   : > { %2275 = vmatpush1.bf16.msra.mxu0 %v2874_v56 }
 0x146   : > { %2276 = vmatprep.subr.bf16.mxu0 %v2890_v5 }
 0x149   : > { %2277 = vmatpush1.bf16.msra.mxu0 %v2875_v49 }
 0x14a   : > { %2278 = vmatprep.subr.bf16.mxu0 %v2890_v5 }
 0x14d   : > { %2279 = vmatpush1.bf16.msra.mxu0 %v2876_v58 }
 0x14e   : > { %2280 = vmatprep.subr.bf16.mxu0 %v2890_v5 }
 0x151   : > { %2281 = vmatpush1.bf16.msra.mxu0 %v2877_v23 }
 0x152   : > { %2282 = vmatprep.subr.bf16.mxu0 %v2890_v5 }
 0x155   : > { %2283 = vmatpush1.bf16.msra.mxu0 %v2878_v24 }
 0x156   : > { %2284 = vmatprep.subr.bf16.mxu0 %v2890_v5 }
 0x159   : > { %2285 = vmatpush1.bf16.msra.mxu0 %v2879_v14 }
 0x15a   : > { %2286 = vmatprep.subr.bf16.mxu0 %v2890_v5 }
 0x15d   : > { %2287 = vmatpush1.bf16.msra.mxu0 %v2880_v25 }
 0x160   : > { %2297 = vmatmul.mubr.bf16.vlgmr.msra.gmra.mrb[0].mxu0 %v3405_v54 }
 0x20a   : > { %v1372_v15 = vpop.f32.mrb[0].mxu1 }
 0x20b   : > { %v1374_v62 = vpop.f32.mrb[1].mxu1 }
 0x20c   : > { %v1375_v4 = vpop.f32.mrb[2].mxu1 }
 0x20d   : > { %v1376_v0 = vpop.f32.mrb[3].mxu1 }
 0x233   : > { %v2298_v16 = vpop.f32.mrb[0].mxu0 }
 0x234   : > { %v2732_v26 = vadd.f32 %v2298_v16, %v1372_v15  ;;  %v2300_v28 = vpop.f32.mrb[1].mxu0 }
 0x235   : > { %v2301_v3 = vpop.f32.mrb[2].mxu0 }
 0x236   : > { %v2305_v11 = vpack.c.bf16 %v2732_v26, %v2732_v26  ;;  %v2308_v5 = vsel %vm485_vm0, %v2732_v26, 0.0  ;;  %v2315_v30 = vmul.f32 %v2732_v26, %v2732_v26  ;;  %v2302_v54 = vpop.f32.mrb[3].mxu0 }
 0x237   : > { %v2309_v12 = vrot.slane %v2308_v5, 4 }
 0x238   : > { %2307 = vst.msk [vmem:[%s175_s14] sm:$0xf] %vm2306_vm1, %v2305_v11  ;;  %v2316_v29 = vsel %vm485_vm0, %v2315_v30, 0.0 }
 0x239   : > { %v2310_v32 = vadd.f32 %v2309_v12, %v2308_v5  ;;  %v2317_v36 = vrot.slane %v2316_v29, 4 }
 0x23b   : > { %v2311_v40 = vrot.slane %v2310_v32, 2  ;;  %v2318_v41 = vadd.f32 %v2317_v36, %v2316_v29 }
 0x23d   : > { %v2312_v33 = vadd.f32 %v2311_v40, %v2310_v32  ;;  %v2319_v35 = vrot.slane %v2318_v41, 2 }
 0x23f   : > { %v2313_v37 = vrot.slane %v2312_v33, 1  ;;  %v2320_v13 = vadd.f32 %v2319_v35, %v2318_v41 }
 0x241   : > { %v2321_v38 = vrot.slane %v2320_v13, 1  ;;  %v2314_v17 = vadd.f32 %v2313_v37, %v2312_v33 }
 0x243   : > { %v2322_v21 = vadd.f32 %v2321_v38, %v2320_v13 }
 0x245   : > { %v2324_v43 = vsel %vm2323_vm2, %v2314_v17, %v2322_v21 }
 0x246   : > { %2326 = vst.msk [vmem:[%s179_s17] sm:$0x3] %vm2325_vm3, %v2324_v43 }
 0x247 PF: > { %s14_s12 = sadd.s32 1, %s2887_s12  }
 0x248   : > { %p11_p4 = scmp.ge.s32.totalorder %s14_s12, 4  }
 0x24a   :  { %13 = sbr.rel (!%p11_p4) target bundleno = 1 (0x1), region = 78 }

</bundles_post_ra>
